<compile_context>
chip_gen: v7x
topology: tpu7x:2x2x1
jax: 0.10.0
libtpu: 0.0.40
codegen_flags: <defaults>
</compile_context>

<pallas_src>
import functools

import jax
import jax.numpy as jnp
from jax.experimental import pallas as pl
from jax.experimental.pallas import tpu as pltpu


# ----------------------------------------------------------------------------- conv kernel
def _conv3x3_relu_kernel(x_ref, h_ref, w_ref, b_ref, o_ref, *,
                         H, TW, Cin, Cout, w_true, fold_all, needs_mask):
    """3x3 'same' conv + bias + ReLU for one (batch, W-tile) block.

    x_ref: (1, H, TW, Cin)     center tile (bf16, auto-pipelined)
    h_ref: (1, H, 1, 2, Cin)   left/right 1-column halos of this tile (bf16)
    w_ref: (9*Cin, Cout) if fold_all else (3, 3*Cin, Cout)  (bf16)
    b_ref: (1, Cout)           (f32)
    o_ref: (1, H, TW, Cout)    (bf16)
    """
    xc = x_ref[...].reshape(H, TW, Cin)
    if needs_mask:
        # Last W-tile may overhang the true seq_len: overhung columns hold stale data
        # and must act like zero "same" padding.
        col0 = pl.program_id(1) * TW
        gcol = jax.lax.broadcasted_iota(jnp.int32, (H, TW, Cin), 1) + col0
        xc = jnp.where(gcol < w_true, xc, jnp.zeros_like(xc))

    hal = h_ref[...].reshape(H, 2, Cin)
    lh = hal[:, 0:1, :]                                      # column j*TW - 1 (or zeros)
    rh = hal[:, 1:2, :]                                      # column (j+1)*TW (or zeros)
    xw = jnp.concatenate([lh, xc, rh], axis=1)               # (H, TW+2, Cin)
    zrow = jnp.zeros((1, TW + 2, Cin), dtype=xw.dtype)
    xp = jnp.concatenate([zrow, xw, zrow], axis=0)           # (H+2, TW+2, Cin), zero H-halo

    if fold_all:
        # Small Cin (conv1, Cin=1): one im2col matmul with K = 9*Cin instead of 9 K=Cin
        # matmuls -> much better MXU contraction-depth utilisation.
        taps = [xp[kh:kh + H, kw:kw + TW, :] for kh in range(3) for kw in range(3)]
        patch = jnp.concatenate(taps, axis=-1).reshape(H * TW, 9 * Cin)
        acc = jnp.dot(patch, w_ref[...], preferred_element_type=jnp.float32)
    else:
        # Fold the 3 kw taps into the contraction dim: 3 matmuls with K = 3*Cin.
        acc = jnp.zeros((H * TW, Cout), dtype=jnp.float32)
        for kh in range(3):
            rows = xp[kh:kh + H]                             # (H, TW+2, Cin)
            patch = jnp.concatenate(
                [rows[:, 0:TW], rows[:, 1:1 + TW], rows[:, 2:2 + TW]], axis=-1)
            acc = acc + jnp.dot(patch.reshape(H * TW, 3 * Cin), w_ref[kh],
                                preferred_element_type=jnp.float32)

    acc = acc + b_ref[...]                                   # (1, Cout) broadcast, f32
    o_ref[0] = jnp.maximum(acc, 0.0).reshape(H, TW, Cout).astype(o_ref.dtype)


# ----------------------------------------------------------------------------- pool kernel
def _maxpool3x3s2_kernel(x_ref, h_ref, o_ref, *, Ho, TWo, Hi, cw):
    """MaxPool2d(kernel=3, stride=2, pad=0) for one (batch, W-tile) block.

    x_ref: (1, Hi, cw, C)   input columns [2*j*TWo, 2*j*TWo + cw)
    h_ref: (1, 1, Hi, C)    single overlap column 2*(j+1)*TWo
    o_ref: (1, Ho, TWo, C)
    Separable max with the stride-2 subsample done via even/odd pair splits
    (no strided loads / gathers).
    """
    C = x_ref.shape[-1]
    xc = x_ref[...].reshape(Hi, cw, C)[:, :2 * TWo, :]
    hl = h_ref[...].reshape(Hi, 1, C)
    x = jnp.concatenate([xc, hl], axis=1)                    # (Hi, 2*TWo+1, C)

    # H direction: out row i = max over input rows {2i, 2i+1, 2i+2}.
    ev = x[0:2 * Ho].reshape(Ho, 2, 2 * TWo + 1, C)
    a_h, b_h = ev[:, 0], ev[:, 1]
    c_h = jnp.concatenate([a_h[1:], x[2 * Ho:2 * Ho + 1]], axis=0)
    r = jnp.maximum(jnp.maximum(a_h, b_h), c_h)              # (Ho, 2*TWo+1, C)

    # W direction: out col t = max over cols {2t, 2t+1, 2t+2}.
    ew = r[:, 0:2 * TWo].reshape(Ho, TWo, 2, C)
    a_w, b_w = ew[:, :, 0], ew[:, :, 1]
    c_w = jnp.concatenate([a_w[:, 1:], r[:, 2 * TWo:2 * TWo + 1]], axis=1)
    o_ref[0] = jnp.maximum(jnp.maximum(a_w, b_w), c_w).astype(o_ref.dtype)


# ----------------------------------------------------------------------------- wrappers
def conv3x3_relu(x, w, bias, *, w_true, tw_max=128):
    """x: (B, H, W, Cin) bf16 NHWC;  w: (3,3,Cin,Cout);  bias: (1,Cout).
    Returns (y, w_true) with y: (B, H, w_true, Cout) bf16.  tw_max must be a multiple of 8."""
    B, H, w_arr, Cin = x.shape
    Cout = w.shape[-1]
    TW = w_true if w_true <= tw_max else tw_max
    NW = pl.cdiv(w_true, TW)
    needs_mask = NW * TW > w_true

    # Per-tile 1-column halos (left & right), gathered once in plain JAX: tiny HBM cost
    # (~2/TW of one activation pass) instead of a full jnp.pad round trip per layer.
    tiles = jnp.arange(NW)
    lcol = tiles * TW - 1
    rcol = (tiles + 1) * TW
    lval = (lcol >= 0)[None, None, :, None]
    rval = (rcol <= w_true - 1)[None, None, :, None]
    lhalo = jnp.where(lval, x[:, :, jnp.clip(lcol, 0, w_arr - 1), :], 0).astype(x.dtype)
    rhalo = jnp.where(rval, x[:, :, jnp.clip(rcol, 0, w_arr - 1), :], 0).astype(x.dtype)
    halos = jnp.stack([lhalo, rhalo], axis=3)                # (B, H, NW, 2, Cin)

    fold_all = Cin <= 32                                     # conv1: one K=9*Cin matmul
    wk = (w.reshape(9 * Cin, Cout) if fold_all else w.reshape(3, 3 * Cin, Cout))
    wk = wk.astype(jnp.bfloat16)                             # cast once, outside the kernel
    bias = bias.astype(jnp.float32)

    kern = functools.partial(_conv3x3_relu_kernel, H=H, TW=TW, Cin=Cin, Cout=Cout,
                             w_true=w_true, fold_all=fold_all, needs_mask=needs_mask)
    y = pl.pallas_call(
        kern,
        out_shape=jax.ShapeDtypeStruct((B, H, w_true, Cout), jnp.bfloat16),
        grid=(B, NW),
        in_specs=[
            pl.BlockSpec((1, H, TW, Cin), lambda b_, j_: (b_, 0, j_, 0)),
            pl.BlockSpec((1, H, 1, 2, Cin), lambda b_, j_: (b_, 0, j_, 0, 0)),
            pl.BlockSpec(wk.shape, lambda b_, j_: (0,) * wk.ndim),
            pl.BlockSpec((1, Cout), lambda b_, j_: (0, 0)),
        ],
        out_specs=pl.BlockSpec((1, H, TW, Cout), lambda b_, j_: (b_, 0, j_, 0)),
        compiler_params=pltpu.CompilerParams(
            dimension_semantics=("parallel", "parallel"),
            vmem_limit_bytes=48 * 1024 * 1024),
    )(x, halos, wk, bias)
    return y, w_true


def maxpool3x3s2(x, *, w_true, two_max=128):
    """MaxPool2d(kernel_size=3, stride=2, padding=0) over (H, W) of NHWC bf16.
    Returns (y, Wo).  two_max must be a multiple of 8."""
    B, H, w_arr, C = x.shape
    Ho = (H - 3) // 2 + 1
    Wo = (w_true - 3) // 2 + 1
    TWo = Wo if Wo <= two_max else two_max
    NWo = pl.cdiv(Wo, TWo)
    Hi = 2 * Ho + 1
    cw = w_true if NWo == 1 else 2 * TWo                     # layout-aligned center width

    # Single overlap column per tile (3-wide / stride-2 windows overlap the next tile by 1).
    tiles = jnp.arange(NWo)
    hcol = jnp.clip(2 * (tiles + 1) * TWo, 0, w_arr - 1)
    halo = jnp.transpose(x[:, :Hi, hcol, :], (0, 2, 1, 3))   # (B, NWo, Hi, C)

    kern = functools.partial(_maxpool3x3s2_kernel, Ho=Ho, TWo=TWo, Hi=Hi, cw=cw)
    y = pl.pallas_call(
        kern,
        out_shape=jax.ShapeDtypeStruct((B, Ho, Wo, C), jnp.bfloat16),
        grid=(B, NWo),
        in_specs=[
            pl.BlockSpec((1, Hi, cw, C), lambda b_, j_: (b_, 0, j_, 0)),
            pl.BlockSpec((1, 1, Hi, C), lambda b_, j_: (b_, j_, 0, 0)),
        ],
        out_specs=pl.BlockSpec((1, Ho, TWo, C), lambda b_, j_: (b_, 0, j_, 0)),
        compiler_params=pltpu.CompilerParams(
            dimension_semantics=("parallel", "parallel"),
            vmem_limit_bytes=48 * 1024 * 1024),
    )(x, halo)
    return y, Wo


# ----------------------------------------------------------------------------- module
def init_vggnet_params(key, out_channels=128):
    """Deterministic Conv2d-style init (kaiming-uniform-ish bounds), HWIO weight layout."""
    def conv_init(k, cin, cout):
        k1, k2 = jax.random.split(k)
        bound = 1.0 / jnp.sqrt(jnp.float32(cin * 9))
        w = jax.random.uniform(k1, (3, 3, cin, cout), jnp.float32, -bound, bound)
        b = jax.random.uniform(k2, (1, cout), jnp.float32, -bound, bound)
        return w, b

    k1, k2, k3, k4 = jax.random.split(key, 4)
    return {
        "conv1": conv_init(k1, 1, 64),
        "conv2": conv_init(k2, 64, 64),
        "conv3": conv_init(k3, 64, out_channels),
        "conv4": conv_init(k4, out_channels, out_channels),
    }


@functools.partial(jax.jit, static_argnames=("tw_max", "two_max"))
def vggnet_forward(x_nchw, params, *, tw_max=128, two_max=128):
    """input  x: (batch, 1, n_feats, seq_len)   [NCHW, matching the PyTorch module]
       output  : (batch, out_channels, ~n_feats/4, ~seq_len/4)   float32"""
    x = jnp.transpose(x_nchw, (0, 2, 3, 1)).astype(jnp.bfloat16)   # NCHW -> NHWC, bf16
    wt = x.shape[2]
    x, wt = conv3x3_relu(x, *params["conv1"], w_true=wt, tw_max=tw_max)
    x, wt = conv3x3_relu(x, *params["conv2"], w_true=wt, tw_max=tw_max)
    x, wt = maxpool3x3s2(x, w_true=wt, two_max=two_max)
    x, wt = conv3x3_relu(x, *params["conv3"], w_true=wt, tw_max=tw_max)
    x, wt = conv3x3_relu(x, *params["conv4"], w_true=wt, tw_max=tw_max)
    x, wt = maxpool3x3s2(x, w_true=wt, two_max=two_max)
    return jnp.transpose(x, (0, 3, 1, 2)).astype(jnp.float32)      # NHWC -> NCHW


# ----------------------------------------------------------------------------- reference
def _vggnet_reference(x_nchw, params):
    """Pure-JAX reference mirroring the kernel's bf16 operand / f32 accumulate pipeline."""
    def conv(t, w, b):
        y = jax.lax.conv_general_dilated(
            t.astype(jnp.bfloat16), w.astype(jnp.bfloat16),
            window_strides=(1, 1), padding=((1, 1), (1, 1)),
            dimension_numbers=("NHWC", "HWIO", "NHWC"),
            preferred_element_type=jnp.float32)
        y = jnp.maximum(y + b.reshape(1, 1, 1, -1), 0.0)
        return y.astype(jnp.bfloat16)

    def pool(t):
        return jax.lax.reduce_window(t, jnp.array(-jnp.inf, t.dtype), jax.lax.max,
                                     (1, 3, 3, 1), (1, 2, 2, 1), "VALID")

    x = jnp.transpose(x_nchw, (0, 2, 3, 1)).astype(jnp.bfloat16)
    x = conv(x, *params["conv1"])
    x = conv(x, *params["conv2"])
    x = pool(x)
    x = conv(x, *params["conv3"])
    x = conv(x, *params["conv4"])
    x = pool(x)
    return jnp.transpose(x, (0, 3, 1, 2)).astype(jnp.float32)


if __name__ == "__main__":
    key = jax.random.PRNGKey(0)
    k_in, k_par = jax.random.split(key)

    batch, n_feats, seq_len, out_channels = 2, 16, 16, 32
    x = jax.random.normal(k_in, (batch, 1, n_feats, seq_len), dtype=jnp.float32)
    params = init_vggnet_params(k_par, out_channels=out_channels)

    out = jax.block_until_ready(vggnet_forward(x, params))
    # expected spatial scale-down: 16 -> 7 -> 3  (maxpool k=3 s=2, applied twice)
    assert out.shape == (batch, out_channels, 3, 3), out.shape
    ref = jax.block_until_ready(_vggnet_reference(x, params))
    err = float(jnp.max(jnp.abs(out - ref)))
    assert jnp.allclose(out, ref, atol=2e-2, rtol=2e-2), err

    # Exercise the seq_len-tiled (multi W-tile) path with tiny tiles on a length that is
    # not a tile multiple (tests halos, overhang masking and partial output blocks).
    x2 = jax.random.normal(k_in, (batch, 1, n_feats, 20), dtype=jnp.float32)
    out2 = jax.block_until_ready(vggnet_forward(x2, params, tw_max=8, two_max=8))
    ref2 = jax.block_until_ready(_vggnet_reference(x2, params))
    assert out2.shape == ref2.shape, (out2.shape, ref2.shape)
    err2 = float(jnp.max(jnp.abs(out2 - ref2)))
    assert jnp.allclose(out2, ref2, atol=2e-2, rtol=2e-2), err2

    print("KERNEL_OK")
</pallas_src>

<mosaic_0001>
module attributes {stable_mosaic.version = 11 : i64} {
  func.func @_conv3x3_relu_kernel(%arg0: i32, %arg1: i32, %arg2: memref<1x16x16x1xbf16, #tpu.memory_space<vmem>>, %arg3: memref<1x16x1x2x1xbf16, #tpu.memory_space<vmem>>, %arg4: memref<9x64xbf16, #tpu.memory_space<vmem>>, %arg5: memref<1x64xf32, #tpu.memory_space<vmem>>, %arg6: memref<1x16x16x64xbf16, #tpu.memory_space<vmem>>) attributes {dimension_semantics = [#tpu.dimension_semantics<parallel>, #tpu.dimension_semantics<parallel>], iteration_bounds = array<i64: 2, 1>, scalar_prefetch = 0 : i64, scratch_operands = 0 : i64, tpu.core_type = #tpu.core_type<tc>, window_params = [{transform_indices = @transform_0, window_bounds = array<i64: 1, 16, 16, 1>}, {transform_indices = @transform_1, window_bounds = array<i64: 1, 16, 1, 2, 1>}, {pipeline_mode = #tpu.pipeline_mode<synchronous>, transform_indices = @transform_2, window_bounds = array<i64: 9, 64>}, {pipeline_mode = #tpu.pipeline_mode<synchronous>, transform_indices = @transform_3, window_bounds = array<i64: 1, 64>}, {transform_indices = @transform_4, window_bounds = array<i64: 1, 16, 16, 64>}]} {
    %c0 = arith.constant 0 : index
    %c0_0 = arith.constant 0 : index
    %c0_1 = arith.constant 0 : index
    %c0_2 = arith.constant 0 : index
    %0 = vector.load %arg2[%c0, %c0_0, %c0_1, %c0_2] : memref<1x16x16x1xbf16, #tpu.memory_space<vmem>>, vector<1x16x16x1xbf16>
    %1 = vector.shape_cast %0 : vector<1x16x16x1xbf16> to vector<16x16x1xbf16>
    %c0_3 = arith.constant 0 : index
    %c0_4 = arith.constant 0 : index
    %c0_5 = arith.constant 0 : index
    %c0_6 = arith.constant 0 : index
    %c0_7 = arith.constant 0 : index
    %2 = vector.load %arg3[%c0_3, %c0_4, %c0_5, %c0_6, %c0_7] : memref<1x16x1x2x1xbf16, #tpu.memory_space<vmem>>, vector<1x16x1x2x1xbf16>
    %3 = vector.shape_cast %2 : vector<1x16x1x2x1xbf16> to vector<16x2x1xbf16>
    %4 = vector.extract_strided_slice %3 {offsets = [0, 0, 0], sizes = [16, 1, 1], strides = [1, 1, 1]} : vector<16x2x1xbf16> to vector<16x1x1xbf16>
    %5 = vector.extract_strided_slice %3 {offsets = [0, 1, 0], sizes = [16, 1, 1], strides = [1, 1, 1]} : vector<16x2x1xbf16> to vector<16x1x1xbf16>
    %6 = tpu.concatenate %4, %1, %5 in 1 : vector<16x1x1xbf16>, vector<16x16x1xbf16>, vector<16x1x1xbf16> -> vector<16x18x1xbf16>
    %cst = arith.constant 0.000000e+00 : bf16
    %7 = vector.broadcast %cst : bf16 to vector<1x18x1xbf16>
    %8 = tpu.concatenate %7, %6, %7 in 0 : vector<1x18x1xbf16>, vector<16x18x1xbf16>, vector<1x18x1xbf16> -> vector<18x18x1xbf16>
    %9 = vector.extract_strided_slice %8 {offsets = [0, 0, 0], sizes = [16, 16, 1], strides = [1, 1, 1]} : vector<18x18x1xbf16> to vector<16x16x1xbf16>
    %10 = vector.extract_strided_slice %8 {offsets = [0, 1, 0], sizes = [16, 16, 1], strides = [1, 1, 1]} : vector<18x18x1xbf16> to vector<16x16x1xbf16>
    %11 = vector.extract_strided_slice %8 {offsets = [0, 2, 0], sizes = [16, 16, 1], strides = [1, 1, 1]} : vector<18x18x1xbf16> to vector<16x16x1xbf16>
    %12 = vector.extract_strided_slice %8 {offsets = [1, 0, 0], sizes = [16, 16, 1], strides = [1, 1, 1]} : vector<18x18x1xbf16> to vector<16x16x1xbf16>
    %13 = vector.extract_strided_slice %8 {offsets = [1, 1, 0], sizes = [16, 16, 1], strides = [1, 1, 1]} : vector<18x18x1xbf16> to vector<16x16x1xbf16>
    %14 = vector.extract_strided_slice %8 {offsets = [1, 2, 0], sizes = [16, 16, 1], strides = [1, 1, 1]} : vector<18x18x1xbf16> to vector<16x16x1xbf16>
    %15 = vector.extract_strided_slice %8 {offsets = [2, 0, 0], sizes = [16, 16, 1], strides = [1, 1, 1]} : vector<18x18x1xbf16> to vector<16x16x1xbf16>
    %16 = vector.extract_strided_slice %8 {offsets = [2, 1, 0], sizes = [16, 16, 1], strides = [1, 1, 1]} : vector<18x18x1xbf16> to vector<16x16x1xbf16>
    %17 = vector.extract_strided_slice %8 {offsets = [2, 2, 0], sizes = [16, 16, 1], strides = [1, 1, 1]} : vector<18x18x1xbf16> to vector<16x16x1xbf16>
    %18 = tpu.concatenate %9, %10, %11, %12, %13, %14, %15, %16, %17 in 2 : vector<16x16x1xbf16>, vector<16x16x1xbf16>, vector<16x16x1xbf16>, vector<16x16x1xbf16>, vector<16x16x1xbf16>, vector<16x16x1xbf16>, vector<16x16x1xbf16>, vector<16x16x1xbf16>, vector<16x16x1xbf16> -> vector<16x16x9xbf16>
    %19 = vector.shape_cast %18 : vector<16x16x9xbf16> to vector<256x9xbf16>
    %c0_8 = arith.constant 0 : index
    %c0_9 = arith.constant 0 : index
    %20 = vector.load %arg4[%c0_8, %c0_9] : memref<9x64xbf16, #tpu.memory_space<vmem>>, vector<9x64xbf16>
    %cst_10 = arith.constant dense<0.000000e+00> : vector<256x64xf32>
    %21 = tpu.matmul %19, %20, %cst_10 {dimension_numbers = #tpu.dot_dimension_numbers<[1], [0], [0], [1], [0, 0, 1, 1], [], []>} : vector<256x9xbf16>, vector<9x64xbf16>, vector<256x64xf32> -> vector<256x64xf32>
    %c0_11 = arith.constant 0 : index
    %c0_12 = arith.constant 0 : index
    %22 = vector.load %arg5[%c0_11, %c0_12] : memref<1x64xf32, #tpu.memory_space<vmem>>, vector<1x64xf32>
    %23 = vector.broadcast %22 : vector<1x64xf32> to vector<256x64xf32>
    %24 = arith.addf %21, %23 : vector<256x64xf32>
    %cst_13 = arith.constant 0.000000e+00 : f32
    %25 = vector.broadcast %cst_13 : f32 to vector<256x64xf32>
    %26 = arith.maximumf %24, %25 : vector<256x64xf32>
    %27 = vector.shape_cast %26 : vector<256x64xf32> to vector<16x16x64xf32>
    %28 = arith.truncf %27 : vector<16x16x64xf32> to vector<16x16x64xbf16>
    %c0_14 = arith.constant 0 : index
    %c0_15 = arith.constant 0 : index
    %c0_16 = arith.constant 0 : index
    %c0_17 = arith.constant 0 : index
    %29 = vector.load %arg6[%c0_14, %c0_15, %c0_16, %c0_17] : memref<1x16x16x64xbf16, #tpu.memory_space<vmem>>, vector<1x16x16x64xbf16>
    %30 = vector.shape_cast %29 : vector<1x16x16x64xbf16> to vector<16x16x64xbf16>
    %31 = vector.shape_cast %28 : vector<16x16x64xbf16> to vector<1x16x16x64xbf16>
    tpu.vector_store %arg6[%c0_14, %c0_15, %c0_16, %c0_17], %31 {strides = array<i32>} : memref<1x16x16x64xbf16, #tpu.memory_space<vmem>>, vector<1x16x16x64xbf16>,
    return
  }
  func.func @transform_0(%arg0: i32, %arg1: i32) -> (i32, i32, i32, i32) {
    %c0_i32 = arith.constant 0 : i32
    %c0_i32_0 = arith.constant 0 : i32
    %c0_i32_1 = arith.constant 0 : i32
    return %arg0, %c0_i32, %arg1, %c0_i32_0 : i32, i32, i32, i32
  }
  func.func @transform_1(%arg0: i32, %arg1: i32) -> (i32, i32, i32, i32, i32) {
    %c0_i32 = arith.constant 0 : i32
    %c0_i32_0 = arith.constant 0 : i32
    %c0_i32_1 = arith.constant 0 : i32
    %c0_i32_2 = arith.constant 0 : i32
    return %arg0, %c0_i32, %arg1, %c0_i32_0, %c0_i32_1 : i32, i32, i32, i32, i32
  }
  func.func @transform_2(%arg0: i32, %arg1: i32) -> (i32, i32) {
    %c0_i32 = arith.constant 0 : i32
    %c0_i32_0 = arith.constant 0 : i32
    %c0_i32_1 = arith.constant 0 : i32
    return %c0_i32, %c0_i32_0 : i32, i32
  }
  func.func @transform_3(%arg0: i32, %arg1: i32) -> (i32, i32) {
    %c0_i32 = arith.constant 0 : i32
    %c0_i32_0 = arith.constant 0 : i32
    %c0_i32_1 = arith.constant 0 : i32
    return %c0_i32, %c0_i32_0 : i32, i32
  }
  func.func @transform_4(%arg0: i32, %arg1: i32) -> (i32, i32, i32, i32) {
    %c0_i32 = arith.constant 0 : i32
    %c0_i32_0 = arith.constant 0 : i32
    %c0_i32_1 = arith.constant 0 : i32
    return %arg0, %c0_i32, %arg1, %c0_i32_0 : i32, i32, i32, i32
  }
}

module attributes {stable_mosaic.version = 11 : i64} {
  func.func @_conv3x3_relu_kernel(%arg0: i32, %arg1: i32, %arg2: memref<1x16x16x64xbf16, #tpu.memory_space<vmem>>, %arg3: memref<1x16x1x2x64xbf16, #tpu.memory_space<vmem>>, %arg4: memref<3x192x64xbf16, #tpu.memory_space<vmem>>, %arg5: memref<1x64xf32, #tpu.memory_space<vmem>>, %arg6: memref<1x16x16x64xbf16, #tpu.memory_space<vmem>>) attributes {dimension_semantics = [#tpu.dimension_semantics<parallel>, #tpu.dimension_semantics<parallel>], iteration_bounds = array<i64: 2, 1>, scalar_prefetch = 0 : i64, scratch_operands = 0 : i64, tpu.core_type = #tpu.core_type<tc>, window_params = [{transform_indices = @transform_0, window_bounds = array<i64: 1, 16, 16, 64>}, {transform_indices = @transform_1, window_bounds = array<i64: 1, 16, 1, 2, 64>}, {pipeline_mode = #tpu.pipeline_mode<synchronous>, transform_indices = @transform_2, window_bounds = array<i64: 3, 192, 64>}, {pipeline_mode = #tpu.pipeline_mode<synchronous>, transform_indices = @transform_3, window_bounds = array<i64: 1, 64>}, {transform_indices = @transform_4, window_bounds = array<i64: 1, 16, 16, 64>}]} {
    %c0 = arith.constant 0 : index
    %c0_0 = arith.constant 0 : index
    %c0_1 = arith.constant 0 : index
    %c0_2 = arith.constant 0 : index
    %0 = vector.load %arg2[%c0, %c0_0, %c0_1, %c0_2] : memref<1x16x16x64xbf16, #tpu.memory_space<vmem>>, vector<1x16x16x64xbf16>
    %1 = vector.shape_cast %0 : vector<1x16x16x64xbf16> to vector<16x16x64xbf16>
    %c0_3 = arith.constant 0 : index
    %c0_4 = arith.constant 0 : index
    %c0_5 = arith.constant 0 : index
    %c0_6 = arith.constant 0 : index
    %c0_7 = arith.constant 0 : index
    %2 = vector.load %arg3[%c0_3, %c0_4, %c0_5, %c0_6, %c0_7] : memref<1x16x1x2x64xbf16, #tpu.memory_space<vmem>>, vector<1x16x1x2x64xbf16>
    %3 = vector.shape_cast %2 : vector<1x16x1x2x64xbf16> to vector<16x2x64xbf16>
    %4 = vector.extract_strided_slice %3 {offsets = [0, 0, 0], sizes = [16, 1, 64], strides = [1, 1, 1]} : vector<16x2x64xbf16> to vector<16x1x64xbf16>
    %5 = vector.extract_strided_slice %3 {offsets = [0, 1, 0], sizes = [16, 1, 64], strides = [1, 1, 1]} : vector<16x2x64xbf16> to vector<16x1x64xbf16>
    %6 = tpu.concatenate %4, %1, %5 in 1 : vector<16x1x64xbf16>, vector<16x16x64xbf16>, vector<16x1x64xbf16> -> vector<16x18x64xbf16>
    %cst = arith.constant 0.000000e+00 : bf16
    %7 = vector.broadcast %cst : bf16 to vector<1x18x64xbf16>
    %8 = tpu.concatenate %7, %6, %7 in 0 : vector<1x18x64xbf16>, vector<16x18x64xbf16>, vector<1x18x64xbf16> -> vector<18x18x64xbf16>
    %cst_8 = arith.constant 0.000000e+00 : f32
    %9 = vector.broadcast %cst_8 : f32 to vector<256x64xf32>
    %10 = vector.extract_strided_slice %8 {offsets = [0, 0, 0], sizes = [16, 18, 64], strides = [1, 1, 1]} : vector<18x18x64xbf16> to vector<16x18x64xbf16>
    %11 = vector.extract_strided_slice %10 {offsets = [0, 0, 0], sizes = [16, 16, 64], strides = [1, 1, 1]} : vector<16x18x64xbf16> to vector<16x16x64xbf16>
    %12 = vector.extract_strided_slice %10 {offsets = [0, 1, 0], sizes = [16, 16, 64], strides = [1, 1, 1]} : vector<16x18x64xbf16> to vector<16x16x64xbf16>
    %13 = vector.extract_strided_slice %10 {offsets = [0, 2, 0], sizes = [16, 16, 64], strides = [1, 1, 1]} : vector<16x18x64xbf16> to vector<16x16x64xbf16>
    %14 = tpu.concatenate %11, %12, %13 in 2 : vector<16x16x64xbf16>, vector<16x16x64xbf16>, vector<16x16x64xbf16> -> vector<16x16x192xbf16>
    %15 = vector.shape_cast %14 : vector<16x16x192xbf16> to vector<256x192xbf16>
    %c0_9 = arith.constant 0 : index
    %c0_10 = arith.constant 0 : index
    %c0_11 = arith.constant 0 : index
    %16 = vector.load %arg4[%c0_9, %c0_10, %c0_11] : memref<3x192x64xbf16, #tpu.memory_space<vmem>>, vector<1x192x64xbf16>
    %17 = vector.shape_cast %16 : vector<1x192x64xbf16> to vector<192x64xbf16>
    %cst_12 = arith.constant dense<0.000000e+00> : vector<256x64xf32>
    %18 = tpu.matmul %15, %17, %cst_12 {dimension_numbers = #tpu.dot_dimension_numbers<[1], [0], [0], [1], [0, 0, 1, 1], [], []>} : vector<256x192xbf16>, vector<192x64xbf16>, vector<256x64xf32> -> vector<256x64xf32>
    %19 = arith.addf %9, %18 : vector<256x64xf32>
    %20 = vector.extract_strided_slice %8 {offsets = [1, 0, 0], sizes = [16, 18, 64], strides = [1, 1, 1]} : vector<18x18x64xbf16> to vector<16x18x64xbf16>
    %21 = vector.extract_strided_slice %20 {offsets = [0, 0, 0], sizes = [16, 16, 64], strides = [1, 1, 1]} : vector<16x18x64xbf16> to vector<16x16x64xbf16>
    %22 = vector.extract_strided_slice %20 {offsets = [0, 1, 0], sizes = [16, 16, 64], strides = [1, 1, 1]} : vector<16x18x64xbf16> to vector<16x16x64xbf16>
    %23 = vector.extract_strided_slice %20 {offsets = [0, 2, 0], sizes = [16, 16, 64], strides = [1, 1, 1]} : vector<16x18x64xbf16> to vector<16x16x64xbf16>
    %24 = tpu.concatenate %21, %22, %23 in 2 : vector<16x16x64xbf16>, vector<16x16x64xbf16>, vector<16x16x64xbf16> -> vector<16x16x192xbf16>
    %25 = vector.shape_cast %24 : vector<16x16x192xbf16> to vector<256x192xbf16>
    %c1 = arith.constant 1 : index
    %c0_13 = arith.constant 0 : index
    %c0_14 = arith.constant 0 : index
    %26 = vector.load %arg4[%c1, %c0_13, %c0_14] : memref<3x192x64xbf16, #tpu.memory_space<vmem>>, vector<1x192x64xbf16>
    %27 = vector.shape_cast %26 : vector<1x192x64xbf16> to vector<192x64xbf16>
    %cst_15 = arith.constant dense<0.000000e+00> : vector<256x64xf32>
    %28 = tpu.matmul %25, %27, %cst_15 {dimension_numbers = #tpu.dot_dimension_numbers<[1], [0], [0], [1], [0, 0, 1, 1], [], []>} : vector<256x192xbf16>, vector<192x64xbf16>, vector<256x64xf32> -> vector<256x64xf32>
    %29 = arith.addf %19, %28 : vector<256x64xf32>
    %30 = vector.extract_strided_slice %8 {offsets = [2, 0, 0], sizes = [16, 18, 64], strides = [1, 1, 1]} : vector<18x18x64xbf16> to vector<16x18x64xbf16>
    %31 = vector.extract_strided_slice %30 {offsets = [0, 0, 0], sizes = [16, 16, 64], strides = [1, 1, 1]} : vector<16x18x64xbf16> to vector<16x16x64xbf16>
    %32 = vector.extract_strided_slice %30 {offsets = [0, 1, 0], sizes = [16, 16, 64], strides = [1, 1, 1]} : vector<16x18x64xbf16> to vector<16x16x64xbf16>
    %33 = vector.extract_strided_slice %30 {offsets = [0, 2, 0], sizes = [16, 16, 64], strides = [1, 1, 1]} : vector<16x18x64xbf16> to vector<16x16x64xbf16>
    %34 = tpu.concatenate %31, %32, %33 in 2 : vector<16x16x64xbf16>, vector<16x16x64xbf16>, vector<16x16x64xbf16> -> vector<16x16x192xbf16>
    %35 = vector.shape_cast %34 : vector<16x16x192xbf16> to vector<256x192xbf16>
    %c2 = arith.constant 2 : index
    %c0_16 = arith.constant 0 : index
    %c0_17 = arith.constant 0 : index
    %36 = vector.load %arg4[%c2, %c0_16, %c0_17] : memref<3x192x64xbf16, #tpu.memory_space<vmem>>, vector<1x192x64xbf16>
    %37 = vector.shape_cast %36 : vector<1x192x64xbf16> to vector<192x64xbf16>
    %cst_18 = arith.constant dense<0.000000e+00> : vector<256x64xf32>
    %38 = tpu.matmul %35, %37, %cst_18 {dimension_numbers = #tpu.dot_dimension_numbers<[1], [0], [0], [1], [0, 0, 1, 1], [], []>} : vector<256x192xbf16>, vector<192x64xbf16>, vector<256x64xf32> -> vector<256x64xf32>
    %39 = arith.addf %29, %38 : vector<256x64xf32>
    %c0_19 = arith.constant 0 : index
    %c0_20 = arith.constant 0 : index
    %40 = vector.load %arg5[%c0_19, %c0_20] : memref<1x64xf32, #tpu.memory_space<vmem>>, vector<1x64xf32>
    %41 = vector.broadcast %40 : vector<1x64xf32> to vector<256x64xf32>
    %42 = arith.addf %39, %41 : vector<256x64xf32>
    %cst_21 = arith.constant 0.000000e+00 : f32
    %43 = vector.broadcast %cst_21 : f32 to vector<256x64xf32>
    %44 = arith.maximumf %42, %43 : vector<256x64xf32>
    %45 = vector.shape_cast %44 : vector<256x64xf32> to vector<16x16x64xf32>
    %46 = arith.truncf %45 : vector<16x16x64xf32> to vector<16x16x64xbf16>
    %c0_22 = arith.constant 0 : index
    %c0_23 = arith.constant 0 : index
    %c0_24 = arith.constant 0 : index
    %c0_25 = arith.constant 0 : index
    %47 = vector.load %arg6[%c0_22, %c0_23, %c0_24, %c0_25] : memref<1x16x16x64xbf16, #tpu.memory_space<vmem>>, vector<1x16x16x64xbf16>
    %48 = vector.shape_cast %47 : vector<1x16x16x64xbf16> to vector<16x16x64xbf16>
    %49 = vector.shape_cast %46 : vector<16x16x64xbf16> to vector<1x16x16x64xbf16>
    tpu.vector_store %arg6[%c0_22, %c0_23, %c0_24, %c0_25], %49 {strides = array<i32>} : memref<1x16x16x64xbf16, #tpu.memory_space<vmem>>, vector<1x16x16x64xbf16>,
    return
  }
  func.func @transform_0(%arg0: i32, %arg1: i32) -> (i32, i32, i32, i32) {
    %c0_i32 = arith.constant 0 : i32
    %c0_i32_0 = arith.constant 0 : i32
    %c0_i32_1 = arith.constant 0 : i32
    return %arg0, %c0_i32, %arg1, %c0_i32_0 : i32, i32, i32, i32
  }
  func.func @transform_1(%arg0: i32, %arg1: i32) -> (i32, i32, i32, i32, i32) {
    %c0_i32 = arith.constant 0 : i32
    %c0_i32_0 = arith.constant 0 : i32
    %c0_i32_1 = arith.constant 0 : i32
    %c0_i32_2 = arith.constant 0 : i32
    return %arg0, %c0_i32, %arg1, %c0_i32_0, %c0_i32_1 : i32, i32, i32, i32, i32
  }
  func.func @transform_2(%arg0: i32, %arg1: i32) -> (i32, i32, i32) {
    %c0_i32 = arith.constant 0 : i32
    %c0_i32_0 = arith.constant 0 : i32
    %c0_i32_1 = arith.constant 0 : i32
    %c0_i32_2 = arith.constant 0 : i32
    return %c0_i32, %c0_i32_0, %c0_i32_1 : i32, i32, i32
  }
  func.func @transform_3(%arg0: i32, %arg1: i32) -> (i32, i32) {
    %c0_i32 = arith.constant 0 : i32
    %c0_i32_0 = arith.constant 0 : i32
    %c0_i32_1 = arith.constant 0 : i32
    return %c0_i32, %c0_i32_0 : i32, i32
  }
  func.func @transform_4(%arg0: i32, %arg1: i32) -> (i32, i32, i32, i32) {
    %c0_i32 = arith.constant 0 : i32
    %c0_i32_0 = arith.constant 0 : i32
    %c0_i32_1 = arith.constant 0 : i32
    return %arg0, %c0_i32, %arg1, %c0_i32_0 : i32, i32, i32, i32
  }
}

module attributes {stable_mosaic.version = 11 : i64} {
  func.func @_maxpool3x3s2_kernel(%arg0: i32, %arg1: i32, %arg2: memref<1x15x16x64xbf16, #tpu.memory_space<vmem>>, %arg3: memref<1x1x15x64xbf16, #tpu.memory_space<vmem>>, %arg4: memref<1x7x7x64xbf16, #tpu.memory_space<vmem>>) attributes {dimension_semantics = [#tpu.dimension_semantics<parallel>, #tpu.dimension_semantics<parallel>], iteration_bounds = array<i64: 2, 1>, scalar_prefetch = 0 : i64, scratch_operands = 0 : i64, tpu.core_type = #tpu.core_type<tc>, window_params = [{transform_indices = @transform_0, window_bounds = array<i64: 1, 15, 16, 64>}, {transform_indices = @transform_1, window_bounds = array<i64: 1, 1, 15, 64>}, {transform_indices = @transform_2, window_bounds = array<i64: 1, 7, 7, 64>}]} {
    %c0 = arith.constant 0 : index
    %c0_0 = arith.constant 0 : index
    %c0_1 = arith.constant 0 : index
    %c0_2 = arith.constant 0 : index
    %0 = vector.load %arg2[%c0, %c0_0, %c0_1, %c0_2] : memref<1x15x16x64xbf16, #tpu.memory_space<vmem>>, vector<1x15x16x64xbf16>
    %1 = vector.shape_cast %0 : vector<1x15x16x64xbf16> to vector<15x16x64xbf16>
    %2 = vector.extract_strided_slice %1 {offsets = [0, 0, 0], sizes = [15, 14, 64], strides = [1, 1, 1]} : vector<15x16x64xbf16> to vector<15x14x64xbf16>
    %c0_3 = arith.constant 0 : index
    %c0_4 = arith.constant 0 : index
    %c0_5 = arith.constant 0 : index
    %c0_6 = arith.constant 0 : index
    %3 = vector.load %arg3[%c0_3, %c0_4, %c0_5, %c0_6] : memref<1x1x15x64xbf16, #tpu.memory_space<vmem>>, vector<1x1x15x64xbf16>
    %4 = vector.shape_cast %3 : vector<1x1x15x64xbf16> to vector<15x1x64xbf16>
    %5 = tpu.concatenate %2, %4 in 1 : vector<15x14x64xbf16>, vector<15x1x64xbf16> -> vector<15x15x64xbf16>
    %6 = vector.extract_strided_slice %5 {offsets = [0, 0, 0], sizes = [14, 15, 64], strides = [1, 1, 1]} : vector<15x15x64xbf16> to vector<14x15x64xbf16>
    %7 = vector.shape_cast %6 : vector<14x15x64xbf16> to vector<7x2x15x64xbf16>
    %8 = vector.extract_strided_slice %7 {offsets = [0, 0, 0, 0], sizes = [7, 1, 15, 64], strides = [1, 1, 1, 1]} : vector<7x2x15x64xbf16> to vector<7x1x15x64xbf16>
    %9 = vector.shape_cast %8 : vector<7x1x15x64xbf16> to vector<7x15x64xbf16>
    %10 = vector.extract_strided_slice %7 {offsets = [0, 1, 0, 0], sizes = [7, 1, 15, 64], strides = [1, 1, 1, 1]} : vector<7x2x15x64xbf16> to vector<7x1x15x64xbf16>
    %11 = vector.shape_cast %10 : vector<7x1x15x64xbf16> to vector<7x15x64xbf16>
    %12 = vector.extract_strided_slice %9 {offsets = [1, 0, 0], sizes = [6, 15, 64], strides = [1, 1, 1]} : vector<7x15x64xbf16> to vector<6x15x64xbf16>
    %13 = vector.extract_strided_slice %5 {offsets = [14, 0, 0], sizes = [1, 15, 64], strides = [1, 1, 1]} : vector<15x15x64xbf16> to vector<1x15x64xbf16>
    %14 = tpu.concatenate %12, %13 in 0 : vector<6x15x64xbf16>, vector<1x15x64xbf16> -> vector<7x15x64xbf16>
    %15 = arith.maximumf %9, %11 : vector<7x15x64xbf16>
    %16 = arith.maximumf %15, %14 : vector<7x15x64xbf16>
    %17 = vector.extract_strided_slice %16 {offsets = [0, 0, 0], sizes = [7, 14, 64], strides = [1, 1, 1]} : vector<7x15x64xbf16> to vector<7x14x64xbf16>
    %18 = vector.shape_cast %17 : vector<7x14x64xbf16> to vector<7x7x2x64xbf16>
    %19 = vector.extract_strided_slice %18 {offsets = [0, 0, 0, 0], sizes = [7, 7, 1, 64], strides = [1, 1, 1, 1]} : vector<7x7x2x64xbf16> to vector<7x7x1x64xbf16>
    %20 = vector.shape_cast %19 : vector<7x7x1x64xbf16> to vector<7x7x64xbf16>
    %21 = vector.extract_strided_slice %18 {offsets = [0, 0, 1, 0], sizes = [7, 7, 1, 64], strides = [1, 1, 1, 1]} : vector<7x7x2x64xbf16> to vector<7x7x1x64xbf16>
    %22 = vector.shape_cast %21 : vector<7x7x1x64xbf16> to vector<7x7x64xbf16>
    %23 = vector.extract_strided_slice %20 {offsets = [0, 1, 0], sizes = [7, 6, 64], strides = [1, 1, 1]} : vector<7x7x64xbf16> to vector<7x6x64xbf16>
    %24 = vector.extract_strided_slice %16 {offsets = [0, 14, 0], sizes = [7, 1, 64], strides = [1, 1, 1]} : vector<7x15x64xbf16> to vector<7x1x64xbf16>
    %25 = tpu.concatenate %23, %24 in 1 : vector<7x6x64xbf16>, vector<7x1x64xbf16> -> vector<7x7x64xbf16>
    %26 = arith.maximumf %20, %22 : vector<7x7x64xbf16>
    %27 = arith.maximumf %26, %25 : vector<7x7x64xbf16>
    %c0_7 = arith.constant 0 : index
    %c0_8 = arith.constant 0 : index
    %c0_9 = arith.constant 0 : index
    %c0_10 = arith.constant 0 : index
    %28 = vector.load %arg4[%c0_7, %c0_8, %c0_9, %c0_10] : memref<1x7x7x64xbf16, #tpu.memory_space<vmem>>, vector<1x7x7x64xbf16>
    %29 = vector.shape_cast %28 : vector<1x7x7x64xbf16> to vector<7x7x64xbf16>
    %30 = vector.shape_cast %27 : vector<7x7x64xbf16> to vector<1x7x7x64xbf16>
    tpu.vector_store %arg4[%c0_7, %c0_8, %c0_9, %c0_10], %30 {strides = array<i32>} : memref<1x7x7x64xbf16, #tpu.memory_space<vmem>>, vector<1x7x7x64xbf16>,
    return
  }
  func.func @transform_0(%arg0: i32, %arg1: i32) -> (i32, i32, i32, i32) {
    %c0_i32 = arith.constant 0 : i32
    %c0_i32_0 = arith.constant 0 : i32
    %c0_i32_1 = arith.constant 0 : i32
    return %arg0, %c0_i32, %arg1, %c0_i32_0 : i32, i32, i32, i32
  }
  func.func @transform_1(%arg0: i32, %arg1: i32) -> (i32, i32, i32, i32) {
    %c0_i32 = arith.constant 0 : i32
    %c0_i32_0 = arith.constant 0 : i32
    %c0_i32_1 = arith.constant 0 : i32
    return %arg0, %arg1, %c0_i32, %c0_i32_0 : i32, i32, i32, i32
  }
  func.func @transform_2(%arg0: i32, %arg1: i32) -> (i32, i32, i32, i32) {
    %c0_i32 = arith.constant 0 : i32
    %c0_i32_0 = arith.constant 0 : i32
    %c0_i32_1 = arith.constant 0 : i32
    return %arg0, %c0_i32, %arg1, %c0_i32_0 : i32, i32, i32, i32
  }
}

module attributes {stable_mosaic.version = 11 : i64} {
  func.func @_conv3x3_relu_kernel(%arg0: i32, %arg1: i32, %arg2: memref<1x7x7x64xbf16, #tpu.memory_space<vmem>>, %arg3: memref<1x7x1x2x64xbf16, #tpu.memory_space<vmem>>, %arg4: memref<3x192x32xbf16, #tpu.memory_space<vmem>>, %arg5: memref<1x32xf32, #tpu.memory_space<vmem>>, %arg6: memref<1x7x7x32xbf16, #tpu.memory_space<vmem>>) attributes {dimension_semantics = [#tpu.dimension_semantics<parallel>, #tpu.dimension_semantics<parallel>], iteration_bounds = array<i64: 2, 1>, scalar_prefetch = 0 : i64, scratch_operands = 0 : i64, tpu.core_type = #tpu.core_type<tc>, window_params = [{transform_indices = @transform_0, window_bounds = array<i64: 1, 7, 7, 64>}, {transform_indices = @transform_1, window_bounds = array<i64: 1, 7, 1, 2, 64>}, {pipeline_mode = #tpu.pipeline_mode<synchronous>, transform_indices = @transform_2, window_bounds = array<i64: 3, 192, 32>}, {pipeline_mode = #tpu.pipeline_mode<synchronous>, transform_indices = @transform_3, window_bounds = array<i64: 1, 32>}, {transform_indices = @transform_4, window_bounds = array<i64: 1, 7, 7, 32>}]} {
    %c0 = arith.constant 0 : index
    %c0_0 = arith.constant 0 : index
    %c0_1 = arith.constant 0 : index
    %c0_2 = arith.constant 0 : index
    %0 = vector.load %arg2[%c0, %c0_0, %c0_1, %c0_2] : memref<1x7x7x64xbf16, #tpu.memory_space<vmem>>, vector<1x7x7x64xbf16>
    %1 = vector.shape_cast %0 : vector<1x7x7x64xbf16> to vector<7x7x64xbf16>
    %c0_3 = arith.constant 0 : index
    %c0_4 = arith.constant 0 : index
    %c0_5 = arith.constant 0 : index
    %c0_6 = arith.constant 0 : index
    %c0_7 = arith.constant 0 : index
    %2 = vector.load %arg3[%c0_3, %c0_4, %c0_5, %c0_6, %c0_7] : memref<1x7x1x2x64xbf16, #tpu.memory_space<vmem>>, vector<1x7x1x2x64xbf16>
    %3 = vector.shape_cast %2 : vector<1x7x1x2x64xbf16> to vector<7x2x64xbf16>
    %4 = vector.extract_strided_slice %3 {offsets = [0, 0, 0], sizes = [7, 1, 64], strides = [1, 1, 1]} : vector<7x2x64xbf16> to vector<7x1x64xbf16>
    %5 = vector.extract_strided_slice %3 {offsets = [0, 1, 0], sizes = [7, 1, 64], strides = [1, 1, 1]} : vector<7x2x64xbf16> to vector<7x1x64xbf16>
    %6 = tpu.concatenate %4, %1, %5 in 1 : vector<7x1x64xbf16>, vector<7x7x64xbf16>, vector<7x1x64xbf16> -> vector<7x9x64xbf16>
    %cst = arith.constant 0.000000e+00 : bf16
    %7 = vector.broadcast %cst : bf16 to vector<1x9x64xbf16>
    %8 = tpu.concatenate %7, %6, %7 in 0 : vector<1x9x64xbf16>, vector<7x9x64xbf16>, vector<1x9x64xbf16> -> vector<9x9x64xbf16>
    %cst_8 = arith.constant 0.000000e+00 : f32
    %9 = vector.broadcast %cst_8 : f32 to vector<49x32xf32>
    %10 = vector.extract_strided_slice %8 {offsets = [0, 0, 0], sizes = [7, 9, 64], strides = [1, 1, 1]} : vector<9x9x64xbf16> to vector<7x9x64xbf16>
    %11 = vector.extract_strided_slice %10 {offsets = [0, 0, 0], sizes = [7, 7, 64], strides = [1, 1, 1]} : vector<7x9x64xbf16> to vector<7x7x64xbf16>
    %12 = vector.extract_strided_slice %10 {offsets = [0, 1, 0], sizes = [7, 7, 64], strides = [1, 1, 1]} : vector<7x9x64xbf16> to vector<7x7x64xbf16>
    %13 = vector.extract_strided_slice %10 {offsets = [0, 2, 0], sizes = [7, 7, 64], strides = [1, 1, 1]} : vector<7x9x64xbf16> to vector<7x7x64xbf16>
    %14 = tpu.concatenate %11, %12, %13 in 2 : vector<7x7x64xbf16>, vector<7x7x64xbf16>, vector<7x7x64xbf16> -> vector<7x7x192xbf16>
    %15 = vector.shape_cast %14 : vector<7x7x192xbf16> to vector<49x192xbf16>
    %c0_9 = arith.constant 0 : index
    %c0_10 = arith.constant 0 : index
    %c0_11 = arith.constant 0 : index
    %16 = vector.load %arg4[%c0_9, %c0_10, %c0_11] : memref<3x192x32xbf16, #tpu.memory_space<vmem>>, vector<1x192x32xbf16>
    %17 = vector.shape_cast %16 : vector<1x192x32xbf16> to vector<192x32xbf16>
    %cst_12 = arith.constant dense<0.000000e+00> : vector<49x32xf32>
    %18 = tpu.matmul %15, %17, %cst_12 {dimension_numbers = #tpu.dot_dimension_numbers<[1], [0], [0], [1], [0, 0, 1, 1], [], []>} : vector<49x192xbf16>, vector<192x32xbf16>, vector<49x32xf32> -> vector<49x32xf32>
    %19 = arith.addf %9, %18 : vector<49x32xf32>
    %20 = vector.extract_strided_slice %8 {offsets = [1, 0, 0], sizes = [7, 9, 64], strides = [1, 1, 1]} : vector<9x9x64xbf16> to vector<7x9x64xbf16>
    %21 = vector.extract_strided_slice %20 {offsets = [0, 0, 0], sizes = [7, 7, 64], strides = [1, 1, 1]} : vector<7x9x64xbf16> to vector<7x7x64xbf16>
    %22 = vector.extract_strided_slice %20 {offsets = [0, 1, 0], sizes = [7, 7, 64], strides = [1, 1, 1]} : vector<7x9x64xbf16> to vector<7x7x64xbf16>
    %23 = vector.extract_strided_slice %20 {offsets = [0, 2, 0], sizes = [7, 7, 64], strides = [1, 1, 1]} : vector<7x9x64xbf16> to vector<7x7x64xbf16>
    %24 = tpu.concatenate %21, %22, %23 in 2 : vector<7x7x64xbf16>, vector<7x7x64xbf16>, vector<7x7x64xbf16> -> vector<7x7x192xbf16>
    %25 = vector.shape_cast %24 : vector<7x7x192xbf16> to vector<49x192xbf16>
    %c1 = arith.constant 1 : index
    %c0_13 = arith.constant 0 : index
    %c0_14 = arith.constant 0 : index
    %26 = vector.load %arg4[%c1, %c0_13, %c0_14] : memref<3x192x32xbf16, #tpu.memory_space<vmem>>, vector<1x192x32xbf16>
    %27 = vector.shape_cast %26 : vector<1x192x32xbf16> to vector<192x32xbf16>
    %cst_15 = arith.constant dense<0.000000e+00> : vector<49x32xf32>
    %28 = tpu.matmul %25, %27, %cst_15 {dimension_numbers = #tpu.dot_dimension_numbers<[1], [0], [0], [1], [0, 0, 1, 1], [], []>} : vector<49x192xbf16>, vector<192x32xbf16>, vector<49x32xf32> -> vector<49x32xf32>
    %29 = arith.addf %19, %28 : vector<49x32xf32>
    %30 = vector.extract_strided_slice %8 {offsets = [2, 0, 0], sizes = [7, 9, 64], strides = [1, 1, 1]} : vector<9x9x64xbf16> to vector<7x9x64xbf16>
    %31 = vector.extract_strided_slice %30 {offsets = [0, 0, 0], sizes = [7, 7, 64], strides = [1, 1, 1]} : vector<7x9x64xbf16> to vector<7x7x64xbf16>
    %32 = vector.extract_strided_slice %30 {offsets = [0, 1, 0], sizes = [7, 7, 64], strides = [1, 1, 1]} : vector<7x9x64xbf16> to vector<7x7x64xbf16>
    %33 = vector.extract_strided_slice %30 {offsets = [0, 2, 0], sizes = [7, 7, 64], strides = [1, 1, 1]} : vector<7x9x64xbf16> to vector<7x7x64xbf16>
    %34 = tpu.concatenate %31, %32, %33 in 2 : vector<7x7x64xbf16>, vector<7x7x64xbf16>, vector<7x7x64xbf16> -> vector<7x7x192xbf16>
    %35 = vector.shape_cast %34 : vector<7x7x192xbf16> to vector<49x192xbf16>
    %c2 = arith.constant 2 : index
    %c0_16 = arith.constant 0 : index
    %c0_17 = arith.constant 0 : index
    %36 = vector.load %arg4[%c2, %c0_16, %c0_17] : memref<3x192x32xbf16, #tpu.memory_space<vmem>>, vector<1x192x32xbf16>
    %37 = vector.shape_cast %36 : vector<1x192x32xbf16> to vector<192x32xbf16>
    %cst_18 = arith.constant dense<0.000000e+00> : vector<49x32xf32>
    %38 = tpu.matmul %35, %37, %cst_18 {dimension_numbers = #tpu.dot_dimension_numbers<[1], [0], [0], [1], [0, 0, 1, 1], [], []>} : vector<49x192xbf16>, vector<192x32xbf16>, vector<49x32xf32> -> vector<49x32xf32>
    %39 = arith.addf %29, %38 : vector<49x32xf32>
    %c0_19 = arith.constant 0 : index
    %c0_20 = arith.constant 0 : index
    %40 = vector.load %arg5[%c0_19, %c0_20] : memref<1x32xf32, #tpu.memory_space<vmem>>, vector<1x32xf32>
    %41 = vector.broadcast %40 : vector<1x32xf32> to vector<49x32xf32>
    %42 = arith.addf %39, %41 : vector<49x32xf32>
    %cst_21 = arith.constant 0.000000e+00 : f32
    %43 = vector.broadcast %cst_21 : f32 to vector<49x32xf32>
    %44 = arith.maximumf %42, %43 : vector<49x32xf32>
    %45 = vector.shape_cast %44 : vector<49x32xf32> to vector<7x7x32xf32>
    %46 = arith.truncf %45 : vector<7x7x32xf32> to vector<7x7x32xbf16>
    %c0_22 = arith.constant 0 : index
    %c0_23 = arith.constant 0 : index
    %c0_24 = arith.constant 0 : index
    %c0_25 = arith.constant 0 : index
    %47 = vector.load %arg6[%c0_22, %c0_23, %c0_24, %c0_25] : memref<1x7x7x32xbf16, #tpu.memory_space<vmem>>, vector<1x7x7x32xbf16>
    %48 = vector.shape_cast %47 : vector<1x7x7x32xbf16> to vector<7x7x32xbf16>
    %49 = vector.shape_cast %46 : vector<7x7x32xbf16> to vector<1x7x7x32xbf16>
    tpu.vector_store %arg6[%c0_22, %c0_23, %c0_24, %c0_25], %49 {strides = array<i32>} : memref<1x7x7x32xbf16, #tpu.memory_space<vmem>>, vector<1x7x7x32xbf16>,
    return
  }
  func.func @transform_0(%arg0: i32, %arg1: i32) -> (i32, i32, i32, i32) {
    %c0_i32 = arith.constant 0 : i32
    %c0_i32_0 = arith.constant 0 : i32
    %c0_i32_1 = arith.constant 0 : i32
    return %arg0, %c0_i32, %arg1, %c0_i32_0 : i32, i32, i32, i32
  }
  func.func @transform_1(%arg0: i32, %arg1: i32) -> (i32, i32, i32, i32, i32) {
    %c0_i32 = arith.constant 0 : i32
    %c0_i32_0 = arith.constant 0 : i32
    %c0_i32_1 = arith.constant 0 : i32
    %c0_i32_2 = arith.constant 0 : i32
    return %arg0, %c0_i32, %arg1, %c0_i32_0, %c0_i32_1 : i32, i32, i32, i32, i32
  }
  func.func @transform_2(%arg0: i32, %arg1: i32) -> (i32, i32, i32) {
    %c0_i32 = arith.constant 0 : i32
    %c0_i32_0 = arith.constant 0 : i32
    %c0_i32_1 = arith.constant 0 : i32
    %c0_i32_2 = arith.constant 0 : i32
    return %c0_i32, %c0_i32_0, %c0_i32_1 : i32, i32, i32
  }
  func.func @transform_3(%arg0: i32, %arg1: i32) -> (i32, i32) {
    %c0_i32 = arith.constant 0 : i32
    %c0_i32_0 = arith.constant 0 : i32
    %c0_i32_1 = arith.constant 0 : i32
    return %c0_i32, %c0_i32_0 : i32, i32
  }
  func.func @transform_4(%arg0: i32, %arg1: i32) -> (i32, i32, i32, i32) {
    %c0_i32 = arith.constant 0 : i32
    %c0_i32_0 = arith.constant 0 : i32
    %c0_i32_1 = arith.constant 0 : i32
    return %arg0, %c0_i32, %arg1, %c0_i32_0 : i32, i32, i32, i32
  }
}

module attributes {stable_mosaic.version = 11 : i64} {
  func.func @_conv3x3_relu_kernel(%arg0: i32, %arg1: i32, %arg2: memref<1x7x7x32xbf16, #tpu.memory_space<vmem>>, %arg3: memref<1x7x1x2x32xbf16, #tpu.memory_space<vmem>>, %arg4: memref<288x32xbf16, #tpu.memory_space<vmem>>, %arg5: memref<1x32xf32, #tpu.memory_space<vmem>>, %arg6: memref<1x7x7x32xbf16, #tpu.memory_space<vmem>>) attributes {dimension_semantics = [#tpu.dimension_semantics<parallel>, #tpu.dimension_semantics<parallel>], iteration_bounds = array<i64: 2, 1>, scalar_prefetch = 0 : i64, scratch_operands = 0 : i64, tpu.core_type = #tpu.core_type<tc>, window_params = [{transform_indices = @transform_0, window_bounds = array<i64: 1, 7, 7, 32>}, {transform_indices = @transform_1, window_bounds = array<i64: 1, 7, 1, 2, 32>}, {pipeline_mode = #tpu.pipeline_mode<synchronous>, transform_indices = @transform_2, window_bounds = array<i64: 288, 32>}, {pipeline_mode = #tpu.pipeline_mode<synchronous>, transform_indices = @transform_3, window_bounds = array<i64: 1, 32>}, {transform_indices = @transform_4, window_bounds = array<i64: 1, 7, 7, 32>}]} {
    %c0 = arith.constant 0 : index
    %c0_0 = arith.constant 0 : index
    %c0_1 = arith.constant 0 : index
    %c0_2 = arith.constant 0 : index
    %0 = vector.load %arg2[%c0, %c0_0, %c0_1, %c0_2] : memref<1x7x7x32xbf16, #tpu.memory_space<vmem>>, vector<1x7x7x32xbf16>
    %1 = vector.shape_cast %0 : vector<1x7x7x32xbf16> to vector<7x7x32xbf16>
    %c0_3 = arith.constant 0 : index
    %c0_4 = arith.constant 0 : index
    %c0_5 = arith.constant 0 : index
    %c0_6 = arith.constant 0 : index
    %c0_7 = arith.constant 0 : index
    %2 = vector.load %arg3[%c0_3, %c0_4, %c0_5, %c0_6, %c0_7] : memref<1x7x1x2x32xbf16, #tpu.memory_space<vmem>>, vector<1x7x1x2x32xbf16>
    %3 = vector.shape_cast %2 : vector<1x7x1x2x32xbf16> to vector<7x2x32xbf16>
    %4 = vector.extract_strided_slice %3 {offsets = [0, 0, 0], sizes = [7, 1, 32], strides = [1, 1, 1]} : vector<7x2x32xbf16> to vector<7x1x32xbf16>
    %5 = vector.extract_strided_slice %3 {offsets = [0, 1, 0], sizes = [7, 1, 32], strides = [1, 1, 1]} : vector<7x2x32xbf16> to vector<7x1x32xbf16>
    %6 = tpu.concatenate %4, %1, %5 in 1 : vector<7x1x32xbf16>, vector<7x7x32xbf16>, vector<7x1x32xbf16> -> vector<7x9x32xbf16>
    %cst = arith.constant 0.000000e+00 : bf16
    %7 = vector.broadcast %cst : bf16 to vector<1x9x32xbf16>
    %8 = tpu.concatenate %7, %6, %7 in 0 : vector<1x9x32xbf16>, vector<7x9x32xbf16>, vector<1x9x32xbf16> -> vector<9x9x32xbf16>
    %9 = vector.extract_strided_slice %8 {offsets = [0, 0, 0], sizes = [7, 7, 32], strides = [1, 1, 1]} : vector<9x9x32xbf16> to vector<7x7x32xbf16>
    %10 = vector.extract_strided_slice %8 {offsets = [0, 1, 0], sizes = [7, 7, 32], strides = [1, 1, 1]} : vector<9x9x32xbf16> to vector<7x7x32xbf16>
    %11 = vector.extract_strided_slice %8 {offsets = [0, 2, 0], sizes = [7, 7, 32], strides = [1, 1, 1]} : vector<9x9x32xbf16> to vector<7x7x32xbf16>
    %12 = vector.extract_strided_slice %8 {offsets = [1, 0, 0], sizes = [7, 7, 32], strides = [1, 1, 1]} : vector<9x9x32xbf16> to vector<7x7x32xbf16>
    %13 = vector.extract_strided_slice %8 {offsets = [1, 1, 0], sizes = [7, 7, 32], strides = [1, 1, 1]} : vector<9x9x32xbf16> to vector<7x7x32xbf16>
    %14 = vector.extract_strided_slice %8 {offsets = [1, 2, 0], sizes = [7, 7, 32], strides = [1, 1, 1]} : vector<9x9x32xbf16> to vector<7x7x32xbf16>
    %15 = vector.extract_strided_slice %8 {offsets = [2, 0, 0], sizes = [7, 7, 32], strides = [1, 1, 1]} : vector<9x9x32xbf16> to vector<7x7x32xbf16>
    %16 = vector.extract_strided_slice %8 {offsets = [2, 1, 0], sizes = [7, 7, 32], strides = [1, 1, 1]} : vector<9x9x32xbf16> to vector<7x7x32xbf16>
    %17 = vector.extract_strided_slice %8 {offsets = [2, 2, 0], sizes = [7, 7, 32], strides = [1, 1, 1]} : vector<9x9x32xbf16> to vector<7x7x32xbf16>
    %18 = tpu.concatenate %9, %10, %11, %12, %13, %14, %15, %16, %17 in 2 : vector<7x7x32xbf16>, vector<7x7x32xbf16>, vector<7x7x32xbf16>, vector<7x7x32xbf16>, vector<7x7x32xbf16>, vector<7x7x32xbf16>, vector<7x7x32xbf16>, vector<7x7x32xbf16>, vector<7x7x32xbf16> -> vector<7x7x288xbf16>
    %19 = vector.shape_cast %18 : vector<7x7x288xbf16> to vector<49x288xbf16>
    %c0_8 = arith.constant 0 : index
    %c0_9 = arith.constant 0 : index
    %20 = vector.load %arg4[%c0_8, %c0_9] : memref<288x32xbf16, #tpu.memory_space<vmem>>, vector<288x32xbf16>
    %cst_10 = arith.constant dense<0.000000e+00> : vector<49x32xf32>
    %21 = tpu.matmul %19, %20, %cst_10 {dimension_numbers = #tpu.dot_dimension_numbers<[1], [0], [0], [1], [0, 0, 1, 1], [], []>} : vector<49x288xbf16>, vector<288x32xbf16>, vector<49x32xf32> -> vector<49x32xf32>
    %c0_11 = arith.constant 0 : index
    %c0_12 = arith.constant 0 : index
    %22 = vector.load %arg5[%c0_11, %c0_12] : memref<1x32xf32, #tpu.memory_space<vmem>>, vector<1x32xf32>
    %23 = vector.broadcast %22 : vector<1x32xf32> to vector<49x32xf32>
    %24 = arith.addf %21, %23 : vector<49x32xf32>
    %cst_13 = arith.constant 0.000000e+00 : f32
    %25 = vector.broadcast %cst_13 : f32 to vector<49x32xf32>
    %26 = arith.maximumf %24, %25 : vector<49x32xf32>
    %27 = vector.shape_cast %26 : vector<49x32xf32> to vector<7x7x32xf32>
    %28 = arith.truncf %27 : vector<7x7x32xf32> to vector<7x7x32xbf16>
    %c0_14 = arith.constant 0 : index
    %c0_15 = arith.constant 0 : index
    %c0_16 = arith.constant 0 : index
    %c0_17 = arith.constant 0 : index
    %29 = vector.load %arg6[%c0_14, %c0_15, %c0_16, %c0_17] : memref<1x7x7x32xbf16, #tpu.memory_space<vmem>>, vector<1x7x7x32xbf16>
    %30 = vector.shape_cast %29 : vector<1x7x7x32xbf16> to vector<7x7x32xbf16>
    %31 = vector.shape_cast %28 : vector<7x7x32xbf16> to vector<1x7x7x32xbf16>
    tpu.vector_store %arg6[%c0_14, %c0_15, %c0_16, %c0_17], %31 {strides = array<i32>} : memref<1x7x7x32xbf16, #tpu.memory_space<vmem>>, vector<1x7x7x32xbf16>,
    return
  }
  func.func @transform_0(%arg0: i32, %arg1: i32) -> (i32, i32, i32, i32) {
    %c0_i32 = arith.constant 0 : i32
    %c0_i32_0 = arith.constant 0 : i32
    %c0_i32_1 = arith.constant 0 : i32
    return %arg0, %c0_i32, %arg1, %c0_i32_0 : i32, i32, i32, i32
  }
  func.func @transform_1(%arg0: i32, %arg1: i32) -> (i32, i32, i32, i32, i32) {
    %c0_i32 = arith.constant 0 : i32
    %c0_i32_0 = arith.constant 0 : i32
    %c0_i32_1 = arith.constant 0 : i32
    %c0_i32_2 = arith.constant 0 : i32
    return %arg0, %c0_i32, %arg1, %c0_i32_0, %c0_i32_1 : i32, i32, i32, i32, i32
  }
  func.func @transform_2(%arg0: i32, %arg1: i32) -> (i32, i32) {
    %c0_i32 = arith.constant 0 : i32
    %c0_i32_0 = arith.constant 0 : i32
    %c0_i32_1 = arith.constant 0 : i32
    return %c0_i32, %c0_i32_0 : i32, i32
  }
  func.func @transform_3(%arg0: i32, %arg1: i32) -> (i32, i32) {
    %c0_i32 = arith.constant 0 : i32
    %c0_i32_0 = arith.constant 0 : i32
    %c0_i32_1 = arith.constant 0 : i32
    return %c0_i32, %c0_i32_0 : i32, i32
  }
  func.func @transform_4(%arg0: i32, %arg1: i32) -> (i32, i32, i32, i32) {
    %c0_i32 = arith.constant 0 : i32
    %c0_i32_0 = arith.constant 0 : i32
    %c0_i32_1 = arith.constant 0 : i32
    return %arg0, %c0_i32, %arg1, %c0_i32_0 : i32, i32, i32, i32
  }
}

module attributes {stable_mosaic.version = 11 : i64} {
  func.func @_maxpool3x3s2_kernel(%arg0: i32, %arg1: i32, %arg2: memref<1x7x7x32xbf16, #tpu.memory_space<vmem>>, %arg3: memref<1x1x7x32xbf16, #tpu.memory_space<vmem>>, %arg4: memref<1x3x3x32xbf16, #tpu.memory_space<vmem>>) attributes {dimension_semantics = [#tpu.dimension_semantics<parallel>, #tpu.dimension_semantics<parallel>], iteration_bounds = array<i64: 2, 1>, scalar_prefetch = 0 : i64, scratch_operands = 0 : i64, tpu.core_type = #tpu.core_type<tc>, window_params = [{transform_indices = @transform_0, window_bounds = array<i64: 1, 7, 7, 32>}, {transform_indices = @transform_1, window_bounds = array<i64: 1, 1, 7, 32>}, {transform_indices = @transform_2, window_bounds = array<i64: 1, 3, 3, 32>}]} {
    %c0 = arith.constant 0 : index
    %c0_0 = arith.constant 0 : index
    %c0_1 = arith.constant 0 : index
    %c0_2 = arith.constant 0 : index
    %0 = vector.load %arg2[%c0, %c0_0, %c0_1, %c0_2] : memref<1x7x7x32xbf16, #tpu.memory_space<vmem>>, vector<1x7x7x32xbf16>
    %1 = vector.shape_cast %0 : vector<1x7x7x32xbf16> to vector<7x7x32xbf16>
    %2 = vector.extract_strided_slice %1 {offsets = [0, 0, 0], sizes = [7, 6, 32], strides = [1, 1, 1]} : vector<7x7x32xbf16> to vector<7x6x32xbf16>
    %c0_3 = arith.constant 0 : index
    %c0_4 = arith.constant 0 : index
    %c0_5 = arith.constant 0 : index
    %c0_6 = arith.constant 0 : index
    %3 = vector.load %arg3[%c0_3, %c0_4, %c0_5, %c0_6] : memref<1x1x7x32xbf16, #tpu.memory_space<vmem>>, vector<1x1x7x32xbf16>
    %4 = vector.shape_cast %3 : vector<1x1x7x32xbf16> to vector<7x1x32xbf16>
    %5 = tpu.concatenate %2, %4 in 1 : vector<7x6x32xbf16>, vector<7x1x32xbf16> -> vector<7x7x32xbf16>
    %6 = vector.extract_strided_slice %5 {offsets = [0, 0, 0], sizes = [6, 7, 32], strides = [1, 1, 1]} : vector<7x7x32xbf16> to vector<6x7x32xbf16>
    %7 = vector.shape_cast %6 : vector<6x7x32xbf16> to vector<3x2x7x32xbf16>
    %8 = vector.extract_strided_slice %7 {offsets = [0, 0, 0, 0], sizes = [3, 1, 7, 32], strides = [1, 1, 1, 1]} : vector<3x2x7x32xbf16> to vector<3x1x7x32xbf16>
    %9 = vector.shape_cast %8 : vector<3x1x7x32xbf16> to vector<3x7x32xbf16>
    %10 = vector.extract_strided_slice %7 {offsets = [0, 1, 0, 0], sizes = [3, 1, 7, 32], strides = [1, 1, 1, 1]} : vector<3x2x7x32xbf16> to vector<3x1x7x32xbf16>
    %11 = vector.shape_cast %10 : vector<3x1x7x32xbf16> to vector<3x7x32xbf16>
    %12 = vector.extract_strided_slice %9 {offsets = [1, 0, 0], sizes = [2, 7, 32], strides = [1, 1, 1]} : vector<3x7x32xbf16> to vector<2x7x32xbf16>
    %13 = vector.extract_strided_slice %5 {offsets = [6, 0, 0], sizes = [1, 7, 32], strides = [1, 1, 1]} : vector<7x7x32xbf16> to vector<1x7x32xbf16>
    %14 = tpu.concatenate %12, %13 in 0 : vector<2x7x32xbf16>, vector<1x7x32xbf16> -> vector<3x7x32xbf16>
    %15 = arith.maximumf %9, %11 : vector<3x7x32xbf16>
    %16 = arith.maximumf %15, %14 : vector<3x7x32xbf16>
    %17 = vector.extract_strided_slice %16 {offsets = [0, 0, 0], sizes = [3, 6, 32], strides = [1, 1, 1]} : vector<3x7x32xbf16> to vector<3x6x32xbf16>
    %18 = vector.shape_cast %17 : vector<3x6x32xbf16> to vector<3x3x2x32xbf16>
    %19 = vector.extract_strided_slice %18 {offsets = [0, 0, 0, 0], sizes = [3, 3, 1, 32], strides = [1, 1, 1, 1]} : vector<3x3x2x32xbf16> to vector<3x3x1x32xbf16>
    %20 = vector.shape_cast %19 : vector<3x3x1x32xbf16> to vector<3x3x32xbf16>
    %21 = vector.extract_strided_slice %18 {offsets = [0, 0, 1, 0], sizes = [3, 3, 1, 32], strides = [1, 1, 1, 1]} : vector<3x3x2x32xbf16> to vector<3x3x1x32xbf16>
    %22 = vector.shape_cast %21 : vector<3x3x1x32xbf16> to vector<3x3x32xbf16>
    %23 = vector.extract_strided_slice %20 {offsets = [0, 1, 0], sizes = [3, 2, 32], strides = [1, 1, 1]} : vector<3x3x32xbf16> to vector<3x2x32xbf16>
    %24 = vector.extract_strided_slice %16 {offsets = [0, 6, 0], sizes = [3, 1, 32], strides = [1, 1, 1]} : vector<3x7x32xbf16> to vector<3x1x32xbf16>
    %25 = tpu.concatenate %23, %24 in 1 : vector<3x2x32xbf16>, vector<3x1x32xbf16> -> vector<3x3x32xbf16>
    %26 = arith.maximumf %20, %22 : vector<3x3x32xbf16>
    %27 = arith.maximumf %26, %25 : vector<3x3x32xbf16>
    %c0_7 = arith.constant 0 : index
    %c0_8 = arith.constant 0 : index
    %c0_9 = arith.constant 0 : index
    %c0_10 = arith.constant 0 : index
    %28 = vector.load %arg4[%c0_7, %c0_8, %c0_9, %c0_10] : memref<1x3x3x32xbf16, #tpu.memory_space<vmem>>, vector<1x3x3x32xbf16>
    %29 = vector.shape_cast %28 : vector<1x3x3x32xbf16> to vector<3x3x32xbf16>
    %30 = vector.shape_cast %27 : vector<3x3x32xbf16> to vector<1x3x3x32xbf16>
    tpu.vector_store %arg4[%c0_7, %c0_8, %c0_9, %c0_10], %30 {strides = array<i32>} : memref<1x3x3x32xbf16, #tpu.memory_space<vmem>>, vector<1x3x3x32xbf16>,
    return
  }
  func.func @transform_0(%arg0: i32, %arg1: i32) -> (i32, i32, i32, i32) {
    %c0_i32 = arith.constant 0 : i32
    %c0_i32_0 = arith.constant 0 : i32
    %c0_i32_1 = arith.constant 0 : i32
    return %arg0, %c0_i32, %arg1, %c0_i32_0 : i32, i32, i32, i32
  }
  func.func @transform_1(%arg0: i32, %arg1: i32) -> (i32, i32, i32, i32) {
    %c0_i32 = arith.constant 0 : i32
    %c0_i32_0 = arith.constant 0 : i32
    %c0_i32_1 = arith.constant 0 : i32
    return %arg0, %arg1, %c0_i32, %c0_i32_0 : i32, i32, i32, i32
  }
  func.func @transform_2(%arg0: i32, %arg1: i32) -> (i32, i32, i32, i32) {
    %c0_i32 = arith.constant 0 : i32
    %c0_i32_0 = arith.constant 0 : i32
    %c0_i32_1 = arith.constant 0 : i32
    return %arg0, %c0_i32, %arg1, %c0_i32_0 : i32, i32, i32, i32
  }
}

</mosaic_0001>

<bundles_post_ra>
// kernel: vggnet_forward.6
= control target key start
LH: loop header
LB: loop body
LE: loop exit
PB: predicated region body
PF: predicated region fallthrough
CT: control target
= control target key end

     0   :  { %s2163_s15 = smov 0   ;;  %s2165_s16 = smov 0   ;;  %s3078_s0 = inlined_call_operand.vmem [shape: bf16[2,16,16,1], index: 0, kind: input, shape index: {}]   ;;  %s3079_s1 = inlined_call_operand.vmem [shape: bf16[2,16,1,2,1], index: 1, kind: input, shape index: {}]   ;;  %s3080_s2 = inlined_call_operand.vmem [shape: bf16[9,64], index: 2, kind: input, shape index: {}]   ;;  %s3081_s3 = inlined_call_operand.vmem [shape: f32[1,64], index: 3, kind: input, shape index: {}]   ;;  %s3082_s4 = inlined_call_operand.vmem [shape: bf16[2,16,16,64], index: 4, kind: output, shape index: {}]  }
   0x1   :  { %s2167_s17 = smov 0  }
   0x2 LB: > { %s26_s18 = sadd.s32 1, %s2122_s16  ;;  %p1892_p0 = scmp.ge.s32.totalorder %s2126_s17, 1  ;;  %s2126_s17 = sphi %s2167_s17, %s14_s17   ;;  %s2122_s16 = sphi %s2165_s16, %s3086_s16   ;;  %s2118_s15 = sphi %s2163_s15, %s3085_s15  }
   0x3   : > { %p28_p1 = scmp.ge.s32.totalorder %s26_s18, 2  ;;  %p197_p2 = scmp.lt.s32.totalorder %s2126_s17, 3 }
   0x5   : > { %s3088_s18 = smov (%p28_p1, %s26_s18), 0  ;;  %p198_p3 = pnand %p1892_p0, %p197_p2 }
   0x6   : > { %v2128_v0 = vmov (!%p198_p3), 0   ;;  %p239_p4 = scmp.lt.s32.totalorder (!%p198_p3), %s2118_s15, 1  ;;  %s2129_s19 = smov (!%p198_p3), 1   ;;  %vm539_vm0 = vsmask.f32 (!%p198_p3), 256  ;;  %vm538_vm1 = vcmask (!%p198_p3), 1040384  }
   0x7   : > { %201 = sbr.rel (%p198_p3) target bundleno = 615 (0x267), region = 36  ;;  %v2182_v1 = vrot.slane (!%p198_p3), %v2128_v0, 1  ;;  %s2130_s25 = smov (!%p198_p3), 2   ;;  %vm2211_vm2 = vmand (!%p198_p3), %vm538_vm1, %vm539_vm0  ;;  %vm825_vm3 = vcmask (!%p198_p3), 1046528   ;;  %vm573_vm4 = vsmask.f32 (!%p198_p3), 7424 }
   0x8   : > { %s2131_s29 = smov (!%p198_p3), 3   ;;  %s2132_s30 = smov (!%p198_p3), 4   ;;  %vm1425_vm5 = vcmask (!%p198_p3), 1043456   ;;  %vm1426_vm6 = vcmask (!%p198_p3), 1044480   ;;  %vm1114_vm7 = vcmask (!%p198_p3), 7168   ;;  %vm1147_vm8 = vcmask (!%p198_p3), 15360  }
   0x9   : > { %762 = vrot.lane.b32.xlu0 (!%p198_p3), %v2182_v1, %s2129_s19  ;;  %s2133_s5 = smov (!%p198_p3), 5   ;;  %s2134_s6 = smov (!%p198_p3), 6   ;;  %vm1180_vm9 = vcmask (!%p198_p3), 23552   ;;  %vm1213_vm10 = vcmask (!%p198_p3), 31744   ;;  %vm1246_vm11 = vcmask (!%p198_p3), 39936   ;;  %vm1279_vm12 = vcmask (!%p198_p3), 48128  }
   0xa   : > { %s2135_s7 = smov (!%p198_p3), 7   ;;  %s2136_s10 = smov (!%p198_p3), 8   ;;  %vm1312_vm13 = vcmask (!%p198_p3), 56320   ;;  %vm1345_vm14 = vcmask (!%p198_p3), 64512   ;;  %vm1392_vm15 = vcmask (!%p198_p3), 72704   ;;  %vm1753_vm0 = vcmask (!%p198_p3), 519168  }
   0xd   : > { %873 = vrot.lane.b32.xlu0 (!%p198_p3), %v2182_v1, %s2130_s25 }
   0xe   : > { %s3090_s15 = smov (!%p239_p4, %s2118_s15), 1 }
   0xf   : > { %s1966_s20 = sshll.u32 %s3090_s15, 7  ;;  %s1895_s21 = sshll.u32 %s3090_s15, 4 }
  0x10   : > { %s2195_s24 = scalar_lea.vmem %s3078_s0, %s1966_s20  ;;  %s2202_s28 = scalar_lea.vmem %s3079_s1, %s1895_s21 }
  0x11   : > { %v2087_v2 = vld [vmem:[%s2195_s24 + $0x40] sm:$0xff]   ;;  %v306_v6 = vld [vmem:[%s2202_s28 + $0x8] sm:$0x1]  ;;  %v2091_v13 = vld [vmem:[%s2195_s24 + $0x38] sm:$0xff]  }
  0x12   : > { %v2088_v3 = vld [vmem:[%s2195_s24] sm:$0xff]   ;;  %v451_v4 = vshrl.u32 %v2087_v2, 16  ;;  %v454_v5 = vshll.u32 %v2087_v2, 16  ;;  %v2089_v9 = vld [vmem:[%s2195_s24 + $0x48] sm:$0xff]   ;;  %v444_v23 = vshrl.u32 %v2091_v13, 16  ;;  %v447_v27 = vshll.u32 %v2091_v13, 16 }
  0x13   : > { %v395_v7 = vshrl.u32 %v2088_v3, 16  ;;  %v398_v8 = vshll.u32 %v2088_v3, 16  ;;  %v2090_v10 = vld [vmem:[%s2195_s24 + $0x8] sm:$0xff]   ;;  %v298_v12 = vld [vmem:[%s2202_s28] sm:$0x1]  ;;  %v458_v16 = vshrl.u32 %v2089_v9, 16 }
  0x14   : > { %v453_v11 = vrot.slane %v451_v4, 7  ;;  %v461_v17 = vshll.u32 %v2089_v9, 16  ;;  %v402_v18 = vshrl.u32 %v2090_v10, 16  ;;  %v2216_v20 = vld [vmem:[%s2202_s28 + $0x9] sm:$0x1]  ;;  %v405_v21 = vshll.u32 %v2090_v10, 16 }
  0x15   : > { %v397_v15 = vrot.slane %v395_v7, 7  ;;  %v305_v22 = vld [vmem:[%s2202_s28 + $0x7] sm:$0x1]  ;;  %v2219_v25 = vrot.slane %v458_v16, 7  ;;  %v299_v29 = vld [vmem:[%s2202_s28 + $0x1] sm:$0x1] }
  0x16   : > { %v456_v19 = vor.u32 %v454_v5, %v453_v11  ;;  %v404_v26 = vrot.slane %v402_v18, 7  ;;  %v446_v30 = vrot.slane %v444_v23, 7  ;;  %v565_v35 = vsel %vm2211_vm2, %v453_v11, %v306_v6  ;;  %v2092_v10 = vld [vmem:[%s2195_s24 + $0x10] sm:$0xff]  }
  0x17   : > { %v400_v24 = vor.u32 %v398_v8, %v397_v15  ;;  %v557_v31 = vsel %vm2211_vm2, %v397_v15, %v298_v12  ;;  %v463_v33 = vor.u32 %v461_v17, %v2219_v25  ;;  %v853_v45 = vrot.slane %v565_v35, 1 }
  0x18   : > { %v2223_v28 = vsel %vm2211_vm2, %v306_v6, %v456_v19  ;;  %v407_v34 = vor.u32 %v405_v21, %v404_v26  ;;  %v449_v36 = vor.u32 %v447_v27, %v446_v30  ;;  %v564_v37 = vsel %vm2211_vm2, %v446_v30, %v305_v22  ;;  %v2093_v27 = vld [vmem:[%s2195_s24 + $0x50] sm:$0xff]  }
  0x19   : > { %922 = vrot.lane.b32.xlu1 %v2223_v28, %s2131_s29  ;;  %v2232_v32 = vsel %vm2211_vm2, %v298_v12, %v400_v24  ;;  %v829_v39 = vrot.slane %v557_v31, 1  ;;  %v2245_v40 = vsel %vm2211_vm2, %v2216_v20, %v463_v33  ;;  %v850_v42 = vrot.slane %v564_v37, 1 }
  0x1a   : > { %906 = vrot.lane.b32.xlu0 %v2232_v32, %s2131_s29  ;;  %v828_v38 = vrot.slane %v2232_v32, 1  ;;  %v2249_v41 = vsel %vm2211_vm2, %v299_v29, %v407_v34  ;;  %v674_v43 = vshll.u32 %v564_v37, 16  ;;  %v2253_v44 = vsel %vm2211_vm2, %v305_v22, %v449_v36  ;;  %v300_v36 = vld [vmem:[%s2202_s28 + $0x2] sm:$0x1] }
  0x1b   : > { %v849_v46 = vrot.slane %v2253_v44, 1  ;;  %v852_v47 = vrot.slane %v2223_v28, 1  ;;  %v667_v48 = vshrl.u32 %v2253_v44, 16  ;;  %v669_v49 = vshll.u32 %v2253_v44, 16 }
  0x1c   : > { %v830_v50 = vsel %vm825_vm3, %v828_v38, %v829_v39  ;;  %v583_v51 = vshrl.u32 %v2232_v32, 16  ;;  %v585_v52 = vshll.u32 %v2232_v32, 16  ;;  %v590_v53 = vshll.u32 %v557_v31, 16 }
  0x1d   : > { %924 = vrot.lane.b32.xlu1 %v2245_v40, %s2131_s29  ;;  %v2267_v54 = vsel %vm825_vm3, %v849_v46, %v850_v42  ;;  %v671_v55 = vrot.slane %v669_v49, 1  ;;  %v676_v56 = vrot.slane %v674_v43, 1  ;;  %v597_v57 = vshll.u32 %v2249_v41, 16 }
  0x1e   : > { %908 = vrot.lane.b32.xlu0 %v2249_v41, %s2131_s29  ;;  %v587_v58 = vrot.slane %v585_v52, 1  ;;  %v558_v59 = vsel %vm2211_vm2, %v404_v26, %v299_v29  ;;  %v681_v60 = vshll.u32 %v2223_v28, 16  ;;  %v2276_v61 = vsel %vm825_vm3, %v852_v47, %v853_v45 }
  0x1f   : > { %v672_v62 = vor.u32 %v671_v55, %v667_v48  ;;  %v592_v63 = vrot.slane %v590_v53, 1  ;;  %v679_v3 = vshrl.u32 %v2223_v28, 16  ;;  %v686_v5 = vshll.u32 %v565_v35, 16 }
  0x20   : > { %v588_v2 = vor.u32 %v587_v58, %v583_v51  ;;  %v683_v4 = vrot.slane %v681_v60, 1  ;;  %v595_v7 = vshrl.u32 %v2249_v41, 16  ;;  %v599_v8 = vrot.slane %v597_v57, 1 }
  0x21   : > { %889 = vrot.lane.b32.xlu1 %v2267_v54, %s2130_s25  ;;  %v2281_v6 = vsel %vm573_vm4, %v672_v62, %v676_v56  ;;  %v602_v9 = vshll.u32 %v558_v59, 16  ;;  %v688_v13 = vrot.slane %v686_v5, 1  ;;  %v693_v15 = vshll.u32 %v2245_v40, 16 }
  0x22   : > { %875 = vrot.lane.b32.xlu0 %v830_v50, %s2130_s25  ;;  %v593_v11 = vsel %vm573_vm4, %v588_v2, %v592_v63  ;;  %v684_v12 = vor.u32 %v683_v4, %v679_v3  ;;  %v600_v16 = vor.u32 %v599_v8, %v595_v7  ;;  %v566_v18 = vsel %vm2211_vm2, %v2219_v25, %v2216_v20  ;;  %v2101_v7 = vld [vmem:[%s3080_s2] sm:$0x1f]  }
  0x23   : > { %v604_v17 = vrot.slane %v602_v9, 1  ;;  %v409_v19 = vshrl.u32 %v2092_v10, 16  ;;  %v691_v22 = vshrl.u32 %v2245_v40, 16  ;;  %v695_v23 = vrot.slane %v693_v15, 1  ;;  %v2094_v15 = vld [vmem:[%s2195_s24 + $0x18] sm:$0xff]  }
  0x24   : > { %v2298_v21 = vsel %vm573_vm4, %v684_v12, %v688_v13  ;;  %v698_v24 = vshll.u32 %v566_v18, 16  ;;  %v412_v20 = vshll.u32 %v2092_v10, 16  ;;  %v831_v31 = vrot.slane %v2249_v41, 1 }
  0x25   : > { %891 = vrot.lane.b32.xlu1 %v2276_v61, %s2130_s25  ;;  %v2302_v26 = vsel %vm573_vm4, %v600_v16, %v604_v17  ;;  %v411_v29 = vrot.slane %v409_v19, 7  ;;  %v696_v25 = vor.u32 %v695_v23, %v691_v22  ;;  %v832_v33 = vrot.slane %v558_v59, 1  ;;  %v2095_v23 = vld [vmem:[%s2195_s24 + $0x58] sm:$0xff]  }
  0x26   : > { %778 = vrot.lane.b32.xlu0 %v2281_v6, %s2129_s19  ;;  %v700_v30 = vrot.slane %v698_v24, 1  ;;  %v465_v34 = vshrl.u32 %v2093_v27, 16  ;;  %v468_v42 = vshll.u32 %v2093_v27, 16  ;;  %v855_v45 = vrot.slane %v2245_v40, 1 }
  0x27   : > { %v414_v35 = vor.u32 %v412_v20, %v411_v29  ;;  %v2318_v38 = vsel %vm825_vm3, %v831_v31, %v832_v33  ;;  %v856_v46 = vrot.slane %v566_v18, 1  ;;  %v559_v49 = vsel %vm2211_vm2, %v411_v29, %v300_v36 }
  0x28   : > { %v2315_v37 = vsel %vm573_vm4, %v696_v25, %v700_v30  ;;  %v467_v39 = vrot.slane %v465_v34, 7  ;;  %v614_v55 = vshll.u32 %v559_v49, 16  ;;  %v2137_v9 = vmov 65535   ;;  %v301_v25 = vld [vmem:[%s2202_s28 + $0x3] sm:$0x1] }
  0x29   : > { %764 = vrot.lane.b32.xlu1 %v593_v11, %s2129_s19  ;;  %v2322_v43 = vsel %vm2211_vm2, %v300_v36, %v414_v35  ;;  %v2338_v51 = vsel %vm825_vm3, %v855_v45, %v856_v46  ;;  %v1427_v10 = vsel %vm1425_vm5, 4294967295, %v2137_v9  ;;  %v835_v12 = vrot.slane %v559_v49, 1  ;;  %v2096_v46 = vld [vmem:[%s2195_s24 + $0x20] sm:$0xff]  }
  0x2a   : > { %950 = vrot.lane.b32.xlu0 %v593_v11, %s2132_s30  ;;  %v609_v47 = vshll.u32 %v2322_v43, 16  ;;  %v470_v48 = vor.u32 %v468_v42, %v467_v39  ;;  %v607_v52 = vshrl.u32 %v2322_v43, 16  ;;  %v616_v59 = vrot.slane %v614_v55, 1 }
  0x2b   : > { %v834_v11 = vrot.slane %v2322_v43, 1  ;;  %v1428_v13 = vsel %vm1426_vm6, %v1427_v10, 0  ;;  %v416_v18 = vshrl.u32 %v2094_v15, 16  ;;  %v419_v27 = vshll.u32 %v2094_v15, 16 }
  0x2c   : > { %v611_v53 = vrot.slane %v609_v47, 1  ;;  %v1430_v16 = vand.u32 %v2101_v7, %v1428_v13  ;;  %v472_v29 = vshrl.u32 %v2095_v23, 16  ;;  %v475_v31 = vshll.u32 %v2095_v23, 16  ;;  %v302_v7 = vld [vmem:[%s2202_s28 + $0x4] sm:$0x1] }
  0x2d   : > { %780 = vrot.lane.b32.xlu1 %v2298_v21, %s2129_s19  ;;  %v836_v17 = vsel %vm825_vm3, %v834_v11, %v835_v12  ;;  %v418_v24 = vrot.slane %v416_v18, 7 }
  0x2e   : > { %952 = vrot.lane.b32.xlu0 %v2302_v26, %s2132_s30  ;;  %v612_v58 = vor.u32 %v611_v53, %v607_v52  ;;  %2017 = vmatprep.subr.bf16.mxu0 %v1430_v16  ;;  %v474_v30 = vrot.slane %v472_v29, 7 }
  0x2f   : > { %2018 = vmatpush3.bf16.msra.mxu0 %v1430_v16  ;;  %2051 = vmatprep.subr.bf16.mxu1 %v1430_v16  ;;  %v421_v20 = vor.u32 %v419_v27, %v418_v24  ;;  %v560_v36 = vsel %vm2211_vm2, %v418_v24, %v301_v25 }
  0x30   : > { %v2358_v3 = vsel %vm573_vm4, %v612_v58, %v616_v59  ;;  %2052 = vmatpush3.bf16.msra.mxu1 %v1430_v16  ;;  %v477_v35 = vor.u32 %v475_v31, %v474_v30  ;;  %v626_v42 = vshll.u32 %v560_v36, 16  ;;  %v2097_v58 = vld [vmem:[%s2195_s24 + $0x60] sm:$0xff]  }
  0x31   : > { %966 = vrot.lane.b32.xlu1 %v2298_v21, %s2132_s30  ;;  %v2397_v33 = vsel %vm2211_vm2, %v301_v25, %v421_v20  ;;  %v482_v12 = vshll.u32 %v2097_v58, 16 }
  0x32   : > { %986 = vrot.lane.b32.xlu0 %v830_v50, %s2133_s5  ;;  %v308_v50 = vld [vmem:[%s2202_s28 + $0xa] sm:$0x1]  ;;  %v621_v34 = vshll.u32 %v2397_v33, 16  ;;  %v628_v49 = vrot.slane %v626_v42, 1 }
  0x33   : > { %v2343_v56 = vsel %vm2211_vm2, %v308_v50, %v470_v48  ;;  %v567_v60 = vsel %vm2211_vm2, %v467_v39, %v308_v50 }
  0x34   : > { %v705_v57 = vshll.u32 %v2343_v56, 16  ;;  %v703_v62 = vshrl.u32 %v2343_v56, 16  ;;  %v710_v2 = vshll.u32 %v567_v60, 16  ;;  %v858_v19 = vrot.slane %v2343_v56, 1 }
  0x35   : > { %968 = vrot.lane.b32.xlu1 %v2315_v37, %s2132_s30  ;;  %v859_v22 = vrot.slane %v567_v60, 1  ;;  %v623_v39 = vrot.slane %v621_v34, 1  ;;  %v426_v60 = vshll.u32 %v2096_v46, 16 }
  0x36   : > { %988 = vrot.lane.b32.xlu0 %v2318_v38, %s2133_s5  ;;  %v707_v63 = vrot.slane %v705_v57, 1  ;;  %v712_v5 = vrot.slane %v710_v2, 1  ;;  %v837_v2 = vrot.slane %v2397_v33, 1 }
  0x38   : > { %v708_v4 = vor.u32 %v707_v63, %v703_v62 }
  0x39   : > { %1002 = vrot.lane.b32.xlu1 %v2276_v61, %s2133_s5 }
  0x3a   : > { %1018 = vrot.lane.b32.xlu0 %v2249_v41, %s2134_s6  ;;  %v2372_v8 = vsel %vm573_vm4, %v708_v4, %v712_v5  ;;  %v479_v4 = vshrl.u32 %v2097_v58, 16 }
  0x3c   : > { %v481_v11 = vrot.slane %v479_v4, 7 }
  0x3d   : > { %1004 = vrot.lane.b32.xlu1 %v2338_v51, %s2133_s5 }
  0x3e   : > { %1020 = vrot.lane.b32.xlu0 %v2322_v43, %s2134_s6 }
  0x41   : > { %1034 = vrot.lane.b32.xlu1 %v2245_v40, %s2134_s6 }
  0x42   : > { %1050 = vrot.lane.b32.xlu0 %v2302_v26, %s2135_s7 }
  0x45   : > { %1036 = vrot.lane.b32.xlu1 %v2343_v56, %s2134_s6 }
  0x46   : > { %1052 = vrot.lane.b32.xlu0 %v2358_v3, %s2135_s7 }
  0x49   : > { %1066 = vrot.lane.b32.xlu1 %v2315_v37, %s2135_s7 }
  0x4a   : > { %1082 = vrot.lane.b32.xlu0 %v2318_v38, %s2136_s10 }
  0x4d   : > { %1068 = vrot.lane.b32.xlu1 %v2372_v8, %s2135_s7 }
  0x4e   : > { %766 = vrot.lane.b32.xlu0 %v2302_v26, %s2129_s19  ;;  %v860_v26 = vsel %vm825_vm3, %v858_v19, %v859_v22  ;;  %v310_v19 = vld [vmem:[%s2202_s28 + $0xc] sm:$0x1] }
  0x51   : > { %1098 = vrot.lane.b32.xlu1 %v2338_v51, %s2136_s10 }
  0x52   : > { %1084 = vrot.lane.b32.xlu0 %v836_v17, %s2136_s10 }
  0x55   : > { %782 = vrot.lane.b32.xlu1 %v2315_v37, %s2129_s19  ;;  %v309_v37 = vld [vmem:[%s2202_s28 + $0xb] sm:$0x1] }
  0x56   : > { %768 = vrot.lane.b32.xlu0 %v2358_v3, %s2129_s19  ;;  %v2413_v45 = vsel %vm2211_vm2, %v309_v37, %v477_v35  ;;  %v568_v50 = vsel %vm2211_vm2, %v474_v30, %v309_v37  ;;  %v569_v30 = vsel %vm2211_vm2, %v481_v11, %v310_v19 }
  0x57   : > { %v717_v47 = vshll.u32 %v2413_v45, 16  ;;  %v715_v52 = vshrl.u32 %v2413_v45, 16  ;;  %v722_v55 = vshll.u32 %v568_v50, 16  ;;  %v862_v15 = vrot.slane %v568_v50, 1 }
  0x59   : > { %1100 = vrot.lane.b32.xlu1 %v860_v26, %s2136_s10  ;;  %v719_v53 = vrot.slane %v717_v47, 1  ;;  %v724_v63 = vrot.slane %v722_v55, 1 }
  0x5a   : > { %877 = vrot.lane.b32.xlu0 %v2318_v38, %s2130_s25  ;;  %v619_v38 = vshrl.u32 %v2397_v33, 16 }
  0x5b   : > { %v720_v62 = vor.u32 %v719_v53, %v715_v52 }
  0x5c   : > { %v624_v48 = vor.u32 %v623_v39, %v619_v38 }
  0x5d   : > { %784 = vrot.lane.b32.xlu1 %v2372_v8, %s2129_s19  ;;  %v725_v9 = vsel %vm573_vm4, %v720_v62, %v724_v63 }
  0x5e   : > { %879 = vrot.lane.b32.xlu0 %v836_v17, %s2130_s25  ;;  %v629_v57 = vsel %vm573_vm4, %v624_v48, %v628_v49 }
  0x61   : > { %893 = vrot.lane.b32.xlu1 %v2338_v51, %s2130_s25  ;;  %v423_v51 = vshrl.u32 %v2096_v46, 16 }
  0x62   : > { %910 = vrot.lane.b32.xlu0 %v2322_v43, %s2131_s29 }
  0x63   : > { %v425_v59 = vrot.slane %v423_v51, 7  ;;  %v2098_v51 = vld [vmem:[%s2195_s24 + $0x28] sm:$0xff]  }
  0x64   : > { %v430_v58 = vshrl.u32 %v2098_v51, 16 }
  0x65   : > { %895 = vrot.lane.b32.xlu1 %v860_v26, %s2130_s25  ;;  %v428_v5 = vor.u32 %v426_v60, %v425_v59  ;;  %v561_v18 = vsel %vm2211_vm2, %v425_v59, %v302_v7  ;;  %v865_v60 = vrot.slane %v569_v30, 1 }
  0x66   : > { %912 = vrot.lane.b32.xlu0 %v2397_v33, %s2131_s29  ;;  %v638_v27 = vshll.u32 %v561_v18, 16  ;;  %v841_v49 = vrot.slane %v561_v18, 1 }
  0x67   : > { %v2443_v13 = vsel %vm2211_vm2, %v302_v7, %v428_v5 }
  0x68   : > { %v633_v16 = vshll.u32 %v2443_v13, 16  ;;  %v631_v23 = vshrl.u32 %v2443_v13, 16  ;;  %v640_v25 = vrot.slane %v638_v27, 1  ;;  %v840_v48 = vrot.slane %v2443_v13, 1 }
  0x69   : > { %926 = vrot.lane.b32.xlu1 %v2343_v56, %s2131_s29 }
  0x6a   : > { %954 = vrot.lane.b32.xlu0 %v2358_v3, %s2132_s30  ;;  %v838_v3 = vrot.slane %v560_v36, 1  ;;  %v635_v24 = vrot.slane %v633_v16, 1  ;;  %v734_v36 = vshll.u32 %v569_v30, 16  ;;  %v2504_v53 = vsel %vm825_vm3, %v840_v48, %v841_v49 }
  0x6c   : > { %v2439_v10 = vsel %vm825_vm3, %v837_v2, %v838_v3  ;;  %v636_v20 = vor.u32 %v635_v24, %v631_v23  ;;  %v736_v42 = vrot.slane %v734_v36, 1  ;;  %v432_v2 = vrot.slane %v430_v58, 7 }
  0x6d   : > { %928 = vrot.lane.b32.xlu1 %v2413_v45, %s2131_s29  ;;  %v433_v3 = vshll.u32 %v2098_v51, 16 }
  0x6e   : > { %956 = vrot.lane.b32.xlu0 %v629_v57, %s2132_s30  ;;  %v2478_v37 = vsel %vm573_vm4, %v636_v20, %v640_v25 }
  0x71   : > { %970 = vrot.lane.b32.xlu1 %v2372_v8, %s2132_s30  ;;  %v861_v8 = vrot.slane %v2413_v45, 1 }
  0x72   : > { %990 = vrot.lane.b32.xlu0 %v836_v17, %s2133_s5  ;;  %v484_v17 = vor.u32 %v482_v12, %v481_v11  ;;  %v435_v12 = vor.u32 %v433_v3, %v432_v2 }
  0x73   : > { %v2457_v22 = vsel %vm825_vm3, %v861_v8, %v862_v15  ;;  %v303_v8 = vld [vmem:[%s2202_s28 + $0x5] sm:$0x1] }
  0x74   : > { %v2462_v29 = vsel %vm2211_vm2, %v310_v19, %v484_v17  ;;  %v2539_v18 = vsel %vm2211_vm2, %v303_v8, %v435_v12  ;;  %v562_v27 = vsel %vm2211_vm2, %v432_v2, %v303_v8  ;;  %v2102_v12 = vld [vmem:[%s2195_s24 + $0x70] sm:$0xff]  }
  0x75   : > { %972 = vrot.lane.b32.xlu1 %v725_v9, %s2132_s30  ;;  %v727_v34 = vshrl.u32 %v2462_v29, 16  ;;  %v864_v59 = vrot.slane %v2462_v29, 1  ;;  %v643_v25 = vshrl.u32 %v2539_v18, 16 }
  0x76   : > { %992 = vrot.lane.b32.xlu0 %v2439_v10, %s2133_s5 }
  0x77   : > { %v2522_v4 = vsel %vm825_vm3, %v864_v59, %v865_v60 }
  0x79   : > { %1006 = vrot.lane.b32.xlu1 %v860_v26, %s2133_s5  ;;  %v729_v26 = vshll.u32 %v2462_v29, 16 }
  0x7a   : > { %1022 = vrot.lane.b32.xlu0 %v2397_v33, %s2134_s6 }
  0x7b   : > { %v2471_v31 = vpop.permute.xlu0 %762  ;;  %v731_v35 = vrot.slane %v729_v26, 1  ;;  %v311_v26 = vld [vmem:[%s2202_s28 + $0xd] sm:$0x1] }
  0x7d   : > { %1008 = vrot.lane.b32.xlu1 %v2457_v22, %s2133_s5  ;;  %v732_v39 = vor.u32 %v731_v35, %v727_v34  ;;  %v650_v34 = vshll.u32 %v562_v27, 16 }
  0x7e   : > { %1024 = vrot.lane.b32.xlu0 %v2443_v13, %s2134_s6 }
  0x7f   : > { %v2484_v38 = vpop.permute.xlu0 %873  ;;  %v2490_v46 = vsel %vm573_vm4, %v732_v39, %v736_v42  ;;  %v2100_v39 = vld [vmem:[%s2195_s24 + $0x30] sm:$0xff]   ;;  %v652_v49 = vrot.slane %v650_v34, 1 }
  0x80   : > { %v437_v59 = vshrl.u32 %v2100_v39, 16 }
  0x81   : > { %1038 = vrot.lane.b32.xlu1 %v2413_v45, %s2134_s6 }
  0x82   : > { %1054 = vrot.lane.b32.xlu0 %v629_v57, %s2135_s7 }
  0x85   : > { %1040 = vrot.lane.b32.xlu1 %v2462_v29, %s2134_s6 }
  0x86   : > { %1056 = vrot.lane.b32.xlu0 %v2478_v37, %s2135_s7 }
  0x89   : > { %1070 = vrot.lane.b32.xlu1 %v725_v9, %s2135_s7 }
  0x8a   : > { %1086 = vrot.lane.b32.xlu0 %v2439_v10, %s2136_s10 }
  0x8b   : > { %v2492_v47 = vpop.permute.xlu1 %922 }
  0x8c   : > { %v2495_v50 = vpop.permute.xlu0 %906 }
  0x8d   : > { %1072 = vrot.lane.b32.xlu1 %v2490_v46, %s2135_s7 }
  0x8e   : > { %770 = vrot.lane.b32.xlu0 %v629_v57, %s2129_s19  ;;  %v2099_v57 = vld [vmem:[%s2195_s24 + $0x68] sm:$0xff]  }
  0x8f   : > { %v2501_v52 = vpop.permute.xlu1 %924  ;;  %v486_v7 = vshrl.u32 %v2099_v57, 16  ;;  %v489_v16 = vshll.u32 %v2099_v57, 16 }
  0x90   : > { %v2506_v55 = vpop.permute.xlu0 %908 }
  0x91   : > { %1102 = vrot.lane.b32.xlu1 %v2457_v22, %s2136_s10  ;;  %v488_v15 = vrot.slane %v486_v7, 7 }
  0x92   : > { %1088 = vrot.lane.b32.xlu0 %v2504_v53, %s2136_s10 }
  0x93   : > { %v2513_v62 = vpop.permute.xlu1 %889  ;;  %v491_v23 = vor.u32 %v489_v16, %v488_v15  ;;  %v2576_v51 = vsel %vm2211_vm2, %v488_v15, %v311_v26  ;;  %v439_v15 = vrot.slane %v437_v59, 7  ;;  %v440_v16 = vshll.u32 %v2100_v39, 16  ;;  %v304_v39 = vld [vmem:[%s2202_s28 + $0x6] sm:$0x1] }
  0x94   : > { %v2516_v63 = vpop.permute.xlu0 %875  ;;  %v746_v2 = vshll.u32 %v2576_v51, 16 }
  0x95   : > { %786 = vrot.lane.b32.xlu1 %v725_v9, %s2129_s19  ;;  %v2562_v35 = vsel %vm2211_vm2, %v311_v26, %v491_v23  ;;  %v843_v26 = vrot.slane %v2539_v18, 1 }
  0x96   : > { %772 = vrot.lane.b32.xlu0 %v2478_v37, %s2129_s19  ;;  %v739_v60 = vshrl.u32 %v2562_v35, 16 }
  0x97   : > { %v2524_v5 = vpop.permute.xlu1 %891 }
  0x98   : > { %v2526_v11 = vpop.permute.xlu0 %778 }
  0x99   : > { %1104 = vrot.lane.b32.xlu1 %v2522_v4, %s2136_s10 }
  0x9a   : > { %881 = vrot.lane.b32.xlu0 %v2439_v10, %s2130_s25  ;;  %v645_v10 = vshll.u32 %v2539_v18, 16 }
  0x9b   : > { %v2533_v9 = vpop.permute.xlu1 %764 }
  0x9c   : > { %v2535_v17 = vpop.permute.xlu0 %950  ;;  %v647_v30 = vrot.slane %v645_v10, 1  ;;  %v748_v10 = vrot.slane %v746_v2, 1 }
  0x9d   : > { %788 = vrot.lane.b32.xlu1 %v2490_v46, %s2129_s19 }
  0x9e   : > { %883 = vrot.lane.b32.xlu0 %v2504_v53, %s2130_s25  ;;  %v648_v48 = vor.u32 %v647_v30, %v643_v25  ;;  %v844_v25 = vrot.slane %v562_v27, 1  ;;  %v493_v30 = vshrl.u32 %v2102_v12, 16 }
  0x9f   : > { %v2545_v19 = vpop.permute.xlu1 %780 }
  0xa0   : > { %v2548_v24 = vpop.permute.xlu0 %952  ;;  %v2589_v7 = vsel %vm573_vm4, %v648_v48, %v652_v49  ;;  %v1116_v48 = vsel %vm1114_vm7, 0, %v2471_v31  ;;  %v2612_v27 = vsel %vm825_vm3, %v843_v26, %v844_v25  ;;  %v1118_v25 = vsel %vm1114_vm7, %v2232_v32, %v2533_v9 }
  0xa1   : > { %897 = vrot.lane.b32.xlu1 %v2457_v22, %s2130_s25  ;;  %v741_v22 = vshll.u32 %v2562_v35, 16  ;;  %v1149_v31 = vsel %vm1147_vm8, %v1116_v48, %v2484_v38 }
  0xa2   : > { %914 = vrot.lane.b32.xlu0 %v2443_v13, %s2131_s29  ;;  %v1182_v26 = vsel %vm1180_vm9, %v1149_v31, %v2495_v50 }
  0xa3   : > { %v2557_v20 = vpop.permute.xlu1 %966  ;;  %v743_v57 = vrot.slane %v741_v22, 1  ;;  %v442_v22 = vor.u32 %v440_v16, %v439_v15 }
  0xa4   : > { %v2564_v36 = vpop.permute.xlu0 %986 }
  0xa5   : > { %899 = vrot.lane.b32.xlu1 %v2522_v4, %s2130_s25 }
  0xa6   : > { %916 = vrot.lane.b32.xlu0 %v2539_v18, %s2131_s29 }
  0xa7   : > { %v2572_v42 = vpop.permute.xlu1 %968 }
  0xa8   : > { %v2578_v58 = vpop.permute.xlu0 %988 }
  0xa9   : > { %930 = vrot.lane.b32.xlu1 %v2462_v29, %s2131_s29 }
  0xaa   : > { %958 = vrot.lane.b32.xlu0 %v2478_v37, %s2132_s30  ;;  %v744_v37 = vor.u32 %v743_v57, %v739_v60  ;;  %v495_v60 = vrot.slane %v493_v30, 7  ;;  %v496_v57 = vshll.u32 %v2102_v12, 16  ;;  %v868_v12 = vrot.slane %v2576_v51, 1  ;;  %v312_v30 = vld [vmem:[%s2202_s28 + $0xe] sm:$0x1] }
  0xab   : > { %v2586_v3 = vpop.permute.xlu1 %1002 }
  0xac   : > { %v1019_v8 = vpop.permute.xlu0 %1018  ;;  %v2609_v49 = vsel %vm573_vm4, %v744_v37, %v748_v10  ;;  %v2630_v37 = vsel %vm2211_vm2, %v439_v15, %v304_v39  ;;  %v498_v10 = vor.u32 %v496_v57, %v495_v60  ;;  %v1215_v15 = vsel %vm1213_vm10, %v1182_v26, %v2535_v17 }
  0xad   : > { %932 = vrot.lane.b32.xlu1 %v2562_v35, %s2131_s29  ;;  %v1248_v50 = vsel %vm1246_vm11, %v1215_v15, %v2564_v36  ;;  %v1151_v17 = vsel %vm1147_vm8, %v1118_v25, %v2516_v63 }
  0xae   : > { %960 = vrot.lane.b32.xlu0 %v2589_v7, %s2132_s30  ;;  %v2660_v36 = vsel %vm2211_vm2, %v312_v30, %v498_v10  ;;  %v1184_v63 = vsel %vm1180_vm9, %v1151_v17, %v2506_v55 }
  0xaf   : > { %v2596_v23 = vpop.permute.xlu1 %1004 }
  0xb0   : > { %v2599_v34 = vpop.permute.xlu0 %1020 }
  0xb1   : > { %974 = vrot.lane.b32.xlu1 %v2490_v46, %s2132_s30  ;;  %v2616_v46 = vsel %vm2211_vm2, %v304_v39, %v442_v22  ;;  %v1132_v22 = vsel %vm1114_vm7, %v2253_v44, %v2526_v11  ;;  %v662_v11 = vshll.u32 %v2630_v37, 16 }
  0xb2   : > { %994 = vrot.lane.b32.xlu0 %v2504_v53, %s2133_s5  ;;  %v867_v53 = vrot.slane %v2562_v35, 1  ;;  %v657_v38 = vshll.u32 %v2616_v46, 16  ;;  %v655_v9 = vshrl.u32 %v2616_v46, 16  ;;  %v1165_v57 = vsel %vm1147_vm8, %v1132_v22, %v2513_v62 }
  0xb3   : > { %v1035_v59 = vpop.permute.xlu1 %1034  ;;  %v753_v62 = vshll.u32 %v2660_v36, 16  ;;  %v664_v26 = vrot.slane %v662_v11, 1  ;;  %v1217_v22 = vsel %vm1213_vm10, %v1184_v63, %v2548_v24  ;;  %v751_v24 = vshrl.u32 %v2660_v36, 16 }
  0xb4   : > { %v1051_v2 = vpop.permute.xlu0 %1050  ;;  %v2651_v32 = vsel %vm825_vm3, %v867_v53, %v868_v12  ;;  %v659_v48 = vrot.slane %v657_v38, 1 }
  0xb5   : > { %976 = vrot.lane.b32.xlu1 %v2609_v49, %s2132_s30 }
  0xb6   : > { %996 = vrot.lane.b32.xlu0 %v2612_v27, %s2133_s5  ;;  %v660_v10 = vor.u32 %v659_v48, %v655_v9 }
  0xb7   : > { %v2626_v16 = vpop.permute.xlu1 %1036 }
  0xb8   : > { %v1053_v51 = vpop.permute.xlu0 %1052  ;;  %v2704_v11 = vsel %vm573_vm4, %v660_v10, %v664_v26 }
  0xb9   : > { %1010 = vrot.lane.b32.xlu1 %v2522_v4, %s2133_s5  ;;  %v1281_v4 = vsel %vm1279_vm12, %v1248_v50, %v1019_v8  ;;  %v2675_v8 = vsel %vm2211_vm2, %v495_v60, %v312_v30  ;;  %v1134_v60 = vsel %vm1114_vm7, %v2223_v28, %v2545_v19  ;;  %v755_v50 = vrot.slane %v753_v62, 1 }
  0xba   : > { %1026 = vrot.lane.b32.xlu0 %v2539_v18, %s2134_s6  ;;  %v1314_v31 = vsel %vm1312_vm13, %v1281_v4, %v1051_v2  ;;  %v1198_v2 = vsel %vm1180_vm9, %v1165_v57, %v2492_v47  ;;  %v758_v47 = vshll.u32 %v2675_v8, 16 }
  0xbb   : > { %v1067_v39 = vpop.permute.xlu1 %1066  ;;  %v1231_v55 = vsel %vm1213_vm10, %v1198_v2, %v2557_v20  ;;  %v1250_v20 = vsel %vm1246_vm11, %v1217_v22, %v2578_v58  ;;  %v1167_v58 = vsel %vm1147_vm8, %v1134_v60, %v2524_v5  ;;  %v847_v2 = vrot.slane %v2630_v37, 1  ;;  %v2103_v60 = vld [vmem:[%s2195_s24 + $0x78] sm:$0xff]  }
  0xbc   : > { %v1083_v53 = vpop.permute.xlu0 %1082  ;;  %v1264_v30 = vsel %vm1246_vm11, %v1231_v55, %v2586_v3  ;;  %v1283_v19 = vsel %vm1279_vm12, %v1250_v20, %v2599_v34  ;;  %v756_v34 = vor.u32 %v755_v50, %v751_v24  ;;  %v1200_v5 = vsel %vm1180_vm9, %v1167_v58, %v2501_v52  ;;  %v313_v58 = vld [vmem:[%s2202_s28 + $0xf] sm:$0x1] }
  0xbd   : > { %v1347_v12 = vsel %vm1345_vm14, %v1314_v31, %v1083_v53  ;;  %1012 = vrot.lane.b32.xlu1 %v2651_v32, %s2133_s5  ;;  %v1297_v15 = vsel %vm1279_vm12, %v1264_v30, %v1035_v59  ;;  %v1316_v59 = vsel %vm1312_vm13, %v1283_v19, %v1053_v51  ;;  %v1233_v57 = vsel %vm1213_vm10, %v1200_v5, %v2572_v42 }
  0xbe   : > { %1028 = vrot.lane.b32.xlu0 %v2616_v46, %s2134_s6  ;;  %2019 = vmatprep.mubr.msk.bf16.mxu0 %vm1392_vm15, %v1347_v12  ;;  %v1330_v3 = vsel %vm1312_vm13, %v1297_v15, %v1067_v39  ;;  %v760_v39 = vrot.slane %v758_v47, 1  ;;  %v1266_v53 = vsel %vm1246_vm11, %v1233_v57, %v2596_v23  ;;  %v846_v42 = vrot.slane %v2616_v46, 1 }
  0xbf   : > { %v1069_v38 = vpop.permute.xlu1 %1068  ;;  %v1299_v12 = vsel %vm1279_vm12, %v1266_v53, %v2626_v16  ;;  %v870_v37 = vrot.slane %v2660_v36, 1  ;;  %v871_v55 = vrot.slane %v2675_v8, 1  ;;  %v500_v20 = vshrl.u32 %v2103_v60, 16 }
  0xc0   : > { %v2682_v25 = vpop.permute.xlu0 %766  ;;  %v761_v52 = vsel %vm573_vm4, %v756_v34, %v760_v39  ;;  %v1332_v63 = vsel %vm1312_vm13, %v1299_v12, %v1069_v38  ;;  %v848_v38 = vsel %vm825_vm3, %v846_v42, %v847_v2 }
  0xc1   : > { %1042 = vrot.lane.b32.xlu1 %v2562_v35, %s2134_s6  ;;  %v502_v24 = vrot.slane %v500_v20, 7 }
  0xc2   : > { %1058 = vrot.lane.b32.xlu0 %v2589_v7, %s2135_s7 }
  0xc3   : > { %v1099_v9 = vpop.permute.xlu1 %1098  ;;  %v572_v34 = vsel %vm2211_vm2, %v502_v24, %v313_v58 }
  0xc4   : > { %v1085_v17 = vpop.permute.xlu0 %1084  ;;  %v1363_v4 = vsel %vm1345_vm14, %v1330_v3, %v1099_v9  ;;  %v946_v57 = vshll.u32 %v572_v34, 16 }
  0xc5   : > { %v1349_v48 = vsel %vm1345_vm14, %v1316_v59, %v1085_v17  ;;  %1044 = vrot.lane.b32.xlu1 %v2660_v36, %s2134_s6  ;;  %2035 = vmatprep.mubr.msk.bf16.mxu1 %vm1392_vm15, %v1363_v4 }
  0xc6   : > { %1060 = vrot.lane.b32.xlu0 %v2704_v11, %s2135_s7  ;;  %2020 = vmatmul.mubr.msk.bf16.vlgmr.msra.gmra.mrb[0].mxu0 %vm1392_vm15, %v1349_v48  ;;  %v948_v14 = vrot.slane %v946_v57, 1 }
  0xc7   : > { %v2719_v51 = vpop.permute.xlu1 %782 }
  0xc8   : > { %v2723_v31 = vpop.permute.xlu0 %768 }
  0xc9   : > { %1074 = vrot.lane.b32.xlu1 %v2609_v49, %s2135_s7 }
  0xca   : > { %1090 = vrot.lane.b32.xlu0 %v2612_v27, %s2136_s10 }
  0xcb   : > { %v1101_v62 = vpop.permute.xlu1 %1100 }
  0xcc   : > { %v2737_v23 = vpop.permute.xlu0 %877  ;;  %v1365_v10 = vsel %vm1345_vm14, %v1332_v63, %v1101_v62 }
  0xcd   : > { %1076 = vrot.lane.b32.xlu1 %v761_v52, %s2135_s7  ;;  %2036 = vmatmul.mubr.msk.bf16.vlgmr.msra.gmra.mrb[0].mxu1 %vm1392_vm15, %v1365_v10 }
  0xce   : > { %774 = vrot.lane.b32.xlu0 %v2589_v7, %s2129_s19  ;;  %v872_v7 = vsel %vm825_vm3, %v870_v37, %v871_v55  ;;  %v1120_v37 = vsel %vm1114_vm7, %v2249_v41, %v2682_v25 }
  0xcf   : > { %v2744_v16 = vpop.permute.xlu1 %784 }
  0xd0   : > { %v2747_v26 = vpop.permute.xlu0 %879 }
  0xd1   : > { %1106 = vrot.lane.b32.xlu1 %v2651_v32, %s2136_s10 }
  0xd2   : > { %1092 = vrot.lane.b32.xlu0 %v848_v38, %s2136_s10 }
  0xd3   : > { %v2754_v22 = vpop.permute.xlu1 %893 }
  0xd4   : > { %v911_v30 = vpop.permute.xlu0 %910 }
  0xd5   : > { %790 = vrot.lane.b32.xlu1 %v2609_v49, %s2129_s19  ;;  %v503_v49 = vshll.u32 %v2103_v60, 16  ;;  %v984_v60 = vrot.slane %v572_v34, 1 }
  0xd6   : > { %776 = vrot.lane.b32.xlu0 %v2704_v11, %s2129_s19 }
  0xd7   : > { %v2762_v47 = vpop.permute.xlu1 %895  ;;  %v505_v3 = vor.u32 %v503_v49, %v502_v24 }
  0xd8   : > { %v2764_v15 = vpop.permute.xlu0 %912 }
  0xd9   : > { %1108 = vrot.lane.b32.xlu1 %v872_v7, %s2136_s10  ;;  %v556_v59 = vsel %vm2211_vm2, %v313_v58, %v505_v3 }
  0xda   : > { %885 = vrot.lane.b32.xlu0 %v2612_v27, %s2130_s25  ;;  %v941_v4 = vshll.u32 %v556_v59, 16  ;;  %v939_v39 = vshrl.u32 %v556_v59, 16  ;;  %v983_v55 = vrot.slane %v556_v59, 1 }
  0xdb   : > { %v2769_v8 = vpop.permute.xlu1 %926 }
  0xdc   : > { %v955_v50 = vpop.permute.xlu0 %954  ;;  %v943_v5 = vrot.slane %v941_v4, 1  ;;  %v985_v41 = vsel %vm825_vm3, %v983_v55, %v984_v60 }
  0xdd   : > { %792 = vrot.lane.b32.xlu1 %v761_v52, %s2129_s19  ;;  %s2974_s19 = scalar_lea.vmem %s3082_s4, %s1966_s20 }
  0xde   : > { %887 = vrot.lane.b32.xlu0 %v848_v38, %s2130_s25  ;;  %v944_v63 = vor.u32 %v943_v5, %v939_v39 }
  0xdf   : > { %v2773_v19 = vpop.permute.xlu1 %928 }
  0xe0   : > { %v2775_v9 = vpop.permute.xlu0 %956 }
  0xe1   : > { %901 = vrot.lane.b32.xlu1 %v2651_v32, %s2130_s25 }
  0xe2   : > { %918 = vrot.lane.b32.xlu0 %v2616_v46, %s2131_s29 }
  0xe3   : > { %v971_v27 = vpop.permute.xlu1 %970 }
  0xe4   : > { %v991_v17 = vpop.permute.xlu0 %990 }
  0xe5   : > { %903 = vrot.lane.b32.xlu1 %v872_v7, %s2130_s25 }
  0xe6   : > { %920 = vrot.lane.b32.xlu0 %v2253_v44, %s2131_s29 }
  0xe7   : > { %v2787_v48 = vpop.permute.xlu1 %972 }
  0xe8   : > { %v993_v32 = vpop.permute.xlu0 %992 }
  0xe9   : > { %934 = vrot.lane.b32.xlu1 %v2660_v36, %s2131_s29 }
  0xea   : > { %962 = vrot.lane.b32.xlu0 %v2704_v11, %s2132_s30  ;;  %v949_v11 = vsel %vm573_vm4, %v944_v63, %v948_v14 }
  0xeb   : > { %v1007_v53 = vpop.permute.xlu1 %1006 }
  0xec   : > { %v1023_v12 = vpop.permute.xlu0 %1022 }
  0xed   : > { %936 = vrot.lane.b32.xlu1 %v556_v59, %s2131_s29 }
  0xee   : > { %964 = vrot.lane.b32.xlu0 %v2281_v6, %s2132_s30 }
  0xef   : > { %v1009_v62 = vpop.permute.xlu1 %1008 }
  0xf0   : > { %v1025_v42 = vpop.permute.xlu0 %1024 }
  0xf1   : > { %978 = vrot.lane.b32.xlu1 %v761_v52, %s2132_s30  ;;  %v1153_v52 = vsel %vm1147_vm8, %v1120_v37, %v2737_v23  ;;  %v1122_v23 = vsel %vm1114_vm7, %v2322_v43, %v2723_v31 }
  0xf2   : > { %998 = vrot.lane.b32.xlu0 %v848_v38, %s2133_s5  ;;  %v1186_v38 = vsel %vm1180_vm9, %v1153_v52, %v911_v30  ;;  %v1155_v43 = vsel %vm1147_vm8, %v1122_v23, %v2747_v26 }
  0xf3   : > { %v1039_v2 = vpop.permute.xlu1 %1038  ;;  %v1219_v49 = vsel %vm1213_vm10, %v1186_v38, %v955_v50 }
  0xf4   : > { %v1055_v10 = vpop.permute.xlu0 %1054  ;;  %v1252_v3 = vsel %vm1246_vm11, %v1219_v49, %v991_v17 }
  0xf5   : > { %980 = vrot.lane.b32.xlu1 %v949_v11, %s2132_s30  ;;  %v1285_v25 = vsel %vm1279_vm12, %v1252_v3, %v1023_v12 }
  0xf6   : > { %1000 = vrot.lane.b32.xlu0 %v2267_v54, %s2133_s5  ;;  %v1318_v30 = vsel %vm1312_vm13, %v1285_v25, %v1055_v10 }
  0xf7   : > { %v1041_v20 = vpop.permute.xlu1 %1040 }
  0xf8   : > { %v1057_v24 = vpop.permute.xlu0 %1056 }
  0xf9   : > { %1014 = vrot.lane.b32.xlu1 %v872_v7, %s2133_s5  ;;  %v1136_v7 = vsel %vm1114_vm7, %v2245_v40, %v2719_v51  ;;  %v1188_v40 = vsel %vm1180_vm9, %v1155_v43, %v2764_v15 }
  0xfa   : > { %1030 = vrot.lane.b32.xlu0 %v2253_v44, %s2134_s6  ;;  %v1169_v44 = vsel %vm1147_vm8, %v1136_v7, %v2754_v22  ;;  %v1221_v22 = vsel %vm1213_vm10, %v1188_v40, %v2775_v9 }
  0xfb   : > { %v1071_v58 = vpop.permute.xlu1 %1070  ;;  %v1202_v31 = vsel %vm1180_vm9, %v1169_v44, %v2769_v8  ;;  %v1254_v39 = vsel %vm1246_vm11, %v1221_v22, %v993_v32 }
  0xfc   : > { %v1087_v4 = vpop.permute.xlu0 %1086  ;;  %v1235_v51 = vsel %vm1213_vm10, %v1202_v31, %v971_v27  ;;  %v1287_v8 = vsel %vm1279_vm12, %v1254_v39, %v1025_v42 }
  0xfd   : > { %v1351_v50 = vsel %vm1345_vm14, %v1318_v30, %v1087_v4  ;;  %1016 = vrot.lane.b32.xlu1 %v985_v41, %s2133_s5  ;;  %v1320_v5 = vsel %vm1312_vm13, %v1287_v8, %v1057_v24 }
  0xfe   : > { %1032 = vrot.lane.b32.xlu0 %v2223_v28, %s2134_s6  ;;  %2023 = vmatprep.mubr.msk.bf16.mxu0 %vm1392_vm15, %v1351_v50  ;;  %v1268_v28 = vsel %vm1246_vm11, %v1235_v51, %v1007_v53 }
  0xff   : > { %v1073_v17 = vpop.permute.xlu1 %1072  ;;  %v1301_v26 = vsel %vm1279_vm12, %v1268_v28, %v1039_v2 }
 0x100   : > { %v771_v34 = vpop.permute.xlu0 %770  ;;  %v1334_v15 = vsel %vm1312_vm13, %v1301_v26, %v1071_v58 }
 0x101   : > { %1046 = vrot.lane.b32.xlu1 %v556_v59, %s2134_s6  ;;  %v1138_v59 = vsel %vm1114_vm7, %v2343_v56, %v2744_v16  ;;  %v1124_v23 = vsel %vm1114_vm7, %v2397_v33, %v771_v34 }
 0x102   : > { %1062 = vrot.lane.b32.xlu0 %v2281_v6, %s2135_s7  ;;  %v1171_v6 = vsel %vm1147_vm8, %v1138_v59, %v2762_v47 }
 0x103   : > { %v1103_v27 = vpop.permute.xlu1 %1102  ;;  %v1204_v53 = vsel %vm1180_vm9, %v1171_v6, %v2773_v19 }
 0x104   : > { %v1089_v57 = vpop.permute.xlu0 %1088  ;;  %v1367_v9 = vsel %vm1345_vm14, %v1334_v15, %v1103_v27  ;;  %v1237_v56 = vsel %vm1213_vm10, %v1204_v53, %v2787_v48 }
 0x105   : > { %v1353_v32 = vsel %vm1345_vm14, %v1320_v5, %v1089_v57  ;;  %1048 = vrot.lane.b32.xlu1 %v2128_v0, %s2134_s6  ;;  %2039 = vmatprep.mubr.msk.bf16.mxu1 %vm1392_vm15, %v1367_v9  ;;  %v1270_v0 = vsel %vm1246_vm11, %v1237_v56, %v1009_v62 }
 0x106   : > { %1064 = vrot.lane.b32.xlu0 %v2298_v21, %s2135_s7  ;;  %2024 = vmatmul.mubr.msk.bf16.gmra.mrb[4].mxu0 %vm1392_vm15, %v1353_v32  ;;  %v1303_v63 = vsel %vm1279_vm12, %v1270_v0, %v1041_v20 }
 0x107   : > { %v787_v12 = vpop.permute.xlu1 %786  ;;  %v1336_v21 = vsel %vm1312_vm13, %v1303_v63, %v1073_v17 }
 0x108   : > { %v773_v16 = vpop.permute.xlu0 %772  ;;  %v1140_v33 = vsel %vm1114_vm7, %v2413_v45, %v787_v12 }
 0x109   : > { %1078 = vrot.lane.b32.xlu1 %v949_v11, %s2135_s7  ;;  %v1126_v17 = vsel %vm1114_vm7, %v2443_v13, %v773_v16 }
 0x10a   : > { %1094 = vrot.lane.b32.xlu0 %v2267_v54, %s2136_s10 }
 0x10b   : > { %v1105_v47 = vpop.permute.xlu1 %1104 }
 0x10c   : > { %v882_v14 = vpop.permute.xlu0 %881  ;;  %v1369_v19 = vsel %vm1345_vm14, %v1336_v21, %v1105_v47 }
 0x10d   : > { %1080 = vrot.lane.b32.xlu1 %v2182_v1, %s2135_s7  ;;  %2040 = vmatmul.mubr.msk.bf16.gmra.mrb[4].mxu1 %vm1392_vm15, %v1369_v19 }
 0x10e   : > { %1096 = vrot.lane.b32.xlu0 %v2276_v61, %s2136_s10 }
 0x10f   : > { %v789_v48 = vpop.permute.xlu1 %788 }
 0x110   : > { %v884_v62 = vpop.permute.xlu0 %883  ;;  %v1142_v56 = vsel %vm1114_vm7, %v2462_v29, %v789_v48 }
 0x111   : > { %1110 = vrot.lane.b32.xlu1 %v985_v41, %s2136_s10  ;;  %v1159_v28 = vsel %vm1147_vm8, %v1126_v17, %v884_v62 }
 0x113   : > { %v898_v42 = vpop.permute.xlu1 %897 }
 0x114   : > { %v915_v54 = vpop.permute.xlu0 %914  ;;  %v1173_v22 = vsel %vm1147_vm8, %v1140_v33, %v898_v42 }
 0x115   : > { %1112 = vrot.lane.b32.xlu1 %v2182_v1, %s2136_s10  ;;  %v1157_v1 = vsel %vm1147_vm8, %v1124_v23, %v882_v14 }
 0x116   : > { %v1190_v4 = vsel %vm1180_vm9, %v1157_v1, %v915_v54 }
 0x117   : > { %v900_v11 = vpop.permute.xlu1 %899 }
 0x118   : > { %v917_v2 = vpop.permute.xlu0 %916  ;;  %v1175_v0 = vsel %vm1147_vm8, %v1142_v56, %v900_v11 }
 0x119   : > { %v1192_v8 = vsel %vm1180_vm9, %v1159_v28, %v917_v2 }
 0x11b   : > { %v931_v10 = vpop.permute.xlu1 %930 }
 0x11c   : > { %v959_v37 = vpop.permute.xlu0 %958  ;;  %v1206_v39 = vsel %vm1180_vm9, %v1173_v22, %v931_v10 }
 0x11d   : > { %v1223_v50 = vsel %vm1213_vm10, %v1190_v4, %v959_v37 }
 0x11f   : > { %v933_v55 = vpop.permute.xlu1 %932 }
 0x120   : > { %v961_v60 = vpop.permute.xlu0 %960  ;;  %v1208_v63 = vsel %vm1180_vm9, %v1175_v0, %v933_v55 }
 0x121   : > { %v1225_v27 = vsel %vm1213_vm10, %v1192_v8, %v961_v60 }
 0x123   : > { %v975_v52 = vpop.permute.xlu1 %974 }
 0x124   : > { %v995_v20 = vpop.permute.xlu0 %994  ;;  %v1239_v13 = vsel %vm1213_vm10, %v1206_v39, %v975_v52 }
 0x125   : > { %v1256_v44 = vsel %vm1246_vm11, %v1223_v50, %v995_v20 }
 0x127   : > { %v977_v38 = vpop.permute.xlu1 %976 }
 0x128   : > { %v997_v24 = vpop.permute.xlu0 %996  ;;  %v1241_v47 = vsel %vm1213_vm10, %v1208_v63, %v977_v38 }
 0x129   : > { %v1258_v5 = vsel %vm1246_vm11, %v1225_v27, %v997_v24 }
 0x12b   : > { %v1011_v61 = vpop.permute.xlu1 %1010 }
 0x12c   : > { %v1027_v49 = vpop.permute.xlu0 %1026  ;;  %v1272_v45 = vsel %vm1246_vm11, %v1239_v13, %v1011_v61 }
 0x12d   : > { %v1289_v43 = vsel %vm1279_vm12, %v1256_v44, %v1027_v49 }
 0x12f   : > { %v1013_v3 = vpop.permute.xlu1 %1012 }
 0x130   : > { %v1029_v25 = vpop.permute.xlu0 %1028  ;;  %v1274_v19 = vsel %vm1246_vm11, %v1241_v47, %v1013_v3 }
 0x131   : > { %v1291_v9 = vsel %vm1279_vm12, %v1258_v5, %v1029_v25 }
 0x133   : > { %v1043_v41 = vpop.permute.xlu1 %1042 }
 0x134   : > { %v1059_v58 = vpop.permute.xlu0 %1058  ;;  %v1305_v57 = vsel %vm1279_vm12, %v1272_v45, %v1043_v41 }
 0x135   : > { %v1322_v40 = vsel %vm1312_vm13, %v1289_v43, %v1059_v58 }
 0x137   : > { %v1045_v30 = vpop.permute.xlu1 %1044 }
 0x138   : > { %v1061_v7 = vpop.permute.xlu0 %1060  ;;  %v1307_v62 = vsel %vm1279_vm12, %v1274_v19, %v1045_v30 }
 0x139   : > { %v1324_v6 = vsel %vm1312_vm13, %v1291_v9, %v1061_v7 }
 0x13b   : > { %v1075_v31 = vpop.permute.xlu1 %1074 }
 0x13c   : > { %v1091_v51 = vpop.permute.xlu0 %1090  ;;  %v1338_v59 = vsel %vm1312_vm13, %v1305_v57, %v1075_v31 }
 0x13d   : > { %v1355_v34 = vsel %vm1345_vm14, %v1322_v40, %v1091_v51 }
 0x13e   : > { %2027 = vmatprep.mubr.msk.bf16.mxu0 %vm1392_vm15, %v1355_v34 }
 0x13f   : > { %v1077_v26 = vpop.permute.xlu1 %1076 }
 0x140   : > { %v775_v15 = vpop.permute.xlu0 %774  ;;  %v1340_v29 = vsel %vm1312_vm13, %v1307_v62, %v1077_v26 }
 0x141   : > { %v1128_v7 = vsel %vm1114_vm7, %v2539_v18, %v775_v15 }
 0x143   : > { %v1107_v32 = vpop.permute.xlu1 %1106 }
 0x144   : > { %v1093_v53 = vpop.permute.xlu0 %1092  ;;  %v1371_v12 = vsel %vm1345_vm14, %v1338_v59, %v1107_v32 }
 0x145   : > { %v1357_v16 = vsel %vm1345_vm14, %v1324_v6, %v1093_v53  ;;  %2043 = vmatprep.mubr.msk.bf16.mxu1 %vm1392_vm15, %v1371_v12 }
 0x146   : > { %2028 = vmatmul.mubr.msk.bf16.gmra.mrb[8].mxu0 %vm1392_vm15, %v1357_v16 }
 0x147   : > { %v791_v21 = vpop.permute.xlu1 %790 }
 0x148   : > { %v777_v14 = vpop.permute.xlu0 %776 }
 0x149   : > { %v1130_v43 = vsel %vm1114_vm7, %v2616_v46, %v777_v14  ;;  %v1144_v46 = vsel %vm1114_vm7, %v2562_v35, %v791_v21 }
 0x14b   : > { %v1109_v48 = vpop.permute.xlu1 %1108 }
 0x14c   : > { %v886_v42 = vpop.permute.xlu0 %885  ;;  %v1373_v54 = vsel %vm1345_vm14, %v1340_v29, %v1109_v48  ;;  %v2964_v29 = vld [vmem:[%s3081_s3] ss:$0 sm:$0xff] }
 0x14d   : > { %2044 = vmatmul.mubr.msk.bf16.gmra.mrb[8].mxu1 %vm1392_vm15, %v1373_v54  ;;  %v1161_v50 = vsel %vm1147_vm8, %v1128_v7, %v886_v42 }
 0x14f   : > { %v793_v11 = vpop.permute.xlu1 %792 }
 0x150   : > { %v888_v2 = vpop.permute.xlu0 %887  ;;  %v1146_v59 = vsel %vm1114_vm7, %v2660_v36, %v793_v11 }
 0x151   : > { %v1163_v33 = vsel %vm1147_vm8, %v1130_v43, %v888_v2 }
 0x153   : > { %v902_v10 = vpop.permute.xlu1 %901 }
 0x154   : > { %v919_v37 = vpop.permute.xlu0 %918  ;;  %v1177_v13 = vsel %vm1147_vm8, %v1144_v46, %v902_v10 }
 0x155   : > { %v1194_v31 = vsel %vm1180_vm9, %v1161_v50, %v919_v37 }
 0x157   : > { %v904_v55 = vpop.permute.xlu1 %903 }
 0x158   : > { %v921_v60 = vpop.permute.xlu0 %920  ;;  %v1179_v53 = vsel %vm1147_vm8, %v1146_v59, %v904_v55 }
 0x159   : > { %v1196_v18 = vsel %vm1180_vm9, %v1163_v33, %v921_v60 }
 0x15b   : > { %v935_v52 = vpop.permute.xlu1 %934 }
 0x15c   : > { %v963_v20 = vpop.permute.xlu0 %962  ;;  %v1210_v27 = vsel %vm1180_vm9, %v1177_v13, %v935_v52 }
 0x15d   : > { %v1227_v40 = vsel %vm1213_vm10, %v1194_v31, %v963_v20 }
 0x15f   : > { %v937_v38 = vpop.permute.xlu1 %936 }
 0x160   : > { %v965_v24 = vpop.permute.xlu0 %964  ;;  %v1212_v56 = vsel %vm1180_vm9, %v1179_v53, %v937_v38 }
 0x161   : > { %v1229_v26 = vsel %vm1213_vm10, %v1196_v18, %v965_v24 }
 0x163   : > { %v979_v61 = vpop.permute.xlu1 %978 }
 0x164   : > { %v999_v49 = vpop.permute.xlu0 %998  ;;  %v1243_v57 = vsel %vm1213_vm10, %v1210_v27, %v979_v61 }
 0x165   : > { %v1260_v51 = vsel %vm1246_vm11, %v1227_v40, %v999_v49 }
 0x167   : > { %v981_v3 = vpop.permute.xlu1 %980 }
 0x168   : > { %v1001_v25 = vpop.permute.xlu0 %1000  ;;  %v1245_v63 = vsel %vm1213_vm10, %v1212_v56, %v981_v3 }
 0x169   : > { %v1262_v15 = vsel %vm1246_vm11, %v1229_v26, %v1001_v25 }
 0x16b   : > { %v1015_v41 = vpop.permute.xlu1 %1014 }
 0x16c   : > { %v1031_v58 = vpop.permute.xlu0 %1030  ;;  %v1276_v32 = vsel %vm1246_vm11, %v1243_v57, %v1015_v41 }
 0x16d   : > { %v1293_v34 = vsel %vm1279_vm12, %v1260_v51, %v1031_v58 }
 0x16f   : > { %v1017_v23 = vpop.permute.xlu1 %1016 }
 0x170   : > { %v1033_v1 = vpop.permute.xlu0 %1032  ;;  %v1278_v36 = vsel %vm1246_vm11, %v1245_v63, %v1017_v23 }
 0x171   : > { %v1295_v45 = vsel %vm1279_vm12, %v1262_v15, %v1033_v1 }
 0x173   : > { %v1047_v30 = vpop.permute.xlu1 %1046 }
 0x174   : > { %v1063_v4 = vpop.permute.xlu0 %1062  ;;  %v1309_v12 = vsel %vm1279_vm12, %v1276_v32, %v1047_v30 }
 0x175   : > { %v1326_v28 = vsel %vm1312_vm13, %v1293_v34, %v1063_v4 }
 0x177   : > { %v1049_v44 = vpop.permute.xlu1 %1048 }
 0x178   : > { %v1065_v17 = vpop.permute.xlu0 %1064  ;;  %v1311_v47 = vsel %vm1279_vm12, %v1278_v36, %v1049_v44 }
 0x179   : > { %v1328_v9 = vsel %vm1312_vm13, %v1295_v45, %v1065_v17 }
 0x17b   : > { %v1079_v22 = vpop.permute.xlu1 %1078 }
 0x17c   : > { %v1095_v39 = vpop.permute.xlu0 %1094  ;;  %v1342_v16 = vsel %vm1312_vm13, %v1309_v12, %v1079_v22 }
 0x17d   : > { %v1359_v8 = vsel %vm1345_vm14, %v1326_v28, %v1095_v39 }
 0x17e   : > { %2031 = vmatprep.mubr.msk.bf16.mxu0 %vm1392_vm15, %v1359_v8 }
 0x17f   : > { %v1081_v5 = vpop.permute.xlu1 %1080 }
 0x180   : > { %v1097_v35 = vpop.permute.xlu0 %1096  ;;  %v1344_v14 = vsel %vm1312_vm13, %v1311_v47, %v1081_v5 }
 0x181   : > { %v1361_v6 = vsel %vm1345_vm14, %v1328_v9, %v1097_v35 }
 0x182   : > { %2032 = vmatmul.mubr.msk.bf16.gmra.mrb[12].mxu0 %vm1392_vm15, %v1361_v6 }
 0x183   : > { %v1111_v0 = vpop.permute.xlu1 %1110 }
 0x184   : > { %v1375_v21 = vsel %vm1345_vm14, %v1342_v16, %v1111_v0 }
 0x185   : > { %2047 = vmatprep.mubr.msk.bf16.mxu1 %vm1392_vm15, %v1375_v21 }
 0x187   : > { %v1113_v19 = vpop.permute.xlu1 %1112 }
 0x188   : > { %v1377_v62 = vsel %vm1345_vm14, %v1344_v14, %v1113_v19 }
 0x189   : > { %2048 = vmatmul.mubr.msk.bf16.gmra.mrb[12].mxu1 %vm1392_vm15, %v1377_v62 }
 0x199   : > { %v2021_v48 = vpop.f32.mrb[0].mxu0 }
 0x19a   : > { %v1475_v42 = vadd.f32 %v2021_v48, %v2964_v29  ;;  %v1466_v54 = vpop.f32.mrb[1].mxu0 }
 0x19b   : > { %v1467_v11 = vadd.f32 %v2964_v29, %v1466_v54  ;;  %v2022_v2 = vpop.f32.mrb[2].mxu0 }
 0x19c   : > { %v1595_v10 = vmax.f32 %v1475_v42, 0.0  ;;  %v1478_v37 = vadd.f32 %v2022_v2, %v2964_v29  ;;  %v1469_v55 = vpop.f32.mrb[3].mxu0 }
 0x19d   : > { %v1593_v60 = vmax.f32 %v1467_v11, 0.0  ;;  %v1470_v52 = vadd.f32 %v2964_v29, %v1469_v55 }
 0x19e   : > { %v1970_v20 = vpack.c.bf16 %v1595_v10, %v1595_v10  ;;  %v1596_v38 = vmax.f32 %v1478_v37, 0.0 }
 0x19f   : > { %v1968_v24 = vpack.c.bf16 %v1593_v60, %v1593_v60  ;;  %v1594_v61 = vmax.f32 %v1470_v52, 0.0 }
 0x1a0   : > { %1756 = vst.msk [vmem:[%s2974_s19 + $0x8] sm:$0xf] %vm1753_vm0, %v1970_v20  ;;  %v1971_v49 = vpack.c.bf16 %v1596_v38, %v1596_v38  ;;  %v2037_v3 = vpop.f32.mrb[0].mxu1 }
 0x1a1   : > { %1754 = vst.msk [vmem:[%s2974_s19] sm:$0xf] %vm1753_vm0, %v1968_v24  ;;  %v1969_v25 = vpack.c.bf16 %v1594_v61, %v1594_v61  ;;  %v1539_v41 = vadd.f32 %v2037_v3, %v2964_v29  ;;  %v1530_v58 = vpop.f32.mrb[1].mxu1 }
 0x1a2   : > { %1757 = vst.msk [vmem:[%s2974_s19 + $0xc] sm:$0xf] %vm1753_vm0, %v1971_v49  ;;  %v1531_v23 = vadd.f32 %v2964_v29, %v1530_v58  ;;  %v2038_v1 = vpop.f32.mrb[2].mxu1 }
 0x1a3   : > { %1755 = vst.msk [vmem:[%s2974_s19 + $0x4] sm:$0xf] %vm1753_vm0, %v1969_v25  ;;  %v1611_v30 = vmax.f32 %v1539_v41, 0.0  ;;  %v1542_v4 = vadd.f32 %v2038_v1, %v2964_v29  ;;  %v1533_v7 = vpop.f32.mrb[3].mxu1 }
 0x1a4   : > { %v1609_v50 = vmax.f32 %v1531_v23, 0.0  ;;  %v1534_v44 = vadd.f32 %v2964_v29, %v1533_v7 }
 0x1a5   : > { %v1986_v43 = vpack.c.bf16 %v1611_v30, %v1611_v30  ;;  %v1612_v31 = vmax.f32 %v1542_v4, 0.0 }
 0x1a6   : > { %v1984_v17 = vpack.c.bf16 %v1609_v50, %v1609_v50  ;;  %v1610_v40 = vmax.f32 %v1534_v44, 0.0 }
 0x1a7   : > { %1772 = vst.msk [vmem:[%s2974_s19 + $0x48] sm:$0xf] %vm1753_vm0, %v1986_v43  ;;  %v1987_v51 = vpack.c.bf16 %v1612_v31, %v1612_v31 }
 0x1a8   : > { %1770 = vst.msk [vmem:[%s2974_s19 + $0x40] sm:$0xf] %vm1753_vm0, %v1984_v17  ;;  %v1985_v33 = vpack.c.bf16 %v1610_v40, %v1610_v40 }
 0x1a9   : > { %1773 = vst.msk [vmem:[%s2974_s19 + $0x4c] sm:$0xf] %vm1753_vm0, %v1987_v51 }
 0x1aa   : > { %1771 = vst.msk [vmem:[%s2974_s19 + $0x44] sm:$0xf] %vm1753_vm0, %v1985_v33 }
 0x1d9   : > { %v2025_v34 = vpop.f32.mrb[4].mxu0 }
 0x1da   : > { %v1491_v22 = vadd.f32 %v2025_v34, %v2964_v29  ;;  %v1482_v18 = vpop.f32.mrb[5].mxu0 }
 0x1db   : > { %v1483_v28 = vadd.f32 %v2964_v29, %v1482_v18  ;;  %v2026_v39 = vpop.f32.mrb[6].mxu0 }
 0x1dc   : > { %v1599_v46 = vmax.f32 %v1491_v22, 0.0  ;;  %v1494_v26 = vadd.f32 %v2026_v39, %v2964_v29  ;;  %v1485_v8 = vpop.f32.mrb[7].mxu0 }
 0x1dd   : > { %v1597_v13 = vmax.f32 %v1483_v28, 0.0  ;;  %v1486_v15 = vadd.f32 %v2964_v29, %v1485_v8 }
 0x1de   : > { %v1974_v27 = vpack.c.bf16 %v1599_v46, %v1599_v46  ;;  %v1600_v45 = vmax.f32 %v1494_v26, 0.0 }
 0x1df   : > { %v1972_v5 = vpack.c.bf16 %v1597_v13, %v1597_v13  ;;  %v1598_v57 = vmax.f32 %v1486_v15, 0.0 }
 0x1e0   : > { %1760 = vst.msk [vmem:[%s2974_s19 + $0x18] sm:$0xf] %vm1753_vm0, %v1974_v27  ;;  %v1975_v9 = vpack.c.bf16 %v1600_v45, %v1600_v45  ;;  %v2041_v35 = vpop.f32.mrb[4].mxu1 }
 0x1e1   : > { %1758 = vst.msk [vmem:[%s2974_s19 + $0x10] sm:$0xf] %vm1753_vm0, %v1972_v5  ;;  %v1973_v59 = vpack.c.bf16 %v1598_v57, %v1598_v57  ;;  %v1555_v32 = vadd.f32 %v2041_v35, %v2964_v29  ;;  %v1546_v6 = vpop.f32.mrb[5].mxu1 }
 0x1e2   : > { %1761 = vst.msk [vmem:[%s2974_s19 + $0x1c] sm:$0xf] %vm1753_vm0, %v1975_v9  ;;  %v1547_v53 = vadd.f32 %v2964_v29, %v1546_v6  ;;  %v2042_v12 = vpop.f32.mrb[6].mxu1 }
 0x1e3   : > { %1759 = vst.msk [vmem:[%s2974_s19 + $0x14] sm:$0xf] %vm1753_vm0, %v1973_v59  ;;  %v1615_v56 = vmax.f32 %v1555_v32, 0.0  ;;  %v1558_v16 = vadd.f32 %v2042_v12, %v2964_v29  ;;  %v1549_v0 = vpop.f32.mrb[7].mxu1 }
 0x1e4   : > { %v1613_v63 = vmax.f32 %v1547_v53, 0.0  ;;  %v1550_v21 = vadd.f32 %v2964_v29, %v1549_v0 }
 0x1e5   : > { %v1990_v36 = vpack.c.bf16 %v1615_v56, %v1615_v56  ;;  %v1616_v47 = vmax.f32 %v1558_v16, 0.0 }
 0x1e6   : > { %v1988_v14 = vpack.c.bf16 %v1613_v63, %v1613_v63  ;;  %v1614_v19 = vmax.f32 %v1550_v21, 0.0 }
 0x1e7   : > { %1776 = vst.msk [vmem:[%s2974_s19 + $0x58] sm:$0xf] %vm1753_vm0, %v1990_v36  ;;  %v1991_v62 = vpack.c.bf16 %v1616_v47, %v1616_v47 }
 0x1e8   : > { %1774 = vst.msk [vmem:[%s2974_s19 + $0x50] sm:$0xf] %vm1753_vm0, %v1988_v14  ;;  %v1989_v48 = vpack.c.bf16 %v1614_v19, %v1614_v19 }
 0x1e9   : > { %1777 = vst.msk [vmem:[%s2974_s19 + $0x5c] sm:$0xf] %vm1753_vm0, %v1991_v62 }
 0x1ea   : > { %1775 = vst.msk [vmem:[%s2974_s19 + $0x54] sm:$0xf] %vm1753_vm0, %v1989_v48 }
 0x219   : > { %v2029_v42 = vpop.f32.mrb[8].mxu0 }
 0x21a   : > { %v1507_v54 = vadd.f32 %v2029_v42, %v2964_v29  ;;  %v1498_v11 = vpop.f32.mrb[9].mxu0 }
 0x21b   : > { %v1499_v2 = vadd.f32 %v2964_v29, %v1498_v11  ;;  %v2030_v10 = vpop.f32.mrb[10].mxu0 }
 0x21c   : > { %v1603_v37 = vmax.f32 %v1507_v54, 0.0  ;;  %v1510_v55 = vadd.f32 %v2030_v10, %v2964_v29  ;;  %v1501_v60 = vpop.f32.mrb[11].mxu0 }
 0x21d   : > { %v1601_v52 = vmax.f32 %v1499_v2, 0.0  ;;  %v1502_v20 = vadd.f32 %v2964_v29, %v1501_v60 }
 0x21e   : > { %v1978_v38 = vpack.c.bf16 %v1603_v37, %v1603_v37  ;;  %v1604_v24 = vmax.f32 %v1510_v55, 0.0 }
 0x21f   : > { %v1976_v61 = vpack.c.bf16 %v1601_v52, %v1601_v52  ;;  %v1602_v49 = vmax.f32 %v1502_v20, 0.0 }
 0x220   : > { %1764 = vst.msk [vmem:[%s2974_s19 + $0x28] sm:$0xf] %vm1753_vm0, %v1978_v38  ;;  %v1979_v3 = vpack.c.bf16 %v1604_v24, %v1604_v24  ;;  %v2045_v25 = vpop.f32.mrb[8].mxu1 }
 0x221   : > { %1762 = vst.msk [vmem:[%s2974_s19 + $0x20] sm:$0xf] %vm1753_vm0, %v1976_v61  ;;  %v1977_v41 = vpack.c.bf16 %v1602_v49, %v1602_v49  ;;  %v1571_v58 = vadd.f32 %v2045_v25, %v2964_v29  ;;  %v1562_v23 = vpop.f32.mrb[9].mxu1 }
 0x222   : > { %1765 = vst.msk [vmem:[%s2974_s19 + $0x2c] sm:$0xf] %vm1753_vm0, %v1979_v3  ;;  %v1563_v1 = vadd.f32 %v2964_v29, %v1562_v23  ;;  %v2046_v30 = vpop.f32.mrb[10].mxu1 }
 0x223   : > { %1763 = vst.msk [vmem:[%s2974_s19 + $0x24] sm:$0xf] %vm1753_vm0, %v1977_v41  ;;  %v1619_v4 = vmax.f32 %v1571_v58, 0.0  ;;  %v1574_v7 = vadd.f32 %v2046_v30, %v2964_v29  ;;  %v1565_v50 = vpop.f32.mrb[11].mxu1 }
 0x224   : > { %v1617_v44 = vmax.f32 %v1563_v1, 0.0  ;;  %v1566_v43 = vadd.f32 %v2964_v29, %v1565_v50 }
 0x225   : > { %v1994_v31 = vpack.c.bf16 %v1619_v4, %v1619_v4  ;;  %v1620_v17 = vmax.f32 %v1574_v7, 0.0 }
 0x226   : > { %v1992_v40 = vpack.c.bf16 %v1617_v44, %v1617_v44  ;;  %v1618_v51 = vmax.f32 %v1566_v43, 0.0 }
 0x227   : > { %1780 = vst.msk [vmem:[%s2974_s19 + $0x68] sm:$0xf] %vm1753_vm0, %v1994_v31  ;;  %v1995_v33 = vpack.c.bf16 %v1620_v17, %v1620_v17 }
 0x228   : > { %1778 = vst.msk [vmem:[%s2974_s19 + $0x60] sm:$0xf] %vm1753_vm0, %v1992_v40  ;;  %v1993_v34 = vpack.c.bf16 %v1618_v51, %v1618_v51 }
 0x229   : > { %1781 = vst.msk [vmem:[%s2974_s19 + $0x6c] sm:$0xf] %vm1753_vm0, %v1995_v33 }
 0x22a   : > { %1779 = vst.msk [vmem:[%s2974_s19 + $0x64] sm:$0xf] %vm1753_vm0, %v1993_v34 }
 0x255   : > { %v2033_v22 = vpop.f32.mrb[12].mxu0 }
 0x256   : > { %v1523_v18 = vadd.f32 %v2033_v22, %v2964_v29  ;;  %v1514_v28 = vpop.f32.mrb[13].mxu0 }
 0x257   : > { %v1515_v39 = vadd.f32 %v2964_v29, %v1514_v28  ;;  %v2034_v46 = vpop.f32.mrb[14].mxu0 }
 0x258   : > { %v1607_v26 = vmax.f32 %v1523_v18, 0.0  ;;  %v1526_v8 = vadd.f32 %v2034_v46, %v2964_v29  ;;  %v1517_v13 = vpop.f32.mrb[15].mxu0 }
 0x259   : > { %v1605_v15 = vmax.f32 %v1515_v39, 0.0  ;;  %v1518_v27 = vadd.f32 %v2964_v29, %v1517_v13 }
 0x25a   : > { %v1982_v45 = vpack.c.bf16 %v1607_v26, %v1607_v26  ;;  %v1608_v5 = vmax.f32 %v1526_v8, 0.0 }
 0x25b   : > { %v1980_v57 = vpack.c.bf16 %v1605_v15, %v1605_v15  ;;  %v1606_v9 = vmax.f32 %v1518_v27, 0.0 }
 0x25c   : > { %1768 = vst.msk [vmem:[%s2974_s19 + $0x38] sm:$0xf] %vm1753_vm0, %v1982_v45  ;;  %v1983_v35 = vpack.c.bf16 %v1608_v5, %v1608_v5  ;;  %v2049_v59 = vpop.f32.mrb[12].mxu1 }
 0x25d   : > { %1766 = vst.msk [vmem:[%s2974_s19 + $0x30] sm:$0xf] %vm1753_vm0, %v1980_v57  ;;  %v1981_v32 = vpack.c.bf16 %v1606_v9, %v1606_v9  ;;  %v1587_v6 = vadd.f32 %v2049_v59, %v2964_v29  ;;  %v1578_v53 = vpop.f32.mrb[13].mxu1 }
 0x25e   : > { %1769 = vst.msk [vmem:[%s2974_s19 + $0x3c] sm:$0xf] %vm1753_vm0, %v1983_v35  ;;  %v1579_v12 = vadd.f32 %v2964_v29, %v1578_v53  ;;  %v2050_v56 = vpop.f32.mrb[14].mxu1 }
 0x25f   : > { %1767 = vst.msk [vmem:[%s2974_s19 + $0x34] sm:$0xf] %vm1753_vm0, %v1981_v32  ;;  %v1623_v16 = vmax.f32 %v1587_v6, 0.0  ;;  %v1590_v0 = vadd.f32 %v2050_v56, %v2964_v29  ;;  %v1581_v63 = vpop.f32.mrb[15].mxu1 }
 0x260   : > { %v1621_v21 = vmax.f32 %v1579_v12, 0.0  ;;  %v1582_v36 = vadd.f32 %v2964_v29, %v1581_v63 }
 0x261   : > { %v1998_v47 = vpack.c.bf16 %v1623_v16, %v1623_v16  ;;  %v1624_v14 = vmax.f32 %v1590_v0, 0.0 }
 0x262   : > { %v1996_v19 = vpack.c.bf16 %v1621_v21, %v1621_v21  ;;  %v1622_v62 = vmax.f32 %v1582_v36, 0.0 }
 0x263   : > { %1784 = vst.msk [vmem:[%s2974_s19 + $0x78] sm:$0xf] %vm1753_vm0, %v1998_v47  ;;  %v1999_v48 = vpack.c.bf16 %v1624_v14, %v1624_v14 }
 0x264   : > { %1782 = vst.msk [vmem:[%s2974_s19 + $0x70] sm:$0xf] %vm1753_vm0, %v1996_v19  ;;  %v1997_v42 = vpack.c.bf16 %v1622_v62, %v1622_v62 }
 0x265   : > { %1785 = vst.msk [vmem:[%s2974_s19 + $0x7c] sm:$0xf] %vm1753_vm0, %v1999_v48 }
 0x266   : > { %1783 = vst.msk [vmem:[%s2974_s19 + $0x74] sm:$0xf] %vm1753_vm0, %v1997_v42 }
 0x267 PF: > { %s14_s17 = sadd.s32 1, %s2126_s17   ;;  %s3085_s15 = smov %s2122_s16 }
 0x268   : > { %p11_p5 = scmp.ge.s32.totalorder %s14_s17, 4   ;;  %s3086_s16 = smov %s3088_s18 }
 0x26a   :  { %13 = sbr.rel (!%p11_p5) target bundleno = 2 (0x2), region = 69 }

// kernel: vggnet_forward.7
= control target key start
LH: loop header
LB: loop body
LE: loop exit
PB: predicated region body
PF: predicated region fallthrough
CT: control target
= control target key end

     0   :  { %s2518_s15 = smov 0   ;;  %s2520_s16 = smov 0   ;;  %s3467_s0 = inlined_call_operand.vmem [shape: bf16[2,16,16,64], index: 0, kind: input, shape index: {}]   ;;  %s3468_s1 = inlined_call_operand.vmem [shape: bf16[2,16,1,2,64], index: 1, kind: input, shape index: {}]   ;;  %s3469_s2 = inlined_call_operand.vmem [shape: bf16[3,192,64], index: 2, kind: input, shape index: {}]   ;;  %s3470_s3 = inlined_call_operand.vmem [shape: f32[1,64], index: 3, kind: input, shape index: {}]   ;;  %s3471_s4 = inlined_call_operand.vmem [shape: bf16[2,16,16,64], index: 4, kind: output, shape index: {}]  }
   0x1   :  { %s2522_s17 = smov 0  }
   0x2 LB: > { %s26_s18 = sadd.s32 1, %s2485_s16  ;;  %p2138_p0 = scmp.ge.s32.totalorder %s2489_s17, 1  ;;  %s2489_s17 = sphi %s2522_s17, %s14_s17   ;;  %s2485_s16 = sphi %s2520_s16, %s3477_s16   ;;  %s2481_s15 = sphi %s2518_s15, %s3476_s15  }
   0x3   : > { %p28_p1 = scmp.ge.s32.totalorder %s26_s18, 2  ;;  %p197_p2 = scmp.lt.s32.totalorder %s2489_s17, 3 }
   0x5   : > { %s3479_s18 = smov (%p28_p1, %s26_s18), 0  ;;  %p198_p3 = pnand %p2138_p0, %p197_p2 }
   0x6   : > { %p239_p4 = scmp.lt.s32.totalorder (!%p198_p3), %s2481_s15, 1  ;;  %v2491_v0 = vmov (!%p198_p3), 0   ;;  %v2431_v1 = vld [vmem:[%s3469_s2 + $0x60] sm:$0xff] (!%p198_p3)   ;;  %v2432_v2 = vld [vmem:[%s3469_s2 + $0x68] sm:$0xff] (!%p198_p3)   ;;  %vm539_vm0 = vsmask.f32 (!%p198_p3), 256 }
   0x7   : > { %201 = sbr.rel (%p198_p3) target bundleno = 559 (0x22f), region = 36  ;;  %2365 = vmatprep.subr.bf16.mxu1 (!%p198_p3), %v2491_v0  ;;  %1113 = vmatprep.subr.bf16.mxu0 (!%p198_p3), %v2491_v0  ;;  %v2433_v5 = vld [vmem:[%s3469_s2 + $0x70] sm:$0xff] (!%p198_p3)   ;;  %vm538_vm1 = vcmask (!%p198_p3), 1040384   ;;  %v2568_v8 = vrot.slane (!%p198_p3), %v2491_v0, 1  ;;  %v2434_v13 = vld [vmem:[%s3469_s2 + $0x78] sm:$0xff] (!%p198_p3)   ;;  %s2492_s9 = smov (!%p198_p3), 64  }
   0x8   : > { %2377 = vmatpush1.bf16.msra.mxu1 (!%p198_p3), %v2431_v1  ;;  %1114 = vmatpush1.bf16.msra.mxu0 (!%p198_p3), %v2431_v1  ;;  %vm573_vm2 = vsmask.f32 (!%p198_p3), 7424  ;;  %vm2582_vm3 = vmand (!%p198_p3), %vm538_vm1, %vm539_vm0  ;;  %vm825_vm4 = vcmask (!%p198_p3), 1046528   ;;  %vm873_vm5 = vcmask (!%p198_p3), 523264   ;;  %vm1999_vm7 = vcmask (!%p198_p3), 519168  }
   0x9   : > { %2366 = vmatprep.subr.bf16.mxu1 (!%p198_p3), %v2491_v0  ;;  %1115 = vmatprep.subr.bf16.mxu0 (!%p198_p3), %v2491_v0  ;;  %vm3164_vm6 = vmneg (!%p198_p3), %vm873_vm5 }
   0xc   : > { %2378 = vmatpush1.bf16.msra.mxu1 (!%p198_p3), %v2432_v2  ;;  %1116 = vmatpush1.bf16.msra.mxu0 (!%p198_p3), %v2432_v2 }
   0xd   : > { %2367 = vmatprep.subr.bf16.mxu1 (!%p198_p3), %v2491_v0  ;;  %1117 = vmatprep.subr.bf16.mxu0 (!%p198_p3), %v2491_v0 }
   0xe   : > { %s3481_s15 = smov (!%p239_p4, %s2481_s15), 1 }
   0xf   : > { %s2331_s21 = sshll.u32 %s3481_s15, 7  ;;  %s2141_s22 = sshll.u32 %s3481_s15, 4 }
  0x10   : > { %s2553_s27 = scalar_lea.vmem %s3467_s0, %s2331_s21  ;;  %s2561_s30 = scalar_lea.vmem %s3468_s1, %s2141_s22  ;;  %2379 = vmatpush1.bf16.msra.mxu1 %v2433_v5  ;;  %1118 = vmatpush1.bf16.msra.mxu0 %v2433_v5 }
  0x11   : > { %v2415_v3 = vld [vmem:[%s2553_s27 + $0x40] sm:$0xff]   ;;  %v2417_v11 = vld [vmem:[%s2553_s27 + $0x48] sm:$0xff]   ;;  %v2579_v16 = vld [vmem:[%s2553_s27 + $0x50] sm:$0xff]   ;;  %2368 = vmatprep.subr.bf16.mxu1 %v2491_v0  ;;  %1119 = vmatprep.subr.bf16.mxu0 %v2491_v0  ;;  %s3333_s19 = scalar_lea.vmem %s3471_s4, %s2331_s21 }
  0x12   : > { %v2416_v4 = vld [vmem:[%s2553_s27] sm:$0xff]   ;;  %v451_v6 = vshrl.u32 %v2415_v3, 16  ;;  %v454_v7 = vshll.u32 %v2415_v3, 16  ;;  %v2418_v12 = vld [vmem:[%s2553_s27 + $0x8] sm:$0xff]   ;;  %v458_v19 = vshrl.u32 %v2417_v11, 16  ;;  %v461_v20 = vshll.u32 %v2417_v11, 16 }
  0x13   : > { %v395_v9 = vshrl.u32 %v2416_v4, 16  ;;  %v398_v10 = vshll.u32 %v2416_v4, 16  ;;  %v306_v14 = vld [vmem:[%s2561_s30 + $0x8] sm:$0x1]  ;;  %v402_v21 = vshrl.u32 %v2418_v12, 16  ;;  %v405_v25 = vshll.u32 %v2418_v12, 16 }
  0x14   : > { %v453_v15 = vrot.slane %v451_v6, 7  ;;  %v298_v24 = vld [vmem:[%s2561_s30] sm:$0x1]  ;;  %v465_v26 = vshrl.u32 %v2579_v16, 16  ;;  %v307_v30 = vld [vmem:[%s2561_s30 + $0x9] sm:$0x1]  ;;  %2380 = vmatpush1.bf16.msra.mxu1 %v2434_v13  ;;  %1120 = vmatpush1.bf16.msra.mxu0 %v2434_v13 }
  0x15   : > { %v397_v18 = vrot.slane %v395_v9, 7  ;;  %v460_v31 = vrot.slane %v458_v19, 7  ;;  %v299_v34 = vld [vmem:[%s2561_s30 + $0x1] sm:$0x1]  ;;  %v404_v35 = vrot.slane %v402_v21, 7  ;;  %2369 = vmatprep.subr.bf16.mxu1 %v2491_v0  ;;  %1121 = vmatprep.subr.bf16.mxu0 %v2491_v0  ;;  %v2420_v53 = vld [vmem:[%s2553_s27 + $0x10] sm:$0xff]  }
  0x16   : > { %v456_v22 = vor.u32 %v454_v7, %v453_v15  ;;  %v2588_v23 = vsel %vm2582_vm3, %v453_v15, %v306_v14  ;;  %v467_v36 = vrot.slane %v465_v26, 7  ;;  %v2421_v62 = vld [vmem:[%s2553_s27 + $0x58] sm:$0xff]   ;;  %v308_v3 = vld [vmem:[%s2561_s30 + $0xa] sm:$0x1]  ;;  %v468_v4 = vshll.u32 %v2579_v16, 16 }
  0x17   : > { %v686_v27 = vshll.u32 %v2588_v23, 16  ;;  %v400_v28 = vor.u32 %v398_v10, %v397_v18  ;;  %v2597_v29 = vsel %vm2582_vm3, %v397_v18, %v298_v24  ;;  %v463_v44 = vor.u32 %v461_v20, %v460_v31  ;;  %v2423_v20 = vld [vmem:[%s2553_s27 + $0x60] sm:$0xff]  }
  0x18   : > { %v2602_v32 = vsel %vm2582_vm3, %v306_v14, %v456_v22  ;;  %v590_v33 = vshll.u32 %v2597_v29, 16  ;;  %v2618_v46 = vsel %vm2582_vm3, %v460_v31, %v307_v30  ;;  %v407_v47 = vor.u32 %v405_v25, %v404_v35  ;;  %v2422_v14 = vld [vmem:[%s2553_s27 + $0x18] sm:$0xff]   ;;  %v300_v25 = vld [vmem:[%s2561_s30 + $0x2] sm:$0x1] }
  0x19   : > { %v679_v37 = vshrl.u32 %v2602_v32, 16  ;;  %v681_v38 = vshll.u32 %v2602_v32, 16  ;;  %v688_v39 = vrot.slane %v686_v27, 1  ;;  %v2610_v40 = vsel %vm2582_vm3, %v298_v24, %v400_v28 }
  0x1a   : > { %v583_v41 = vshrl.u32 %v2610_v40, 16  ;;  %v585_v42 = vshll.u32 %v2610_v40, 16  ;;  %v592_v43 = vrot.slane %v590_v33, 1  ;;  %v2622_v48 = vsel %vm2582_vm3, %v404_v35, %v299_v34  ;;  %v309_v33 = vld [vmem:[%s2561_s30 + $0xb] sm:$0x1] }
  0x1b   : > { %v683_v45 = vrot.slane %v681_v38, 1  ;;  %v2626_v50 = vsel %vm2582_vm3, %v307_v30, %v463_v44  ;;  %v698_v51 = vshll.u32 %v2618_v46, 16  ;;  %v856_v52 = vrot.slane %v2618_v46, 1 }
  0x1c   : > { %v587_v49 = vrot.slane %v585_v42, 1  ;;  %v691_v55 = vshrl.u32 %v2626_v50, 16  ;;  %v693_v56 = vshll.u32 %v2626_v50, 16  ;;  %v2635_v57 = vsel %vm2582_vm3, %v299_v34, %v407_v47 }
  0x1d   : > { %v684_v54 = vor.u32 %v683_v45, %v679_v37  ;;  %v700_v59 = vrot.slane %v698_v51, 1  ;;  %v595_v60 = vshrl.u32 %v2635_v57, 16  ;;  %v597_v61 = vshll.u32 %v2635_v57, 16 }
  0x1e   : > { %v588_v58 = vor.u32 %v587_v49, %v583_v41  ;;  %v695_v1 = vrot.slane %v693_v56, 1  ;;  %v602_v2 = vshll.u32 %v2622_v48, 16  ;;  %v2648_v7 = vsel %vm2582_vm3, %v467_v36, %v308_v3  ;;  %v2424_v56 = vld [vmem:[%s2553_s27 + $0x20] sm:$0xff]  }
  0x1f   : > { %v689_v63 = vsel %vm573_vm2, %v684_v54, %v688_v39  ;;  %v599_v6 = vrot.slane %v597_v61, 1  ;;  %v409_v9 = vshrl.u32 %v2420_v53, 16  ;;  %v470_v12 = vor.u32 %v468_v4, %v467_v36  ;;  %v301_v54 = vld [vmem:[%s2561_s30 + $0x3] sm:$0x1] }
  0x20   : > { %780 = vrot.lane.b32.xlu0 %v689_v63, %s2492_s9  ;;  %v593_v5 = vsel %vm573_vm2, %v588_v58, %v592_v43  ;;  %v696_v10 = vor.u32 %v695_v1, %v691_v55  ;;  %v604_v11 = vrot.slane %v602_v2, 1  ;;  %v710_v13 = vshll.u32 %v2648_v7, 16  ;;  %v2435_v63 = vld [vmem:[%s3469_s2 + $0x80] sm:$0xff]  }
  0x21   : > { %v600_v15 = vor.u32 %v599_v6, %v595_v60  ;;  %v411_v16 = vrot.slane %v409_v9, 7  ;;  %v412_v18 = vshll.u32 %v2420_v53, 16  ;;  %v472_v19 = vshrl.u32 %v2421_v62, 16  ;;  %v310_v60 = vld [vmem:[%s2561_s30 + $0xc] sm:$0x1]  ;;  %2381 = vmatpush1.bf16.msra.mxu1 %v2435_v63  ;;  %1122 = vmatpush1.bf16.msra.mxu0 %v2435_v63 }
  0x22   : > { %v701_v21 = vsel %vm573_vm2, %v696_v10, %v700_v59  ;;  %v2656_v22 = vsel %vm2582_vm3, %v308_v3, %v470_v12  ;;  %v712_v24 = vrot.slane %v710_v13, 1  ;;  %v475_v26 = vshll.u32 %v2421_v62, 16  ;;  %2370 = vmatprep.subr.bf16.mxu1 %v2491_v0  ;;  %1123 = vmatprep.subr.bf16.mxu0 %v2491_v0 }
  0x23   : > { %782 = vrot.lane.b32.xlu1 %v701_v21, %s2492_s9  ;;  %v605_v27 = vsel %vm573_vm2, %v600_v15, %v604_v11  ;;  %v703_v28 = vshrl.u32 %v2656_v22, 16  ;;  %v705_v30 = vshll.u32 %v2656_v22, 16  ;;  %v414_v31 = vor.u32 %v412_v18, %v411_v16  ;;  %v2425_v11 = vld [vmem:[%s2553_s27 + $0x68] sm:$0xff]  }
  0x24   : > { %764 = vrot.lane.b32.xlu0 %v593_v5, %s2492_s9  ;;  %v2667_v34 = vsel %vm2582_vm3, %v411_v16, %v300_v25  ;;  %v474_v35 = vrot.slane %v472_v19, 7  ;;  %v416_v36 = vshrl.u32 %v2422_v14, 16  ;;  %v419_v37 = vshll.u32 %v2422_v14, 16  ;;  %v2436_v16 = vld [vmem:[%s3469_s2 + $0x88] sm:$0xff]  }
  0x25   : > { %v707_v38 = vrot.slane %v705_v30, 1  ;;  %v2671_v39 = vsel %vm2582_vm3, %v300_v25, %v414_v31  ;;  %v614_v41 = vshll.u32 %v2667_v34, 16  ;;  %v479_v42 = vshrl.u32 %v2423_v20, 16  ;;  %v302_v30 = vld [vmem:[%s2561_s30 + $0x4] sm:$0x1]  ;;  %v2727_v31 = vld [vmem:[%s2553_s27 + $0x70] sm:$0xff]   ;;  %2382 = vmatpush1.bf16.msra.mxu1 %v2436_v16  ;;  %1124 = vmatpush1.bf16.msra.mxu0 %v2436_v16 }
  0x26   : > { %v607_v43 = vshrl.u32 %v2671_v39, 16  ;;  %v609_v44 = vshll.u32 %v2671_v39, 16  ;;  %v477_v45 = vor.u32 %v475_v26, %v474_v35  ;;  %v2678_v47 = vsel %vm2582_vm3, %v474_v35, %v309_v33  ;;  %2371 = vmatprep.subr.bf16.mxu1 %v2491_v0  ;;  %1125 = vmatprep.subr.bf16.mxu0 %v2491_v0 }
  0x27   : > { %766 = vrot.lane.b32.xlu1 %v605_v27, %s2492_s9  ;;  %v708_v49 = vor.u32 %v707_v38, %v703_v28  ;;  %v616_v51 = vrot.slane %v614_v41, 1  ;;  %v722_v53 = vshll.u32 %v2678_v47, 16  ;;  %v418_v55 = vrot.slane %v416_v36, 7 }
  0x28   : > { %v611_v58 = vrot.slane %v609_v44, 1  ;;  %v2686_v59 = vsel %vm2582_vm3, %v309_v33, %v477_v45  ;;  %v481_v61 = vrot.slane %v479_v42, 7  ;;  %v482_v62 = vshll.u32 %v2423_v20, 16  ;;  %v2437_v44 = vld [vmem:[%s3469_s2 + $0x90] sm:$0xff]  }
  0x29   : > { %v713_v1 = vsel %vm573_vm2, %v708_v49, %v712_v24  ;;  %v715_v2 = vshrl.u32 %v2686_v59, 16  ;;  %v717_v3 = vshll.u32 %v2686_v59, 16  ;;  %v724_v4 = vrot.slane %v722_v53, 1  ;;  %v2426_v24 = vld [vmem:[%s2553_s27 + $0x28] sm:$0xff]   ;;  %2383 = vmatpush1.bf16.msra.mxu1 %v2437_v44  ;;  %1126 = vmatpush1.bf16.msra.mxu0 %v2437_v44 }
  0x2a   : > { %784 = vrot.lane.b32.xlu0 %v713_v1, %s2492_s9  ;;  %v612_v5 = vor.u32 %v611_v58, %v607_v43  ;;  %v421_v6 = vor.u32 %v419_v37, %v418_v55  ;;  %v2698_v9 = vsel %vm2582_vm3, %v418_v55, %v301_v54  ;;  %v484_v10 = vor.u32 %v482_v62, %v481_v61  ;;  %v303_v62 = vld [vmem:[%s2561_s30 + $0x5] sm:$0x1] }
  0x2b   : > { %v719_v12 = vrot.slane %v717_v3, 1  ;;  %v626_v13 = vshll.u32 %v2698_v9, 16  ;;  %v2704_v14 = vsel %vm2582_vm3, %v481_v61, %v310_v60  ;;  %v423_v15 = vshrl.u32 %v2424_v56, 16  ;;  %2372 = vmatprep.subr.bf16.mxu1 %v2491_v0  ;;  %1127 = vmatprep.subr.bf16.mxu0 %v2491_v0 }
  0x2c   : > { %v617_v18 = vsel %vm573_vm2, %v612_v5, %v616_v51  ;;  %v2712_v19 = vsel %vm2582_vm3, %v301_v54, %v421_v6  ;;  %v2716_v20 = vsel %vm2582_vm3, %v310_v60, %v484_v10  ;;  %v734_v21 = vshll.u32 %v2704_v14, 16  ;;  %v311_v51 = vld [vmem:[%s2561_s30 + $0xd] sm:$0x1]  ;;  %v2752_v10 = vld [vmem:[%s2553_s27 + $0x30] sm:$0xff]  }
  0x2d   : > { %768 = vrot.lane.b32.xlu1 %v617_v18, %s2492_s9  ;;  %v720_v25 = vor.u32 %v719_v12, %v715_v2  ;;  %v619_v26 = vshrl.u32 %v2712_v19, 16  ;;  %v621_v27 = vshll.u32 %v2712_v19, 16  ;;  %v628_v28 = vrot.slane %v626_v13, 1 }
  0x2e   : > { %v727_v33 = vshrl.u32 %v2716_v20, 16  ;;  %v729_v35 = vshll.u32 %v2716_v20, 16  ;;  %v736_v36 = vrot.slane %v734_v21, 1  ;;  %v425_v37 = vrot.slane %v423_v15, 7 }
  0x2f   : > { %v725_v38 = vsel %vm573_vm2, %v720_v25, %v724_v4  ;;  %v623_v41 = vrot.slane %v621_v27, 1  ;;  %v426_v42 = vshll.u32 %v2424_v56, 16  ;;  %v486_v43 = vshrl.u32 %v2425_v11, 16 }
  0x30   : > { %786 = vrot.lane.b32.xlu0 %v725_v38, %s2492_s9  ;;  %v731_v45 = vrot.slane %v729_v35, 1  ;;  %v2738_v49 = vsel %vm2582_vm3, %v425_v37, %v302_v30  ;;  %v489_v53 = vshll.u32 %v2425_v11, 16  ;;  %v430_v54 = vshrl.u32 %v2426_v24, 16  ;;  %v2438_v11 = vld [vmem:[%s3469_s2 + $0x98] sm:$0xff]   ;;  %v312_v35 = vld [vmem:[%s2561_s30 + $0xe] sm:$0x1] }
  0x31   : > { %v624_v55 = vor.u32 %v623_v41, %v619_v26  ;;  %v428_v56 = vor.u32 %v426_v42, %v425_v37  ;;  %v638_v58 = vshll.u32 %v2738_v49, 16  ;;  %v488_v60 = vrot.slane %v486_v43, 7  ;;  %v2777_v26 = vld [vmem:[%s2553_s27 + $0x78] sm:$0xff]   ;;  %2384 = vmatpush1.bf16.msra.mxu1 %v2438_v11  ;;  %1128 = vmatpush1.bf16.msra.mxu0 %v2438_v11  ;;  %v2439_v42 = vld [vmem:[%s3469_s2 + $0xa0] sm:$0xff]  }
  0x32   : > { %v732_v61 = vor.u32 %v731_v45, %v727_v33  ;;  %v432_v63 = vrot.slane %v430_v54, 7  ;;  %v433_v1 = vshll.u32 %v2426_v24, 16  ;;  %v493_v2 = vshrl.u32 %v2727_v31, 16  ;;  %2373 = vmatprep.subr.bf16.mxu1 %v2491_v0  ;;  %1129 = vmatprep.subr.bf16.mxu0 %v2491_v0 }
  0x33   : > { %v629_v3 = vsel %vm573_vm2, %v624_v55, %v628_v28  ;;  %v2749_v4 = vsel %vm2582_vm3, %v302_v30, %v428_v56  ;;  %v640_v5 = vrot.slane %v638_v58, 1  ;;  %v491_v6 = vor.u32 %v489_v53, %v488_v60  ;;  %v2430_v56 = vld [vmem:[%s2553_s27 + $0x38] sm:$0xff]  }
  0x34   : > { %770 = vrot.lane.b32.xlu1 %v629_v3, %s2492_s9  ;;  %v737_v12 = vsel %vm573_vm2, %v732_v61, %v736_v36  ;;  %v631_v13 = vshrl.u32 %v2749_v4, 16  ;;  %v633_v15 = vshll.u32 %v2749_v4, 16  ;;  %v2763_v16 = vsel %vm2582_vm3, %v488_v60, %v311_v51 }
  0x35   : > { %788 = vrot.lane.b32.xlu0 %v737_v12, %s2492_s9  ;;  %v2769_v18 = vsel %vm2582_vm3, %v311_v51, %v491_v6  ;;  %v746_v21 = vshll.u32 %v2763_v16, 16  ;;  %v435_v24 = vor.u32 %v433_v1, %v432_v63  ;;  %v2774_v25 = vsel %vm2582_vm3, %v432_v63, %v303_v62  ;;  %v304_v63 = vld [vmem:[%s2561_s30 + $0x6] sm:$0x1]  ;;  %2385 = vmatpush1.bf16.msra.mxu1 %v2439_v42 }
  0x36   : > { %v635_v27 = vrot.slane %v633_v15, 1  ;;  %v739_v28 = vshrl.u32 %v2769_v18, 16  ;;  %v741_v30 = vshll.u32 %v2769_v18, 16  ;;  %v650_v33 = vshll.u32 %v2774_v25, 16  ;;  %1130 = vmatpush1.bf16.msra.mxu0 %v2439_v42  ;;  %2374 = vmatprep.subr.bf16.mxu1 %v2491_v0 }
  0x37   : > { %v748_v36 = vrot.slane %v746_v21, 1  ;;  %v2786_v37 = vsel %vm2582_vm3, %v303_v62, %v435_v24  ;;  %v495_v38 = vrot.slane %v493_v2, 7  ;;  %v496_v41 = vshll.u32 %v2727_v31, 16  ;;  %v313_v21 = vld [vmem:[%s2561_s30 + $0xf] sm:$0x1]  ;;  %1131 = vmatprep.subr.bf16.mxu0 %v2491_v0 }
  0x38   : > { %v636_v43 = vor.u32 %v635_v27, %v631_v13  ;;  %v743_v44 = vrot.slane %v741_v30, 1  ;;  %v643_v45 = vshrl.u32 %v2786_v37, 16  ;;  %v645_v51 = vshll.u32 %v2786_v37, 16 }
  0x39   : > { %v652_v53 = vrot.slane %v650_v33, 1  ;;  %v498_v54 = vor.u32 %v496_v41, %v495_v38  ;;  %v2798_v31 = vsel %vm2582_vm3, %v495_v38, %v312_v35  ;;  %v437_v55 = vshrl.u32 %v2752_v10, 16 }
  0x3a   : > { %v641_v58 = vsel %vm573_vm2, %v636_v43, %v640_v5  ;;  %v744_v60 = vor.u32 %v743_v44, %v739_v28  ;;  %v647_v61 = vrot.slane %v645_v51, 1  ;;  %v758_v62 = vshll.u32 %v2798_v31, 16  ;;  %v2440_v5 = vld [vmem:[%s3469_s2 + $0xa8] sm:$0xff]   ;;  %v2441_v44 = vld [vmem:[%s3469_s2 + $0xb0] sm:$0xff]  }
  0x3b   : > { %772 = vrot.lane.b32.xlu1 %v641_v58, %s2492_s9  ;;  %v2808_v1 = vsel %vm2582_vm3, %v312_v35, %v498_v54  ;;  %v439_v2 = vrot.slane %v437_v55, 7  ;;  %v440_v3 = vshll.u32 %v2752_v10, 16  ;;  %v500_v6 = vshrl.u32 %v2777_v26, 16  ;;  %2386 = vmatpush1.bf16.msra.mxu1 %v2440_v5  ;;  %v305_v54 = vld [vmem:[%s2561_s30 + $0x7] sm:$0x1] }
  0x3c   : > { %v749_v11 = vsel %vm573_vm2, %v744_v60, %v748_v36  ;;  %v648_v12 = vor.u32 %v647_v61, %v643_v45  ;;  %v751_v13 = vshrl.u32 %v2808_v1, 16  ;;  %v753_v15 = vshll.u32 %v2808_v1, 16  ;;  %1132 = vmatpush1.bf16.msra.mxu0 %v2440_v5  ;;  %2375 = vmatprep.subr.bf16.mxu1 %v2491_v0 }
  0x3d   : > { %790 = vrot.lane.b32.xlu0 %v749_v11, %s2492_s9  ;;  %v760_v10 = vrot.slane %v758_v62, 1  ;;  %v442_v24 = vor.u32 %v440_v3, %v439_v2  ;;  %v2823_v27 = vsel %vm2582_vm3, %v439_v2, %v304_v63  ;;  %v502_v28 = vrot.slane %v500_v6, 7  ;;  %1133 = vmatprep.subr.bf16.mxu0 %v2491_v0  ;;  %v2442_v11 = vld [vmem:[%s3469_s2 + $0xb8] sm:$0xff]  }
  0x3e   : > { %v653_v30 = vsel %vm573_vm2, %v648_v12, %v652_v53  ;;  %v755_v33 = vrot.slane %v753_v15, 1  ;;  %v662_v35 = vshll.u32 %v2823_v27, 16  ;;  %v503_v36 = vshll.u32 %v2777_v26, 16 }
  0x3f   : > { %774 = vrot.lane.b32.xlu1 %v653_v30, %s2492_s9  ;;  %v2832_v38 = vsel %vm2582_vm3, %v304_v63, %v442_v24  ;;  %v2836_v41 = vsel %vm2582_vm3, %v502_v28, %v313_v21  ;;  %v444_v42 = vshrl.u32 %v2430_v56, 16  ;;  %v447_v43 = vshll.u32 %v2430_v56, 16  ;;  %2387 = vmatpush1.bf16.msra.mxu1 %v2441_v44 }
  0x40   : > { %v756_v45 = vor.u32 %v755_v33, %v751_v13  ;;  %v655_v26 = vshrl.u32 %v2832_v38, 16  ;;  %v657_v51 = vshll.u32 %v2832_v38, 16  ;;  %v664_v53 = vrot.slane %v662_v35, 1  ;;  %1134 = vmatpush1.bf16.msra.mxu0 %v2441_v44  ;;  %2376 = vmatprep.subr.bf16.mxu1 %v2491_v0 }
  0x41   : > { %v505_v55 = vor.u32 %v503_v36, %v502_v28  ;;  %v954_v58 = vshll.u32 %v2836_v41, 16  ;;  %v446_v60 = vrot.slane %v444_v42, 7  ;;  %v852_v56 = vrot.slane %v2602_v32, 1  ;;  %1135 = vmatprep.subr.bf16.mxu0 %v2491_v0 }
  0x42   : > { %v761_v61 = vsel %vm573_vm2, %v756_v45, %v760_v10  ;;  %v659_v62 = vrot.slane %v657_v51, 1  ;;  %v853_v63 = vrot.slane %v2588_v23, 1  ;;  %v828_v24 = vrot.slane %v2610_v40, 1 }
  0x43   : > { %792 = vrot.lane.b32.xlu0 %v761_v61, %s2492_s9  ;;  %v2853_v2 = vsel %vm2582_vm3, %v313_v21, %v505_v55  ;;  %v956_v3 = vrot.slane %v954_v58, 1  ;;  %v449_v6 = vor.u32 %v447_v43, %v446_v60  ;;  %v2857_v5 = vsel %vm2582_vm3, %v446_v60, %v305_v54  ;;  %2388 = vmatpush1.bf16.msra.mxu1 %v2442_v11 }
  0x44   : > { %v660_v12 = vor.u32 %v659_v62, %v655_v26  ;;  %v947_v23 = vshrl.u32 %v2853_v2, 16  ;;  %v949_v13 = vshll.u32 %v2853_v2, 16  ;;  %v674_v15 = vshll.u32 %v2857_v5, 16  ;;  %1136 = vmatpush1.bf16.msra.mxu0 %v2442_v11  ;;  %1349 = vmatprep.subr.bf16.mxu1 %v2491_v0 }
  0x45   : > { %v2868_v21 = vsel %vm2582_vm3, %v305_v54, %v449_v6  ;;  %v2872_v10 = vsel %vm825_vm4, %v852_v56, %v853_v63  ;;  %v829_v28 = vrot.slane %v2597_v29, 1  ;;  %v855_v43 = vrot.slane %v2626_v50, 1  ;;  %1607 = vmatprep.subr.bf16.mxu0 %v2491_v0 }
  0x46   : > { %v665_v30 = vsel %vm573_vm2, %v660_v12, %v664_v53  ;;  %v951_v33 = vrot.slane %v949_v13, 1  ;;  %v667_v35 = vshrl.u32 %v2868_v21, 16  ;;  %v669_v36 = vshll.u32 %v2868_v21, 16  ;;  %2204 = vmatprep.mubr.msk.bf16.mxu1 %vm873_vm5, %v2872_v10 }
  0x47   : > { %776 = vrot.lane.b32.xlu1 %v665_v30, %s2492_s9  ;;  %v676_v17 = vrot.slane %v674_v15, 1  ;;  %v2883_v42 = vsel %vm825_vm4, %v828_v24, %v829_v28  ;;  %v831_v29 = vrot.slane %v2635_v57, 1  ;;  %v832_v26 = vrot.slane %v2622_v48, 1 }
  0x48   : > { %v952_v44 = vor.u32 %v951_v33, %v947_v23  ;;  %v671_v45 = vrot.slane %v669_v36, 1  ;;  %v858_v51 = vrot.slane %v2656_v22, 1  ;;  %2196 = vmatprep.mubr.msk.bf16.mxu0 %vm873_vm5, %v2883_v42  ;;  %v2896_v53 = vsel %vm825_vm4, %v855_v43, %v856_v52 }
  0x49   : > { %v859_v54 = vrot.slane %v2648_v7, 1  ;;  %v834_v55 = vrot.slane %v2671_v39, 1  ;;  %v835_v58 = vrot.slane %v2667_v34, 1  ;;  %v2903_v56 = vsel %vm825_vm4, %v831_v29, %v832_v26 }
  0x4a   : > { %v957_v48 = vsel %vm573_vm2, %v952_v44, %v956_v3  ;;  %v672_v60 = vor.u32 %v671_v45, %v667_v35  ;;  %v861_v61 = vrot.slane %v2686_v59, 1  ;;  %v862_v7 = vrot.slane %v2678_v47, 1 }
  0x4b   : > { %958 = vrot.lane.b32.xlu0 %v957_v48, %s2492_s9  ;;  %v2908_v46 = vsel %vm825_vm4, %v858_v51, %v859_v54  ;;  %v2911_v52 = vsel %vm825_vm4, %v834_v55, %v835_v58  ;;  %v837_v34 = vrot.slane %v2712_v19, 1  ;;  %v838_v63 = vrot.slane %v2698_v9, 1  ;;  %v2444_v54 = vld [vmem:[%s3469_s2 + $0xc0] sm:$0xff]  }
  0x4c   : > { %v677_v62 = vsel %vm573_vm2, %v672_v60, %v676_v17  ;;  %v864_v3 = vrot.slane %v2716_v20, 1  ;;  %v865_v6 = vrot.slane %v2704_v14, 1  ;;  %v2921_v11 = vsel %vm825_vm4, %v861_v61, %v862_v7  ;;  %v2446_v60 = vld [vmem:[%s3469_s2 + $0xc8] sm:$0xff]   ;;  %v2447_v61 = vld [vmem:[%s3469_s2 + $0x10] sm:$0xff]  }
  0x4d   : > { %778 = vrot.lane.b32.xlu1 %v677_v62, %s2492_s9  ;;  %v840_v12 = vrot.slane %v2749_v4, 1  ;;  %v841_v23 = vrot.slane %v2738_v49, 1  ;;  %v867_v47 = vrot.slane %v2769_v18, 1  ;;  %v2927_v13 = vsel %vm825_vm4, %v837_v34, %v838_v63  ;;  %v2448_v7 = vld [vmem:[%s3469_s2 + $0xd0] sm:$0xff]   ;;  %v2449_v34 = vld [vmem:[%s3469_s2 + $0x18] sm:$0xff]  }
  0x4e   : > { %v2930_v9 = vsel %vm825_vm4, %v864_v3, %v865_v6  ;;  %v868_v15 = vrot.slane %v2763_v16, 1  ;;  %v843_v14 = vrot.slane %v2786_v37, 1  ;;  %v844_v49 = vrot.slane %v2774_v25, 1  ;;  %v2450_v63 = vld [vmem:[%s3469_s2 + $0xd8] sm:$0xff]   ;;  %v2451_v6 = vld [vmem:[%s3469_s2 + $0x20] sm:$0xff]  }
  0x4f   : > { %762 = vrot.lane.b32.xlu0 %v2568_v8, %s2492_s9  ;;  %v2937_v24 = vsel %vm825_vm4, %v840_v12, %v841_v23  ;;  %v870_v28 = vrot.slane %v2808_v1, 1  ;;  %v871_v30 = vrot.slane %v2798_v31, 1  ;;  %v846_v36 = vrot.slane %v2832_v38, 1  ;;  %v2452_v12 = vld [vmem:[%s3469_s2 + $0xe0] sm:$0xff]  }
  0x50   : > { %v2943_v33 = vsel %vm825_vm4, %v867_v47, %v868_v15  ;;  %v2946_v35 = vsel %vm825_vm4, %v843_v14, %v844_v49  ;;  %v847_v17 = vrot.slane %v2823_v27, 1  ;;  %v962_v43 = vrot.slane %v2853_v2, 1  ;;  %v2443_v27 = vld [vmem:[%s3469_s2] sm:$0xff]   ;;  %v2453_v47 = vld [vmem:[%s3469_s2 + $0x28] sm:$0xff]   ;;  %v2455_v49 = vld [vmem:[%s3469_s2 + $0x30] sm:$0xff]  }
  0x51   : > { %v2949_v16 = vsel %vm825_vm4, %v870_v28, %v871_v30  ;;  %v963_v25 = vrot.slane %v2836_v41, 1  ;;  %v849_v31 = vrot.slane %v2868_v21, 1  ;;  %v850_v45 = vrot.slane %v2857_v5, 1  ;;  %v2445_v5 = vld [vmem:[%s3469_s2 + $0x8] sm:$0xff]   ;;  %v2456_v28 = vld [vmem:[%s3469_s2 + $0xf0] sm:$0xff]  }
  0x52   : > { %v2956_v29 = vsel %vm825_vm4, %v846_v36, %v847_v17  ;;  %v2454_v15 = vld [vmem:[%s3469_s2 + $0xe8] sm:$0xff]   ;;  %v2457_v36 = vld [vmem:[%s3469_s2 + $0x38] sm:$0xff]  }
  0x53   : > { %v2960_v44 = vsel %vm825_vm4, %v962_v43, %v963_v25  ;;  %v2964_v26 = vsel %vm825_vm4, %v849_v31, %v850_v45  ;;  %v2458_v17 = vld [vmem:[%s3469_s2 + $0xf8] sm:$0xff]   ;;  %v2459_v25 = vld [vmem:[%s3469_s2 + $0x40] sm:$0xff]  }
  0x54   : > { %v2460_v31 = vld [vmem:[%s3469_s2 + $0x100] sm:$0xff]  }
  0x92   : > { %v781_v51 = vpop.permute.xlu0 %780 }
  0x93   : > { %v2971_v41 = vsel %vm873_vm5, %v2602_v32, %v781_v51  ;;  %v2462_v51 = vld [vmem:[%s3469_s2 + $0x108] sm:$0xff]  }
  0x94   : > { %1210 = vmatmul.mubr.bf16.vlgmr.msra.gmra.mrb[0].mxu1 %v2971_v41 }
  0x95   : > { %1350 = vmatpush1.bf16.msra.mxu1 %v2443_v27  ;;  %2205 = vmatprep.mubr.msk.bf16.mxu1 %vm873_vm5, %v2896_v53  ;;  %v783_v58 = vpop.permute.xlu1 %782  ;;  %v2461_v27 = vld [vmem:[%s3469_s2 + $0x48] sm:$0xff]  }
  0x96   : > { %v765_v55 = vpop.permute.xlu0 %764  ;;  %1351 = vmatprep.subr.bf16.mxu1 %v2491_v0  ;;  %v2990_v48 = vsel %vm873_vm5, %v2626_v50, %v783_v58 }
  0x97   : > { %v2985_v32 = vsel %vm873_vm5, %v2610_v40, %v765_v55  ;;  %v2464_v55 = vld [vmem:[%s3469_s2 + $0x110] sm:$0xff]  }
  0x98   : > { %1146 = vmatmul.mubr.bf16.vlgmr.msra.gmra.mrb[0].mxu0 %v2985_v32 }
  0x99   : > { %1608 = vmatpush1.bf16.msra.mxu0 %v2444_v54  ;;  %1352 = vmatpush1.bf16.msra.mxu1 %v2445_v5  ;;  %v767_v40 = vpop.permute.xlu1 %766  ;;  %v2463_v5 = vld [vmem:[%s3469_s2 + $0x50] sm:$0xff]  }
  0x9a   : > { %1609 = vmatprep.subr.bf16.mxu0 %v2491_v0  ;;  %2197 = vmatprep.mubr.msk.bf16.mxu0 %vm873_vm5, %v2903_v56  ;;  %v3005_v50 = vsel %vm873_vm5, %v2635_v57, %v767_v40 }
  0x9b   : > { %1353 = vmatprep.subr.bf16.mxu1 %v2491_v0 }
  0x9c   : > { %1218 = vmatmul.mubr.bf16.gmra.mrb[4].mxu1 %v2990_v48  ;;  %v785_v62 = vpop.permute.xlu0 %784 }
  0x9d   : > { %1610 = vmatpush1.bf16.msra.mxu0 %v2446_v60  ;;  %1354 = vmatpush1.bf16.msra.mxu1 %v2447_v61  ;;  %v3020_v57 = vsel %vm873_vm5, %v2656_v22, %v785_v62  ;;  %v2465_v60 = vld [vmem:[%s3469_s2 + $0x58] sm:$0xff]  }
  0x9e   : > { %1611 = vmatprep.subr.bf16.mxu0 %v2491_v0  ;;  %2206 = vmatprep.mubr.msk.bf16.mxu1 %vm873_vm5, %v2908_v46  ;;  %v2466_v61 = vld [vmem:[%s3469_s2 + $0x118] sm:$0xff]  }
  0x9f   : > { %1355 = vmatprep.subr.bf16.mxu1 %v2491_v0  ;;  %v769_v3 = vpop.permute.xlu1 %768 }
  0xa0   : > { %1154 = vmatmul.mubr.bf16.gmra.mrb[4].mxu0 %v3005_v50  ;;  %v3035_v22 = vsel %vm873_vm5, %v2671_v39, %v769_v3 }
  0xa1   : > { %1612 = vmatpush1.bf16.msra.mxu0 %v2448_v7  ;;  %1356 = vmatpush1.bf16.msra.mxu1 %v2449_v34 }
  0xa2   : > { %2198 = vmatprep.mubr.msk.bf16.mxu0 %vm873_vm5, %v2911_v52  ;;  %1613 = vmatprep.subr.bf16.mxu0 %v2491_v0  ;;  %v787_v23 = vpop.permute.xlu0 %786 }
  0xa3   : > { %1357 = vmatprep.subr.bf16.mxu1 %v2491_v0  ;;  %v3050_v39 = vsel %vm873_vm5, %v2686_v59, %v787_v23 }
  0xa4   : > { %1226 = vmatmul.mubr.bf16.gmra.mrb[8].mxu1 %v3020_v57 }
  0xa5   : > { %1614 = vmatpush1.bf16.msra.mxu0 %v2450_v63  ;;  %2207 = vmatprep.mubr.msk.bf16.mxu1 %vm873_vm5, %v2921_v11 }
  0xa6   : > { %1358 = vmatpush1.bf16.msra.mxu1 %v2451_v6  ;;  %1615 = vmatprep.subr.bf16.mxu0 %v2491_v0  ;;  %v771_v14 = vpop.permute.xlu1 %770 }
  0xa7   : > { %1359 = vmatprep.subr.bf16.mxu1 %v2491_v0  ;;  %v3065_v59 = vsel %vm873_vm5, %v2712_v19, %v771_v14  ;;  %v789_v30 = vpop.permute.xlu0 %788 }
  0xa8   : > { %1162 = vmatmul.mubr.bf16.gmra.mrb[8].mxu0 %v3035_v22  ;;  %v3080_v19 = vsel %vm873_vm5, %v2716_v20, %v789_v30 }
  0xa9   : > { %1616 = vmatpush1.bf16.msra.mxu0 %v2452_v12  ;;  %2199 = vmatprep.mubr.msk.bf16.mxu0 %vm873_vm5, %v2927_v13 }
  0xaa   : > { %1360 = vmatpush1.bf16.msra.mxu1 %v2453_v47  ;;  %1617 = vmatprep.subr.bf16.mxu0 %v2491_v0 }
  0xab   : > { %1361 = vmatprep.subr.bf16.mxu1 %v2491_v0 }
  0xac   : > { %1234 = vmatmul.mubr.bf16.gmra.mrb[12].mxu1 %v3050_v39 }
  0xad   : > { %2208 = vmatprep.mubr.msk.bf16.mxu1 %vm873_vm5, %v2930_v9  ;;  %1618 = vmatpush1.bf16.msra.mxu0 %v2454_v15  ;;  %v773_v43 = vpop.permute.xlu1 %772 }
  0xae   : > { %1362 = vmatpush1.bf16.msra.mxu1 %v2455_v49  ;;  %1619 = vmatprep.subr.bf16.mxu0 %v2491_v0  ;;  %v3095_v20 = vsel %vm873_vm5, %v2749_v4, %v773_v43 }
  0xaf   : > { %1363 = vmatprep.subr.bf16.mxu1 %v2491_v0  ;;  %v791_v45 = vpop.permute.xlu0 %790 }
  0xb0   : > { %1170 = vmatmul.mubr.bf16.gmra.mrb[12].mxu0 %v3065_v59  ;;  %v3110_v4 = vsel %vm873_vm5, %v2769_v18, %v791_v45 }
  0xb1   : > { %2200 = vmatprep.mubr.msk.bf16.mxu0 %vm873_vm5, %v2937_v24  ;;  %1620 = vmatpush1.bf16.msra.mxu0 %v2456_v28  ;;  %v775_v54 = vpop.permute.xlu1 %774 }
  0xb2   : > { %1364 = vmatpush1.bf16.msra.mxu1 %v2457_v36  ;;  %1621 = vmatprep.subr.bf16.mxu0 %v2491_v0  ;;  %v893_v18 = vsel %vm873_vm5, %v2786_v37, %v775_v54 }
  0xb3   : > { %1365 = vmatprep.subr.bf16.mxu1 %v2491_v0 }
  0xb4   : > { %1242 = vmatmul.mubr.bf16.gmra.mrb[16].mxu1 %v3080_v19 }
  0xb5   : > { %2209 = vmatprep.mubr.msk.bf16.mxu1 %vm873_vm5, %v2943_v33  ;;  %1622 = vmatpush1.bf16.msra.mxu0 %v2458_v17  ;;  %v793_v58 = vpop.permute.xlu0 %792 }
  0xb6   : > { %1366 = vmatpush1.bf16.msra.mxu1 %v2459_v25  ;;  %1623 = vmatprep.subr.bf16.mxu0 %v2491_v0  ;;  %v3137_v37 = vsel %vm873_vm5, %v2808_v1, %v793_v58 }
  0xb7   : > { %1367 = vmatprep.subr.bf16.mxu1 %v2491_v0 }
  0xb8   : > { %1178 = vmatmul.mubr.bf16.gmra.mrb[16].mxu0 %v3095_v20 }
  0xb9   : > { %2201 = vmatprep.mubr.msk.bf16.mxu0 %vm873_vm5, %v2946_v35  ;;  %1624 = vmatpush1.bf16.msra.mxu0 %v2460_v31  ;;  %v777_v40 = vpop.permute.xlu1 %776 }
  0xba   : > { %1368 = vmatpush1.bf16.msra.mxu1 %v2461_v27  ;;  %1625 = vmatprep.subr.bf16.mxu0 %v2491_v0  ;;  %v896_v7 = vsel %vm873_vm5, %v2832_v38, %v777_v40 }
  0xbb   : > { %1369 = vmatprep.subr.bf16.mxu1 %v2491_v0 }
  0xbc   : > { %1250 = vmatmul.mubr.bf16.gmra.mrb[20].mxu1 %v3110_v4 }
  0xbd   : > { %2210 = vmatprep.mubr.msk.bf16.mxu1 %vm873_vm5, %v2949_v16  ;;  %1626 = vmatpush1.bf16.msra.mxu0 %v2462_v51  ;;  %v959_v1 = vpop.permute.xlu0 %958 }
  0xbe   : > { %1370 = vmatpush1.bf16.msra.mxu1 %v2463_v5  ;;  %1627 = vmatprep.subr.bf16.mxu0 %v2491_v0  ;;  %v3152_v34 = vsel %vm873_vm5, %v2853_v2, %v959_v1 }
  0xbf   : > { %1371 = vmatprep.subr.bf16.mxu1 %v2491_v0  ;;  %v779_v62 = vpop.permute.xlu1 %778 }
  0xc0   : > { %1186 = vmatmul.mubr.bf16.gmra.mrb[20].mxu0 %v893_v18 }
  0xc1   : > { %2202 = vmatprep.mubr.msk.bf16.mxu0 %vm873_vm5, %v2956_v29  ;;  %1628 = vmatpush1.bf16.msra.mxu0 %v2464_v55  ;;  %v3161_v38 = vpop.permute.xlu0 %762 }
  0xc2   : > { %1372 = vmatpush1.bf16.msra.mxu1 %v2465_v60  ;;  %1629 = vmatprep.subr.bf16.mxu0 %v2491_v0  ;;  %v899_v0 = vsel %vm873_vm5, %v2868_v21, %v779_v62 }
  0xc4   : > { %1258 = vmatmul.mubr.bf16.gmra.mrb[24].mxu1 %v3137_v37 }
  0xc5   : > { %2211 = vmatprep.mubr.msk.bf16.mxu1 %vm873_vm5, %v2960_v44  ;;  %1630 = vmatpush1.bf16.msra.mxu0 %v2466_v61 }
  0xc8   : > { %1194 = vmatmul.mubr.bf16.gmra.mrb[24].mxu0 %v896_v7 }
  0xc9   : > { %2203 = vmatprep.mubr.msk.bf16.mxu0 %vm873_vm5, %v2964_v26 }
  0xcc   : > { %1266 = vmatmul.mubr.bf16.gmra.mrb[28].mxu1 %v3152_v34 }
  0xcd   : > { %2224 = vmatprep.mubr.msk.bf16.mxu1 %vm873_vm5, %v2568_v8 }
  0xd0   : > { %1202 = vmatmul.mubr.bf16.gmra.mrb[28].mxu0 %v899_v0 }
  0xd1   : > { %2278 = vmatprep.mubr.msk.bf16.mxu0 %vm873_vm5, %v2903_v56 }
  0xd4   : > { %2226 = vmatmul.mubr.msk.bf16.vlgmr.msra.gmra.mrb[32].mxu1 %vm3164_vm6, %v3161_v38 }
  0xd5   : > { %2227 = vmatprep.mubr.msk.bf16.mxu1 %vm873_vm5, %v2883_v42 }
  0xd8   : > { %1640 = vmatmul.mubr.bf16.vlgmr.msra.gmra.mrb[32].mxu0 %v3005_v50 }
  0xd9   : > { %2279 = vmatprep.mubr.msk.bf16.mxu0 %vm873_vm5, %v2911_v52 }
  0xdc   : > { %1390 = vmatmul.mubr.bf16.gmra.mrb[36].mxu1 %v2985_v32 }
  0xdd   : > { %2228 = vmatprep.mubr.msk.bf16.mxu1 %vm873_vm5, %v2903_v56 }
  0xe0   : > { %1648 = vmatmul.mubr.bf16.gmra.mrb[36].mxu0 %v3035_v22 }
  0xe1   : > { %2280 = vmatprep.mubr.msk.bf16.mxu0 %vm873_vm5, %v2927_v13 }
  0xe4   : > { %1398 = vmatmul.mubr.bf16.gmra.mrb[40].mxu1 %v3005_v50 }
  0xe5   : > { %2229 = vmatprep.mubr.msk.bf16.mxu1 %vm873_vm5, %v2911_v52 }
  0xe8   : > { %1656 = vmatmul.mubr.bf16.gmra.mrb[40].mxu0 %v3065_v59 }
  0xe9   : > { %2281 = vmatprep.mubr.msk.bf16.mxu0 %vm873_vm5, %v2937_v24 }
  0xec   : > { %1406 = vmatmul.mubr.bf16.gmra.mrb[44].mxu1 %v3035_v22 }
  0xed   : > { %2230 = vmatprep.mubr.msk.bf16.mxu1 %vm873_vm5, %v2927_v13 }
  0xf0   : > { %1664 = vmatmul.mubr.bf16.gmra.mrb[44].mxu0 %v3095_v20 }
  0xf1   : > { %2282 = vmatprep.mubr.msk.bf16.mxu0 %vm873_vm5, %v2946_v35 }
  0xf4   : > { %1414 = vmatmul.mubr.bf16.gmra.mrb[48].mxu1 %v3065_v59 }
  0xf5   : > { %2231 = vmatprep.mubr.msk.bf16.mxu1 %vm873_vm5, %v2937_v24 }
  0xf8   : > { %1672 = vmatmul.mubr.bf16.gmra.mrb[48].mxu0 %v893_v18 }
  0xf9   : > { %2283 = vmatprep.mubr.msk.bf16.mxu0 %vm873_vm5, %v2956_v29 }
  0xfc   : > { %1422 = vmatmul.mubr.bf16.gmra.mrb[52].mxu1 %v3095_v20 }
  0xfd   : > { %2232 = vmatprep.mubr.msk.bf16.mxu1 %vm873_vm5, %v2946_v35 }
 0x100   : > { %1680 = vmatmul.mubr.bf16.gmra.mrb[52].mxu0 %v896_v7 }
 0x101   : > { %2284 = vmatprep.mubr.msk.bf16.mxu0 %vm873_vm5, %v2964_v26 }
 0x104   : > { %1430 = vmatmul.mubr.bf16.gmra.mrb[56].mxu1 %v893_v18 }
 0x105   : > { %2233 = vmatprep.mubr.msk.bf16.mxu1 %vm873_vm5, %v2956_v29 }
 0x108   : > { %1688 = vmatmul.mubr.bf16.gmra.mrb[56].mxu0 %v899_v0 }
 0x109   : > { %2285 = vmatprep.mubr.msk.bf16.mxu0 %vm873_vm5, %v2872_v10 }
 0x10c   : > { %1438 = vmatmul.mubr.bf16.gmra.mrb[60].mxu1 %v896_v7 }
 0x10d   : > { %2234 = vmatprep.mubr.msk.bf16.mxu1 %vm873_vm5, %v2964_v26 }
 0x110   : > { %1696 = vmatmul.mubr.bf16.gmra.mrb[60].mxu0 %v2971_v41 }
 0x111   : > { %2286 = vmatprep.mubr.msk.bf16.mxu0 %vm873_vm5, %v2896_v53 }
 0x114   : > { %1446 = vmatmul.mubr.bf16.gmra.mrb[64].mxu1 %v899_v0 }
 0x115   : > { %2235 = vmatprep.mubr.msk.bf16.mxu1 %vm873_vm5, %v2872_v10 }
 0x118   : > { %1704 = vmatmul.mubr.bf16.gmra.mrb[64].mxu0 %v2990_v48 }
 0x119   : > { %2287 = vmatprep.mubr.msk.bf16.mxu0 %vm873_vm5, %v2908_v46 }
 0x11c   : > { %1454 = vmatmul.mubr.bf16.gmra.mrb[68].mxu1 %v2971_v41 }
 0x11d   : > { %2236 = vmatprep.mubr.msk.bf16.mxu1 %vm873_vm5, %v2896_v53 }
 0x120   : > { %1712 = vmatmul.mubr.bf16.gmra.mrb[68].mxu0 %v3020_v57 }
 0x121   : > { %2288 = vmatprep.mubr.msk.bf16.mxu0 %vm873_vm5, %v2921_v11 }
 0x124   : > { %1462 = vmatmul.mubr.bf16.gmra.mrb[72].mxu1 %v2990_v48 }
 0x125   : > { %2237 = vmatprep.mubr.msk.bf16.mxu1 %vm873_vm5, %v2908_v46 }
 0x128   : > { %1720 = vmatmul.mubr.bf16.gmra.mrb[72].mxu0 %v3050_v39 }
 0x129   : > { %2289 = vmatprep.mubr.msk.bf16.mxu0 %vm873_vm5, %v2930_v9 }
 0x12c   : > { %1470 = vmatmul.mubr.bf16.gmra.mrb[76].mxu1 %v3020_v57 }
 0x12d   : > { %2238 = vmatprep.mubr.msk.bf16.mxu1 %vm873_vm5, %v2921_v11 }
 0x130   : > { %1728 = vmatmul.mubr.bf16.gmra.mrb[76].mxu0 %v3080_v19 }
 0x131   : > { %2290 = vmatprep.mubr.msk.bf16.mxu0 %vm873_vm5, %v2943_v33 }
 0x134   : > { %1478 = vmatmul.mubr.bf16.gmra.mrb[80].mxu1 %v3050_v39 }
 0x135   : > { %2239 = vmatprep.mubr.msk.bf16.mxu1 %vm873_vm5, %v2930_v9 }
 0x138   : > { %1736 = vmatmul.mubr.bf16.gmra.mrb[80].mxu0 %v3110_v4 }
 0x139   : > { %2291 = vmatprep.mubr.msk.bf16.mxu0 %vm873_vm5, %v2949_v16 }
 0x13c   : > { %1486 = vmatmul.mubr.bf16.gmra.mrb[84].mxu1 %v3080_v19 }
 0x13d   : > { %2240 = vmatprep.mubr.msk.bf16.mxu1 %vm873_vm5, %v2943_v33 }
 0x140   : > { %1744 = vmatmul.mubr.bf16.gmra.mrb[84].mxu0 %v3137_v37 }
 0x141   : > { %2292 = vmatprep.mubr.msk.bf16.mxu0 %vm873_vm5, %v2960_v44 }
 0x144   : > { %1494 = vmatmul.mubr.bf16.gmra.mrb[88].mxu1 %v3110_v4 }
 0x145   : > { %2241 = vmatprep.mubr.msk.bf16.mxu1 %vm873_vm5, %v2949_v16 }
 0x148   : > { %1752 = vmatmul.mubr.bf16.gmra.mrb[88].mxu0 %v3152_v34 }
 0x149   : > { %2293 = vmatprep.mubr.msk.bf16.mxu0 %vm873_vm5, %v2568_v8 }
 0x14c   : > { %1502 = vmatmul.mubr.bf16.gmra.mrb[92].mxu1 %v3137_v37 }
 0x150   : > { %2295 = vmatmul.mubr.msk.bf16.gmra.mrb[92].mxu0 %vm3164_vm6, %v3161_v38 }
 0x167   : > { %v3260_v2 = vpop.f32.mrb[0].mxu1 }
 0x168   : > { %v1213_v21 = vpop.f32.mrb[1].mxu1 }
 0x169   : > { %v3262_v10 = vpop.f32.mrb[2].mxu1 }
 0x16a   : > { %v1216_v42 = vpop.f32.mrb[3].mxu1 }
 0x16b   : > { %v1147_v53 = vpop.f32.mrb[0].mxu0 }
 0x16c   : > { %v1149_v56 = vpop.f32.mrb[1].mxu0 }
 0x16d   : > { %v1150_v46 = vpop.f32.mrb[2].mxu0 }
 0x16e   : > { %v1152_v52 = vpop.f32.mrb[3].mxu0 }
 0x16f   : > { %v3264_v11 = vpop.f32.mrb[4].mxu1 }
 0x170   : > { %v1221_v13 = vpop.f32.mrb[5].mxu1 }
 0x171   : > { %v3266_v8 = vpop.f32.mrb[6].mxu1 }
 0x172   : > { %v1224_v9 = vpop.f32.mrb[7].mxu1 }
 0x173   : > { %v3268_v24 = vpop.f32.mrb[4].mxu0 }
 0x174   : > { %v1157_v33 = vpop.f32.mrb[5].mxu0 }
 0x175   : > { %v3270_v35 = vpop.f32.mrb[6].mxu0 }
 0x176   : > { %v1160_v16 = vpop.f32.mrb[7].mxu0 }
 0x177   : > { %v3272_v29 = vpop.f32.mrb[8].mxu1  ;;  %v3323_v16 = vld [vmem:[%s3470_s3] ss:$0 sm:$0xff] }
 0x178   : > { %v1229_v44 = vpop.f32.mrb[9].mxu1 }
 0x179   : > { %v3274_v26 = vpop.f32.mrb[10].mxu1 }
 0x17a   : > { %v1232_v41 = vpop.f32.mrb[11].mxu1 }
 0x17b   : > { %v3276_v32 = vpop.f32.mrb[8].mxu0 }
 0x17c   : > { %v1165_v48 = vpop.f32.mrb[9].mxu0 }
 0x17d   : > { %v3278_v50 = vpop.f32.mrb[10].mxu0 }
 0x17e   : > { %v1168_v57 = vpop.f32.mrb[11].mxu0 }
 0x17f   : > { %v3280_v3 = vpop.f32.mrb[12].mxu1 }
 0x180   : > { %v1237_v6 = vpop.f32.mrb[13].mxu1 }
 0x181   : > { %v3282_v22 = vpop.f32.mrb[14].mxu1 }
 0x182   : > { %v1240_v12 = vpop.f32.mrb[15].mxu1 }
 0x183   : > { %v3284_v23 = vpop.f32.mrb[12].mxu0 }
 0x184   : > { %v1173_v47 = vpop.f32.mrb[13].mxu0 }
 0x185   : > { %v3286_v39 = vpop.f32.mrb[14].mxu0 }
 0x186   : > { %v1176_v15 = vpop.f32.mrb[15].mxu0 }
 0x187   : > { %v3288_v14 = vpop.f32.mrb[16].mxu1 }
 0x188   : > { %v1245_v49 = vpop.f32.mrb[17].mxu1 }
 0x189   : > { %v3290_v59 = vpop.f32.mrb[18].mxu1 }
 0x18a   : > { %v1248_v28 = vpop.f32.mrb[19].mxu1 }
 0x18b   : > { %v3292_v30 = vpop.f32.mrb[16].mxu0 }
 0x18c   : > { %v1181_v36 = vpop.f32.mrb[17].mxu0 }
 0x18d   : > { %v3294_v19 = vpop.f32.mrb[18].mxu0 }
 0x18e   : > { %v1184_v17 = vpop.f32.mrb[19].mxu0 }
 0x18f   : > { %v3296_v43 = vpop.f32.mrb[20].mxu1 }
 0x190   : > { %v1253_v25 = vpop.f32.mrb[21].mxu1 }
 0x191   : > { %v3298_v20 = vpop.f32.mrb[22].mxu1 }
 0x192   : > { %v1256_v31 = vpop.f32.mrb[23].mxu1 }
 0x193   : > { %v3300_v45 = vpop.f32.mrb[20].mxu0 }
 0x194   : > { %v1189_v27 = vpop.f32.mrb[21].mxu0 }
 0x195   : > { %v3302_v4 = vpop.f32.mrb[22].mxu0 }
 0x196   : > { %v1192_v51 = vpop.f32.mrb[23].mxu0 }
 0x197   : > { %v3304_v54 = vpop.f32.mrb[24].mxu1 }
 0x198   : > { %v1261_v5 = vpop.f32.mrb[25].mxu1 }
 0x199   : > { %v3306_v18 = vpop.f32.mrb[26].mxu1 }
 0x19a   : > { %v1264_v55 = vpop.f32.mrb[27].mxu1 }
 0x19b   : > { %v3308_v58 = vpop.f32.mrb[24].mxu0 }
 0x19c   : > { %v1197_v60 = vpop.f32.mrb[25].mxu0 }
 0x19d   : > { %v3310_v37 = vpop.f32.mrb[26].mxu0 }
 0x19e   : > { %v1200_v61 = vpop.f32.mrb[27].mxu0 }
 0x19f   : > { %v3312_v40 = vpop.f32.mrb[28].mxu1 }
 0x1a0   : > { %v1269_v7 = vpop.f32.mrb[29].mxu1 }
 0x1a1   : > { %v3314_v1 = vpop.f32.mrb[30].mxu1 }
 0x1a2   : > { %v1272_v34 = vpop.f32.mrb[31].mxu1 }
 0x1a3   : > { %v3316_v62 = vpop.f32.mrb[28].mxu0 }
 0x1a4   : > { %v1205_v0 = vpop.f32.mrb[29].mxu0 }
 0x1a5   : > { %v3318_v38 = vpop.f32.mrb[30].mxu0 }
 0x1a6   : > { %v1208_v63 = vpop.f32.mrb[31].mxu0 }
 0x1a7   : > { %v1383_v21 = vpop.f32.mrb[32].mxu1 }
 0x1a8   : > { %v1384_v42 = vadd.f32 %v1383_v21, %v1147_v53  ;;  %v1385_v56 = vpop.f32.mrb[33].mxu1 }
 0x1a9   : > { %v1386_v52 = vpop.f32.mrb[34].mxu1 }
 0x1aa   : > { %v1387_v13 = vadd.f32 %v1386_v52, %v1150_v46  ;;  %v1388_v9 = vpop.f32.mrb[35].mxu1 }
 0x1ab   : > { %v1641_v33 = vpop.f32.mrb[32].mxu0 }
 0x1ac   : > { %v1768_v44 = vadd.f32 %v1641_v33, %v1384_v42  ;;  %v1643_v41 = vpop.f32.mrb[33].mxu0 }
 0x1ad   : > { %v1644_v48 = vpop.f32.mrb[34].mxu0 }
 0x1ae   : > { %v1807_v57 = vadd.f32 %v3323_v16, %v1768_v44  ;;  %v1769_v6 = vadd.f32 %v1644_v48, %v1387_v13  ;;  %v1646_v12 = vpop.f32.mrb[35].mxu0 }
 0x1af   : > { %v1391_v47 = vpop.f32.mrb[36].mxu1 }
 0x1b0   : > { %v1839_v53 = vmax.f32 %v1807_v57, 0.0  ;;  %v1808_v15 = vadd.f32 %v3323_v16, %v1769_v6  ;;  %v1392_v46 = vadd.f32 %v1391_v47, %v3268_v24  ;;  %v1393_v49 = vpop.f32.mrb[37].mxu1 }
 0x1b1   : > { %v1394_v28 = vpop.f32.mrb[38].mxu1 }
 0x1b2   : > { %v2333_v36 = vpack.c.bf16 %v1839_v53, %v1839_v53  ;;  %v1840_v17 = vmax.f32 %v1808_v15, 0.0  ;;  %v1395_v25 = vadd.f32 %v1394_v28, %v3270_v35  ;;  %v1396_v31 = vpop.f32.mrb[39].mxu1 }
 0x1b3   : > { %v1649_v27 = vpop.f32.mrb[36].mxu0 }
 0x1b4   : > { %2000 = vst.msk [vmem:[%s3333_s19] sm:$0xf] %vm1999_vm7, %v2333_v36  ;;  %v2334_v24 = vpack.c.bf16 %v1840_v17, %v1840_v17  ;;  %v1770_v51 = vadd.f32 %v1649_v27, %v1392_v46  ;;  %v1651_v5 = vpop.f32.mrb[37].mxu0 }
 0x1b5   : > { %v1652_v55 = vpop.f32.mrb[38].mxu0 }
 0x1b6   : > { %2001 = vst.msk [vmem:[%s3333_s19 + $0x4] sm:$0xf] %vm1999_vm7, %v2334_v24  ;;  %v1809_v60 = vadd.f32 %v3323_v16, %v1770_v51  ;;  %v1771_v61 = vadd.f32 %v1652_v55, %v1395_v25  ;;  %v1654_v7 = vpop.f32.mrb[39].mxu0 }
 0x1b7   : > { %v1399_v34 = vpop.f32.mrb[40].mxu1 }
 0x1b8   : > { %v1841_v0 = vmax.f32 %v1809_v60, 0.0  ;;  %v1810_v35 = vadd.f32 %v3323_v16, %v1771_v61  ;;  %v1400_v63 = vadd.f32 %v1399_v34, %v3276_v32  ;;  %v1401_v21 = vpop.f32.mrb[41].mxu1 }
 0x1b9   : > { %v1402_v42 = vpop.f32.mrb[42].mxu1 }
 0x1ba   : > { %v2335_v56 = vpack.c.bf16 %v1841_v0, %v1841_v0  ;;  %v1842_v52 = vmax.f32 %v1810_v35, 0.0  ;;  %v1403_v13 = vadd.f32 %v1402_v42, %v3278_v50  ;;  %v1404_v9 = vpop.f32.mrb[43].mxu1 }
 0x1bb   : > { %v1657_v33 = vpop.f32.mrb[40].mxu0 }
 0x1bc   : > { %2002 = vst.msk [vmem:[%s3333_s19 + $0x8] sm:$0xf] %vm1999_vm7, %v2335_v56  ;;  %v2336_v44 = vpack.c.bf16 %v1842_v52, %v1842_v52  ;;  %v1772_v41 = vadd.f32 %v1657_v33, %v1400_v63  ;;  %v1659_v48 = vpop.f32.mrb[41].mxu0 }
 0x1bd   : > { %v1660_v57 = vpop.f32.mrb[42].mxu0 }
 0x1be   : > { %2003 = vst.msk [vmem:[%s3333_s19 + $0xc] sm:$0xf] %vm1999_vm7, %v2336_v44  ;;  %v1811_v6 = vadd.f32 %v3323_v16, %v1772_v41  ;;  %v1773_v32 = vadd.f32 %v1660_v57, %v1403_v13  ;;  %v1662_v12 = vpop.f32.mrb[43].mxu0 }
 0x1bf   : > { %v1407_v47 = vpop.f32.mrb[44].mxu1 }
 0x1c0   : > { %v1843_v53 = vmax.f32 %v1811_v6, 0.0  ;;  %v1812_v50 = vadd.f32 %v3323_v16, %v1773_v32  ;;  %v1408_v15 = vadd.f32 %v1407_v47, %v3284_v23  ;;  %v1409_v46 = vpop.f32.mrb[45].mxu1 }
 0x1c1   : > { %v1410_v49 = vpop.f32.mrb[46].mxu1 }
 0x1c2   : > { %v2337_v28 = vpack.c.bf16 %v1843_v53, %v1843_v53  ;;  %v1844_v36 = vmax.f32 %v1812_v50, 0.0  ;;  %v1411_v17 = vadd.f32 %v1410_v49, %v3286_v39  ;;  %v1412_v25 = vpop.f32.mrb[47].mxu1 }
 0x1c3   : > { %v1665_v31 = vpop.f32.mrb[44].mxu0 }
 0x1c4   : > { %2004 = vst.msk [vmem:[%s3333_s19 + $0x10] sm:$0xf] %vm1999_vm7, %v2337_v28  ;;  %v2338_v27 = vpack.c.bf16 %v1844_v36, %v1844_v36  ;;  %v1774_v24 = vadd.f32 %v1665_v31, %v1408_v15  ;;  %v1667_v51 = vpop.f32.mrb[45].mxu0 }
 0x1c5   : > { %v1668_v5 = vpop.f32.mrb[46].mxu0 }
 0x1c6   : > { %2005 = vst.msk [vmem:[%s3333_s19 + $0x14] sm:$0xf] %vm1999_vm7, %v2338_v27  ;;  %v1813_v55 = vadd.f32 %v3323_v16, %v1774_v24  ;;  %v1775_v23 = vadd.f32 %v1668_v5, %v1411_v17  ;;  %v1670_v60 = vpop.f32.mrb[47].mxu0 }
 0x1c7   : > { %v1415_v61 = vpop.f32.mrb[48].mxu1 }
 0x1c8   : > { %v1845_v7 = vmax.f32 %v1813_v55, 0.0  ;;  %v1814_v39 = vadd.f32 %v3323_v16, %v1775_v23  ;;  %v1416_v34 = vadd.f32 %v1415_v61, %v3292_v30  ;;  %v1417_v0 = vpop.f32.mrb[49].mxu1 }
 0x1c9   : > { %v1418_v35 = vpop.f32.mrb[50].mxu1 }
 0x1ca   : > { %v2339_v63 = vpack.c.bf16 %v1845_v7, %v1845_v7  ;;  %v1846_v21 = vmax.f32 %v1814_v39, 0.0  ;;  %v1419_v42 = vadd.f32 %v1418_v35, %v3294_v19  ;;  %v1420_v56 = vpop.f32.mrb[51].mxu1 }
 0x1cb   : > { %v1673_v52 = vpop.f32.mrb[48].mxu0 }
 0x1cc   : > { %2006 = vst.msk [vmem:[%s3333_s19 + $0x18] sm:$0xf] %vm1999_vm7, %v2339_v63  ;;  %v2340_v13 = vpack.c.bf16 %v1846_v21, %v1846_v21  ;;  %v1776_v9 = vadd.f32 %v1673_v52, %v1416_v34  ;;  %v1675_v33 = vpop.f32.mrb[49].mxu0 }
 0x1cd   : > { %v1676_v44 = vpop.f32.mrb[50].mxu0 }
 0x1ce   : > { %2007 = vst.msk [vmem:[%s3333_s19 + $0x1c] sm:$0xf] %vm1999_vm7, %v2340_v13  ;;  %v1815_v41 = vadd.f32 %v3323_v16, %v1776_v9  ;;  %v1777_v30 = vadd.f32 %v1676_v44, %v1419_v42  ;;  %v1678_v48 = vpop.f32.mrb[51].mxu0 }
 0x1cf   : > { %v1423_v57 = vpop.f32.mrb[52].mxu1 }
 0x1d0   : > { %v1847_v6 = vmax.f32 %v1815_v41, 0.0  ;;  %v1816_v19 = vadd.f32 %v3323_v16, %v1777_v30  ;;  %v1424_v32 = vadd.f32 %v1423_v57, %v3300_v45  ;;  %v1425_v12 = vpop.f32.mrb[53].mxu1 }
 0x1d1   : > { %v1426_v47 = vpop.f32.mrb[54].mxu1 }
 0x1d2   : > { %v2341_v53 = vpack.c.bf16 %v1847_v6, %v1847_v6  ;;  %v1848_v50 = vmax.f32 %v1816_v19, 0.0  ;;  %v1427_v15 = vadd.f32 %v1426_v47, %v3302_v4  ;;  %v1428_v46 = vpop.f32.mrb[55].mxu1 }
 0x1d3   : > { %v1681_v49 = vpop.f32.mrb[52].mxu0 }
 0x1d4   : > { %2008 = vst.msk [vmem:[%s3333_s19 + $0x20] sm:$0xf] %vm1999_vm7, %v2341_v53  ;;  %v2342_v28 = vpack.c.bf16 %v1848_v50, %v1848_v50  ;;  %v1778_v36 = vadd.f32 %v1681_v49, %v1424_v32  ;;  %v1683_v17 = vpop.f32.mrb[53].mxu0 }
 0x1d5   : > { %v1684_v25 = vpop.f32.mrb[54].mxu0 }
 0x1d6   : > { %2009 = vst.msk [vmem:[%s3333_s19 + $0x24] sm:$0xf] %vm1999_vm7, %v2342_v28  ;;  %v1817_v31 = vadd.f32 %v3323_v16, %v1778_v36  ;;  %v1779_v45 = vadd.f32 %v1684_v25, %v1427_v15  ;;  %v1686_v27 = vpop.f32.mrb[55].mxu0 }
 0x1d7   : > { %v1431_v24 = vpop.f32.mrb[56].mxu1 }
 0x1d8   : > { %v1849_v51 = vmax.f32 %v1817_v31, 0.0  ;;  %v1818_v4 = vadd.f32 %v3323_v16, %v1779_v45  ;;  %v1432_v5 = vadd.f32 %v1431_v24, %v3308_v58  ;;  %v1433_v55 = vpop.f32.mrb[57].mxu1 }
 0x1d9   : > { %v1434_v23 = vpop.f32.mrb[58].mxu1 }
 0x1da   : > { %v2343_v60 = vpack.c.bf16 %v1849_v51, %v1849_v51  ;;  %v1850_v61 = vmax.f32 %v1818_v4, 0.0  ;;  %v1435_v7 = vadd.f32 %v1434_v23, %v3310_v37  ;;  %v1436_v39 = vpop.f32.mrb[59].mxu1 }
 0x1db   : > { %v1689_v34 = vpop.f32.mrb[56].mxu0 }
 0x1dc   : > { %2010 = vst.msk [vmem:[%s3333_s19 + $0x28] sm:$0xf] %vm1999_vm7, %v2343_v60  ;;  %v2344_v0 = vpack.c.bf16 %v1850_v61, %v1850_v61  ;;  %v1780_v35 = vadd.f32 %v1689_v34, %v1432_v5  ;;  %v1691_v63 = vpop.f32.mrb[57].mxu0 }
 0x1dd   : > { %v1692_v21 = vpop.f32.mrb[58].mxu0 }
 0x1de   : > { %2011 = vst.msk [vmem:[%s3333_s19 + $0x2c] sm:$0xf] %vm1999_vm7, %v2344_v0  ;;  %v1819_v42 = vadd.f32 %v3323_v16, %v1780_v35  ;;  %v1781_v58 = vadd.f32 %v1692_v21, %v1435_v7  ;;  %v1694_v56 = vpop.f32.mrb[59].mxu0 }
 0x1df   : > { %v1439_v52 = vpop.f32.mrb[60].mxu1 }
 0x1e0   : > { %v1851_v13 = vmax.f32 %v1819_v42, 0.0  ;;  %v1820_v37 = vadd.f32 %v3323_v16, %v1781_v58  ;;  %v1440_v9 = vadd.f32 %v1439_v52, %v3316_v62  ;;  %v1441_v33 = vpop.f32.mrb[61].mxu1 }
 0x1e1   : > { %v1442_v44 = vpop.f32.mrb[62].mxu1 }
 0x1e2   : > { %v2345_v41 = vpack.c.bf16 %v1851_v13, %v1851_v13  ;;  %v1852_v30 = vmax.f32 %v1820_v37, 0.0  ;;  %v1443_v48 = vadd.f32 %v1442_v44, %v3318_v38  ;;  %v1444_v57 = vpop.f32.mrb[63].mxu1 }
 0x1e3   : > { %v1697_v6 = vpop.f32.mrb[60].mxu0 }
 0x1e4   : > { %2012 = vst.msk [vmem:[%s3333_s19 + $0x30] sm:$0xf] %vm1999_vm7, %v2345_v41  ;;  %v2346_v19 = vpack.c.bf16 %v1852_v30, %v1852_v30  ;;  %v1782_v32 = vadd.f32 %v1697_v6, %v1440_v9  ;;  %v1699_v12 = vpop.f32.mrb[61].mxu0 }
 0x1e5   : > { %v1700_v47 = vpop.f32.mrb[62].mxu0 }
 0x1e6   : > { %2013 = vst.msk [vmem:[%s3333_s19 + $0x34] sm:$0xf] %vm1999_vm7, %v2346_v19  ;;  %v1821_v53 = vadd.f32 %v3323_v16, %v1782_v32  ;;  %v1783_v62 = vadd.f32 %v1700_v47, %v1443_v48  ;;  %v1702_v50 = vpop.f32.mrb[63].mxu0 }
 0x1e7   : > { %v1447_v15 = vpop.f32.mrb[64].mxu1 }
 0x1e8   : > { %v1853_v46 = vmax.f32 %v1821_v53, 0.0  ;;  %v1822_v38 = vadd.f32 %v3323_v16, %v1783_v62  ;;  %v1448_v49 = vadd.f32 %v1447_v15, %v3260_v2  ;;  %v1449_v28 = vpop.f32.mrb[65].mxu1 }
 0x1e9   : > { %v1450_v36 = vpop.f32.mrb[66].mxu1 }
 0x1ea   : > { %v2347_v17 = vpack.c.bf16 %v1853_v46, %v1853_v46  ;;  %v1854_v25 = vmax.f32 %v1822_v38, 0.0  ;;  %v1451_v31 = vadd.f32 %v1450_v36, %v3262_v10  ;;  %v1452_v45 = vpop.f32.mrb[67].mxu1 }
 0x1eb   : > { %v1705_v27 = vpop.f32.mrb[64].mxu0 }
 0x1ec   : > { %2014 = vst.msk [vmem:[%s3333_s19 + $0x38] sm:$0xf] %vm1999_vm7, %v2347_v17  ;;  %v2348_v24 = vpack.c.bf16 %v1854_v25, %v1854_v25  ;;  %v1784_v51 = vadd.f32 %v1705_v27, %v1448_v49  ;;  %v1707_v4 = vpop.f32.mrb[65].mxu0 }
 0x1ed   : > { %v1708_v5 = vpop.f32.mrb[66].mxu0 }
 0x1ee   : > { %2015 = vst.msk [vmem:[%s3333_s19 + $0x3c] sm:$0xf] %vm1999_vm7, %v2348_v24  ;;  %v1823_v55 = vadd.f32 %v3323_v16, %v1784_v51  ;;  %v1785_v2 = vadd.f32 %v1708_v5, %v1451_v31  ;;  %v1710_v23 = vpop.f32.mrb[67].mxu0 }
 0x1ef   : > { %v1455_v60 = vpop.f32.mrb[68].mxu1 }
 0x1f0   : > { %v1855_v61 = vmax.f32 %v1823_v55, 0.0  ;;  %v1824_v10 = vadd.f32 %v3323_v16, %v1785_v2  ;;  %v1456_v7 = vadd.f32 %v1455_v60, %v3264_v11  ;;  %v1457_v39 = vpop.f32.mrb[69].mxu1 }
 0x1f1   : > { %v1458_v34 = vpop.f32.mrb[70].mxu1 }
 0x1f2   : > { %v2349_v0 = vpack.c.bf16 %v1855_v61, %v1855_v61  ;;  %v1856_v35 = vmax.f32 %v1824_v10, 0.0  ;;  %v1459_v63 = vadd.f32 %v1458_v34, %v3266_v8  ;;  %v1460_v21 = vpop.f32.mrb[71].mxu1 }
 0x1f3   : > { %v1713_v42 = vpop.f32.mrb[68].mxu0 }
 0x1f4   : > { %2016 = vst.msk [vmem:[%s3333_s19 + $0x40] sm:$0xf] %vm1999_vm7, %v2349_v0  ;;  %v2350_v58 = vpack.c.bf16 %v1856_v35, %v1856_v35  ;;  %v1786_v56 = vadd.f32 %v1713_v42, %v1456_v7  ;;  %v1715_v52 = vpop.f32.mrb[69].mxu0 }
 0x1f5   : > { %v1716_v13 = vpop.f32.mrb[70].mxu0 }
 0x1f6   : > { %2017 = vst.msk [vmem:[%s3333_s19 + $0x44] sm:$0xf] %vm1999_vm7, %v2350_v58  ;;  %v1825_v37 = vadd.f32 %v3323_v16, %v1786_v56  ;;  %v1787_v11 = vadd.f32 %v1716_v13, %v1459_v63  ;;  %v1718_v9 = vpop.f32.mrb[71].mxu0 }
 0x1f7   : > { %v1463_v33 = vpop.f32.mrb[72].mxu1 }
 0x1f8   : > { %v1857_v44 = vmax.f32 %v1825_v37, 0.0  ;;  %v1826_v8 = vadd.f32 %v3323_v16, %v1787_v11  ;;  %v1464_v41 = vadd.f32 %v1463_v33, %v3272_v29  ;;  %v1465_v30 = vpop.f32.mrb[73].mxu1 }
 0x1f9   : > { %v1466_v48 = vpop.f32.mrb[74].mxu1 }
 0x1fa   : > { %v2351_v57 = vpack.c.bf16 %v1857_v44, %v1857_v44  ;;  %v1858_v6 = vmax.f32 %v1826_v8, 0.0  ;;  %v1467_v19 = vadd.f32 %v1466_v48, %v3274_v26  ;;  %v1468_v32 = vpop.f32.mrb[75].mxu1 }
 0x1fb   : > { %v1721_v12 = vpop.f32.mrb[72].mxu0 }
 0x1fc   : > { %2018 = vst.msk [vmem:[%s3333_s19 + $0x48] sm:$0xf] %vm1999_vm7, %v2351_v57  ;;  %v2352_v47 = vpack.c.bf16 %v1858_v6, %v1858_v6  ;;  %v1788_v53 = vadd.f32 %v1721_v12, %v1464_v41  ;;  %v1723_v62 = vpop.f32.mrb[73].mxu0 }
 0x1fd   : > { %v1724_v50 = vpop.f32.mrb[74].mxu0 }
 0x1fe   : > { %2019 = vst.msk [vmem:[%s3333_s19 + $0x4c] sm:$0xf] %vm1999_vm7, %v2352_v47  ;;  %v1827_v15 = vadd.f32 %v3323_v16, %v1788_v53  ;;  %v1789_v29 = vadd.f32 %v1724_v50, %v1467_v19  ;;  %v1726_v46 = vpop.f32.mrb[75].mxu0 }
 0x1ff   : > { %v1471_v38 = vpop.f32.mrb[76].mxu1 }
 0x200   : > { %v1859_v49 = vmax.f32 %v1827_v15, 0.0  ;;  %v1828_v26 = vadd.f32 %v3323_v16, %v1789_v29  ;;  %v1472_v28 = vadd.f32 %v1471_v38, %v3280_v3  ;;  %v1473_v36 = vpop.f32.mrb[77].mxu1 }
 0x201   : > { %v1474_v17 = vpop.f32.mrb[78].mxu1 }
 0x202   : > { %v2353_v25 = vpack.c.bf16 %v1859_v49, %v1859_v49  ;;  %v1860_v31 = vmax.f32 %v1828_v26, 0.0  ;;  %v1475_v45 = vadd.f32 %v1474_v17, %v3282_v22  ;;  %v1476_v27 = vpop.f32.mrb[79].mxu1 }
 0x203   : > { %v1729_v24 = vpop.f32.mrb[76].mxu0 }
 0x204   : > { %2020 = vst.msk [vmem:[%s3333_s19 + $0x50] sm:$0xf] %vm1999_vm7, %v2353_v25  ;;  %v2354_v51 = vpack.c.bf16 %v1860_v31, %v1860_v31  ;;  %v1790_v4 = vadd.f32 %v1729_v24, %v1472_v28  ;;  %v1731_v5 = vpop.f32.mrb[77].mxu0 }
 0x205   : > { %v1732_v55 = vpop.f32.mrb[78].mxu0 }
 0x206   : > { %2021 = vst.msk [vmem:[%s3333_s19 + $0x54] sm:$0xf] %vm1999_vm7, %v2354_v51  ;;  %v1829_v2 = vadd.f32 %v3323_v16, %v1790_v4  ;;  %v1791_v3 = vadd.f32 %v1732_v55, %v1475_v45  ;;  %v1734_v23 = vpop.f32.mrb[79].mxu0 }
 0x207   : > { %v1479_v60 = vpop.f32.mrb[80].mxu1 }
 0x208   : > { %v1861_v61 = vmax.f32 %v1829_v2, 0.0  ;;  %v1830_v22 = vadd.f32 %v3323_v16, %v1791_v3  ;;  %v1480_v10 = vadd.f32 %v1479_v60, %v3288_v14  ;;  %v1481_v7 = vpop.f32.mrb[81].mxu1 }
 0x209   : > { %v1482_v39 = vpop.f32.mrb[82].mxu1 }
 0x20a   : > { %v2355_v34 = vpack.c.bf16 %v1861_v61, %v1861_v61  ;;  %v1862_v0 = vmax.f32 %v1830_v22, 0.0  ;;  %v1483_v35 = vadd.f32 %v1482_v39, %v3290_v59  ;;  %v1484_v63 = vpop.f32.mrb[83].mxu1 }
 0x20b   : > { %v1737_v21 = vpop.f32.mrb[80].mxu0 }
 0x20c   : > { %2022 = vst.msk [vmem:[%s3333_s19 + $0x58] sm:$0xf] %vm1999_vm7, %v2355_v34  ;;  %v2356_v42 = vpack.c.bf16 %v1862_v0, %v1862_v0  ;;  %v1792_v58 = vadd.f32 %v1737_v21, %v1480_v10  ;;  %v1739_v56 = vpop.f32.mrb[81].mxu0 }
 0x20d   : > { %v1740_v52 = vpop.f32.mrb[82].mxu0 }
 0x20e   : > { %2023 = vst.msk [vmem:[%s3333_s19 + $0x5c] sm:$0xf] %vm1999_vm7, %v2356_v42  ;;  %v1831_v13 = vadd.f32 %v3323_v16, %v1792_v58  ;;  %v1793_v14 = vadd.f32 %v1740_v52, %v1483_v35  ;;  %v1742_v37 = vpop.f32.mrb[83].mxu0 }
 0x20f   : > { %v1487_v11 = vpop.f32.mrb[84].mxu1 }
 0x210   : > { %v1863_v9 = vmax.f32 %v1831_v13, 0.0  ;;  %v1832_v59 = vadd.f32 %v3323_v16, %v1793_v14  ;;  %v1488_v33 = vadd.f32 %v1487_v11, %v3296_v43  ;;  %v1489_v44 = vpop.f32.mrb[85].mxu1 }
 0x211   : > { %v1490_v8 = vpop.f32.mrb[86].mxu1 }
 0x212   : > { %v2357_v41 = vpack.c.bf16 %v1863_v9, %v1863_v9  ;;  %v1864_v30 = vmax.f32 %v1832_v59, 0.0  ;;  %v1491_v48 = vadd.f32 %v1490_v8, %v3298_v20  ;;  %v1492_v57 = vpop.f32.mrb[87].mxu1 }
 0x213   : > { %v1745_v6 = vpop.f32.mrb[84].mxu0 }
 0x214   : > { %2024 = vst.msk [vmem:[%s3333_s19 + $0x60] sm:$0xf] %vm1999_vm7, %v2357_v41  ;;  %v2358_v19 = vpack.c.bf16 %v1864_v30, %v1864_v30  ;;  %v1794_v32 = vadd.f32 %v1745_v6, %v1488_v33  ;;  %v1747_v12 = vpop.f32.mrb[85].mxu0 }
 0x215   : > { %v1748_v47 = vpop.f32.mrb[86].mxu0 }
 0x216   : > { %2025 = vst.msk [vmem:[%s3333_s19 + $0x64] sm:$0xf] %vm1999_vm7, %v2358_v19  ;;  %v1833_v53 = vadd.f32 %v3323_v16, %v1794_v32  ;;  %v1795_v43 = vadd.f32 %v1748_v47, %v1491_v48  ;;  %v1750_v62 = vpop.f32.mrb[87].mxu0 }
 0x217   : > { %v1495_v50 = vpop.f32.mrb[88].mxu1 }
 0x218   : > { %v1865_v15 = vmax.f32 %v1833_v53, 0.0  ;;  %v1834_v20 = vadd.f32 %v3323_v16, %v1795_v43  ;;  %v1496_v29 = vadd.f32 %v1495_v50, %v3304_v54  ;;  %v1497_v46 = vpop.f32.mrb[89].mxu1 }
 0x219   : > { %v1498_v38 = vpop.f32.mrb[90].mxu1 }
 0x21a   : > { %v2359_v49 = vpack.c.bf16 %v1865_v15, %v1865_v15  ;;  %v1866_v26 = vmax.f32 %v1834_v20, 0.0  ;;  %v1499_v28 = vadd.f32 %v1498_v38, %v3306_v18  ;;  %v1500_v36 = vpop.f32.mrb[91].mxu1 }
 0x21b   : > { %v1753_v17 = vpop.f32.mrb[88].mxu0 }
 0x21c   : > { %2026 = vst.msk [vmem:[%s3333_s19 + $0x68] sm:$0xf] %vm1999_vm7, %v2359_v49  ;;  %v2360_v25 = vpack.c.bf16 %v1866_v26, %v1866_v26  ;;  %v1796_v31 = vadd.f32 %v1753_v17, %v1496_v29  ;;  %v1755_v45 = vpop.f32.mrb[89].mxu0 }
 0x21d   : > { %v1756_v27 = vpop.f32.mrb[90].mxu0 }
 0x21e   : > { %2027 = vst.msk [vmem:[%s3333_s19 + $0x6c] sm:$0xf] %vm1999_vm7, %v2360_v25  ;;  %v1835_v24 = vadd.f32 %v3323_v16, %v1796_v31  ;;  %v1797_v54 = vadd.f32 %v1756_v27, %v1499_v28  ;;  %v1758_v51 = vpop.f32.mrb[91].mxu0 }
 0x21f   : > { %v1503_v4 = vpop.f32.mrb[92].mxu1 }
 0x220   : > { %v1867_v5 = vmax.f32 %v1835_v24, 0.0  ;;  %v1836_v18 = vadd.f32 %v3323_v16, %v1797_v54  ;;  %v1504_v55 = vadd.f32 %v1503_v4, %v3312_v40  ;;  %v1505_v2 = vpop.f32.mrb[93].mxu1 }
 0x221   : > { %v1506_v3 = vpop.f32.mrb[94].mxu1 }
 0x222   : > { %v2361_v23 = vpack.c.bf16 %v1867_v5, %v1867_v5  ;;  %v1868_v60 = vmax.f32 %v1836_v18, 0.0  ;;  %v1507_v61 = vadd.f32 %v1506_v3, %v3314_v1  ;;  %v1508_v22 = vpop.f32.mrb[95].mxu1 }
 0x223   : > { %v1761_v10 = vpop.f32.mrb[92].mxu0 }
 0x224   : > { %2028 = vst.msk [vmem:[%s3333_s19 + $0x70] sm:$0xf] %vm1999_vm7, %v2361_v23  ;;  %v2362_v7 = vpack.c.bf16 %v1868_v60, %v1868_v60  ;;  %v1798_v39 = vadd.f32 %v1761_v10, %v1504_v55  ;;  %v1763_v34 = vpop.f32.mrb[93].mxu0 }
 0x225   : > { %v1764_v0 = vpop.f32.mrb[94].mxu0 }
 0x226   : > { %2029 = vst.msk [vmem:[%s3333_s19 + $0x74] sm:$0xf] %vm1999_vm7, %v2362_v7  ;;  %v1837_v40 = vadd.f32 %v3323_v16, %v1798_v39  ;;  %v1799_v35 = vadd.f32 %v1764_v0, %v1507_v61  ;;  %v1766_v63 = vpop.f32.mrb[95].mxu0 }
 0x228   : > { %v1869_v21 = vmax.f32 %v1837_v40, 0.0  ;;  %v1838_v42 = vadd.f32 %v3323_v16, %v1799_v35 }
 0x22a   : > { %v2363_v1 = vpack.c.bf16 %v1869_v21, %v1869_v21  ;;  %v1870_v58 = vmax.f32 %v1838_v42, 0.0 }
 0x22c   : > { %2030 = vst.msk [vmem:[%s3333_s19 + $0x78] sm:$0xf] %vm1999_vm7, %v2363_v1  ;;  %v2364_v56 = vpack.c.bf16 %v1870_v58, %v1870_v58 }
 0x22e   : > { %2031 = vst.msk [vmem:[%s3333_s19 + $0x7c] sm:$0xf] %vm1999_vm7, %v2364_v56 }
 0x22f PF: > { %s14_s17 = sadd.s32 1, %s2489_s17   ;;  %s3476_s15 = smov %s2485_s16 }
 0x230   : > { %p11_p5 = scmp.ge.s32.totalorder %s14_s17, 4   ;;  %s3477_s16 = smov %s3479_s18 }
 0x232   :  { %13 = sbr.rel (!%p11_p5) target bundleno = 2 (0x2), region = 71 }

// kernel: vggnet_forward.8
= control target key start
LH: loop header
LB: loop body
LE: loop exit
PB: predicated region body
PF: predicated region fallthrough
CT: control target
= control target key end

     0   :  { %s3530_s9 = smov 0   ;;  %s3532_s10 = smov 0   ;;  %s5117_s0 = inlined_call_operand.vmem [shape: bf16[2,16,16,64], index: 0, kind: input, shape index: {}]   ;;  %s5118_s1 = inlined_call_operand.vmem [shape: bf16[2,1,15,64], index: 1, kind: input, shape index: {}]   ;;  %s5119_s2 = inlined_call_operand.vmem [shape: bf16[2,7,7,64], index: 2, kind: output, shape index: {}]  }
   0x1   :  { %s3534_s11 = smov 0  }
   0x2 LB: > { %s24_s12 = sadd.s32 1, %s3507_s10  ;;  %p3363_p0 = scmp.ge.s32.totalorder %s3511_s11, 1  ;;  %s3511_s11 = sphi %s3534_s11, %s12_s11   ;;  %s3507_s10 = sphi %s3532_s10, %s5564_s10   ;;  %s3503_s9 = sphi %s3530_s9, %s5563_s9  }
   0x3   : > { %p26_p1 = scmp.ge.s32.totalorder %s24_s12, 2  ;;  %p149_p2 = scmp.lt.s32.totalorder %s3511_s11, 3 }
   0x5   : > { %s5566_s12 = smov (%p26_p1, %s24_s12), 0  ;;  %p150_p3 = pnand %p3363_p0, %p149_p2 }
   0x7   : > { %153 = sbr.rel (%p150_p3) target bundleno = 251 (0xfb), region = 28 }
   0xe   : > { %p188_p4 = scmp.lt.s32.totalorder %s3503_s9, 1  ;;  %v259_v0 = vlaneseq  ;;  %v3513_v1 = vmov 1966171168   ;;  %vm461_vm0 = vcmask 1046528   ;;  %vm1559_vm1 = vcmask 1041409  }
   0xf   : > { %v257_v2 = vunpack.c.l.s4 %v3513_v1  ;;  %vm1562_vm2 = vcmask 1042434   ;;  %vm1565_vm3 = vcmask 1043459   ;;  %vm1568_vm4 = vcmask 1044484  }
  0x10   : > { %s5568_s9 = smov (!%p188_p4, %s3503_s9), 1  ;;  %v3557_v3 = vshrl.u32 %v259_v0, 7  ;;  %vm1571_vm5 = vcmask 1045509   ;;  %vm1647_vm6 = vcmask 1042432   ;;  %vm3143_vm7 = vcmask 1046534  }
  0x11   : > { %s3445_s13 = sshll.u32 %s5568_s9, 7  ;;  %s3446_s17 = sshll.u32 %s5568_s9, 3  ;;  %v258_v4 = vunpack.c.0.s8 %v257_v2  ;;  %vm3231_vm8 = vcmask 519168   ;;  %vm3232_vm9 = vsmask.f32 3328 }
  0x12   : > { %s3554_s16 = scalar_lea.vmem %s5117_s0, %s3445_s13  ;;  %5256 = vst [vmem:[#allocation2_spill] sm:$0xff] %v3557_v3  ;;  %s205_s20 = scalar_lea.vmem %s5118_s1, %s3446_s17  ;;  %v3568_v12 = vsub.s32 0, %v3557_v3  ;;  %vm5065_vm10 = vmand %vm3231_vm8, %vm3232_vm9 }
  0x13   : > { %v3563_v5 = vsub.s32 %v258_v4, %v3557_v3  ;;  %v3369_v6 = vld.sshfl [vmem:[%s205_s20] sm:$0x33 pattern:$0x75316420]  ;;  %v3475_v38 = vld [vmem:[%s3554_s16 + $0x8] sm:$0xff]   ;;  %v3476_v39 = vld [vmem:[%s3554_s16 + $0x10] sm:$0xff]  }
  0x14   : > { %v3370_v7 = vld.sshfl [vmem:[%s205_s20 + $0x4] sm:$0x33 pattern:$0x75316420]  ;;  %v255_v8 = vcombine.high %v3369_v6, %v3369_v6  ;;  %v3477_v40 = vld [vmem:[%s3554_s16 + $0x18] sm:$0xff]   ;;  %v3479_v46 = vld [vmem:[%s3554_s16 + $0x28] sm:$0xff]  }
  0x15   : > { %5257 = vst [vmem:[#allocation3_spill] sm:$0xff] %v3563_v5  ;;  %v262_v9 = vrot.slane %v3369_v6, %v3563_v5  ;;  %v279_v10 = vcombine.high %v3370_v7, %v3370_v7  ;;  %v286_v11 = vrot.slane %v3370_v7, %v3563_v5  ;;  %v3474_v33 = vld [vmem:[%s3554_s16] sm:$0xff]   ;;  %v3480_v47 = vld [vmem:[%s3554_s16 + $0x30] sm:$0xff]   ;;  %v3481_v52 = vld [vmem:[%s3554_s16 + $0x38] sm:$0xff]   ;;  %s3447_s21 = smul.u32 28, %s5568_s9 }
  0x16   : > { %v269_v13 = vrot.slane %v255_v8, %v3563_v5  ;;  %v3478_v45 = vld [vmem:[%s3554_s16 + $0x20] sm:$0xff]   ;;  %v3483_v54 = vld [vmem:[%s3554_s16 + $0x48] sm:$0xff]   ;;  %v3484_v59 = vld [vmem:[%s3554_s16 + $0x50] sm:$0xff]  }
  0x17   : > { %v270_v14 = vcombine.high %v262_v9, %v262_v9  ;;  %v297_v15 = vunpack.i.h.s16 %v262_v9  ;;  %v3386_v16 = vpack.i.b16 %v262_v9, %v262_v9  ;;  %v293_v17 = vrot.slane %v279_v10, %v3563_v5  ;;  %v3482_v53 = vld [vmem:[%s3554_s16 + $0x40] sm:$0xff]   ;;  %v3485_v60 = vld [vmem:[%s3554_s16 + $0x58] sm:$0xff]   ;;  %v3487_v2 = vld [vmem:[%s3554_s16 + $0x68] sm:$0xff]   ;;  %s5037_s24 = scalar_lea.vmem %s5119_s2, %s3447_s21 }
  0x18   : > { %v294_v18 = vcombine.high %v286_v11, %v286_v11  ;;  %v305_v19 = vunpack.i.h.s16 %v286_v11  ;;  %v3390_v20 = vpack.i.b16 %v286_v11, %v286_v11  ;;  %v271_v21 = vcombine.high %v269_v13, %v269_v13  ;;  %v3486_v61 = vld [vmem:[%s3554_s16 + $0x60] sm:$0xff]   ;;  %v3488_v4 = vld [vmem:[%s3554_s16 + $0x70] sm:$0xff]  }
  0x19   : > { %v299_v22 = vunpack.i.h.s16 %v269_v13  ;;  %v301_v23 = vunpack.i.h.s16 %v270_v14  ;;  %v387_v24 = vpack.i.b16 %v297_v15, %v297_v15  ;;  %v295_v25 = vcombine.high %v293_v17, %v293_v17 }
  0x1a   : > { %v307_v26 = vunpack.i.h.s16 %v293_v17  ;;  %v309_v27 = vunpack.i.h.s16 %v294_v18  ;;  %v3387_v28 = vpack.i.b16 %v269_v13, %v269_v13  ;;  %v303_v29 = vunpack.i.h.s16 %v271_v21 }
  0x1b   : > { %v389_v30 = vpack.i.b16 %v299_v22, %v299_v22  ;;  %v3388_v31 = vpack.i.b16 %v270_v14, %v270_v14  ;;  %v391_v32 = vpack.i.b16 %v301_v23, %v301_v23  ;;  %v3389_v34 = vpack.i.b16 %v271_v21, %v271_v21 }
  0x1c   : > { %v395_v35 = vpack.i.b16 %v305_v19, %v305_v19  ;;  %v3391_v36 = vpack.i.b16 %v293_v17, %v293_v17  ;;  %v397_v37 = vpack.i.b16 %v307_v26, %v307_v26  ;;  %v393_v41 = vpack.i.b16 %v303_v29, %v303_v29 }
  0x1d   : > { %v3392_v42 = vpack.i.b16 %v294_v18, %v294_v18  ;;  %v399_v43 = vpack.i.b16 %v309_v27, %v309_v27  ;;  %v3393_v44 = vpack.i.b16 %v295_v25, %v295_v25  ;;  %v404_v48 = vrot.slane %v3386_v16, %v3568_v12 }
  0x1e   : > { %v408_v49 = vrot.slane %v387_v24, %v3568_v12  ;;  %v412_v50 = vrot.slane %v3387_v28, %v3568_v12  ;;  %v416_v51 = vrot.slane %v389_v30, %v3568_v12  ;;  %v420_v55 = vrot.slane %v3388_v31, %v3568_v12 }
  0x1f   : > { %v424_v56 = vrot.slane %v391_v32, %v3568_v12  ;;  %v428_v57 = vrot.slane %v3389_v34, %v3568_v12  ;;  %v432_v58 = vrot.slane %v393_v41, %v3568_v12  ;;  %v436_v62 = vrot.slane %v3390_v20, %v3568_v12 }
  0x20   : > { %v440_v63 = vrot.slane %v395_v35, %v3568_v12  ;;  %v444_v0 = vrot.slane %v3391_v36, %v3568_v12  ;;  %v448_v1 = vrot.slane %v397_v37, %v3568_v12  ;;  %v452_v6 = vrot.slane %v3392_v42, %v3568_v12 }
  0x21   : > { %v456_v7 = vrot.slane %v399_v43, %v3568_v12  ;;  %v460_v8 = vrot.slane %v3393_v44, %v3568_v12  ;;  %v464_v9 = vsel %vm461_vm0, %v3474_v33, %v404_v48  ;;  %v468_v10 = vsel %vm461_vm0, %v3475_v38, %v408_v49 }
  0x22   : > { %v472_v11 = vsel %vm461_vm0, %v3476_v39, %v412_v50  ;;  %v476_v13 = vsel %vm461_vm0, %v3477_v40, %v416_v51  ;;  %v480_v14 = vsel %vm461_vm0, %v3478_v45, %v420_v55  ;;  %v484_v15 = vsel %vm461_vm0, %v3479_v46, %v424_v56 }
  0x23   : > { %v488_v16 = vsel %vm461_vm0, %v3480_v47, %v428_v57  ;;  %v492_v17 = vsel %vm461_vm0, %v3481_v52, %v432_v58  ;;  %v496_v18 = vsel %vm461_vm0, %v3482_v53, %v436_v62  ;;  %v500_v12 = vsel %vm461_vm0, %v3483_v54, %v440_v63 }
  0x24   : > { %v504_v19 = vsel %vm461_vm0, %v3484_v59, %v444_v0  ;;  %v508_v20 = vsel %vm461_vm0, %v3485_v60, %v448_v1  ;;  %v512_v21 = vsel %vm461_vm0, %v3486_v61, %v452_v6  ;;  %v516_v22 = vsel %vm461_vm0, %v3487_v2, %v456_v7 }
  0x25   : > { %v520_v23 = vsel %vm461_vm0, %v3488_v4, %v460_v8  ;;  %v522_v24 = vmax.bf16 %v468_v10, %v464_v9  ;;  %v523_v25 = vmax.bf16 %v476_v13, %v472_v11  ;;  %v524_v26 = vmax.bf16 %v484_v15, %v480_v14 }
  0x26   : > { %v525_v27 = vmax.bf16 %v492_v17, %v488_v16  ;;  %v526_v28 = vmax.bf16 %v500_v12, %v496_v18  ;;  %v527_v29 = vmax.bf16 %v508_v20, %v504_v19  ;;  %v528_v30 = vmax.bf16 %v516_v22, %v512_v21 }
  0x27   : > { %v3617_v31 = vmax.bf16 %v522_v24, %v472_v11  ;;  %v3619_v32 = vmax.bf16 %v523_v25, %v480_v14  ;;  %v3621_v33 = vmax.bf16 %v524_v26, %v488_v16 }
  0x28   : > { %v3623_v34 = vmax.bf16 %v525_v27, %v496_v18  ;;  %v3625_v35 = vmax.bf16 %v526_v28, %v504_v19  ;;  %v3627_v36 = vmax.bf16 %v527_v29, %v512_v21  ;;  %v3629_v37 = vmax.bf16 %v528_v30, %v520_v23 }
  0x29   : > { %v543_v38 = vcombine.high %v3617_v31, %v3617_v31  ;;  %v550_v39 = vrot.slane %v3617_v31, %v3563_v5  ;;  %v591_v40 = vcombine.high %v3619_v32, %v3619_v32  ;;  %v598_v41 = vrot.slane %v3619_v32, %v3563_v5 }
  0x2a   : > { %5258 = vst [vmem:[#allocation4_spill] sm:$0xff] %v3629_v37  ;;  %v639_v42 = vcombine.high %v3621_v33, %v3621_v33  ;;  %v646_v43 = vrot.slane %v3621_v33, %v3563_v5  ;;  %v687_v54 = vcombine.high %v3623_v34, %v3623_v34  ;;  %v694_v8 = vrot.slane %v3623_v34, %v3563_v5 }
  0x2b   : > { %v557_v44 = vrot.slane %v543_v38, %v3563_v5  ;;  %v558_v45 = vcombine.high %v550_v39, %v550_v39  ;;  %v3645_v46 = vrot.slane %v550_v39, %v3563_v5  ;;  %v605_v47 = vrot.slane %v591_v40, %v3563_v5 }
  0x2c   : > { %v606_v48 = vcombine.high %v598_v41, %v598_v41  ;;  %v3649_v49 = vrot.slane %v598_v41, %v3563_v5  ;;  %v653_v50 = vrot.slane %v639_v42, %v3563_v5  ;;  %v654_v58 = vcombine.high %v646_v43, %v646_v43 }
  0x2d   : > { %5259 = vst [vmem:[#allocation5_spill] sm:$0xff] %v3645_v46  ;;  %v559_v51 = vcombine.high %v557_v44, %v557_v44  ;;  %v3653_v52 = vrot.slane %v557_v44, %v3563_v5  ;;  %v3656_v53 = vrot.slane %v558_v45, %v3563_v5  ;;  %v607_v55 = vcombine.high %v605_v47, %v605_v47 }
  0x2e   : > { %5260 = vst [vmem:[#allocation6_spill] sm:$0xff] %v3649_v49  ;;  %v3661_v56 = vrot.slane %v605_v47, %v3563_v5  ;;  %v3664_v57 = vrot.slane %v606_v48, %v3563_v5  ;;  %v3671_v60 = vcombine.high %v3645_v46, %v3645_v46  ;;  %v3675_v61 = vcombine.high %v3649_v49, %v3649_v49 }
  0x2f   : > { %5261 = vst [vmem:[#allocation7_spill] sm:$0xff] %v3653_v52  ;;  %5262 = vst [vmem:[#allocation8_spill] sm:$0xff] %v3656_v53  ;;  %v3667_v59 = vrot.slane %v559_v51, %v3563_v5  ;;  %v655_v62 = vcombine.high %v653_v50, %v653_v50  ;;  %v3679_v63 = vcombine.high %v3653_v52, %v3653_v52 }
  0x30   : > { %5263 = vst [vmem:[#allocation9_spill] sm:$0xff] %v3661_v56  ;;  %5264 = vst [vmem:[#allocation10_spill] sm:$0xff] %v3664_v57  ;;  %v3683_v0 = vcombine.high %v3656_v53, %v3656_v53  ;;  %v3686_v1 = vrot.slane %v607_v55, %v3563_v5  ;;  %v3689_v2 = vrot.slane %v646_v43, %v3563_v5 }
  0x31   : > { %5265 = vst [vmem:[#allocation11_spill] sm:$0xff] %v3667_v59  ;;  %5266 = vst [vmem:[#allocation12_spill] sm:$0xff] %v3671_v60  ;;  %v3693_v4 = vcombine.high %v3661_v56, %v3661_v56  ;;  %v3697_v6 = vcombine.high %v3664_v57, %v3664_v57  ;;  %v3700_v7 = vrot.slane %v653_v50, %v3563_v5 }
  0x32   : > { %5267 = vst [vmem:[#allocation13_spill] sm:$0xff] %v3675_v61  ;;  %5268 = vst [vmem:[#allocation14_spill] sm:$0xff] %v3679_v63  ;;  %v3705_v9 = vrot.slane %v654_v58, %v3563_v5  ;;  %v701_v10 = vrot.slane %v687_v54, %v3563_v5  ;;  %v735_v11 = vcombine.high %v3625_v35, %v3625_v35 }
  0x33   : > { %5269 = vst [vmem:[#allocation15_spill] sm:$0xff] %v3683_v0  ;;  %5270 = vst [vmem:[#allocation16_spill] sm:$0xff] %v3686_v1  ;;  %v742_v13 = vrot.slane %v3625_v35, %v3563_v5  ;;  %v3713_v14 = vrot.slane %v655_v62, %v3563_v5  ;;  %v3717_v15 = vcombine.high %v3689_v2, %v3689_v2 }
  0x34   : > { %5271 = vst [vmem:[#allocation17_spill] sm:$0xff] %v3689_v2  ;;  %5272 = vst [vmem:[#allocation18_spill] sm:$0xff] %v3693_v4  ;;  %v702_v16 = vcombine.high %v694_v8, %v694_v8  ;;  %v3720_v17 = vrot.slane %v694_v8, %v3563_v5  ;;  %v703_v18 = vcombine.high %v701_v10, %v701_v10 }
  0x35   : > { %5273 = vst [vmem:[#allocation19_spill] sm:$0xff] %v3697_v6  ;;  %5274 = vst [vmem:[#allocation20_spill] sm:$0xff] %v3700_v7  ;;  %v3723_v12 = vrot.slane %v701_v10, %v3563_v5  ;;  %v749_v19 = vrot.slane %v735_v11, %v3563_v5  ;;  %v750_v20 = vcombine.high %v742_v13, %v742_v13 }
  0x36   : > { %5275 = vst [vmem:[#allocation21_spill] sm:$0xff] %v3705_v9  ;;  %5276 = vst [vmem:[#allocation22_spill] sm:$0xff] %v3713_v14  ;;  %v3728_v21 = vcombine.high %v3700_v7, %v3700_v7  ;;  %v3731_v22 = vrot.slane %v702_v16, %v3563_v5  ;;  %v3734_v23 = vrot.slane %v742_v13, %v3563_v5 }
  0x37   : > { %5277 = vst [vmem:[#allocation23_spill] sm:$0xff] %v3717_v15  ;;  %5278 = vst [vmem:[#allocation24_spill] sm:$0xff] %v3720_v17  ;;  %v783_v24 = vcombine.high %v3627_v36, %v3627_v36  ;;  %v3740_v25 = vcombine.high %v3705_v9, %v3705_v9  ;;  %v3743_v26 = vrot.slane %v703_v18, %v3563_v5 }
  0x38   : > { %5279 = vst [vmem:[#allocation25_spill] sm:$0xff] %v3723_v12  ;;  %5280 = vst [vmem:[#allocation26_spill] sm:$0xff] %v3728_v21  ;;  %v3747_v27 = vcombine.high %v3720_v17, %v3720_v17  ;;  %v751_v28 = vcombine.high %v749_v19, %v749_v19  ;;  %v3751_v29 = vcombine.high %v3723_v12, %v3723_v12 }
  0x39   : > { %5281 = vst [vmem:[#allocation27_spill] sm:$0xff] %v3731_v22  ;;  %5282 = vst [vmem:[#allocation28_spill] sm:$0xff] %v3734_v23  ;;  %v3755_v30 = vcombine.high %v3731_v22, %v3731_v22  ;;  %v3758_v38 = vrot.slane %v749_v19, %v3563_v5  ;;  %v790_v39 = vrot.slane %v3627_v36, %v3563_v5 }
  0x3a   : > { %5283 = vst [vmem:[#allocation29_spill] sm:$0xff] %v3740_v25  ;;  %5284 = vst [vmem:[#allocation30_spill] sm:$0xff] %v3743_v26  ;;  %v3763_v40 = vrot.slane %v750_v20, %v3563_v5  ;;  %v3767_v41 = vcombine.high %v3734_v23, %v3734_v23  ;;  %v797_v42 = vrot.slane %v783_v24, %v3563_v5 }
  0x3b   : > { %5285 = vst [vmem:[#allocation31_spill] sm:$0xff] %v3747_v27  ;;  %5286 = vst [vmem:[#allocation32_spill] sm:$0xff] %v3751_v29  ;;  %v831_v43 = vcombine.high %v3629_v37, %v3629_v37  ;;  %v3773_v44 = vrot.slane %v751_v28, %v3563_v5  ;;  %v798_v45 = vcombine.high %v790_v39, %v790_v39 }
  0x3c   : > { %5287 = vst [vmem:[#allocation33_spill] sm:$0xff] %v3755_v30  ;;  %5288 = vst [vmem:[#allocation34_spill] sm:$0xff] %v3758_v38  ;;  %v3776_v47 = vrot.slane %v790_v39, %v3563_v5  ;;  %v838_v48 = vrot.slane %v3629_v37, %v3563_v5  ;;  %v799_v50 = vcombine.high %v797_v42, %v797_v42 }
  0x3d   : > { %5289 = vst [vmem:[#allocation35_spill] sm:$0xff] %v3763_v40  ;;  %5290 = vst [vmem:[#allocation36_spill] sm:$0xff] %v3767_v41  ;;  %v3781_v51 = vrot.slane %v797_v42, %v3563_v5  ;;  %v845_v54 = vrot.slane %v831_v43, %v3563_v5  ;;  %v934_v55 = vrot.slane %v3656_v53, %v3563_v5 }
  0x3e   : > { %5291 = vst [vmem:[#allocation37_spill] sm:$0xff] %v3773_v44  ;;  %5292 = vst [vmem:[#allocation38_spill] sm:$0xff] %v3776_v47  ;;  %v3788_v58 = vcombine.high %v3758_v38, %v3758_v38  ;;  %v3791_v62 = vrot.slane %v798_v45, %v3563_v5  ;;  %v846_v8 = vcombine.high %v838_v48, %v838_v48 }
  0x3f   : > { %5293 = vst [vmem:[#allocation39_spill] sm:$0xff] %v3781_v51  ;;  %v3794_v10 = vrot.slane %v838_v48, %v3563_v5  ;;  %v3798_v11 = vcombine.high %v3763_v40, %v3763_v40  ;;  %v3802_v13 = vcombine.high %v3776_v47, %v3776_v47  ;;  %v847_v16 = vcombine.high %v845_v54, %v845_v54 }
  0x40   : > { %5294 = vst [vmem:[#allocation40_spill] sm:$0xff] %v3788_v58  ;;  %5295 = vst [vmem:[#allocation41_spill] sm:$0xff] %v3791_v62  ;;  %v3805_v18 = vrot.slane %v845_v54, %v3563_v5  ;;  %v3808_v19 = vrot.slane %v799_v50, %v3563_v5  ;;  %v3812_v20 = vcombine.high %v3781_v51, %v3781_v51 }
  0x41   : > { %5296 = vst [vmem:[#allocation42_spill] sm:$0xff] %v3794_v10  ;;  %5297 = vst [vmem:[#allocation43_spill] sm:$0xff] %v3798_v11  ;;  %v3816_v24 = vcombine.high %v3791_v62, %v3791_v62  ;;  %v3819_v28 = vrot.slane %v846_v8, %v3563_v5  ;;  %v3823_v39 = vcombine.high %v3794_v10, %v3794_v10 }
  0x42   : > { %5298 = vst [vmem:[#allocation44_spill] sm:$0xff] %v3802_v13  ;;  %5299 = vst [vmem:[#allocation45_spill] sm:$0xff] %v3805_v18  ;;  %v3826_v42 = vrot.slane %v934_v55, %v3563_v5  ;;  %v948_v43 = vrot.slane %v3671_v60, %v3563_v5  ;;  %v962_v45 = vrot.slane %v3683_v0, %v3563_v5 }
  0x43   : > { %5300 = vst [vmem:[#allocation46_spill] sm:$0xff] %v3808_v19  ;;  %5301 = vst [vmem:[#allocation47_spill] sm:$0xff] %v3812_v20  ;;  %v3833_v48 = vrot.slane %v847_v16, %v3563_v5  ;;  %v976_v50 = vrot.slane %v3653_v52, %v3563_v5  ;;  %v990_v54 = vrot.slane %v3667_v59, %v3563_v5 }
  0x44   : > { %5302 = vst [vmem:[#allocation48_spill] sm:$0xff] %v3816_v24  ;;  %5303 = vst [vmem:[#allocation49_spill] sm:$0xff] %v3819_v28  ;;  %v1004_v8 = vrot.slane %v3679_v63, %v3563_v5  ;;  %v3843_v55 = vcombine.high %v3805_v18, %v3805_v18  ;;  %v3847_v3 = vcombine.high %v3819_v28, %v3819_v28 }
  0x45   : > { %5304 = vst [vmem:[#allocation50_spill] sm:$0xff] %v3823_v39  ;;  %5305 = vst [vmem:[#allocation51_spill] sm:$0xff] %v3833_v48  ;;  %v1018_v16 = vrot.slane %v3664_v57, %v3563_v5  ;;  %v1032_v10 = vrot.slane %v3675_v61, %v3563_v5  ;;  %v3854_v47 = vrot.slane %v948_v43, %v3563_v5 }
  0x46   : > { %5306 = vst [vmem:[#allocation52_spill] sm:$0xff] %v3843_v55  ;;  %5307 = vst [vmem:[#allocation53_spill] sm:$0xff] %v3847_v3  ;;  %v3857_v23 = vrot.slane %v962_v45, %v3563_v5  ;;  %v3860_v17 = vrot.slane %v976_v50, %v3563_v5  ;;  %v1046_v2 = vrot.slane %v3697_v6, %v3563_v5 }
  0x47   : > { %v3865_v49 = vrot.slane %v990_v54, %v3563_v5  ;;  %v3868_v57 = vrot.slane %v1004_v8, %v3563_v5  ;;  %v1060_v61 = vrot.slane %v3661_v56, %v3563_v5  ;;  %v1074_v43 = vrot.slane %v3686_v1, %v3563_v5 }
  0x48   : > { %v3875_v45 = vrot.slane %v1018_v16, %v3563_v5  ;;  %v1088_v50 = vrot.slane %v3693_v4, %v3563_v5  ;;  %v1102_v6 = vrot.slane %v3705_v9, %v3563_v5  ;;  %v1116_v54 = vrot.slane %v3717_v15, %v3563_v5 }
  0x49   : > { %v3884_v8 = vrot.slane %v1032_v10, %v3563_v5  ;;  %v3887_v56 = vrot.slane %v1046_v2, %v3563_v5  ;;  %v1130_v1 = vrot.slane %v3740_v25, %v3563_v5  ;;  %v1144_v16 = vrot.slane %v3700_v7, %v3563_v5 }
  0x4a   : > { %v3894_v4 = vrot.slane %v1060_v61, %v3563_v5  ;;  %v3897_v9 = vrot.slane %v1074_v43, %v3563_v5  ;;  %v3900_v15 = vrot.slane %v1088_v50, %v3563_v5  ;;  %v1158_v10 = vrot.slane %v3713_v14, %v3563_v5 }
  0x4b   : > { %v3905_v2 = vrot.slane %v1102_v6, %v3563_v5  ;;  %v3908_v25 = vrot.slane %v1116_v54, %v3563_v5  ;;  %v1172_v7 = vrot.slane %v3728_v21, %v3563_v5  ;;  %v1186_v61 = vrot.slane %v3731_v22, %v3563_v5 }
  0x4c   : > { %v3915_v43 = vrot.slane %v1130_v1, %v3563_v5  ;;  %v1200_v50 = vrot.slane %v3747_v27, %v3563_v5  ;;  %v1214_v14 = vrot.slane %v3755_v30, %v3563_v5  ;;  %v1228_v6 = vrot.slane %v3723_v12, %v3563_v5 }
  0x4d   : > { %v3924_v54 = vrot.slane %v1144_v16, %v3563_v5  ;;  %v3927_v21 = vrot.slane %v1158_v10, %v3563_v5  ;;  %v1242_v22 = vrot.slane %v3743_v26, %v3563_v5  ;;  %v1256_v1 = vrot.slane %v3751_v29, %v3563_v5 }
  0x4e   : > { %v3934_v27 = vrot.slane %v1172_v7, %v3563_v5  ;;  %v3937_v30 = vrot.slane %v1186_v61, %v3563_v5  ;;  %v3940_v12 = vrot.slane %v1200_v50, %v3563_v5  ;;  %v1270_v16 = vrot.slane %v3763_v40, %v3563_v5 }
  0x4f   : > { %v3945_v10 = vrot.slane %v1214_v14, %v3563_v5  ;;  %v3948_v26 = vrot.slane %v1228_v6, %v3563_v5  ;;  %v1284_v29 = vrot.slane %v3767_v41, %v3563_v5  ;;  %v1298_v7 = vrot.slane %v3798_v11, %v3563_v5 }
  0x50   : > { %v3955_v61 = vrot.slane %v1242_v22, %v3563_v5  ;;  %v1312_v50 = vrot.slane %v3758_v38, %v3563_v5  ;;  %v1326_v40 = vrot.slane %v3773_v44, %v3563_v5  ;;  %v1340_v14 = vrot.slane %v3788_v58, %v3563_v5 }
  0x51   : > { %v3964_v6 = vrot.slane %v1256_v1, %v3563_v5  ;;  %v3967_v41 = vrot.slane %v1270_v16, %v3563_v5  ;;  %v1354_v11 = vrot.slane %v3791_v62, %v3563_v5  ;;  %v1368_v22 = vrot.slane %v3802_v13, %v3563_v5 }
  0x52   : > { %v3974_v38 = vrot.slane %v1284_v29, %v3563_v5  ;;  %v3977_v44 = vrot.slane %v1298_v7, %v3563_v5  ;;  %v3980_v58 = vrot.slane %v1312_v50, %v3563_v5  ;;  %v1382_v1 = vrot.slane %v3816_v24, %v3563_v5 }
  0x53   : > { %v3985_v16 = vrot.slane %v1326_v40, %v3563_v5  ;;  %v3988_v62 = vrot.slane %v1340_v14, %v3563_v5  ;;  %v1396_v13 = vrot.slane %v3781_v51, %v3563_v5  ;;  %v1410_v29 = vrot.slane %v3808_v19, %v3563_v5 }
  0x54   : > { %v3995_v7 = vrot.slane %v1354_v11, %v3563_v5  ;;  %v1424_v50 = vrot.slane %v3812_v20, %v3563_v5  ;;  %v1438_v24 = vrot.slane %v3819_v28, %v3563_v5  ;;  %v1452_v40 = vrot.slane %v3823_v39, %v3563_v5 }
  0x55   : > { %v4004_v14 = vrot.slane %v1368_v22, %v3563_v5  ;;  %v4007_v51 = vrot.slane %v1382_v1, %v3563_v5  ;;  %v1466_v19 = vrot.slane %v3847_v3, %v3563_v5  ;;  %v1480_v11 = vrot.slane %v3805_v18, %v3563_v5 }
  0x56   : > { %v4014_v20 = vrot.slane %v1396_v13, %v3563_v5  ;;  %v4017_v28 = vrot.slane %v1410_v29, %v3563_v5  ;;  %v4020_v39 = vrot.slane %v1424_v50, %v3563_v5  ;;  %v1494_v22 = vrot.slane %v3833_v48, %v3563_v5 }
  0x57   : > { %v4025_v1 = vrot.slane %v1438_v24, %v3563_v5  ;;  %v4028_v3 = vrot.slane %v1452_v40, %v3563_v5  ;;  %v4031_v18 = vrot.slane %v1466_v19, %v3563_v5  ;;  %v1508_v13 = vrot.slane %v3843_v55, %v3563_v5 }
  0x58   : > { %v4036_v29 = vrot.slane %v1480_v11, %v3563_v5  ;;  %v4039_v50 = vrot.slane %v1494_v22, %v3563_v5  ;;  %v1516_v48 = vunpack.c.l.b16 %v3826_v42  ;;  %v1517_v24 = vunpack.c.l.b16 %v3854_v47 }
  0x59   : > { %v4044_v63 = vrot.slane %v1508_v13, %v3563_v5  ;;  %v1518_v40 = vunpack.c.l.b16 %v3857_v23  ;;  %v1519_v19 = vunpack.c.l.b16 %v3860_v17  ;;  %v1520_v59 = vunpack.c.l.b16 %v3865_v49 }
  0x5a   : > { %v1521_v11 = vunpack.c.l.b16 %v3868_v57  ;;  %v1522_v55 = vunpack.c.l.b16 %v3875_v45  ;;  %v1523_v22 = vunpack.c.l.b16 %v3884_v8  ;;  %v1524_v42 = vunpack.c.l.b16 %v3887_v56 }
  0x5b   : > { %v1525_v47 = vunpack.c.l.b16 %v3894_v4  ;;  %v1526_v13 = vunpack.c.l.b16 %v3897_v9  ;;  %v1527_v23 = vunpack.c.l.b16 %v3900_v15  ;;  %v1528_v17 = vunpack.c.l.b16 %v3905_v2 }
  0x5c   : > { %v1529_v49 = vunpack.c.l.b16 %v3908_v25  ;;  %v1530_v57 = vunpack.c.l.b16 %v3915_v43  ;;  %v1531_v45 = vunpack.c.l.b16 %v3924_v54  ;;  %v1532_v8 = vunpack.c.l.b16 %v3927_v21 }
  0x5d   : > { %v1533_v56 = vunpack.c.l.b16 %v3934_v27  ;;  %v1534_v4 = vunpack.c.l.b16 %v3937_v30  ;;  %v1535_v9 = vunpack.c.l.b16 %v3940_v12  ;;  %v1536_v15 = vunpack.c.l.b16 %v3945_v10 }
  0x5e   : > { %v1537_v2 = vunpack.c.l.b16 %v3948_v26  ;;  %v1538_v5 = vunpack.c.l.b16 %v3955_v61  ;;  %v1539_v25 = vunpack.c.l.b16 %v3964_v6  ;;  %v1540_v43 = vunpack.c.l.b16 %v3967_v41 }
  0x5f   : > { %v1541_v54 = vunpack.c.l.b16 %v3974_v38  ;;  %v1542_v21 = vunpack.c.l.b16 %v3977_v44  ;;  %v1543_v27 = vunpack.c.l.b16 %v3980_v58  ;;  %v1544_v30 = vunpack.c.l.b16 %v3985_v16 }
  0x60   : > { %v1545_v12 = vunpack.c.l.b16 %v3988_v62  ;;  %v1546_v10 = vunpack.c.l.b16 %v3995_v7  ;;  %v1547_v26 = vunpack.c.l.b16 %v4004_v14  ;;  %v1548_v61 = vunpack.c.l.b16 %v4007_v51 }
  0x61   : > { %v1549_v6 = vunpack.c.l.b16 %v4014_v20  ;;  %v1550_v41 = vunpack.c.l.b16 %v4017_v28  ;;  %v1551_v38 = vunpack.c.l.b16 %v4020_v39  ;;  %v1553_v58 = vunpack.c.l.b16 %v4028_v3 }
  0x62   : > { %v1554_v16 = vunpack.c.l.b16 %v4031_v18  ;;  %v1555_v62 = vunpack.c.l.b16 %v4036_v29  ;;  %v1558_v52 = vrot.slane %v1517_v24, 7  ;;  %v1561_v7 = vrot.slane %v1518_v40, 6 }
  0x63   : > { %v1564_v0 = vrot.slane %v1519_v19, 5  ;;  %v1567_v14 = vrot.slane %v1520_v59, 4  ;;  %v1570_v60 = vrot.slane %v1521_v11, 3  ;;  %v1573_v20 = vrot.slane %v1523_v22, 7 }
  0x64   : > { %v1560_v51 = vsel %vm1559_vm1, %v1558_v52, %v1516_v48  ;;  %v1575_v53 = vrot.slane %v1524_v42, 6  ;;  %v1577_v28 = vrot.slane %v1525_v47, 5  ;;  %v1579_v46 = vrot.slane %v1526_v13, 4 }
  0x65   : > { %v1563_v39 = vsel %vm1562_vm2, %v1561_v7, %v1560_v51  ;;  %v1581_v44 = vrot.slane %v1527_v23, 3  ;;  %v1583_v37 = vrot.slane %v1529_v49, 7  ;;  %v1574_v18 = vsel %vm1559_vm1, %v1573_v20, %v1522_v55 }
  0x66   : > { %v1566_v3 = vsel %vm1565_vm3, %v1564_v0, %v1563_v39  ;;  %v1585_v29 = vrot.slane %v1530_v57, 6  ;;  %v1587_v24 = vrot.slane %v1531_v45, 5  ;;  %v1576_v59 = vsel %vm1562_vm2, %v1575_v53, %v1574_v18 }
  0x67   : > { %v1569_v40 = vsel %vm1568_vm4, %v1567_v14, %v1566_v3  ;;  %v1584_v52 = vsel %vm1559_vm1, %v1583_v37, %v1528_v17  ;;  %v1589_v48 = vrot.slane %v1532_v8, 4  ;;  %v1556_v19 = vunpack.c.l.b16 %v4039_v50 }
  0x68   : > { %v1557_v11 = vunpack.c.l.b16 %v4044_v63  ;;  %v1578_v22 = vsel %vm1565_vm3, %v1577_v28, %v1576_v59  ;;  %v1586_v42 = vsel %vm1562_vm2, %v1585_v29, %v1584_v52  ;;  %v1593_v47 = vrot.slane %v1535_v9, 7 }
  0x69   : > { %v1580_v0 = vsel %vm1568_vm4, %v1579_v46, %v1578_v22  ;;  %v1588_v55 = vsel %vm1565_vm3, %v1587_v24, %v1586_v42  ;;  %v1595_v13 = vrot.slane %v1536_v15, 6  ;;  %v1572_v23 = vsel %vm1571_vm5, %v1570_v60, %v1569_v40 }
  0x6a   : > { %v1582_v53 = vsel %vm1571_vm5, %v1581_v44, %v1580_v0  ;;  %v1591_v37 = vrot.slane %v1533_v56, 3  ;;  %v1597_v17 = vrot.slane %v1537_v2, 5  ;;  %v1590_v50 = vsel %vm1568_vm4, %v1589_v48, %v1588_v55 }
  0x6b   : > { %v1594_v63 = vsel %vm1559_vm1, %v1593_v47, %v1534_v4  ;;  %v1599_v49 = vrot.slane %v1538_v5, 4  ;;  %v1603_v57 = vrot.slane %v1541_v54, 7  ;;  %v1605_v8 = vrot.slane %v1542_v21, 6 }
  0x6c   : > { %v1596_v45 = vsel %vm1562_vm2, %v1595_v13, %v1594_v63  ;;  %v1607_v46 = vrot.slane %v1543_v27, 5  ;;  %v1609_v7 = vrot.slane %v1544_v30, 4  ;;  %v1601_v15 = vrot.slane %v1539_v25, 3  ;;  %v5309_v13 = vld [vmem:[#allocation4_spill] sm:$0xff] }
  0x6d   : > { %v1598_v9 = vsel %vm1565_vm3, %v1597_v17, %v1596_v45  ;;  %v1604_v60 = vsel %vm1559_vm1, %v1603_v57, %v1540_v43  ;;  %v1613_v14 = vrot.slane %v1547_v26, 7  ;;  %v1611_v2 = vrot.slane %v1545_v12, 3  ;;  %v5320_v45 = vld [vmem:[#allocation15_spill] sm:$0xff] }
  0x6e   : > { %v1606_v56 = vsel %vm1562_vm2, %v1605_v8, %v1604_v60  ;;  %v1615_v44 = vrot.slane %v1548_v61, 6  ;;  %v1617_v51 = vrot.slane %v1549_v6, 5  ;;  %v1600_v4 = vsel %vm1568_vm4, %v1599_v49, %v1598_v9  ;;  %v5319_v49 = vld [vmem:[#allocation12_spill] sm:$0xff]  ;;  %v5322_v9 = vld [vmem:[#allocation11_spill] sm:$0xff]  ;;  %v5323_v60 = vld [vmem:[#allocation14_spill] sm:$0xff] }
  0x6f   : > { %v1608_v5 = vsel %vm1565_vm3, %v1607_v46, %v1606_v56  ;;  %v1614_v54 = vsel %vm1559_vm1, %v1613_v14, %v1546_v10  ;;  %v1619_v21 = vrot.slane %v1550_v41, 4  ;;  %v1621_v25 = vrot.slane %v1551_v38, 3  ;;  %v5321_v46 = vld [vmem:[#allocation7_spill] sm:$0xff]  ;;  %v5324_v56 = vld [vmem:[#allocation6_spill] sm:$0xff] }
  0x70   : > { %v1610_v27 = vsel %vm1568_vm4, %v1609_v7, %v1608_v5  ;;  %v1616_v30 = vsel %vm1562_vm2, %v1615_v44, %v1614_v54  ;;  %v1623_v20 = vrot.slane %v1553_v58, 7  ;;  %v1592_v43 = vsel %vm1571_vm5, %v1591_v37, %v1590_v50  ;;  %v5318_v50 = vld [vmem:[#allocation8_spill] sm:$0xff]  ;;  %v5325_v44 = vld [vmem:[#allocation10_spill] sm:$0xff]  ;;  %v5327_v54 = vld [vmem:[#allocation19_spill] sm:$0xff] }
  0x71   : > { %v1618_v26 = vsel %vm1565_vm3, %v1617_v51, %v1616_v30  ;;  %v1625_v12 = vrot.slane %v1554_v16, 6  ;;  %v1627_v61 = vrot.slane %v1555_v62, 5  ;;  %v5308_v28 = vunpack.c.l.b16 %v4025_v1 }
  0x72   : > { %v1620_v6 = vsel %vm1568_vm4, %v1619_v21, %v1618_v26  ;;  %v1629_v10 = vrot.slane %v1556_v19, 4  ;;  %v1631_v41 = vrot.slane %v1557_v11, 3  ;;  %v1602_v3 = vsel %vm1571_vm5, %v1601_v15, %v1600_v4  ;;  %v5326_v4 = vld [vmem:[#allocation13_spill] sm:$0xff] }
  0x73   : > { %v1624_v39 = vsel %vm1559_vm1, %v1623_v20, %v5308_v28  ;;  %v1612_v18 = vsel %vm1571_vm5, %v1611_v2, %v1610_v27  ;;  %v1622_v38 = vsel %vm1571_vm5, %v1621_v25, %v1620_v6  ;;  %v1633_v62 = vpack.c.b16 %v1572_v23, %v1572_v23  ;;  %v5328_v27 = vld [vmem:[#allocation9_spill] sm:$0xff]  ;;  %v5329_v25 = vld [vmem:[#allocation16_spill] sm:$0xff] }
  0x74   : > { %v1626_v58 = vsel %vm1562_vm2, %v1625_v12, %v1624_v39  ;;  %v1634_v24 = vpack.c.b16 %v1582_v53, %v1582_v53  ;;  %v1635_v1 = vpack.c.b16 %v1592_v43, %v1592_v43  ;;  %v1636_v59 = vpack.c.b16 %v1602_v3, %v1602_v3  ;;  %v5330_v43 = vld [vmem:[#allocation18_spill] sm:$0xff]  ;;  %v5331_v12 = vld [vmem:[#allocation17_spill] sm:$0xff]  ;;  %v5333_v39 = vld [vmem:[#allocation23_spill] sm:$0xff] }
  0x75   : > { %v1628_v29 = vsel %vm1565_vm3, %v1627_v61, %v1626_v58  ;;  %v1637_v52 = vpack.c.b16 %v1612_v18, %v1612_v18  ;;  %v1638_v48 = vpack.c.b16 %v1622_v38, %v1622_v38  ;;  %v1640_v19 = vrot.slane %v3617_v31, 4  ;;  %v5332_v6 = vld [vmem:[#allocation21_spill] sm:$0xff]  ;;  %v5335_v18 = vld [vmem:[#allocation20_spill] sm:$0xff]  ;;  %v5336_v58 = vld [vmem:[#allocation22_spill] sm:$0xff] }
  0x76   : > { %v1630_v16 = vsel %vm1568_vm4, %v1629_v10, %v1628_v29  ;;  %v1641_v11 = vrot.slane %v3619_v32, 4  ;;  %v1642_v22 = vrot.slane %v3621_v33, 4  ;;  %v1643_v42 = vrot.slane %v3623_v34, 4 }
  0x77   : > { %v1632_v40 = vsel %vm1571_vm5, %v1631_v41, %v1630_v16  ;;  %v1644_v55 = vrot.slane %v3625_v35, 4  ;;  %v1645_v47 = vrot.slane %v3627_v36, 4  ;;  %v1646_v23 = vrot.slane %v5309_v13, 4  ;;  %v5317_v36 = vld [vmem:[#allocation5_spill] sm:$0xff]  ;;  %v5337_v16 = vld [vmem:[#allocation26_spill] sm:$0xff] }
  0x78   : > { %v1639_v0 = vpack.c.b16 %v1632_v40, %v1632_v40  ;;  %v4131_v53 = vsel %vm1647_vm6, %v1633_v62, %v1640_v19  ;;  %v4134_v37 = vsel %vm1647_vm6, %v1634_v24, %v1641_v11  ;;  %v4137_v31 = vsel %vm1647_vm6, %v1635_v1, %v1642_v22  ;;  %v5334_v41 = vld [vmem:[#allocation29_spill] sm:$0xff]  ;;  %v5338_v24 = vld [vmem:[#allocation24_spill] sm:$0xff]  ;;  %v5339_v40 = vld [vmem:[#allocation27_spill] sm:$0xff] }
  0x79   : > { %5310 = vst [vmem:[#allocation4_spill] sm:$0xff] %v4131_v53  ;;  %5311 = vst [vmem:[#allocation54_spill] sm:$0xff] %v4134_v37  ;;  %v4140_v32 = vsel %vm1647_vm6, %v1636_v59, %v1643_v42  ;;  %v4143_v33 = vsel %vm1647_vm6, %v1637_v52, %v1644_v55  ;;  %v4146_v34 = vsel %vm1647_vm6, %v1638_v48, %v1645_v47  ;;  %v1670_v17 = vshrl.u32 %v5317_v36, 16  ;;  %v5340_v52 = vld [vmem:[#allocation31_spill] sm:$0xff]  ;;  %v5341_v19 = vld [vmem:[#allocation33_spill] sm:$0xff] }
  0x7a   : > { %5312 = vst [vmem:[#allocation55_spill] sm:$0xff] %v4137_v31  ;;  %5313 = vst [vmem:[#allocation56_spill] sm:$0xff] %v4140_v32  ;;  %v4149_v35 = vsel %vm1647_vm6, %v1639_v0, %v1646_v23  ;;  %v1675_v63 = vshrl.u32 %v5318_v50, 16  ;;  %v1680_v57 = vshrl.u32 %v5319_v49, 16  ;;  %v1685_v8 = vshrl.u32 %v5320_v45, 16  ;;  %v5342_v22 = vld [vmem:[#allocation25_spill] sm:$0xff] }
  0x7b   : > { %5314 = vst [vmem:[#allocation57_spill] sm:$0xff] %v4143_v33  ;;  %5315 = vst [vmem:[#allocation58_spill] sm:$0xff] %v4146_v34  ;;  %v1690_v7 = vshrl.u32 %v5321_v46, 16  ;;  %v1695_v15 = vshrl.u32 %v5322_v9, 16  ;;  %v1700_v14 = vshrl.u32 %v5323_v60, 16  ;;  %v1705_v2 = vshrl.u32 %v5324_v56, 16 }
  0x7c   : > { %5316 = vst [vmem:[#allocation59_spill] sm:$0xff] %v4149_v35  ;;  %v1710_v51 = vshrl.u32 %v5325_v44, 16  ;;  %v1715_v5 = vshrl.u32 %v5326_v4, 16  ;;  %v1720_v21 = vshrl.u32 %v5327_v54, 16  ;;  %v1725_v30 = vshrl.u32 %v5328_v27, 16  ;;  %v5343_v0 = vld [vmem:[#allocation30_spill] sm:$0xff] }
  0x7d   : > { %v1730_v20 = vshrl.u32 %v5329_v25, 16  ;;  %v1735_v26 = vshrl.u32 %v5330_v43, 16  ;;  %v1740_v61 = vshrl.u32 %v5331_v12, 16  ;;  %v1745_v28 = vshrl.u32 %v5332_v6, 16  ;;  %v5344_v47 = vld [vmem:[#allocation32_spill] sm:$0xff]  ;;  %v5346_v34 = vld [vmem:[#allocation35_spill] sm:$0xff] }
  0x7e   : > { %v1750_v10 = vshrl.u32 %v5333_v39, 16  ;;  %v1755_v3 = vshrl.u32 %v5334_v41, 16  ;;  %v1760_v38 = vshrl.u32 %v5335_v18, 16  ;;  %v1765_v29 = vshrl.u32 %v5336_v58, 16  ;;  %v5345_v23 = vld [vmem:[#allocation28_spill] sm:$0xff]  ;;  %v5348_v37 = vld [vmem:[#allocation43_spill] sm:$0xff] }
  0x7f   : > { %v1770_v62 = vshrl.u32 %v5337_v16, 16  ;;  %v1775_v1 = vshrl.u32 %v5338_v24, 16  ;;  %v1780_v59 = vshrl.u32 %v5339_v40, 16  ;;  %v1785_v48 = vshrl.u32 %v5340_v52, 16  ;;  %v5347_v32 = vld [vmem:[#allocation36_spill] sm:$0xff]  ;;  %v5349_v24 = vld [vmem:[#allocation34_spill] sm:$0xff] }
  0x80   : > { %v1790_v11 = vshrl.u32 %v5341_v19, 16  ;;  %v1795_v42 = vshrl.u32 %v5342_v22, 16  ;;  %v1800_v55 = vshrl.u32 %v5343_v0, 16  ;;  %v1805_v13 = vshrl.u32 %v5344_v47, 16  ;;  %v5350_v16 = vld [vmem:[#allocation37_spill] sm:$0xff]  ;;  %v5351_v58 = vld [vmem:[#allocation40_spill] sm:$0xff] }
  0x81   : > { %v1810_v35 = vshrl.u32 %v5345_v23, 16  ;;  %v1815_v33 = vshrl.u32 %v5346_v34, 16  ;;  %v1820_v31 = vshrl.u32 %v5347_v32, 16  ;;  %v1825_v53 = vshrl.u32 %v5348_v37, 16  ;;  %v5352_v18 = vld [vmem:[#allocation38_spill] sm:$0xff]  ;;  %v5353_v41 = vld [vmem:[#allocation41_spill] sm:$0xff] }
  0x82   : > { %v1830_v40 = vshrl.u32 %v5349_v24, 16  ;;  %v1835_v52 = vshrl.u32 %v5350_v16, 16  ;;  %v1840_v19 = vshrl.u32 %v5351_v58, 16  ;;  %v1845_v22 = vshrl.u32 %v5352_v18, 16  ;;  %v5354_v39 = vld [vmem:[#allocation44_spill] sm:$0xff]  ;;  %v5356_v12 = vld [vmem:[#allocation39_spill] sm:$0xff] }
  0x83   : > { %v1850_v0 = vshrl.u32 %v5353_v41, 16  ;;  %v1855_v47 = vshrl.u32 %v5354_v39, 16  ;;  %v5355_v6 = vld [vmem:[#allocation48_spill] sm:$0xff]  ;;  %v1865_v34 = vshrl.u32 %v5356_v12, 16  ;;  %v5357_v43 = vld [vmem:[#allocation46_spill] sm:$0xff]  ;;  %v5358_v25 = vld [vmem:[#allocation47_spill] sm:$0xff]  ;;  %v4201_v12 = vmax.bf16 %v1670_v17, %v5317_v36 }
  0x84   : > { %v1860_v23 = vshrl.u32 %v5355_v6, 16  ;;  %v1870_v32 = vshrl.u32 %v5357_v43, 16  ;;  %v1875_v37 = vshrl.u32 %v5358_v25, 16  ;;  %v5359_v27 = vld [vmem:[#allocation42_spill] sm:$0xff]  ;;  %v5360_v54 = vld [vmem:[#allocation49_spill] sm:$0xff]  ;;  %v5364_v60 = vld [vmem:[#allocation51_spill] sm:$0xff]  ;;  %v4204_v43 = vmax.bf16 %v1675_v63, %v5318_v50 }
  0x85   : > { %v1880_v24 = vshrl.u32 %v5359_v27, 16  ;;  %v1885_v16 = vshrl.u32 %v5360_v54, 16  ;;  %v5361_v4 = vld [vmem:[#allocation50_spill] sm:$0xff]  ;;  %v5362_v44 = vld [vmem:[#allocation53_spill] sm:$0xff]  ;;  %v1905_v39 = vshrl.u32 %v5364_v60, 16  ;;  %v5365_v9 = vld [vmem:[#allocation52_spill] sm:$0xff]  ;;  %v4207_v27 = vmax.bf16 %v1680_v57, %v5319_v49 }
  0x86   : > { %v1890_v58 = vshrl.u32 %v5361_v4, 16  ;;  %v1895_v18 = vshrl.u32 %v5362_v44, 16  ;;  %v5363_v56 = vld [vmem:[#allocation45_spill] sm:$0xff]  ;;  %v1910_v6 = vshrl.u32 %v5365_v9, 16  ;;  %v4210_v54 = vmax.bf16 %v1685_v8, %v5320_v45  ;;  %v5367_v60 = vld [vmem:[#allocation14_spill] sm:$0xff]  ;;  %v5371_v45 = vld [vmem:[#allocation19_spill] sm:$0xff] }
  0x87   : > { %v1900_v41 = vshrl.u32 %v5363_v56, 16  ;;  %v4213_v44 = vmax.bf16 %v1690_v7, %v5321_v46  ;;  %v5366_v56 = vld [vmem:[#allocation11_spill] sm:$0xff]  ;;  %v4219_v9 = vmax.bf16 %v1700_v14, %v5367_v60  ;;  %v5368_v36 = vld [vmem:[#allocation6_spill] sm:$0xff]  ;;  %v5370_v49 = vld [vmem:[#allocation13_spill] sm:$0xff]  ;;  %v4231_v8 = vmax.bf16 %v1720_v21, %v5371_v45 }
  0x88   : > { %v4216_v4 = vmax.bf16 %v1695_v15, %v5366_v56  ;;  %v4222_v17 = vmax.bf16 %v1705_v2, %v5368_v36  ;;  %v5369_v50 = vld [vmem:[#allocation10_spill] sm:$0xff]  ;;  %v4228_v57 = vmax.bf16 %v1715_v5, %v5370_v49  ;;  %v5372_v46 = vld [vmem:[#allocation9_spill] sm:$0xff]  ;;  %v5373_v15 = vld [vmem:[#allocation16_spill] sm:$0xff] }
  0x89   : > { %v4225_v63 = vmax.bf16 %v1710_v51, %v5369_v50  ;;  %v4234_v7 = vmax.bf16 %v1725_v30, %v5372_v46  ;;  %v4237_v56 = vmax.bf16 %v1730_v20, %v5373_v15  ;;  %v5374_v60 = vld [vmem:[#allocation18_spill] sm:$0xff]  ;;  %v5375_v2 = vld [vmem:[#allocation17_spill] sm:$0xff]  ;;  %v5377_v5 = vld [vmem:[#allocation23_spill] sm:$0xff] }
  0x8a   : > { %v4240_v14 = vmax.bf16 %v1735_v26, %v5374_v60  ;;  %v4243_v36 = vmax.bf16 %v1740_v61, %v5375_v2  ;;  %v5376_v51 = vld [vmem:[#allocation21_spill] sm:$0xff]  ;;  %v4249_v49 = vmax.bf16 %v1750_v10, %v5377_v5  ;;  %v5379_v30 = vld [vmem:[#allocation20_spill] sm:$0xff]  ;;  %v5380_v20 = vld [vmem:[#allocation22_spill] sm:$0xff] }
  0x8b   : > { %v4246_v50 = vmax.bf16 %v1745_v28, %v5376_v51  ;;  %v5378_v21 = vld [vmem:[#allocation29_spill] sm:$0xff]  ;;  %v4255_v46 = vmax.bf16 %v1760_v38, %v5379_v30  ;;  %v4258_v15 = vmax.bf16 %v1765_v29, %v5380_v20  ;;  %v5382_v26 = vld [vmem:[#allocation26_spill] sm:$0xff]  ;;  %v5384_v61 = vld [vmem:[#allocation24_spill] sm:$0xff] }
  0x8c   : > { %v4252_v45 = vmax.bf16 %v1755_v3, %v5378_v21  ;;  %v4261_v60 = vmax.bf16 %v1770_v62, %v5382_v26  ;;  %v4264_v2 = vmax.bf16 %v1775_v1, %v5384_v61  ;;  %v5386_v28 = vld [vmem:[#allocation27_spill] sm:$0xff]  ;;  %v5390_v3 = vld [vmem:[#allocation33_spill] sm:$0xff]  ;;  %v5394_v29 = vld [vmem:[#allocation30_spill] sm:$0xff] }
  0x8d   : > { %5381 = vst [vmem:[#allocation5_spill] sm:$0xff] %v4258_v15  ;;  %v4267_v51 = vmax.bf16 %v1780_v59, %v5386_v28  ;;  %v5388_v10 = vld [vmem:[#allocation31_spill] sm:$0xff]  ;;  %v4273_v21 = vmax.bf16 %v1790_v11, %v5390_v3  ;;  %v5392_v38 = vld [vmem:[#allocation25_spill] sm:$0xff]  ;;  %v4279_v20 = vmax.bf16 %v1800_v55, %v5394_v29  ;;  %v5396_v62 = vld [vmem:[#allocation32_spill] sm:$0xff] }
  0x8e   : > { %5383 = vst [vmem:[#allocation8_spill] sm:$0xff] %v4261_v60  ;;  %5385 = vst [vmem:[#allocation12_spill] sm:$0xff] %v4264_v2  ;;  %v4270_v5 = vmax.bf16 %v1785_v48, %v5388_v10  ;;  %v4276_v30 = vmax.bf16 %v1795_v42, %v5392_v38  ;;  %v4282_v26 = vmax.bf16 %v1805_v13, %v5396_v62  ;;  %v5398_v1 = vld [vmem:[#allocation28_spill] sm:$0xff]  ;;  %v5400_v59 = vld [vmem:[#allocation35_spill] sm:$0xff] }
  0x8f   : > { %5387 = vst [vmem:[#allocation15_spill] sm:$0xff] %v4267_v51  ;;  %5391 = vst [vmem:[#allocation47_spill] sm:$0xff] %v4273_v21  ;;  %v4285_v61 = vmax.bf16 %v1810_v35, %v5398_v1  ;;  %v4288_v28 = vmax.bf16 %v1815_v33, %v5400_v59  ;;  %v5402_v48 = vld [vmem:[#allocation36_spill] sm:$0xff]  ;;  %v5404_v11 = vld [vmem:[#allocation43_spill] sm:$0xff] }
  0x90   : > { %5389 = vst [vmem:[#allocation7_spill] sm:$0xff] %v4270_v5  ;;  %5393 = vst [vmem:[#allocation11_spill] sm:$0xff] %v4276_v30  ;;  %v4291_v10 = vmax.bf16 %v1820_v31, %v5402_v48  ;;  %v4294_v3 = vmax.bf16 %v1825_v53, %v5404_v11  ;;  %v5406_v42 = vld [vmem:[#allocation34_spill] sm:$0xff]  ;;  %v5408_v55 = vld [vmem:[#allocation37_spill] sm:$0xff] }
  0x91   : > { %5395 = vst [vmem:[#allocation14_spill] sm:$0xff] %v4279_v20  ;;  %5397 = vst [vmem:[#allocation6_spill] sm:$0xff] %v4282_v26  ;;  %v4297_v38 = vmax.bf16 %v1830_v40, %v5406_v42  ;;  %v4300_v29 = vmax.bf16 %v1835_v52, %v5408_v55  ;;  %v5410_v13 = vld [vmem:[#allocation40_spill] sm:$0xff]  ;;  %v5412_v35 = vld [vmem:[#allocation38_spill] sm:$0xff] }
  0x92   : > { %5399 = vst [vmem:[#allocation10_spill] sm:$0xff] %v4285_v61  ;;  %5401 = vst [vmem:[#allocation13_spill] sm:$0xff] %v4288_v28  ;;  %v4303_v62 = vmax.bf16 %v1840_v19, %v5410_v13  ;;  %v4306_v1 = vmax.bf16 %v1845_v22, %v5412_v35  ;;  %v5414_v33 = vld [vmem:[#allocation41_spill] sm:$0xff]  ;;  %v5416_v31 = vld [vmem:[#allocation3_spill] sm:$0xff] }
  0x93   : > { %5403 = vst [vmem:[#allocation19_spill] sm:$0xff] %v4291_v10  ;;  %5405 = vst [vmem:[#allocation9_spill] sm:$0xff] %v4294_v3  ;;  %v4309_v59 = vmax.bf16 %v1850_v0, %v5414_v33  ;;  %v5417_v48 = vld [vmem:[#allocation4_spill] sm:$0xff]  ;;  %v5418_v53 = vld [vmem:[#allocation54_spill] sm:$0xff] }
  0x94   : > { %5407 = vst [vmem:[#allocation16_spill] sm:$0xff] %v4297_v38  ;;  %5409 = vst [vmem:[#allocation18_spill] sm:$0xff] %v4300_v29  ;;  %v2025_v10 = vrot.slane %v5417_v48, %v5416_v31  ;;  %v2049_v11 = vrot.slane %v5418_v53, %v5416_v31  ;;  %v5419_v40 = vld [vmem:[#allocation55_spill] sm:$0xff]  ;;  %v5420_v52 = vld [vmem:[#allocation44_spill] sm:$0xff]  ;;  %v4332_v53 = vmax.bf16 %v1875_v37, %v5358_v25 }
  0x95   : > { %5411 = vst [vmem:[#allocation17_spill] sm:$0xff] %v4303_v62  ;;  %5413 = vst [vmem:[#allocation21_spill] sm:$0xff] %v4306_v1  ;;  %v2073_v42 = vrot.slane %v5419_v40, %v5416_v31  ;;  %v4318_v55 = vmax.bf16 %v1855_v47, %v5420_v52  ;;  %v5422_v19 = vld [vmem:[#allocation48_spill] sm:$0xff]  ;;  %v5424_v22 = vld [vmem:[#allocation39_spill] sm:$0xff] }
  0x96   : > { %5415 = vst [vmem:[#allocation23_spill] sm:$0xff] %v4309_v59  ;;  %v4321_v13 = vmax.bf16 %v1860_v23, %v5422_v19  ;;  %v4324_v35 = vmax.bf16 %v1865_v34, %v5424_v22  ;;  %v5426_v0 = vld [vmem:[#allocation56_spill] sm:$0xff]  ;;  %v5427_v59 = vld [vmem:[#allocation46_spill] sm:$0xff]  ;;  %5429 = vst [vmem:[#allocation24_spill] sm:$0xff] %v4332_v53  ;;  %v2050_v37 = vcombine.high %v2049_v11, %v2049_v11 }
  0x97   : > { %5421 = vst [vmem:[#allocation29_spill] sm:$0xff] %v4318_v55  ;;  %v2097_v33 = vrot.slane %v5426_v0, %v5416_v31  ;;  %v4329_v48 = vmax.bf16 %v1870_v32, %v5427_v59  ;;  %v5430_v1 = vld [vmem:[#allocation42_spill] sm:$0xff]  ;;  %v5432_v47 = vld [vmem:[#allocation49_spill] sm:$0xff]  ;;  %v2074_v25 = vcombine.high %v2073_v42, %v2073_v42 }
  0x98   : > { %5423 = vst [vmem:[#allocation20_spill] sm:$0xff] %v4321_v13  ;;  %5425 = vst [vmem:[#allocation22_spill] sm:$0xff] %v4324_v35  ;;  %v4335_v40 = vmax.bf16 %v1880_v24, %v5430_v1  ;;  %v4338_v52 = vmax.bf16 %v1885_v16, %v5432_v47  ;;  %v5434_v23 = vld [vmem:[#allocation50_spill] sm:$0xff]  ;;  %v5436_v34 = vld [vmem:[#allocation53_spill] sm:$0xff]  ;;  %v2026_v35 = vcombine.high %v2025_v10, %v2025_v10 }
  0x99   : > { %5428 = vst [vmem:[#allocation26_spill] sm:$0xff] %v4329_v48  ;;  %v4341_v19 = vmax.bf16 %v1890_v58, %v5434_v23  ;;  %v4344_v22 = vmax.bf16 %v1895_v18, %v5436_v34  ;;  %v5438_v0 = vld [vmem:[#allocation57_spill] sm:$0xff]  ;;  %v5441_v24 = vld [vmem:[#allocation58_spill] sm:$0xff]  ;;  %v5442_v16 = vld [vmem:[#allocation51_spill] sm:$0xff]  ;;  %v4357_v58 = vrot.slane %v2025_v10, %v5416_v31  ;;  %v2098_v18 = vcombine.high %v2097_v33, %v2097_v33 }
  0x9a   : > { %5431 = vst [vmem:[#allocation27_spill] sm:$0xff] %v4335_v40  ;;  %5433 = vst [vmem:[#allocation31_spill] sm:$0xff] %v4338_v52  ;;  %v2121_v32 = vrot.slane %v5438_v0, %v5416_v31  ;;  %v5439_v59 = vld [vmem:[#allocation45_spill] sm:$0xff]  ;;  %v2145_v1 = vrot.slane %v5441_v24, %v5416_v31  ;;  %v4354_v47 = vmax.bf16 %v1905_v39, %v5442_v16  ;;  %v5444_v23 = vld [vmem:[#allocation59_spill] sm:$0xff]  ;;  %v3514_v24 = vmov 1935823168  }
  0x9b   : > { %5435 = vst [vmem:[#allocation33_spill] sm:$0xff] %v4341_v19  ;;  %5437 = vst [vmem:[#allocation25_spill] sm:$0xff] %v4344_v22  ;;  %v4349_v48 = vmax.bf16 %v1900_v41, %v5439_v59  ;;  %v2169_v34 = vrot.slane %v5444_v23, %v5416_v31  ;;  %v5445_v22 = vld [vmem:[#allocation52_spill] sm:$0xff]  ;;  %v4365_v41 = vrot.slane %v2049_v11, %v5416_v31 }
  0x9c   : > { %5443 = vst [vmem:[#allocation32_spill] sm:$0xff] %v4354_v47  ;;  %v4362_v0 = vmax.bf16 %v1910_v6, %v5445_v22  ;;  %v4368_v59 = vrot.slane %v2073_v42, %v5416_v31  ;;  %v4373_v39 = vrot.slane %v2026_v35, %v5416_v31  ;;  %v4377_v10 = vcombine.high %v4357_v58, %v4357_v58 }
  0x9d   : > { %5440 = vst [vmem:[#allocation30_spill] sm:$0xff] %v4349_v48  ;;  %v4370_v48 = vunpack.c.l.s4 %v3514_v24  ;;  %v4380_v16 = vrot.slane %v2097_v33, %v5416_v31  ;;  %v2122_v6 = vcombine.high %v2121_v32, %v2121_v32  ;;  %v4383_v11 = vrot.slane %v2050_v37, %v5416_v31 }
  0x9e   : > { %5446 = vst [vmem:[#allocation28_spill] sm:$0xff] %v4362_v0  ;;  %v4387_v42 = vcombine.high %v4365_v41, %v4365_v41  ;;  %v4390_v22 = vrot.slane %v2074_v25, %v5416_v31  ;;  %v2146_v35 = vcombine.high %v2145_v1, %v2145_v1  ;;  %v4394_v23 = vcombine.high %v4368_v59, %v4368_v59 }
  0x9f   : > { %5447 = vst [vmem:[#allocation35_spill] sm:$0xff] %v4370_v48  ;;  %5448 = vst [vmem:[#allocation36_spill] sm:$0xff] %v4380_v16  ;;  %v4397_v24 = vrot.slane %v2098_v18, %v5416_v31  ;;  %v4401_v33 = vcombine.high %v4380_v16, %v4380_v16  ;;  %v2170_v37 = vcombine.high %v2169_v34, %v2169_v34  ;;  %v2188_v48 = vshrl.u32 %v4357_v58, 16 }
  0xa0   : > { %v2042_v0 = vcombine.high %v4373_v39, %v4373_v39  ;;  %v2066_v25 = vcombine.high %v4383_v11, %v4383_v11  ;;  %v4408_v47 = vrot.slane %v2121_v32, %v5416_v31  ;;  %v4411_v19 = vrot.slane %v2145_v1, %v5416_v31 }
  0xa1   : > { %5449 = vst [vmem:[#allocation43_spill] sm:$0xff] %v4397_v24  ;;  %5450 = vst [vmem:[#allocation34_spill] sm:$0xff] %v4401_v33  ;;  %v2090_v18 = vcombine.high %v4390_v22, %v4390_v22  ;;  %v2114_v52 = vcombine.high %v4397_v24, %v4397_v24  ;;  %v4418_v40 = vrot.slane %v2122_v6, %v5416_v31  ;;  %v2191_v62 = vshrl.u32 %v4373_v39, 16 }
  0xa2   : > { %5451 = vst [vmem:[#allocation37_spill] sm:$0xff] %v4408_v47  ;;  %5452 = vst [vmem:[#allocation40_spill] sm:$0xff] %v4411_v19  ;;  %v4421_v53 = vrot.slane %v2169_v34, %v5416_v31  ;;  %v4425_v13 = vcombine.high %v4408_v47, %v4408_v47  ;;  %v4428_v32 = vrot.slane %v2146_v35, %v5416_v31  ;;  %v2194_v29 = vshrl.u32 %v4377_v10, 16 }
  0xa3   : > { %v4432_v1 = vcombine.high %v4411_v19, %v4411_v19  ;;  %v2138_v6 = vcombine.high %v4418_v40, %v4418_v40  ;;  %v4438_v55 = vrot.slane %v2170_v37, %v5416_v31  ;;  %v2197_v38 = vshrl.u32 %v4365_v41, 16 }
  0xa4   : > { %5453 = vst [vmem:[#allocation38_spill] sm:$0xff] %v4421_v53  ;;  %5454 = vst [vmem:[#allocation41_spill] sm:$0xff] %v4425_v13  ;;  %v4442_v34 = vcombine.high %v4421_v53, %v4421_v53  ;;  %v2200_v3 = vshrl.u32 %v4383_v11, 16  ;;  %v2203_v31 = vshrl.u32 %v4387_v42, 16  ;;  %v2206_v37 = vshrl.u32 %v4368_v59, 16 }
  0xa5   : > { %5455 = vst [vmem:[#allocation3_spill] sm:$0xff] %v4428_v32  ;;  %5456 = vst [vmem:[#allocation4_spill] sm:$0xff] %v4432_v1  ;;  %v2209_v61 = vshrl.u32 %v4390_v22, 16  ;;  %v2212_v26 = vshrl.u32 %v4394_v23, 16  ;;  %v2215_v20 = vshrl.u32 %v4380_v16, 16  ;;  %v2218_v35 = vshrl.u32 %v4397_v24, 16 }
  0xa6   : > { %5457 = vst [vmem:[#allocation54_spill] sm:$0xff] %v4438_v55  ;;  %5458 = vst [vmem:[#allocation55_spill] sm:$0xff] %v4442_v34  ;;  %v2221_v30 = vshrl.u32 %v4401_v33, 16  ;;  %v2224_v21 = vshrl.u32 %v4408_v47, 16  ;;  %v2227_v5 = vshrl.u32 %v4418_v40, 16  ;;  %v2230_v28 = vshrl.u32 %v4425_v13, 16 }
  0xa7   : > { %v2233_v51 = vshrl.u32 %v4411_v19, 16  ;;  %v2236_v2 = vshrl.u32 %v4428_v32, 16  ;;  %v2239_v60 = vshrl.u32 %v4432_v1, 16  ;;  %v2242_v15 = vshrl.u32 %v4421_v53, 16 }
  0xa8   : > { %v2245_v16 = vshrl.u32 %v4438_v55, 16  ;;  %v2248_v24 = vshrl.u32 %v4442_v34, 16  ;;  %v2299_v33 = vmax.bf16 %v4357_v58, %v4201_v12  ;;  %v2300_v47 = vmax.bf16 %v2188_v48, %v4204_v43  ;;  %v5465_v48 = vld [vmem:[#allocation43_spill] sm:$0xff]  ;;  %v5503_v58 = vld [vmem:[#allocation2_spill] sm:$0xff] }
  0xa9   : > { %v2301_v13 = vmax.bf16 %v4373_v39, %v4207_v27  ;;  %v2302_v19 = vmax.bf16 %v2191_v62, %v4210_v54  ;;  %v2303_v32 = vmax.bf16 %v4377_v10, %v4213_v44  ;;  %v2304_v1 = vmax.bf16 %v2194_v29, %v4216_v4  ;;  %v5464_v62 = vld [vmem:[#allocation7_spill] sm:$0xff]  ;;  %v5470_v10 = vld [vmem:[#allocation6_spill] sm:$0xff] }
  0xaa   : > { %v2305_v53 = vmax.bf16 %v2042_v0, %v4219_v9  ;;  %v2306_v34 = vmax.bf16 %v4365_v41, %v4222_v17  ;;  %v4481_v55 = vmax.bf16 %v2197_v38, %v4225_v63  ;;  %v2308_v43 = vmax.bf16 %v4383_v11, %v4228_v57  ;;  %v5467_v0 = vld [vmem:[#allocation11_spill] sm:$0xff]  ;;  %v5468_v41 = vld [vmem:[#allocation34_spill] sm:$0xff] }
  0xab   : > { %v4486_v27 = vmax.bf16 %v2200_v3, %v4231_v8  ;;  %v2310_v54 = vmax.bf16 %v4387_v42, %v4234_v7  ;;  %v4491_v44 = vmax.bf16 %v2203_v31, %v4237_v56  ;;  %v4494_v9 = vmax.bf16 %v2066_v25, %v4240_v14  ;;  %v5459_v8 = vld [vmem:[#allocation5_spill] sm:$0xff]  ;;  %v5460_v56 = vld [vmem:[#allocation8_spill] sm:$0xff]  ;;  %v5471_v42 = vld [vmem:[#allocation10_spill] sm:$0xff] }
  0xac   : > { %v2313_v4 = vmax.bf16 %v4368_v59, %v4243_v36  ;;  %v4499_v12 = vmax.bf16 %v2206_v37, %v4246_v50  ;;  %v4504_v63 = vmax.bf16 %v2209_v61, %v4252_v45  ;;  %v4509_v7 = vmax.bf16 %v2212_v26, %v5459_v8  ;;  %v5461_v3 = vld [vmem:[#allocation12_spill] sm:$0xff]  ;;  %v5463_v50 = vld [vmem:[#allocation15_spill] sm:$0xff]  ;;  %v5469_v26 = vld [vmem:[#allocation14_spill] sm:$0xff] }
  0xad   : > { %v4512_v14 = vmax.bf16 %v2090_v18, %v5460_v56  ;;  %v5462_v36 = vld [vmem:[#allocation36_spill] sm:$0xff]  ;;  %v4517_v29 = vmax.bf16 %v2215_v20, %v5463_v50  ;;  %v5466_v45 = vld [vmem:[#allocation47_spill] sm:$0xff]  ;;  %v4527_v39 = vmax.bf16 %v2221_v30, %v5469_v26  ;;  %v4530_v11 = vmax.bf16 %v2114_v52, %v5470_v10  ;;  %v5472_v25 = vld [vmem:[#allocation37_spill] sm:$0xff] }
  0xae   : > { %v4522_v61 = vmax.bf16 %v2218_v35, %v5466_v45  ;;  %v5473_v20 = vld [vmem:[#allocation13_spill] sm:$0xff]  ;;  %v5477_v50 = vld [vmem:[#allocation16_spill] sm:$0xff]  ;;  %v5479_v30 = vld [vmem:[#allocation18_spill] sm:$0xff] }
  0xaf   : > { %v4535_v31 = vmax.bf16 %v2224_v21, %v5473_v20  ;;  %v5475_v35 = vld [vmem:[#allocation9_spill] sm:$0xff]  ;;  %v4545_v26 = vmax.bf16 %v2230_v28, %v5479_v30  ;;  %v5483_v18 = vld [vmem:[#allocation40_spill] sm:$0xff]  ;;  %v5484_v21 = vld [vmem:[#allocation23_spill] sm:$0xff] }
  0xb0   : > { %v4540_v56 = vmax.bf16 %v2227_v5, %v5475_v35  ;;  %v5478_v45 = vld [vmem:[#allocation41_spill] sm:$0xff]  ;;  %v4553_v20 = vmax.bf16 %v2233_v51, %v5484_v21  ;;  %v5487_v8 = vld [vmem:[#allocation3_spill] sm:$0xff] }
  0xb1   : > { %5480 = vst [vmem:[#allocation48_spill] sm:$0xff] %v4545_v26  ;;  %v5481_v52 = vld [vmem:[#allocation17_spill] sm:$0xff]  ;;  %v5488_v5 = vld [vmem:[#allocation35_spill] sm:$0xff]  ;;  %v5493_v26 = vld [vmem:[#allocation26_spill] sm:$0xff]  ;;  %v5496_v38 = vcombine.high %v5487_v8, %v5487_v8 }
  0xb2   : > { %5476 = vst [vmem:[#allocation44_spill] sm:$0xff] %v4540_v56  ;;  %v4548_v10 = vmax.bf16 %v2138_v6, %v5481_v52  ;;  %5485 = vst [vmem:[#allocation39_spill] sm:$0xff] %v4553_v20  ;;  %v2399_v35 = vunpack.c.0.s8 %v5488_v5  ;;  %v5489_v56 = vld [vmem:[#allocation20_spill] sm:$0xff]  ;;  %v4564_v6 = vmax.bf16 %v2239_v60, %v5493_v26  ;;  %v5498_v21 = vld [vmem:[#allocation27_spill] sm:$0xff] }
  0xb3   : > { %v4559_v37 = vmax.bf16 %v2236_v2, %v5489_v56  ;;  %v5495_v52 = vld [vmem:[#allocation24_spill] sm:$0xff]  ;;  %v5499_v20 = vld [vmem:[#allocation38_spill] sm:$0xff]  ;;  %v5500_v57 = vld [vmem:[#allocation31_spill] sm:$0xff] }
  0xb4   : > { %5494 = vst [vmem:[#allocation46_spill] sm:$0xff] %v4564_v6  ;;  %v4570_v51 = vmax.bf16 %v5496_v38, %v5495_v52  ;;  %v2341_v17 = vmax.bf16 %v5499_v20, %v5498_v21  ;;  %v4575_v5 = vmax.bf16 %v2242_v15, %v5500_v57  ;;  %v5501_v2 = vld [vmem:[#allocation33_spill] sm:$0xff]  ;;  %v5502_v56 = vld [vmem:[#allocation54_spill] sm:$0xff]  ;;  %v4580_v30 = vsub.s32 %v2399_v35, %v5503_v58  ;;  %v5506_v59 = vld [vmem:[#allocation55_spill] sm:$0xff] }
  0xb5   : > { %5490 = vst [vmem:[#allocation56_spill] sm:$0xff] %v4559_v37  ;;  %v5504_v60 = vld [vmem:[#allocation25_spill] sm:$0xff]  ;;  %v5505_v6 = vld [vmem:[#allocation30_spill] sm:$0xff]  ;;  %v5507_v38 = vld [vmem:[#allocation32_spill] sm:$0xff]  ;;  %v5509_v15 = vcombine.high %v5502_v56, %v5502_v56 }
  0xb6   : > { %5497 = vst [vmem:[#allocation42_spill] sm:$0xff] %v4570_v51  ;;  %v4583_v26 = vmax.bf16 %v2245_v16, %v5504_v60  ;;  %v2345_v28 = vmax.bf16 %v5506_v59, %v5505_v6  ;;  %v4588_v52 = vmax.bf16 %v2248_v24, %v5507_v38  ;;  %v5508_v51 = vld [vmem:[#allocation28_spill] sm:$0xff]  ;;  %v4597_v37 = vrot.slane %v2299_v33, %v4580_v30 }
  0xb7   : > { %v4594_v57 = vmax.bf16 %v5509_v15, %v5508_v51  ;;  %v2417_v58 = vrot.slane %v2300_v47, %v4580_v30  ;;  %v4601_v16 = vrot.slane %v2301_v13, %v4580_v30  ;;  %v2445_v35 = vrot.slane %v2302_v19, %v4580_v30 }
  0xb8   : > { %v4605_v60 = vrot.slane %v2303_v32, %v4580_v30  ;;  %v2473_v24 = vrot.slane %v2304_v1, %v4580_v30  ;;  %v2487_v38 = vrot.slane %v2305_v53, %v4580_v30  ;;  %v4610_v51 = vrot.slane %v2306_v34, %v4580_v30 }
  0xb9   : > { %v4615_v47 = vrot.slane %v2417_v58, %v4580_v30  ;;  %v4620_v19 = vrot.slane %v2445_v35, %v4580_v30  ;;  %v2515_v15 = vrot.slane %v4481_v55, %v4580_v30  ;;  %v4635_v58 = vrot.slane %v2308_v43, %v4580_v30 }
  0xba   : > { %v4625_v53 = vrot.slane %v2473_v24, %v4580_v30  ;;  %v4628_v1 = vrot.slane %v2487_v38, %v4580_v30  ;;  %v2543_v35 = vrot.slane %v4486_v27, %v4580_v30  ;;  %v4640_v32 = vrot.slane %v2310_v54, %v4580_v30 }
  0xbb   : > { %v2571_v24 = vrot.slane %v4491_v44, %v4580_v30  ;;  %v2585_v38 = vrot.slane %v4494_v9, %v4580_v30  ;;  %v4647_v34 = vrot.slane %v2313_v4, %v4580_v30  ;;  %v2613_v55 = vrot.slane %v4499_v12, %v4580_v30 }
  0xbc   : > { %v4652_v43 = vrot.slane %v2515_v15, %v4580_v30  ;;  %v4657_v54 = vrot.slane %v2543_v35, %v4580_v30  ;;  %v5510_v35 = vmax.bf16 %v4390_v22, %v4249_v49  ;;  %v2641_v44 = vrot.slane %v4504_v63, %v4580_v30 }
  0xbd   : > { %v4662_v9 = vrot.slane %v2571_v24, %v4580_v30  ;;  %v4665_v4 = vrot.slane %v2585_v38, %v4580_v30  ;;  %v4670_v15 = vrot.slane %v2613_v55, %v4580_v30  ;;  %v5511_v24 = vmax.bf16 %v4394_v23, %v4255_v46 }
  0xbe   : > { %v4676_v27 = vrot.slane %v5510_v35, %v4580_v30  ;;  %v2669_v12 = vrot.slane %v4509_v7, %v4580_v30  ;;  %v2683_v55 = vrot.slane %v4512_v14, %v4580_v30  ;;  %v5512_v49 = vmax.bf16 %v5462_v36, %v5461_v3  ;;  %v5528_v7 = vld [vmem:[#allocation22_spill] sm:$0xff] }
  0xbf   : > { %v4684_v38 = vrot.slane %v5511_v24, %v4580_v30  ;;  %v2711_v63 = vrot.slane %v4517_v29, %v4580_v30  ;;  %v5513_v46 = vmax.bf16 %v5465_v48, %v5464_v62  ;;  %v4707_v14 = vrot.slane %v2641_v44, %v4580_v30 }
  0xc0   : > { %v4694_v22 = vrot.slane %v5512_v49, %v4580_v30  ;;  %v4712_v36 = vrot.slane %v2669_v12, %v4580_v30  ;;  %v4715_v29 = vrot.slane %v2683_v55, %v4580_v30  ;;  %v2739_v44 = vrot.slane %v4522_v61, %v4580_v30 }
  0xc1   : > { %v4702_v23 = vrot.slane %v5513_v46, %v4580_v30  ;;  %v4720_v48 = vrot.slane %v2711_v63, %v4580_v30  ;;  %v5514_v12 = vmax.bf16 %v5468_v41, %v5467_v0  ;;  %v2767_v55 = vrot.slane %v4527_v39, %v4580_v30  ;;  %v5516_v0 = vld [vmem:[#allocation19_spill] sm:$0xff]  ;;  %v5518_v39 = vld [vmem:[#allocation44_spill] sm:$0xff] }
  0xc2   : > { %v2781_v49 = vrot.slane %v4530_v11, %v4580_v30  ;;  %v5515_v63 = vmax.bf16 %v5472_v25, %v5471_v42  ;;  %v2809_v61 = vrot.slane %v4535_v31, %v4580_v30  ;;  %v5517_v41 = vmax.bf16 %v4418_v40, %v5516_v0 }
  0xc3   : > { %v4730_v24 = vrot.slane %v5514_v12, %v4580_v30  ;;  %v2837_v35 = vrot.slane %v5518_v39, %v4580_v30  ;;  %v4753_v11 = vrot.slane %v2739_v44, %v4580_v30  ;;  %v4758_v25 = vrot.slane %v2767_v55, %v4580_v30 }
  0xc4   : > { %v4740_v46 = vrot.slane %v5515_v63, %v4580_v30  ;;  %v4748_v12 = vrot.slane %v5517_v41, %v4580_v30  ;;  %v4761_v31 = vrot.slane %v2781_v49, %v4580_v30  ;;  %v4766_v63 = vrot.slane %v2809_v61, %v4580_v30  ;;  %v5520_v49 = vld [vmem:[#allocation48_spill] sm:$0xff]  ;;  %v5521_v61 = vld [vmem:[#allocation21_spill] sm:$0xff] }
  0xc5   : > { %v4771_v44 = vrot.slane %v2837_v35, %v4580_v30  ;;  %v5519_v55 = vmax.bf16 %v5478_v45, %v5477_v50  ;;  %v2865_v39 = vrot.slane %v5520_v49, %v4580_v30  ;;  %v2879_v40 = vrot.slane %v4548_v10, %v4580_v30  ;;  %v5523_v35 = vld [vmem:[#allocation39_spill] sm:$0xff]  ;;  %v5524_v50 = vld [vmem:[#allocation29_spill] sm:$0xff]  ;;  %v5526_v49 = vld [vmem:[#allocation56_spill] sm:$0xff] }
  0xc6   : > { %v5522_v42 = vmax.bf16 %v5483_v18, %v5521_v61  ;;  %v2907_v62 = vrot.slane %v5523_v35, %v4580_v30  ;;  %v5525_v45 = vmax.bf16 %v5487_v8, %v5524_v50  ;;  %v2935_v3 = vrot.slane %v5526_v49, %v4580_v30  ;;  %v5527_v10 = vld [vmem:[#allocation4_spill] sm:$0xff] }
  0xc7   : > { %v4777_v41 = vrot.slane %v5519_v55, %v4580_v30  ;;  %v5529_v13 = vmax.bf16 %v5527_v10, %v5528_v7  ;;  %v4811_v61 = vrot.slane %v2879_v40, %v4580_v30  ;;  %v5531_v40 = vld [vmem:[#allocation42_spill] sm:$0xff]  ;;  %v3047_v49 = vrot.slane %v2345_v28, %v4580_v30 }
  0xc8   : > { %v4787_v0 = vrot.slane %v5522_v42, %v4580_v30  ;;  %v4795_v55 = vrot.slane %v5525_v45, %v4580_v30  ;;  %v4808_v42 = vrot.slane %v2865_v39, %v4580_v30  ;;  %v4816_v35 = vrot.slane %v2907_v62, %v4580_v30  ;;  %v5530_v39 = vld [vmem:[#allocation46_spill] sm:$0xff] }
  0xc9   : > { %v4803_v33 = vrot.slane %v5529_v13, %v4580_v30  ;;  %v2858_v18 = vrot.slane %v4777_v41, %v4580_v30  ;;  %v4821_v13 = vrot.slane %v2935_v3, %v4580_v30  ;;  %v2963_v50 = vrot.slane %v5530_v39, %v4580_v30 }
  0xca   : > { %v2900_v8 = vrot.slane %v4787_v0, %v4580_v30  ;;  %v2928_v7 = vrot.slane %v4795_v55, %v4580_v30  ;;  %v2977_v45 = vrot.slane %v5531_v40, %v4580_v30  ;;  %v2991_v62 = vrot.slane %v2341_v17, %v4580_v30 }
  0xcb   : > { %v2956_v41 = vrot.slane %v4803_v33, %v4580_v30  ;;  %v3005_v0 = vrot.slane %v4575_v5, %v4580_v30  ;;  %v5532_v3 = vmax.bf16 %v5502_v56, %v5501_v2  ;;  %v3033_v33 = vrot.slane %v4583_v26, %v4580_v30 }
  0xcc   : > { %v3061_v20 = vrot.slane %v4588_v52, %v4580_v30  ;;  %v4848_v17 = vrot.slane %v2963_v50, %v4580_v30  ;;  %v4851_v21 = vrot.slane %v2977_v45, %v4580_v30  ;;  %v2998_v5 = vrot.slane %v2991_v62, %v4580_v30 }
  0xcd   : > { %v3019_v55 = vrot.slane %v5532_v3, %v4580_v30  ;;  %v4855_v2 = vrot.slane %v3005_v0, %v4580_v30  ;;  %v4859_v26 = vrot.slane %v3033_v33, %v4580_v30  ;;  %v3054_v59 = vrot.slane %v3047_v49, %v4580_v30 }
  0xce   : > { %v4863_v28 = vrot.slane %v3061_v20, %v4580_v30  ;;  %v3075_v6 = vrot.slane %v4594_v57, %v4580_v30  ;;  %v5533_v52 = vrot.slane %v4597_v37, %v4580_v30  ;;  %v3084_v39 = vunpack.c.l.b16 %v4615_v47 }
  0xcf   : > { %v3026_v56 = vrot.slane %v3019_v55, %v4580_v30  ;;  %v5534_v50 = vrot.slane %v4601_v16, %v4580_v30  ;;  %v3086_v45 = vunpack.c.l.b16 %v4620_v19  ;;  %v5535_v62 = vrot.slane %v4605_v60, %v4580_v30 }
  0xd0   : > { %v3083_v10 = vunpack.c.l.b16 %v5533_v52  ;;  %v3088_v3 = vunpack.c.l.b16 %v4625_v53  ;;  %v3089_v57 = vunpack.c.l.b16 %v4628_v1  ;;  %v4883_v37 = vrot.slane %v3075_v6, %v4580_v30 }
  0xd1   : > { %v3085_v40 = vunpack.c.l.b16 %v5534_v50  ;;  %v4878_v0 = vunpack.c.l.b16 %v5535_v62  ;;  %v5536_v47 = vrot.slane %v4610_v51, %v4580_v30  ;;  %v3091_v16 = vunpack.c.l.b16 %v4652_v43 }
  0xd2   : > { %v5537_v19 = vrot.slane %v4635_v58, %v4580_v30  ;;  %v3093_v60 = vunpack.c.l.b16 %v4657_v54  ;;  %v5538_v53 = vrot.slane %v4640_v32, %v4580_v30  ;;  %v3095_v1 = vunpack.c.l.b16 %v4662_v9 }
  0xd3   : > { %v3090_v55 = vunpack.c.l.b16 %v5536_v47  ;;  %v3096_v20 = vunpack.c.l.b16 %v4665_v4  ;;  %v5539_v51 = vrot.slane %v4647_v34, %v4580_v30  ;;  %v3098_v43 = vunpack.c.l.b16 %v4670_v15 }
  0xd4   : > { %v3092_v33 = vunpack.c.l.b16 %v5537_v19  ;;  %v4896_v49 = vunpack.c.l.b16 %v5538_v53  ;;  %v5540_v58 = vrot.slane %v4676_v27, %v4580_v30  ;;  %v3100_v54 = vunpack.c.l.b16 %v4707_v14 }
  0xd5   : > { %v3097_v6 = vunpack.c.l.b16 %v5539_v51  ;;  %v5541_v32 = vrot.slane %v4684_v38, %v4580_v30  ;;  %v3102_v9 = vunpack.c.l.b16 %v4712_v36  ;;  %v3103_v4 = vunpack.c.l.b16 %v4715_v29 }
  0xd6   : > { %v4907_v52 = vunpack.c.l.b16 %v5540_v58  ;;  %v5542_v34 = vrot.slane %v4694_v22, %v4580_v30  ;;  %v3105_v27 = vunpack.c.l.b16 %v4720_v48  ;;  %v5543_v62 = vrot.slane %v4702_v23, %v4580_v30 }
  0xd7   : > { %v4913_v50 = vunpack.c.l.b16 %v5541_v32  ;;  %v5544_v47 = vrot.slane %v4730_v24, %v4580_v30  ;;  %v5545_v19 = vrot.slane %v4740_v46, %v4580_v30  ;;  %v5546_v53 = vrot.slane %v4748_v12, %v4580_v30 }
  0xd8   : > { %v4920_v15 = vunpack.c.l.b16 %v5542_v34  ;;  %v4926_v14 = vunpack.c.l.b16 %v5543_v62  ;;  %v4948_v58 = vunpack.c.l.b16 %v2858_v18  ;;  %v4952_v62 = vunpack.c.l.b16 %v2900_v8 }
  0xd9   : > { %v4932_v36 = vunpack.c.l.b16 %v5544_v47  ;;  %v4939_v48 = vunpack.c.l.b16 %v5545_v19  ;;  %v4945_v51 = vunpack.c.l.b16 %v5546_v53  ;;  %v4955_v47 = vunpack.c.l.b16 %v2928_v7 }
  0xda   : > { %v4958_v30 = vunpack.c.l.b16 %v2956_v41  ;;  %v4962_v53 = vunpack.c.l.b16 %v2998_v5  ;;  %v4965_v24 = vunpack.c.l.b16 %v3026_v56  ;;  %v4968_v34 = vunpack.c.l.b16 %v3054_v59 }
  0xdb   : > { %v3131_v19 = vunpack.c.l.b16 %v4883_v37  ;;  %v3132_v41 = vrot.slane %v3084_v39, 7  ;;  %v3134_v46 = vrot.slane %v3085_v40, 6  ;;  %v3136_v23 = vrot.slane %v3086_v45, 5 }
  0xdc   : > { %v3138_v12 = vrot.slane %v4878_v0, 4  ;;  %v3140_v18 = vrot.slane %v3088_v3, 3  ;;  %v3142_v22 = vrot.slane %v3089_v57, 2  ;;  %v3145_v32 = vrot.slane %v3091_v16, 7 }
  0xdd   : > { %v3133_v5 = vsel %vm1559_vm1, %v3132_v41, %v3083_v10  ;;  %v3147_v56 = vrot.slane %v3092_v33, 6  ;;  %v3149_v8 = vrot.slane %v3093_v60, 5  ;;  %v3151_v59 = vrot.slane %v4896_v49, 4 }
  0xde   : > { %v3135_v29 = vsel %vm1562_vm2, %v3134_v46, %v3133_v5  ;;  %v3153_v38 = vrot.slane %v3095_v1, 3  ;;  %v3146_v39 = vsel %vm1559_vm1, %v3145_v32, %v3090_v55  ;;  %v3155_v40 = vrot.slane %v3096_v20, 2 }
  0xdf   : > { %v3137_v7 = vsel %vm1565_vm3, %v3136_v23, %v3135_v29  ;;  %v3157_v45 = vrot.slane %v3098_v43, 7  ;;  %v3148_v3 = vsel %vm1562_vm2, %v3147_v56, %v3146_v39  ;;  %v3159_v10 = vrot.slane %v4907_v52, 6 }
  0xe0   : > { %v3139_v0 = vsel %vm1568_vm4, %v3138_v12, %v3137_v7  ;;  %v3161_v57 = vrot.slane %v3100_v54, 5  ;;  %v3150_v33 = vsel %vm1565_vm3, %v3149_v8, %v3148_v3  ;;  %v3163_v49 = vrot.slane %v4913_v50, 4 }
  0xe1   : > { %v3141_v16 = vsel %vm1571_vm5, %v3140_v18, %v3139_v0  ;;  %v3158_v60 = vsel %vm1559_vm1, %v3157_v45, %v3097_v6  ;;  %v3152_v55 = vsel %vm1568_vm4, %v3151_v59, %v3150_v33  ;;  %v3165_v43 = vrot.slane %v3102_v9, 3 }
  0xe2   : > { %v4986_v1 = vsel %vm3143_vm7, %v3142_v22, %v3141_v16  ;;  %v3160_v20 = vsel %vm1562_vm2, %v3159_v10, %v3158_v60  ;;  %v3154_v29 = vsel %vm1571_vm5, %v3153_v38, %v3152_v55  ;;  %v3167_v54 = vrot.slane %v3103_v4, 2 }
  0xe3   : > { %v3162_v52 = vsel %vm1565_vm3, %v3161_v57, %v3160_v20  ;;  %v3169_v23 = vrot.slane %v3105_v27, 7  ;;  %v4993_v6 = vsel %vm3143_vm7, %v3155_v40, %v3154_v29  ;;  %v3171_v22 = vrot.slane %v4926_v14, 6 }
  0xe4   : > { %v3164_v50 = vsel %vm1568_vm4, %v3163_v49, %v3162_v52  ;;  %v5547_v32 = vunpack.c.l.b16 %v4753_v11  ;;  %v3175_v4 = vrot.slane %v4932_v36, 4  ;;  %v5548_v27 = vunpack.c.l.b16 %v4758_v25 }
  0xe5   : > { %v3166_v9 = vsel %vm1571_vm5, %v3165_v43, %v3164_v50  ;;  %v3170_v38 = vsel %vm1559_vm1, %v3169_v23, %v4920_v15  ;;  %v5549_v7 = vunpack.c.l.b16 %v4761_v31  ;;  %v5550_v11 = vunpack.c.l.b16 %v4766_v63 }
  0xe6   : > { %v3173_v46 = vrot.slane %v5547_v32, 5  ;;  %v3177_v12 = vrot.slane %v5548_v27, 3  ;;  %v3168_v18 = vsel %vm3143_vm7, %v3167_v54, %v3166_v9  ;;  %v3172_v8 = vsel %vm1562_vm2, %v3171_v22, %v3170_v38 }
  0xe7   : > { %v3179_v14 = vrot.slane %v5549_v7, 2  ;;  %v3181_v41 = vrot.slane %v5550_v11, 7  ;;  %v3183_v15 = vrot.slane %v4945_v51, 6  ;;  %v5551_v36 = vunpack.c.l.b16 %v4771_v44 }
  0xe8   : > { %v3174_v5 = vsel %vm1565_vm3, %v3173_v46, %v3172_v8  ;;  %v3187_v25 = vrot.slane %v4948_v58, 4  ;;  %v5552_v31 = vunpack.c.l.b16 %v4808_v42  ;;  %v5553_v63 = vunpack.c.l.b16 %v4811_v61  ;;  %v3243_v46 = vld [vmem:[%s5037_s24 + $0xc] sm:$0xf]  ;;  %v3249_v8 = vld [vmem:[%s5037_s24 + $0x14] sm:$0xf] }
  0xe9   : > { %v3185_v56 = vrot.slane %v5551_v36, 5  ;;  %v3176_v59 = vsel %vm1568_vm4, %v3175_v4, %v3174_v5  ;;  %v3182_v39 = vsel %vm1559_vm1, %v3181_v41, %v4939_v48  ;;  %v5554_v44 = vunpack.c.l.b16 %v4816_v35 }
  0xea   : > { %v3189_v40 = vrot.slane %v5552_v31, 3  ;;  %v3191_v45 = vrot.slane %v5553_v63, 2  ;;  %v3178_v0 = vsel %vm1571_vm5, %v3177_v12, %v3176_v59  ;;  %v3184_v51 = vsel %vm1562_vm2, %v3183_v15, %v3182_v39  ;;  %v3246_v12 = vld [vmem:[%s5037_s24 + $0x10] sm:$0xf] }
  0xeb   : > { %v3193_v3 = vrot.slane %v5554_v44, 7  ;;  %v3195_v58 = vrot.slane %v4955_v47, 6  ;;  %v3180_v10 = vsel %vm3143_vm7, %v3179_v14, %v3178_v0  ;;  %v3186_v57 = vsel %vm1565_vm3, %v3185_v56, %v3184_v51 }
  0xec   : > { %v5555_v48 = vunpack.c.l.b16 %v4821_v13  ;;  %v3199_v16 = vrot.slane %v4958_v30, 4  ;;  %v3188_v61 = vsel %vm1568_vm4, %v3187_v25, %v3186_v57  ;;  %v5556_v47 = vunpack.c.l.b16 %v4848_v17  ;;  %v3252_v25 = vld [vmem:[%s5037_s24 + $0x18] sm:$0xf] }
  0xed   : > { %v3194_v35 = vsel %vm1559_vm1, %v3193_v3, %v4952_v62  ;;  %v5557_v60 = vunpack.c.l.b16 %v4851_v21  ;;  %v3190_v49 = vsel %vm1571_vm5, %v3189_v40, %v3188_v61  ;;  %v5558_v55 = vunpack.c.l.b16 %v4855_v2 }
  0xee   : > { %v3197_v42 = vrot.slane %v5555_v48, 5  ;;  %v3201_v33 = vrot.slane %v5556_v47, 3  ;;  %v3196_v30 = vsel %vm1562_vm2, %v3195_v58, %v3194_v35  ;;  %v3207_v43 = vrot.slane %v4965_v24, 6 }
  0xef   : > { %v3203_v13 = vrot.slane %v5557_v60, 2  ;;  %v3205_v20 = vrot.slane %v5558_v55, 7  ;;  %v3192_v62 = vsel %vm3143_vm7, %v3191_v45, %v3190_v49  ;;  %v5559_v29 = vunpack.c.l.b16 %v4859_v26 }
  0xf0   : > { %v3198_v17 = vsel %vm1565_vm3, %v3197_v42, %v3196_v30  ;;  %v3211_v52 = vrot.slane %v4968_v34, 4  ;;  %v5560_v23 = vunpack.c.l.b16 %v4863_v28  ;;  %v3215_v50 = vrot.slane %v3131_v19, 2  ;;  %v3234_v34 = vld [vmem:[%s5037_s24] sm:$0xf]  ;;  %v3240_v19 = vld [vmem:[%s5037_s24 + $0x8] sm:$0xf] }
  0xf1   : > { %v3209_v21 = vrot.slane %v5559_v29, 5  ;;  %v3200_v54 = vsel %vm1568_vm4, %v3199_v16, %v3198_v17  ;;  %v3206_v2 = vsel %vm1559_vm1, %v3205_v20, %v4962_v53  ;;  %v3217_v28 = vpack.c.b16 %v4986_v1, %v4986_v1  ;;  %v3237_v53 = vld [vmem:[%s5037_s24 + $0x4] sm:$0xf] }
  0xf2   : > { %v3213_v24 = vrot.slane %v5560_v23, 3  ;;  %v3202_v22 = vsel %vm1571_vm5, %v3201_v33, %v3200_v54  ;;  %v3208_v32 = vsel %vm1562_vm2, %v3207_v43, %v3206_v2  ;;  %v3218_v37 = vpack.c.b16 %v4993_v6, %v4993_v6 }
  0xf3   : > { %v3204_v9 = vsel %vm3143_vm7, %v3203_v13, %v3202_v22  ;;  %v3210_v38 = vsel %vm1565_vm3, %v3209_v21, %v3208_v32  ;;  %v3219_v4 = vpack.c.b16 %v3168_v18, %v3168_v18  ;;  %v3220_v27 = vpack.c.b16 %v3180_v10, %v3180_v10 }
  0xf4   : > { %v3212_v1 = vsel %vm1568_vm4, %v3211_v52, %v3210_v38  ;;  %v3221_v7 = vpack.c.b16 %v3192_v62, %v3192_v62  ;;  %v3222_v6 = vpack.c.b16 %v3204_v9, %v3204_v9  ;;  %v3235_v14 = vsel %vm5065_vm10, %v3217_v28, %v3234_v34 }
  0xf5   : > { %v3214_v11 = vsel %vm1571_vm5, %v3213_v24, %v3212_v1  ;;  %3236 = vst [vmem:[%s5037_s24] sm:$0xf] %v3235_v14  ;;  %v3238_v18 = vsel %vm5065_vm10, %v3218_v37, %v3237_v53  ;;  %v3241_v41 = vsel %vm5065_vm10, %v3219_v4, %v3240_v19  ;;  %v3244_v5 = vsel %vm5065_vm10, %v3220_v27, %v3243_v46 }
  0xf6   : > { %v3216_v15 = vsel %vm3143_vm7, %v3215_v50, %v3214_v11  ;;  %3239 = vst [vmem:[%s5037_s24 + $0x4] sm:$0xf] %v3238_v18  ;;  %3242 = vst [vmem:[%s5037_s24 + $0x8] sm:$0xf] %v3241_v41  ;;  %v3247_v36 = vsel %vm5065_vm10, %v3221_v7, %v3246_v12  ;;  %v3250_v56 = vsel %vm5065_vm10, %v3222_v6, %v3249_v8 }
  0xf7   : > { %3245 = vst [vmem:[%s5037_s24 + $0xc] sm:$0xf] %v3244_v5  ;;  %v3223_v59 = vpack.c.b16 %v3216_v15, %v3216_v15  ;;  %3248 = vst [vmem:[%s5037_s24 + $0x10] sm:$0xf] %v3247_v36 }
  0xf8   : > { %3251 = vst [vmem:[%s5037_s24 + $0x14] sm:$0xf] %v3250_v56 }
  0xf9   : > { %v3253_v39 = vsel %vm5065_vm10, %v3223_v59, %v3252_v25 }
  0xfa   : > { %3254 = vst [vmem:[%s5037_s24 + $0x18] sm:$0xf] %v3253_v39 }
  0xfb PF: > { %s12_s11 = sadd.s32 1, %s3511_s11   ;;  %s5563_s9 = smov %s3507_s10 }
  0xfc   : > { %p9_p5 = scmp.ge.s32.totalorder %s12_s11, 4   ;;  %s5564_s10 = smov %s5566_s12 }
  0xfe   :  { %11 = sbr.rel (!%p9_p5) target bundleno = 2 (0x2), region = 61 }

// kernel: vggnet_forward.9
= control target key start
LH: loop header
LB: loop body
LE: loop exit
PB: predicated region body
PF: predicated region fallthrough
CT: control target
= control target key end

     0   :  { %s3231_s15 = smov 0   ;;  %s3233_s16 = smov 0   ;;  %s4112_s0 = inlined_call_operand.vmem [shape: bf16[2,7,7,64], index: 0, kind: input, shape index: {}]   ;;  %s4113_s1 = inlined_call_operand.vmem [shape: bf16[2,7,1,2,64], index: 1, kind: input, shape index: {}]   ;;  %s4114_s2 = inlined_call_operand.vmem [shape: bf16[3,192,32], index: 2, kind: input, shape index: {}]   ;;  %s4115_s3 = inlined_call_operand.vmem [shape: f32[1,32], index: 3, kind: input, shape index: {}]   ;;  %s4116_s4 = inlined_call_operand.vmem [shape: bf16[2,7,7,32], index: 4, kind: output, shape index: {}]  }
   0x1   :  { %s3235_s17 = smov 0  }
   0x2 LB: > { %s26_s18 = sadd.s32 1, %s3197_s16  ;;  %p2940_p0 = scmp.ge.s32.totalorder %s3201_s17, 1  ;;  %s3201_s17 = sphi %s3235_s17, %s14_s17   ;;  %s3197_s16 = sphi %s3233_s16, %s4122_s16   ;;  %s3193_s15 = sphi %s3231_s15, %s4121_s15  }
   0x3   : > { %p28_p1 = scmp.ge.s32.totalorder %s26_s18, 2  ;;  %p195_p2 = scmp.lt.s32.totalorder %s3201_s17, 3 }
   0x5   : > { %s4124_s18 = smov (%p28_p1, %s26_s18), 0  ;;  %p196_p3 = pnand %p2940_p0, %p195_p2 }
   0x6   : > { %p234_p4 = scmp.lt.s32.totalorder (!%p196_p3), %s3193_s15, 1  ;;  %v359_v0 = vlaneseq (!%p196_p3)  ;;  %v3203_v1 = vmov (!%p196_p3), 1966171168   ;;  %vm483_vm0 = vsmask.f32 (!%p196_p3), 256  ;;  %v3143_v3 = vld [vmem:[%s4114_s2 + $0x60] sm:$0xff] (!%p196_p3)  }
   0x7   : > { %199 = sbr.rel (%p196_p3) target bundleno = 510 (0x1fe), region = 36  ;;  %v357_v2 = vunpack.c.l.s4 (!%p196_p3), %v3203_v1  ;;  %vm482_vm1 = vcmask (!%p196_p3), 1040384   ;;  %v3204_v5 = vmov (!%p196_p3), 0   ;;  %v3144_v6 = vld [vmem:[%s4114_s2] sm:$0xff] (!%p196_p3)   ;;  %v3145_v8 = vld [vmem:[%s4114_s2 + $0x68] sm:$0xff] (!%p196_p3)   ;;  %vm492_vm2 = vcmask (!%p196_p3), 1043456  }
   0x8   : > { %v360_v4 = vshrl.u32 (!%p196_p3), %v359_v0, 7  ;;  %1258 = vmatprep.subr.bf16.mxu0 (!%p196_p3), %v3204_v5  ;;  %1655 = vmatprep.subr.bf16.mxu1 (!%p196_p3), %v3204_v5  ;;  %v3146_v10 = vld [vmem:[%s4114_s2 + $0x8] sm:$0xff] (!%p196_p3)   ;;  %v3147_v11 = vld [vmem:[%s4114_s2 + $0x70] sm:$0xff] (!%p196_p3)   ;;  %v3303_v28 = vrot.slane (!%p196_p3), %v3204_v5, 1  ;;  %vm3311_vm3 = vmand (!%p196_p3), %vm482_vm1, %vm483_vm0  ;;  %s3205_s8 = smov (!%p196_p3), 64   ;;  %vm585_vm4 = vcmask (!%p196_p3), 523264  }
   0x9   : > { %v358_v7 = vunpack.c.0.s8 (!%p196_p3), %v357_v2  ;;  %1259 = vmatpush1.bf16.msra.mxu0 (!%p196_p3), %v3143_v3  ;;  %1656 = vmatpush1.bf16.msra.mxu1 (!%p196_p3), %v3144_v6  ;;  %v3148_v30 = vld [vmem:[%s4114_s2 + $0x10] sm:$0xff] (!%p196_p3)   ;;  %v3149_v36 = vld [vmem:[%s4114_s2 + $0x78] sm:$0xff] (!%p196_p3)   ;;  %v3151_v52 = vld [vmem:[%s4114_s2 + $0x80] sm:$0xff] (!%p196_p3)   ;;  %vm2814_vm5 = vcmask (!%p196_p3), 257024   ;;  %vm2815_vm6 = vsmask.f32 (!%p196_p3), 3328 }
   0xa   : > { %1260 = vmatprep.subr.bf16.mxu0 (!%p196_p3), %v3204_v5  ;;  %1657 = vmatprep.subr.bf16.mxu1 (!%p196_p3), %v3204_v5  ;;  %v3150_v42 = vld [vmem:[%s4114_s2 + $0x18] sm:$0xff] (!%p196_p3)   ;;  %v3152_v63 = vld [vmem:[%s4114_s2 + $0x20] sm:$0xff] (!%p196_p3)   ;;  %v3161_v31 = vld [vmem:[%s4114_s2 + $0xa8] sm:$0xff] (!%p196_p3)  }
   0xb   : > { %v3265_v9 = vsub.s32 (!%p196_p3), %v358_v7, %v360_v4  ;;  %vm4005_vm7 = vmand (!%p196_p3), %vm2814_vm5, %vm2815_vm6 }
   0xd   : > { %1261 = vmatpush1.bf16.msra.mxu0 (!%p196_p3), %v3145_v8  ;;  %1658 = vmatpush1.bf16.msra.mxu1 (!%p196_p3), %v3146_v10 }
   0xe   : > { %s4126_s15 = smov (!%p234_p4, %s3193_s15), 1  ;;  %1262 = vmatprep.subr.bf16.mxu0 %v3204_v5  ;;  %1659 = vmatprep.subr.bf16.mxu1 %v3204_v5 }
   0xf   : > { %s3107_s23 = smul.u32 28, %s4126_s15 }
  0x10   : > { %s3108_s26 = smul.u32 7, %s4126_s15 }
  0x11   : > { %s3276_s5 = scalar_lea.vmem %s4112_s0, %s3107_s23  ;;  %1263 = vmatpush1.bf16.msra.mxu0 %v3147_v11  ;;  %1660 = vmatpush1.bf16.msra.mxu1 %v3148_v30  ;;  %s3992_s19 = scalar_lea.vmem %s4116_s4, %s3107_s23 }
  0x12   : > { %s3284_s10 = scalar_lea.vmem %s4113_s1, %s3108_s26  ;;  %v3136_v12 = vld [vmem:[%s3276_s5 + $0x8] ss:$0 sps:$4 sm:$0xff]   ;;  %v3137_v15 = vld [vmem:[%s3276_s5] ss:$0 sps:$4 sm:$0xff]   ;;  %v3138_v23 = vld [vmem:[%s3276_s5 + $0x4] ss:$0 sps:$4 sm:$0xff]   ;;  %1264 = vmatprep.subr.bf16.mxu0 %v3204_v5  ;;  %1661 = vmatprep.subr.bf16.mxu1 %v3204_v5 }
  0x13   : > { %v267_v13 = vld [vmem:[%s3284_s10 + $0x2] sm:$0x1]  ;;  %v265_v14 = vld [vmem:[%s3284_s10] sm:$0x1]  ;;  %v308_v16 = vshrl.u32 %v3136_v12, 16  ;;  %v311_v17 = vshll.u32 %v3136_v12, 16 }
  0x14   : > { %v390_v18 = vrot.slane %v267_v13, %v3265_v9  ;;  %v362_v19 = vrot.slane %v265_v14, %v3265_v9  ;;  %v3294_v20 = vld [vmem:[%s3284_s10 + $0x1] sm:$0x1]  ;;  %v294_v21 = vshrl.u32 %v3137_v15, 16  ;;  %v297_v22 = vshll.u32 %v3137_v15, 16  ;;  %v3139_v29 = vld [vmem:[%s3276_s5 + $0x10] ss:$0 sps:$4 sm:$0xff]  }
  0x15   : > { %v376_v24 = vrot.slane %v3294_v20, %v3265_v9  ;;  %v310_v25 = vrot.slane %v308_v16, 7  ;;  %v301_v33 = vshrl.u32 %v3138_v23, 16  ;;  %v304_v34 = vshll.u32 %v3138_v23, 16  ;;  %v3321_v40 = vld [vmem:[%s3284_s10 + $0x4] sm:$0x1]  ;;  %1265 = vmatpush1.bf16.msra.mxu0 %v3149_v36  ;;  %1662 = vmatpush1.bf16.msra.mxu1 %v3150_v42  ;;  %v3153_v12 = vld [vmem:[%s4114_s2 + $0x88] sm:$0xff]  }
  0x16   : > { %v397_v26 = vrot.slane %v390_v18, %v3265_v9  ;;  %v369_v27 = vrot.slane %v362_v19, %v3265_v9  ;;  %v296_v32 = vrot.slane %v294_v21, 7  ;;  %v322_v41 = vshrl.u32 %v3139_v29, 16  ;;  %v3140_v47 = vld [vmem:[%s3276_s5 + $0xc] ss:$0 sps:$4 sm:$0xff]   ;;  %v3338_v57 = vld [vmem:[%s3284_s10 + $0x3] sm:$0x1]  ;;  %1266 = vmatprep.subr.bf16.mxu0 %v3204_v5  ;;  %1663 = vmatprep.subr.bf16.mxu1 %v3204_v5 }
  0x17   : > { %v383_v35 = vrot.slane %v376_v24, %v3265_v9  ;;  %v313_v37 = vor.u32 %v311_v17, %v310_v25  ;;  %v303_v44 = vrot.slane %v301_v33, 7  ;;  %v325_v46 = vshll.u32 %v3139_v29, 16  ;;  %v3141_v62 = vld [vmem:[%s3276_s5 + $0x18] ss:$0 sps:$4 sm:$0xff]   ;;  %v3356_v4 = vld [vmem:[%s3276_s5 + $0x14] ss:$0 sps:$4 sm:$0xff]  }
  0x18   : > { %v463_v38 = vshrl.u32 %v397_v26, 16  ;;  %v455_v39 = vshrl.u32 %v369_v27, 16  ;;  %v299_v43 = vor.u32 %v297_v22, %v296_v32  ;;  %v324_v51 = vrot.slane %v322_v41, 7  ;;  %v3367_v11 = vld [vmem:[%s3284_s10 + $0x6] sm:$0x1]  ;;  %v3154_v21 = vld [vmem:[%s4114_s2 + $0x28] sm:$0xff]  }
  0x19   : > { %v459_v45 = vshrl.u32 %v383_v35, 16  ;;  %v487_v49 = vsel %vm3311_vm3, %v267_v13, %v313_v37  ;;  %v306_v54 = vor.u32 %v304_v34, %v303_v44  ;;  %v418_v56 = vrot.slane %v3321_v40, %v3265_v9  ;;  %1267 = vmatpush1.bf16.msra.mxu0 %v3151_v52  ;;  %1664 = vmatpush1.bf16.msra.mxu1 %v3152_v63  ;;  %v3384_v26 = vld [vmem:[%s3284_s10 + $0x5] sm:$0x1]  ;;  %v3155_v27 = vld [vmem:[%s4114_s2 + $0x90] sm:$0xff]  }
  0x1a   : > { %v465_v48 = vrot.slane %v463_v38, 4  ;;  %v457_v50 = vrot.slane %v455_v39, 4  ;;  %v485_v53 = vsel %vm3311_vm3, %v265_v14, %v299_v43  ;;  %v327_v60 = vor.u32 %v325_v46, %v324_v51  ;;  %1268 = vmatprep.subr.bf16.mxu0 %v3204_v5  ;;  %1665 = vmatprep.subr.bf16.mxu1 %v3204_v5  ;;  %v3156_v34 = vld [vmem:[%s4114_s2 + $0x30] sm:$0xff]  }
  0x1b   : > { %v461_v55 = vrot.slane %v459_v45, 4  ;;  %v315_v61 = vshrl.u32 %v3140_v47, 16  ;;  %v486_v6 = vsel %vm3311_vm3, %v3294_v20, %v306_v54  ;;  %v425_v7 = vrot.slane %v418_v56, %v3265_v9 }
  0x1c   : > { %v3342_v58 = vsel %vm492_vm2, %v487_v49, %v465_v48  ;;  %v3345_v59 = vsel %vm492_vm2, %v485_v53, %v457_v50  ;;  %v489_v8 = vsel %vm3311_vm3, %v3321_v40, %v327_v60  ;;  %v318_v16 = vshll.u32 %v3140_v47, 16  ;;  %v3157_v50 = vld [vmem:[%s4114_s2 + $0x98] sm:$0xff]  }
  0x1d   : > { %v533_v0 = vshrl.u32 %v3342_v58, 16  ;;  %v535_v1 = vshll.u32 %v3342_v58, 16  ;;  %v521_v2 = vshrl.u32 %v3345_v59, 16  ;;  %v523_v3 = vshll.u32 %v3345_v59, 16  ;;  %1269 = vmatpush1.bf16.msra.mxu0 %v3153_v12  ;;  %1666 = vmatpush1.bf16.msra.mxu1 %v3154_v21 }
  0x1e   : > { %v317_v10 = vrot.slane %v315_v61, 7  ;;  %v3373_v15 = vsel %vm492_vm2, %v486_v6, %v461_v55  ;;  %v471_v19 = vshrl.u32 %v425_v7, 16  ;;  %v404_v20 = vrot.slane %v3338_v57, %v3265_v9  ;;  %1270 = vmatprep.subr.bf16.mxu0 %v3204_v5  ;;  %1667 = vmatprep.subr.bf16.mxu1 %v3204_v5 }
  0x1f   : > { %v537_v13 = vrot.slane %v535_v1, 1  ;;  %v525_v14 = vrot.slane %v523_v3, 1  ;;  %v527_v17 = vshrl.u32 %v3373_v15, 16  ;;  %v529_v18 = vshll.u32 %v3373_v15, 16  ;;  %v3159_v1 = vld [vmem:[%s4114_s2 + $0xa0] sm:$0xff]  }
  0x20   : > { %v320_v24 = vor.u32 %v318_v16, %v317_v10  ;;  %v336_v25 = vshrl.u32 %v3141_v62, 16  ;;  %v473_v30 = vrot.slane %v471_v19, 4  ;;  %v411_v32 = vrot.slane %v404_v20, %v3265_v9  ;;  %v3160_v10 = vld [vmem:[%s4114_s2 + $0x40] sm:$0xff]   ;;  %v3163_v20 = vld [vmem:[%s4114_s2 + $0xb0] sm:$0xff]  }
  0x21   : > { %v538_v22 = vor.u32 %v537_v13, %v533_v0  ;;  %v526_v23 = vor.u32 %v525_v14, %v521_v2  ;;  %v531_v29 = vrot.slane %v529_v18, 1  ;;  %v339_v33 = vshll.u32 %v3141_v62, 16  ;;  %1271 = vmatpush1.bf16.msra.mxu0 %v3155_v27  ;;  %1668 = vmatpush1.bf16.msra.mxu1 %v3156_v34 }
  0x22   : > { %v488_v35 = vsel %vm3311_vm3, %v3338_v57, %v320_v24  ;;  %v338_v36 = vrot.slane %v336_v25, 7  ;;  %v446_v37 = vrot.slane %v3367_v11, %v3265_v9  ;;  %v329_v38 = vshrl.u32 %v3356_v4, 16  ;;  %1272 = vmatprep.subr.bf16.mxu0 %v3204_v5  ;;  %v3158_v57 = vld [vmem:[%s4114_s2 + $0x38] sm:$0xff]   ;;  %1669 = vmatprep.subr.bf16.mxu1 %v3204_v5 }
  0x23   : > { %563 = vrot.lane.b32.xlu1 %v538_v22, %s3205_s8  ;;  %559 = vrot.lane.b32.xlu0 %v526_v23, %s3205_s8  ;;  %v532_v39 = vor.u32 %v531_v29, %v527_v17  ;;  %v3403_v40 = vsel %vm492_vm2, %v489_v8, %v473_v30  ;;  %v467_v41 = vshrl.u32 %v411_v32, 16  ;;  %v332_v42 = vshll.u32 %v3356_v4, 16  ;;  %v3162_v17 = vld [vmem:[%s4114_s2 + $0x48] sm:$0xff]   ;;  %v3164_v22 = vld [vmem:[%s4114_s2 + $0x50] sm:$0xff]  }
  0x24   : > { %v545_v43 = vshrl.u32 %v3403_v40, 16  ;;  %v547_v44 = vshll.u32 %v3403_v40, 16  ;;  %v341_v45 = vor.u32 %v339_v33, %v338_v36  ;;  %v453_v46 = vrot.slane %v446_v37, %v3265_v9  ;;  %v3165_v23 = vld [vmem:[%s4114_s2 + $0xb8] sm:$0xff]  }
  0x25   : > { %v469_v47 = vrot.slane %v467_v41, 4  ;;  %v331_v48 = vrot.slane %v329_v38, 7  ;;  %v432_v49 = vrot.slane %v3384_v26, %v3265_v9  ;;  %1273 = vmatpush1.bf16.msra.mxu0 %v3157_v50  ;;  %1670 = vmatpush1.bf16.msra.mxu1 %v3158_v57  ;;  %v3166_v24 = vld [vmem:[%s4114_s2 + $0x58] sm:$0xff]   ;;  %v581_v25 = vrot.slane %v3342_v58, 1 }
  0x26   : > { %v549_v51 = vrot.slane %v547_v44, 1  ;;  %v479_v52 = vshrl.u32 %v453_v46, 16  ;;  %v491_v53 = vsel %vm3311_vm3, %v3367_v11, %v341_v45  ;;  %1274 = vmatprep.subr.bf16.mxu0 %v3204_v5  ;;  %1671 = vmatprep.subr.bf16.mxu1 %v3204_v5  ;;  %v583_v46 = vrot.slane %v3403_v40, 1 }
  0x27   : > { %557 = vrot.lane.b32.xlu1 %v3303_v28, %s3205_s8  ;;  %561 = vrot.lane.b32.xlu0 %v532_v39, %s3205_s8  ;;  %v3423_v54 = vsel %vm492_vm2, %v488_v35, %v469_v47  ;;  %v334_v55 = vor.u32 %v332_v42, %v331_v48  ;;  %v439_v56 = vrot.slane %v432_v49, %v3265_v9  ;;  %v580_v35 = vrot.slane %v3373_v15, 1 }
  0x28   : > { %v550_v60 = vor.u32 %v549_v51, %v545_v43  ;;  %v539_v61 = vshrl.u32 %v3423_v54, 16  ;;  %v541_v62 = vshll.u32 %v3423_v54, 16  ;;  %v481_v63 = vrot.slane %v479_v52, 4 }
  0x29   : > { %v475_v0 = vshrl.u32 %v439_v56, 16  ;;  %v490_v4 = vsel %vm3311_vm3, %v3384_v26, %v334_v55  ;;  %1275 = vmatpush1.bf16.msra.mxu0 %v3159_v1  ;;  %1672 = vmatpush1.bf16.msra.mxu1 %v3160_v10  ;;  %v579_v26 = vrot.slane %v3345_v59, 1  ;;  %v582_v55 = vrot.slane %v3423_v54, 1 }
  0x2a   : > { %v543_v2 = vrot.slane %v541_v62, 1  ;;  %v3438_v3 = vsel %vm492_vm2, %v491_v53, %v481_v63  ;;  %1276 = vmatprep.subr.bf16.mxu0 %v3204_v5  ;;  %1673 = vmatprep.subr.bf16.mxu1 %v3204_v5 }
  0x2b   : > { %567 = vrot.lane.b32.xlu1 %v550_v60, %s3205_s8  ;;  %v855_v6 = vshrl.u32 %v3438_v3, 16  ;;  %v857_v7 = vshll.u32 %v3438_v3, 16  ;;  %v477_v8 = vrot.slane %v475_v0, 4  ;;  %v864_v56 = vrot.slane %v3438_v3, 1 }
  0x2c   : > { %v544_v11 = vor.u32 %v543_v2, %v539_v61 }
  0x2d   : > { %v859_v12 = vrot.slane %v857_v7, 1  ;;  %v3451_v13 = vsel %vm492_vm2, %v490_v4, %v477_v8  ;;  %1277 = vmatpush1.bf16.msra.mxu0 %v3161_v31  ;;  %1674 = vmatpush1.bf16.msra.mxu1 %v3162_v17 }
  0x2e   : > { %565 = vrot.lane.b32.xlu0 %v544_v11, %s3205_s8  ;;  %v551_v14 = vshrl.u32 %v3451_v13, 16  ;;  %v553_v16 = vshll.u32 %v3451_v13, 16  ;;  %1278 = vmatprep.subr.bf16.mxu0 %v3204_v5  ;;  %v584_v62 = vrot.slane %v3451_v13, 1 }
  0x2f   : > { %v860_v18 = vor.u32 %v859_v12, %v855_v6  ;;  %1675 = vmatprep.subr.bf16.mxu1 %v3204_v5 }
  0x30   : > { %v555_v19 = vrot.slane %v553_v16, 1 }
  0x31   : > { %861 = vrot.lane.b32.xlu1 %v860_v18, %s3205_s8  ;;  %1279 = vmatpush1.bf16.msra.mxu0 %v3163_v20 }
  0x32   : > { %v556_v21 = vor.u32 %v555_v19, %v551_v14  ;;  %1280 = vmatprep.subr.bf16.mxu0 %v3204_v5  ;;  %1676 = vmatpush1.bf16.msra.mxu1 %v3164_v22 }
  0x33   : > { %1677 = vmatprep.subr.bf16.mxu1 %v3204_v5 }
  0x34   : > { %569 = vrot.lane.b32.xlu0 %v556_v21, %s3205_s8 }
  0x35   : > { %1281 = vmatpush1.bf16.msra.mxu0 %v3165_v23 }
  0x36   : > { %2057 = vmatprep.subr.bf16.mxu0 %v3204_v5  ;;  %1678 = vmatpush1.bf16.msra.mxu1 %v3166_v24 }
  0x37   : > { %3083 = vmatprep.subr.bf16.mxu1 %v3204_v5 }
  0x95   : > { %v564_v27 = vpop.permute.xlu1 %563  ;;  %v560_v29 = vpop.permute.xlu0 %559 }
  0x96   : > { %v593_v30 = vsel %vm585_vm4, %v3342_v58, %v564_v27  ;;  %v589_v32 = vsel %vm585_vm4, %v3345_v59, %v560_v29 }
  0x97   : > { %v682_v33 = vcombine.low %v593_v30, %v581_v25  ;;  %v632_v34 = vcombine.low %v589_v32, %v579_v26 }
  0x99   : > { %v689_v36 = vrot.slane %v682_v33, %v3265_v9  ;;  %v639_v37 = vrot.slane %v632_v34, %v3265_v9  ;;  %v558_v38 = vpop.permute.xlu1 %557  ;;  %v562_v39 = vpop.permute.xlu0 %561 }
  0x9a   : > { %v587_v41 = vsel %vm585_vm4, 0, %v558_v38  ;;  %v591_v42 = vsel %vm585_vm4, %v3373_v15, %v562_v39 }
  0x9b   : > { %v690_v43 = vcombine.high %v689_v36, %v689_v36  ;;  %v3497_v58 = vrot.slane %v689_v36, %v3265_v9  ;;  %v640_v59 = vcombine.high %v639_v37, %v639_v37  ;;  %v607_v44 = vcombine.low %v587_v41, %v3303_v28 }
  0x9c   : > { %v657_v45 = vcombine.low %v591_v42, %v580_v35  ;;  %v3510_v15 = vrot.slane %v639_v37, %v3265_v9 }
  0x9d   : > { %v3502_v47 = vrot.slane %v690_v43, %v3265_v9  ;;  %v3506_v48 = vcombine.high %v3497_v58, %v3497_v58  ;;  %v804_v49 = vunpack.i.h.s16 %v3497_v58  ;;  %v568_v50 = vpop.permute.xlu1 %567  ;;  %v3513_v51 = vrot.slane %v640_v59, %v3265_v9 }
  0x9e   : > { %v614_v28 = vrot.slane %v607_v44, %v3265_v9  ;;  %v664_v52 = vrot.slane %v657_v45, %v3265_v9  ;;  %v597_v53 = vsel %vm585_vm4, %v3403_v40, %v568_v50  ;;  %v3532_v40 = vcombine.high %v3510_v15, %v3510_v15 }
  0x9f   : > { %v3527_v63 = vcombine.high %v3502_v47, %v3502_v47  ;;  %v806_v0 = vunpack.i.h.s16 %v3502_v47  ;;  %v732_v1 = vcombine.low %v597_v53, %v583_v46  ;;  %v808_v4 = vunpack.i.h.s16 %v3506_v48 }
  0xa0   : > { %v615_v57 = vcombine.high %v614_v28, %v614_v28  ;;  %v665_v60 = vcombine.high %v664_v52, %v664_v52  ;;  %v3522_v61 = vrot.slane %v664_v52, %v3265_v9  ;;  %v566_v2 = vpop.permute.xlu0 %565  ;;  %v3536_v6 = vpack.i.b16 %v3502_v47, %v804_v49 }
  0xa1   : > { %v3543_v8 = vcombine.high %v3513_v51, %v3513_v51  ;;  %v3546_v10 = vrot.slane %v614_v28, %v3265_v9  ;;  %v739_v12 = vrot.slane %v732_v1, %v3265_v9  ;;  %v595_v31 = vsel %vm585_vm4, %v3423_v54, %v566_v2 }
  0xa2   : > { %v3539_v7 = vrot.slane %v665_v60, %v3265_v9  ;;  %v3550_v11 = vcombine.high %v3522_v61, %v3522_v61  ;;  %v3556_v14 = vrot.slane %v615_v57, %v3265_v9  ;;  %v707_v16 = vcombine.low %v595_v31, %v582_v55 }
  0xa3   : > { %v862_v17 = vpop.permute.xlu1 %861  ;;  %v797_v18 = vunpack.i.h.s16 %v3522_v61  ;;  %v950_v19 = vcombine.low %v3510_v15, %v3513_v51  ;;  %v740_v20 = vcombine.high %v739_v12, %v739_v12  ;;  %v3562_v21 = vrot.slane %v739_v12, %v3265_v9 }
  0xa4   : > { %v866_v22 = vsel %vm585_vm4, %v3438_v3, %v862_v17  ;;  %v799_v23 = vunpack.i.h.s16 %v3539_v7  ;;  %v714_v54 = vrot.slane %v707_v16, %v3265_v9  ;;  %v2974_v25 = vpack.i.b16 %v3522_v61, %v3543_v8 }
  0xa5   : > { %v868_v24 = vcombine.low %v866_v22, %v864_v56  ;;  %v790_v26 = vunpack.i.h.s16 %v3510_v15  ;;  %v3572_v27 = vrot.slane %v740_v20, %v3265_v9  ;;  %v818_v29 = vunpack.i.h.s16 %v3562_v21 }
  0xa6   : > { %v570_v30 = vpop.permute.xlu0 %569  ;;  %v681_v32 = vcombine.high %v3539_v7, %v3539_v7  ;;  %v801_v3 = vunpack.i.h.s16 %v3550_v11  ;;  %v715_v33 = vcombine.high %v714_v54, %v714_v54  ;;  %v2976_v36 = vpack.i.b16 %v3550_v11, %v799_v23 }
  0xa7   : > { %v875_v34 = vrot.slane %v868_v24, %v3265_v9  ;;  %v599_v35 = vsel %vm585_vm4, %v3451_v13, %v570_v30  ;;  %v3584_v37 = vcombine.high %v3546_v10, %v3546_v10  ;;  %v3588_v38 = vcombine.high %v3556_v14, %v3556_v14 }
  0xa8   : > { %v3591_v39 = vrot.slane %v714_v54, %v3265_v9  ;;  %v2975_v41 = vpack.i.b16 %v3539_v7, %v797_v18  ;;  %v3596_v42 = vcombine.high %v3562_v21, %v3562_v21  ;;  %v3600_v13 = vcombine.high %v3572_v27, %v3572_v27 }
  0xa9   : > { %v820_v43 = vunpack.i.h.s16 %v3572_v27  ;;  %v1019_v59 = vcombine.low %v3562_v21, %v3572_v27  ;;  %v876_v44 = vcombine.high %v875_v34, %v875_v34  ;;  %v3606_v45 = vrot.slane %v875_v34, %v3265_v9 }
  0xaa   : > { %v757_v46 = vcombine.low %v599_v35, %v584_v62  ;;  %v2977_v49 = vpack.i.b16 %v681_v32, %v801_v3  ;;  %v3609_v50 = vpack.i.b16 %v3572_v27, %v818_v29  ;;  %v3612_v28 = vrot.slane %v715_v33, %v3265_v9 }
  0xab   : > { %v951_v52 = vcombine.low %v3532_v40, %v2974_v25  ;;  %v952_v53 = vcombine.low %v2975_v41, %v2976_v36  ;;  %v3617_v55 = vcombine.high %v3591_v39, %v3591_v39  ;;  %v811_v56 = vunpack.i.h.s16 %v3591_v39 }
  0xac   : > { %v764_v57 = vrot.slane %v757_v46, %v3265_v9  ;;  %v960_v60 = vrot.slane %v950_v19, %v3265_v9  ;;  %v953_v62 = vcombine.low %v2977_v49, %v3497_v58  ;;  %v792_v12 = vunpack.i.h.s16 %v3513_v51 }
  0xad   : > { %v967_v1 = vrot.slane %v951_v52, %v3265_v9  ;;  %v974_v2 = vrot.slane %v952_v53, %v3265_v9  ;;  %v3627_v31 = vrot.slane %v876_v44, %v3265_v9  ;;  %v3631_v16 = vcombine.high %v3606_v45, %v3606_v45 }
  0xae   : > { %v765_v17 = vcombine.high %v764_v57, %v764_v57  ;;  %v3634_v18 = vpack.i.b16 %v3497_v58, %v681_v32  ;;  %v3637_v19 = vrot.slane %v764_v57, %v3265_v9  ;;  %v981_v20 = vrot.slane %v953_v62, %v3265_v9 }
  0xaf   : > { %v983_v22 = vcombine.high %v960_v60, %v967_v1  ;;  %v794_v23 = vunpack.i.h.s16 %v3532_v40  ;;  %v3002_v24 = vpack.i.b16 %v3510_v15, %v3588_v38  ;;  %v3003_v25 = vpack.i.b16 %v3513_v51, %v790_v26 }
  0xb0   : > { %v3642_v54 = vrot.slane %v765_v17, %v3265_v9  ;;  %v3004_v29 = vpack.i.b16 %v3532_v40, %v792_v12  ;;  %v3650_v58 = vcombine.high %v3637_v19, %v3637_v19  ;;  %v825_v30 = vunpack.i.h.s16 %v3637_v19 }
  0xb1   : > { %v985_v32 = vcombine.high %v974_v2, %v981_v20  ;;  %v999_v3 = vrot.slane %v983_v22, %v3265_v9  ;;  %v3005_v34 = vpack.i.b16 %v3543_v8, %v794_v23  ;;  %v1347_v15 = vcombine.low %v3546_v10, %v3556_v14 }
  0xb2   : > { %v3656_v33 = vcombine.high %v3642_v54, %v3642_v54  ;;  %v1348_v51 = vcombine.low %v3584_v37, %v3002_v24  ;;  %v1349_v26 = vcombine.low %v3003_v25, %v3004_v29  ;;  %v982_v35 = vcombine.low %v960_v60, %v967_v1 }
  0xb3   : > { %v1013_v40 = vrot.slane %v985_v32, %v3265_v9  ;;  %v984_v36 = vcombine.low %v974_v2, %v981_v20  ;;  %v1350_v41 = vcombine.low %v3005_v34, %v3522_v61  ;;  %v1357_v44 = vrot.slane %v1347_v15, %v3265_v9  ;;  %v3167_v2 = vld [vmem:[%s4114_s2 + $0xc0] sm:$0xff]  }
  0xb4   : > { %v1364_v46 = vrot.slane %v1348_v51, %v3265_v9  ;;  %v3669_v8 = vpack.i.b16 %v3506_v48, %v806_v0  ;;  %v1371_v52 = vrot.slane %v1349_v26, %v3265_v9  ;;  %v992_v53 = vrot.slane %v982_v35, %v3265_v9  ;;  %v3168_v35 = vld [vmem:[%s4114_s2 + $0xc8] sm:$0xff]  }
  0xb5   : > { %v1015_v49 = vcombine.low %v999_v3, %v1013_v40  ;;  %v1006_v57 = vrot.slane %v984_v36, %v3265_v9  ;;  %v1378_v60 = vrot.slane %v1350_v41, %v3265_v9  ;;  %v3681_v0 = vpack.i.b16 %v3527_v63, %v808_v4 }
  0xb6   : > { %v1380_v62 = vcombine.high %v1357_v44, %v1364_v46  ;;  %v1379_v1 = vcombine.low %v1357_v44, %v1364_v46  ;;  %v1413_v17 = vcombine.low %v3539_v7, %v3550_v11  ;;  %v1414_v20 = vcombine.low %v3634_v18, %v3536_v6 }
  0xb7   : > { %2998 = vmatprep.mubr.msk.bf16.mxu0 %vm585_vm4, %v1015_v49  ;;  %v1014_v12 = vcombine.low %v992_v53, %v1006_v57  ;;  %v1416_v22 = vcombine.low %v3591_v39, %v3612_v28  ;;  %v1382_v23 = vcombine.high %v1371_v52, %v1378_v60  ;;  %v1381_v25 = vcombine.low %v1371_v52, %v1378_v60 }
  0xb8   : > { %v1396_v24 = vrot.slane %v1380_v62, %v3265_v9  ;;  %v1389_v29 = vrot.slane %v1379_v1, %v3265_v9  ;;  %v1415_v4 = vcombine.low %v3669_v8, %v3681_v0  ;;  %v1423_v32 = vrot.slane %v1413_v17, %v3265_v9 }
  0xb9   : > { %1291 = vmatmul.mubr.bf16.vlgmr.msra.gmra.mrb[0].mxu0 %v1014_v12  ;;  %v1430_v3 = vrot.slane %v1414_v20, %v3265_v9  ;;  %v1444_v34 = vrot.slane %v1416_v22, %v3265_v9  ;;  %v1410_v15 = vrot.slane %v1382_v23, %v3265_v9  ;;  %v1403_v51 = vrot.slane %v1381_v25, %v3265_v9  ;;  %v3169_v20 = vld [vmem:[%s4114_s2 + $0xd0] sm:$0xff]  }
  0xba   : > { %2058 = vmatpush1.bf16.msra.mxu0 %v3167_v2  ;;  %v3701_v40 = vcombine.high %v3612_v28, %v3612_v28  ;;  %v813_v26 = vunpack.i.h.s16 %v3612_v28  ;;  %v1437_v36 = vrot.slane %v1415_v4, %v3265_v9  ;;  %v815_v44 = vunpack.i.h.s16 %v3617_v55 }
  0xbb   : > { %v1446_v41 = vcombine.high %v1423_v32, %v1430_v3  ;;  %v2978_v46 = vpack.i.b16 %v3591_v39, %v3527_v63  ;;  %2059 = vmatprep.subr.bf16.mxu0 %v3204_v5  ;;  %v1412_v49 = vcombine.low %v1396_v24, %v1410_v15  ;;  %v1411_v52 = vcombine.low %v1389_v29, %v1403_v51 }
  0xbc   : > { %v2979_v53 = vpack.i.b16 %v3612_v28, %v811_v56  ;;  %v2980_v57 = vpack.i.b16 %v3617_v55, %v813_v26  ;;  %v1448_v60 = vcombine.high %v1437_v36, %v1444_v34  ;;  %v2981_v1 = vpack.i.b16 %v3701_v40, %v815_v44 }
  0xbd   : > { %v1462_v62 = vrot.slane %v1446_v41, %v3265_v9  ;;  %v1016_v12 = vcombine.low %v3502_v47, %v3506_v48  ;;  %3026 = vmatprep.mubr.msk.bf16.mxu1 %vm585_vm4, %v1412_v49  ;;  %v1047_v17 = vrot.slane %v1019_v59, %v3265_v9  ;;  %v1445_v56 = vcombine.low %v1423_v32, %v1430_v3 }
  0xbe   : > { %v1017_v63 = vcombine.low %v2978_v46, %v2979_v53  ;;  %2060 = vmatpush1.bf16.msra.mxu0 %v3168_v35  ;;  %v827_v22 = vunpack.i.h.s16 %v3642_v54  ;;  %1688 = vmatmul.mubr.bf16.vlgmr.msra.gmra.mrb[0].mxu1 %v1411_v52  ;;  %v1476_v23 = vrot.slane %v1448_v60, %v3265_v9  ;;  %v1018_v47 = vcombine.low %v2980_v57, %v2981_v1 }
  0xbf   : > { %v1026_v48 = vrot.slane %v1016_v12, %v3265_v9  ;;  %2061 = vmatprep.subr.bf16.mxu0 %v3204_v5  ;;  %v829_v24 = vunpack.i.h.s16 %v3650_v58  ;;  %3095 = vmatpush1.bf16.msra.mxu1 %v3167_v2  ;;  %v1447_v25 = vcombine.low %v1437_v36, %v1444_v34  ;;  %v1455_v29 = vrot.slane %v1445_v56, %v3265_v9  ;;  %v3170_v36 = vld [vmem:[%s4114_s2 + $0xd8] sm:$0xff]  }
  0xc0   : > { %v1033_v59 = vrot.slane %v1017_v63, %v3265_v9  ;;  %v2982_v4 = vpack.i.b16 %v3637_v19, %v3600_v13  ;;  %v1478_v32 = vcombine.low %v1462_v62, %v1476_v23  ;;  %v1040_v3 = vrot.slane %v1018_v47, %v3265_v9  ;;  %3084 = vmatprep.subr.bf16.mxu1 %v3204_v5 }
  0xc1   : > { %v2983_v15 = vpack.i.b16 %v3642_v54, %v825_v30  ;;  %v2984_v51 = vpack.i.b16 %v3650_v58, %v827_v22  ;;  %v1469_v34 = vrot.slane %v1447_v25, %v3265_v9  ;;  %v2985_v41 = vpack.i.b16 %v3656_v33, %v829_v24 }
  0xc2   : > { %v1049_v2 = vcombine.high %v1026_v48, %v1033_v59  ;;  %v1048_v26 = vcombine.low %v1026_v48, %v1033_v59  ;;  %2062 = vmatpush1.bf16.msra.mxu0 %v3169_v20  ;;  %v822_v44 = vunpack.i.h.s16 %v3596_v42  ;;  %3027 = vmatprep.mubr.msk.bf16.mxu1 %vm585_vm4, %v1478_v32  ;;  %v1051_v46 = vcombine.high %v1040_v3, %v1047_v17 }
  0xc3   : > { %v1050_v49 = vcombine.low %v1040_v3, %v1047_v17  ;;  %2063 = vmatprep.subr.bf16.mxu0 %v3204_v5  ;;  %v1082_v30 = vcombine.low %v3596_v42, %v2982_v4  ;;  %3096 = vmatpush1.bf16.msra.mxu1 %v3168_v35  ;;  %v1477_v57 = vcombine.low %v1455_v29, %v1469_v34 }
  0xc4   : > { %v1065_v52 = vrot.slane %v1049_v2, %v3265_v9  ;;  %v1058_v53 = vrot.slane %v1048_v26, %v3265_v9  ;;  %v1083_v60 = vcombine.low %v2983_v15, %v2984_v51  ;;  %v1079_v62 = vrot.slane %v1051_v46, %v3265_v9  ;;  %3085 = vmatprep.subr.bf16.mxu1 %v3204_v5  ;;  %v3172_v46 = vld [vmem:[%s4114_s2 + $0xe8] sm:$0xff]  }
  0xc5   : > { %v1072_v1 = vrot.slane %v1050_v49, %v3265_v9  ;;  %v1084_v12 = vcombine.low %v2985_v41, %v3606_v45  ;;  %v1085_v63 = vcombine.low %v3627_v31, %v3631_v16  ;;  %v1092_v17 = vrot.slane %v1082_v30, %v3265_v9 }
  0xc6   : > { %2064 = vmatpush1.bf16.msra.mxu0 %v3170_v36  ;;  %v1099_v35 = vrot.slane %v1083_v60, %v3265_v9  ;;  %v3764_v56 = vpack.i.b16 %v3562_v21, %v3701_v40  ;;  %v3769_v22 = vpack.i.b16 %v3596_v42, %v820_v43  ;;  %v1081_v23 = vcombine.low %v1065_v52, %v1079_v62  ;;  %v3171_v42 = vld [vmem:[%s4114_s2 + $0xe0] sm:$0xff]  }
  0xc7   : > { %v1080_v47 = vcombine.low %v1058_v53, %v1072_v1  ;;  %1696 = vmatmul.mubr.bf16.gmra.mrb[4].mxu1 %v1477_v57  ;;  %v1106_v48 = vrot.slane %v1084_v12, %v3265_v9  ;;  %v1113_v24 = vrot.slane %v1085_v63, %v3265_v9  ;;  %v3774_v25 = vpack.i.b16 %v3600_v13, %v822_v44 }
  0xc8   : > { %3097 = vmatpush1.bf16.msra.mxu1 %v3169_v20  ;;  %v1115_v59 = vcombine.high %v1092_v17, %v1099_v35  ;;  %v1479_v21 = vcombine.low %v3617_v55, %v3764_v56  ;;  %v1480_v27 = vcombine.low %v3609_v50, %v3769_v22  ;;  %2999 = vmatprep.mubr.msk.bf16.mxu0 %vm585_vm4, %v1081_v23  ;;  %v830_v20 = vunpack.i.l.s16 %v3656_v33 }
  0xc9   : > { %3086 = vmatprep.subr.bf16.mxu1 %v3204_v5  ;;  %v1117_v43 = vcombine.high %v1106_v48, %v1113_v24  ;;  %v1482_v40 = vcombine.low %v3642_v54, %v3650_v58  ;;  %v1114_v13 = vcombine.low %v1092_v17, %v1099_v35  ;;  %1299 = vmatmul.mubr.bf16.gmra.mrb[4].mxu0 %v1080_v47  ;;  %v894_v49 = vunpack.i.h.s16 %v3606_v45 }
  0xca   : > { %v1131_v29 = vrot.slane %v1115_v59, %v3265_v9  ;;  %v1481_v4 = vcombine.low %v3774_v25, %v3637_v19  ;;  %v1489_v32 = vrot.slane %v1479_v21, %v3265_v9  ;;  %v1496_v3 = vrot.slane %v1480_v27, %v3265_v9  ;;  %2065 = vmatprep.subr.bf16.mxu0 %v3204_v5 }
  0xcb   : > { %v1145_v15 = vrot.slane %v1117_v43, %v3265_v9  ;;  %v1510_v51 = vrot.slane %v1482_v40, %v3265_v9  ;;  %v1116_v2 = vcombine.low %v1106_v48, %v1113_v24  ;;  %v1124_v26 = vrot.slane %v1114_v13, %v3265_v9  ;;  %2066 = vmatpush1.bf16.msra.mxu0 %v3171_v42 }
  0xcc   : > { %3098 = vmatpush1.bf16.msra.mxu1 %v3170_v36  ;;  %v1503_v34 = vrot.slane %v1481_v4, %v3265_v9  ;;  %v1512_v41 = vcombine.high %v1489_v32, %v1496_v3  ;;  %v1511_v44 = vcombine.low %v1489_v32, %v1496_v3  ;;  %2067 = vmatprep.subr.bf16.mxu0 %v3204_v5  ;;  %v896_v48 = vunpack.i.h.s16 %v3627_v31 }
  0xcd   : > { %v1147_v30 = vcombine.low %v1131_v29, %v1145_v15  ;;  %3087 = vmatprep.subr.bf16.mxu1 %v3204_v5  ;;  %v1138_v52 = vrot.slane %v1116_v2, %v3265_v9  ;;  %v892_v36 = vcombine.high %v3627_v31, %v3627_v31  ;;  %v3811_v63 = vrot.slane %v830_v20, %v3265_v9 }
  0xce   : > { %v1514_v53 = vcombine.high %v1503_v34, %v1510_v51  ;;  %v1528_v57 = vrot.slane %v1512_v41, %v3265_v9  ;;  %v1513_v60 = vcombine.low %v1503_v34, %v1510_v51  ;;  %v1521_v62 = vrot.slane %v1511_v44, %v3265_v9 }
  0xcf   : > { %3000 = vmatprep.mubr.msk.bf16.mxu0 %vm585_vm4, %v1147_v30  ;;  %v1146_v1 = vcombine.low %v1124_v26, %v1138_v52  ;;  %v899_v12 = vunpack.i.l.s16 %v892_v36  ;;  %v1749_v17 = vcombine.low %v3522_v61, %v3539_v7  ;;  %2068 = vmatpush1.bf16.msra.mxu0 %v3172_v46  ;;  %v1750_v47 = vcombine.low %v3550_v11, %v3634_v18  ;;  %v3173_v11 = vld [vmem:[%s4114_s2 + $0xf0] sm:$0xff]  }
  0xd0   : > { %v1542_v35 = vrot.slane %v1514_v53, %v3265_v9  ;;  %v1535_v23 = vrot.slane %v1513_v60, %v3265_v9  ;;  %3099 = vmatpush1.bf16.msra.mxu1 %v3171_v42  ;;  %v898_v24 = vunpack.i.h.s16 %v3631_v16  ;;  %v1552_v61 = vcombine.high %v3811_v63, %v3811_v63  ;;  %2069 = vmatprep.subr.bf16.mxu0 %v3204_v5 }
  0xd1   : > { %3088 = vmatprep.subr.bf16.mxu1 %v3204_v5  ;;  %v1154_v59 = vrot.slane %v899_v12, %v3265_v9  ;;  %1307 = vmatmul.mubr.bf16.gmra.mrb[8].mxu0 %v1146_v1  ;;  %v1751_v18 = vcombine.low %v3536_v6, %v3669_v8  ;;  %v1752_v27 = vcombine.low %v3681_v0, %v3591_v39 }
  0xd2   : > { %v1544_v7 = vcombine.low %v1528_v57, %v1542_v35  ;;  %v1543_v21 = vcombine.low %v1521_v62, %v1535_v23  ;;  %v3055_v42 = vpack.i.b16 %v3627_v31, %v894_v49  ;;  %v1566_v40 = vrot.slane %v1552_v61, %v3265_v9  ;;  %v3175_v49 = vld [vmem:[%s4114_s2 + $0x100] sm:$0xff]   ;;  %v3178_v23 = vld [vmem:[%s4114_s2 + $0x118] sm:$0xff]  }
  0xd3   : > { %v1155_v43 = vcombine.high %v1154_v59, %v1154_v59  ;;  %v3836_v13 = vrot.slane %v1749_v17, %v3265_v9  ;;  %v3840_v20 = vrot.slane %v1750_v47, %v3265_v9  ;;  %v3843_v29 = vrot.slane %v1751_v18, %v3265_v9  ;;  %2070 = vmatpush1.bf16.msra.mxu0 %v3173_v11 }
  0xd4   : > { %3028 = vmatprep.mubr.msk.bf16.mxu1 %vm585_vm4, %v1544_v7  ;;  %3100 = vmatpush1.bf16.msra.mxu1 %v3172_v46  ;;  %v3846_v6 = vrot.slane %v1752_v27, %v3265_v9  ;;  %v3054_v31 = vpack.i.b16 %v3606_v45, %v3656_v33  ;;  %v3056_v8 = vpack.i.b16 %v3631_v16, %v896_v48 }
  0xd5   : > { %1704 = vmatmul.mubr.bf16.gmra.mrb[8].mxu1 %v1543_v21  ;;  %v1169_v39 = vrot.slane %v1155_v43, %v3265_v9  ;;  %3089 = vmatprep.subr.bf16.mxu1 %v3204_v5  ;;  %v1884_v0 = vcombine.low %v3556_v14, %v3584_v37  ;;  %v1162_v4 = vrot.slane %v1154_v59, %v3265_v9  ;;  %v3174_v14 = vld [vmem:[%s4114_s2 + $0xf8] sm:$0xff]  }
  0xd6   : > { %3029 = vmatprep.mubr.msk.bf16.mxu1 %vm585_vm4, %v1566_v40  ;;  %v1782_v32 = vcombine.high %v3836_v13, %v3840_v20  ;;  %v1784_v3 = vcombine.high %v3843_v29, %v3846_v6  ;;  %v3057_v15 = vpack.i.b16 %v892_v36, %v898_v24  ;;  %v1881_v45 = vcombine.low %v3650_v58, %v3054_v31 }
  0xd7   : > { %3001 = vmatprep.mubr.msk.bf16.mxu0 %vm585_vm4, %v1169_v39  ;;  %v1882_v16 = vcombine.low %v3055_v42, %v3056_v8  ;;  %v1559_v37 = vrot.slane %v3811_v63, %v3265_v9  ;;  %2071 = vmatprep.subr.bf16.mxu0 %v3204_v5  ;;  %v1912_v44 = vrot.slane %v1884_v0, %v3265_v9 }
  0xd8   : > { %3101 = vmatpush1.bf16.msra.mxu1 %v3173_v11  ;;  %v1798_v33 = vrot.slane %v1782_v32, %v3265_v9  ;;  %v1812_v51 = vrot.slane %v1784_v3, %v3265_v9  ;;  %v1883_v2 = vcombine.low %v3057_v15, %v3546_v10  ;;  %v1891_v26 = vrot.slane %v1881_v45, %v3265_v9 }
  0xd9   : > { %v1898_v58 = vrot.slane %v1882_v16, %v3265_v9  ;;  %3090 = vmatprep.subr.bf16.mxu1 %v3204_v5  ;;  %1315 = vmatmul.mubr.bf16.gmra.mrb[12].mxu0 %v1162_v4  ;;  %v1815_v10 = vcombine.low %v3612_v28, %v3617_v55  ;;  %v1816_v30 = vcombine.low %v3764_v56, %v3609_v50  ;;  %v3176_v50 = vld [vmem:[%s4114_s2 + $0x108] sm:$0xff]  }
  0xda   : > { %v1814_v34 = vcombine.low %v1798_v33, %v1812_v51  ;;  %v1905_v41 = vrot.slane %v1883_v2, %v3265_v9  ;;  %2072 = vmatpush1.bf16.msra.mxu0 %v3174_v14  ;;  %v1817_v52 = vcombine.low %v3769_v22, %v3774_v25  ;;  %v1818_v57 = vcombine.low %v3637_v19, %v3642_v54  ;;  %v3177_v25 = vld [vmem:[%s4114_s2 + $0x110] sm:$0xff]  }
  0xdb   : > { %v1914_v46 = vcombine.high %v1891_v26, %v1898_v58  ;;  %2073 = vmatprep.subr.bf16.mxu0 %v3204_v5  ;;  %v1825_v28 = vrot.slane %v1815_v10, %v3265_v9  ;;  %v1832_v56 = vrot.slane %v1816_v30, %v3265_v9  ;;  %v788_v22 = vunpack.i.l.s16 %v3588_v38 }
  0xdc   : > { %3102 = vmatpush1.bf16.msra.mxu1 %v3174_v14  ;;  %3070 = vmatprep.mubr.msk.bf16.mxu0 %vm585_vm4, %v1814_v34  ;;  %v1916_v36 = vcombine.high %v1905_v41, %v1912_v44  ;;  %v1839_v19 = vrot.slane %v1817_v52, %v3265_v9  ;;  %v1846_v54 = vrot.slane %v1818_v57, %v3265_v9 }
  0xdd   : > { %1712 = vmatmul.mubr.bf16.gmra.mrb[12].mxu1 %v1559_v37  ;;  %v1930_v53 = vrot.slane %v1914_v46, %v3265_v9  ;;  %3091 = vmatprep.subr.bf16.mxu1 %v3204_v5  ;;  %v1781_v62 = vcombine.low %v3836_v13, %v3840_v20  ;;  %v1783_v1 = vcombine.low %v3843_v29, %v3846_v6 }
  0xde   : > { %v1944_v60 = vrot.slane %v1916_v36, %v3265_v9  ;;  %2074 = vmatpush1.bf16.msra.mxu0 %v3175_v49  ;;  %v1913_v12 = vcombine.low %v1891_v26, %v1898_v58  ;;  %v1915_v63 = vcombine.low %v1905_v41, %v1912_v44  ;;  %v1848_v38 = vcombine.high %v1825_v28, %v1832_v56 }
  0xdf   : > { %2075 = vmatprep.subr.bf16.mxu0 %v3204_v5  ;;  %v1850_v17 = vcombine.high %v1839_v19, %v1846_v54  ;;  %v1953_v35 = vrot.slane %v788_v22, %v3265_v9  ;;  %v1791_v47 = vrot.slane %v1781_v62, %v3265_v9  ;;  %v1805_v48 = vrot.slane %v1783_v1, %v3265_v9 }
  0xe0   : > { %3103 = vmatpush1.bf16.msra.mxu1 %v3175_v49  ;;  %v1946_v55 = vcombine.low %v1930_v53, %v1944_v60  ;;  %v1923_v24 = vrot.slane %v1913_v12, %v3265_v9  ;;  %v1937_v59 = vrot.slane %v1915_v63, %v3265_v9  ;;  %v1864_v61 = vrot.slane %v1848_v38, %v3265_v9  ;;  %v3940_v12 = vld [vmem:[%s4115_s3] ss:$0 sm:$0xff] }
  0xe1   : > { %3092 = vmatprep.subr.bf16.mxu1 %v3204_v5  ;;  %v1878_v7 = vrot.slane %v1850_v17, %v3265_v9  ;;  %v1954_v21 = vcombine.high %v1953_v35, %v1953_v35  ;;  %v1813_v11 = vcombine.low %v1791_v47, %v1805_v48  ;;  %v1847_v18 = vcombine.low %v1825_v28, %v1832_v56 }
  0xe2   : > { %3072 = vmatprep.mubr.msk.bf16.mxu1 %vm585_vm4, %v1946_v55  ;;  %2076 = vmatpush1.bf16.msra.mxu0 %v3176_v50  ;;  %v1849_v27 = vcombine.low %v1839_v19, %v1846_v54  ;;  %v1945_v42 = vcombine.low %v1923_v24, %v1937_v59  ;;  %v1961_v29 = vrot.slane %v1953_v35, %v3265_v9 }
  0xe3   : > { %2077 = vmatprep.subr.bf16.mxu0 %v3204_v5  ;;  %v1880_v43 = vcombine.low %v1864_v61, %v1878_v7  ;;  %v1968_v40 = vrot.slane %v1954_v21, %v3265_v9 }
  0xe4   : > { %3104 = vmatpush1.bf16.msra.mxu1 %v3176_v50  ;;  %v1871_v13 = vrot.slane %v1849_v27, %v3265_v9 }
  0xe5   : > { %3093 = vmatprep.subr.bf16.mxu1 %v3204_v5 }
  0xe6   : > { %2078 = vmatpush1.bf16.msra.mxu0 %v3177_v25 }
  0xe7   : > { %2079 = vmatprep.subr.bf16.mxu0 %v3204_v5 }
  0xe8   : > { %3105 = vmatpush1.bf16.msra.mxu1 %v3177_v25 }
  0xe9   : > { %3094 = vmatprep.subr.bf16.mxu1 %v3204_v5  ;;  %v1857_v5 = vrot.slane %v1847_v18, %v3265_v9 }
  0xea   : > { %2080 = vmatpush1.bf16.msra.mxu0 %v3178_v23 }
  0xeb   : > { %v1879_v20 = vcombine.low %v1857_v5, %v1871_v13 }
  0xec   : > { %3106 = vmatpush1.bf16.msra.mxu1 %v3178_v23 }
  0xed   : > { %2090 = vmatmul.mubr.bf16.vlgmr.msra.gmra.mrb[16].mxu0 %v1813_v11 }
  0xee   : > { %3071 = vmatprep.mubr.msk.bf16.mxu0 %vm585_vm4, %v1880_v43 }
  0xef   : > { %2106 = vmatmul.mubr.bf16.vlgmr.msra.gmra.mrb[16].mxu1 %v1945_v42 }
  0xf0   : > { %3073 = vmatprep.mubr.msk.bf16.mxu1 %vm585_vm4, %v1968_v40 }
  0xf5   : > { %2098 = vmatmul.mubr.bf16.gmra.mrb[20].mxu0 %v1879_v20 }
  0xf7   : > { %2114 = vmatmul.mubr.bf16.gmra.mrb[20].mxu1 %v1961_v29 }
 0x18c   : > { %v1292_v6 = vpop.f32.mrb[0].mxu0 }
 0x18d   : > { %v1294_v39 = vpop.f32.mrb[1].mxu0 }
 0x18e   : > { %v1295_v31 = vpop.f32.mrb[2].mxu0 }
 0x18f   : > { %v1297_v8 = vpop.f32.mrb[3].mxu0 }
 0x191   : > { %v1689_v0 = vpop.f32.mrb[0].mxu1 }
 0x192   : > { %v1690_v4 = vadd.f32 %v1689_v0, %v1292_v6  ;;  %v1691_v32 = vpop.f32.mrb[1].mxu1 }
 0x193   : > { %v1692_v3 = vpop.f32.mrb[2].mxu1 }
 0x194   : > { %v1693_v15 = vadd.f32 %v1692_v3, %v1295_v31  ;;  %v1694_v45 = vpop.f32.mrb[3].mxu1 }
 0x19a   : > { %v1697_v16 = vpop.f32.mrb[4].mxu1 }
 0x19b   : > { %v1699_v14 = vpop.f32.mrb[5].mxu1 }
 0x19c   : > { %v1700_v37 = vpop.f32.mrb[6].mxu1  ;;  %v1300_v33 = vpop.f32.mrb[4].mxu0 }
 0x19d   : > { %v1702_v51 = vpop.f32.mrb[7].mxu1  ;;  %v3931_v2 = vadd.f32 %v1697_v16, %v1300_v33  ;;  %v1302_v26 = vpop.f32.mrb[5].mxu0 }
 0x19e   : > { %v1303_v58 = vpop.f32.mrb[6].mxu0 }
 0x19f   : > { %v3933_v34 = vadd.f32 %v1700_v37, %v1303_v58  ;;  %v1305_v41 = vpop.f32.mrb[7].mxu0 }
 0x1a4   : > { %v1308_v44 = vpop.f32.mrb[8].mxu0 }
 0x1a5   : > { %v1310_v46 = vpop.f32.mrb[9].mxu0 }
 0x1a6   : > { %v1311_v49 = vpop.f32.mrb[10].mxu0 }
 0x1a7   : > { %v1313_v30 = vpop.f32.mrb[11].mxu0 }
 0x1a8   : > { %v1705_v10 = vpop.f32.mrb[8].mxu1 }
 0x1a9   : > { %v1706_v52 = vadd.f32 %v1705_v10, %v1308_v44  ;;  %v1707_v36 = vpop.f32.mrb[9].mxu1 }
 0x1aa   : > { %v1708_v53 = vpop.f32.mrb[10].mxu1 }
 0x1ab   : > { %v1709_v57 = vadd.f32 %v1708_v53, %v1311_v49  ;;  %v1710_v60 = vpop.f32.mrb[11].mxu1 }
 0x1ac   : > { %v1316_v50 = vpop.f32.mrb[12].mxu0 }
 0x1ad   : > { %v1318_v28 = vpop.f32.mrb[13].mxu0 }
 0x1ae   : > { %v1319_v55 = vpop.f32.mrb[14].mxu0 }
 0x1af   : > { %v1320_v19 = vpop.f32.mrb[15].mxu0 }
 0x1b0   : > { %v1713_v56 = vpop.f32.mrb[12].mxu1 }
 0x1b1   : > { %v3935_v54 = vadd.f32 %v1713_v56, %v1316_v50  ;;  %v1715_v22 = vpop.f32.mrb[13].mxu1 }
 0x1b2   : > { %v1716_v25 = vpop.f32.mrb[14].mxu1 }
 0x1b3   : > { %v1717_v62 = vpop.f32.mrb[15].mxu1 }
 0x1c0   : > { %v2091_v1 = vpop.f32.mrb[16].mxu0 }
 0x1c1   : > { %v2121_v63 = vadd.f32 %v2091_v1, %v1690_v4  ;;  %v2093_v17 = vpop.f32.mrb[17].mxu0 }
 0x1c2   : > { %v2107_v38 = vpop.f32.mrb[16].mxu1  ;;  %v2094_v47 = vpop.f32.mrb[18].mxu0 }
 0x1c3   : > { %v2125_v35 = vadd.f32 %v2107_v38, %v1706_v52  ;;  %v2109_v23 = vpop.f32.mrb[17].mxu1  ;;  %v2135_v48 = vadd.f32 %v3940_v12, %v2121_v63  ;;  %v2122_v24 = vadd.f32 %v2094_v47, %v1693_v15  ;;  %v2096_v61 = vpop.f32.mrb[19].mxu0 }
 0x1c4   : > { %v2110_v59 = vpop.f32.mrb[18].mxu1 }
 0x1c5   : > { %v2139_v7 = vadd.f32 %v3940_v12, %v2125_v35  ;;  %v2126_v21 = vadd.f32 %v2110_v59, %v1709_v57  ;;  %v2112_v11 = vpop.f32.mrb[19].mxu1  ;;  %v2142_v18 = vmax.f32 %v2135_v48, 0.0  ;;  %v2136_v27 = vadd.f32 %v3940_v12, %v2122_v24 }
 0x1c7   : > { %v2146_v42 = vmax.f32 %v2139_v7, 0.0  ;;  %v2156_v43 = vcombine.high %v2142_v18, %v2142_v18  ;;  %v2163_v40 = vrot.slane %v2142_v18, %v3265_v9  ;;  %v2143_v5 = vmax.f32 %v2136_v27, 0.0 }
 0x1c8   : > { %v3949_v29 = vpop.f32.mrb[20].mxu0  ;;  %v2140_v56 = vadd.f32 %v3940_v12, %v2126_v21 }
 0x1c9   : > { %v2352_v13 = vcombine.high %v2146_v42, %v2146_v42  ;;  %v3947_v20 = vrot.slane %v2146_v42, %v3265_v9  ;;  %v2170_v6 = vrot.slane %v2156_v43, %v3265_v9  ;;  %v2171_v39 = vcombine.high %v2163_v40, %v2163_v40  ;;  %v2101_v8 = vpop.f32.mrb[21].mxu0 }
 0x1ca   : > { %v3952_v31 = vpop.f32.mrb[20].mxu1  ;;  %v2205_v32 = vcombine.high %v2143_v5, %v2143_v5  ;;  %v3957_v15 = vpop.f32.mrb[22].mxu0  ;;  %v2179_v16 = vrot.slane %v2163_v40, %v3265_v9  ;;  %v2212_v44 = vrot.slane %v2143_v5, %v3265_v9  ;;  %v2147_v24 = vmax.f32 %v2140_v56, 0.0 }
 0x1cb   : > { %v2366_v0 = vrot.slane %v2352_v13, %v3265_v9  ;;  %v2367_v4 = vcombine.high %v3947_v20, %v3947_v20  ;;  %v2117_v3 = vpop.f32.mrb[21].mxu1  ;;  %v2172_v45 = vcombine.high %v2170_v6, %v2170_v6  ;;  %v2186_v14 = vrot.slane %v2170_v6, %v3265_v9  ;;  %v2104_v51 = vpop.f32.mrb[23].mxu0 }
 0x1cc   : > { %v2193_v37 = vrot.slane %v2171_v39, %v3265_v9  ;;  %v2118_v33 = vpop.f32.mrb[22].mxu1  ;;  %v2219_v60 = vrot.slane %v2205_v32, %v3265_v9  ;;  %v2220_v38 = vcombine.high %v2212_v44, %v2212_v44  ;;  %v2228_v48 = vrot.slane %v2212_v44, %v3265_v9  ;;  %v2817_v32 = vld [vmem:[%s3992_s19] sm:$0xf] }
 0x1cd   : > { %v2368_v26 = vcombine.high %v2366_v0, %v2366_v0  ;;  %v2382_v58 = vrot.slane %v2366_v0, %v3265_v9  ;;  %v3964_v41 = vrot.slane %v2367_v4, %v3265_v9  ;;  %v2119_v46 = vpop.f32.mrb[23].mxu1  ;;  %v2200_v49 = vrot.slane %v2172_v45, %v3265_v9 }
 0x1ce   : > { %v2202_v10 = vcombine.high %v2186_v14, %v2186_v14  ;;  %v2464_v30 = vcombine.low %v2179_v16, %v2193_v37  ;;  %v3075_v52 = vcombine.high %v2179_v16, %v2193_v37  ;;  %v2221_v23 = vcombine.high %v2219_v60, %v2219_v60 }
 0x1cf   : > { %v2396_v36 = vrot.slane %v2368_v26, %v3265_v9  ;;  %v2398_v53 = vcombine.high %v2382_v58, %v2382_v58  ;;  %v2399_v57 = vcombine.high %v3964_v41, %v3964_v41  ;;  %v2466_v50 = vcombine.low %v2186_v14, %v2200_v49 }
 0x1d0   : > { %v2473_v28 = vrot.slane %v2464_v30, %v3265_v9  ;;  %v2480_v55 = vrot.slane %v3075_v52, %v3265_v9  ;;  %v2494_v19 = vrot.slane %v2202_v10, %v3265_v9  ;;  %v2204_v63 = vcombine.high %v2200_v49, %v2200_v49 }
 0x1d1   : > { %v2704_v22 = vcombine.low %v2399_v57, %v2382_v58  ;;  %v2705_v25 = vcombine.low %v2396_v36, %v2398_v53  ;;  %v2487_v62 = vrot.slane %v2466_v50, %v3265_v9  ;;  %v2242_v7 = vrot.slane %v2220_v38, %v3265_v9 }
 0x1d2   : > { %v2495_v1 = vcombine.low %v2473_v28, %v2480_v55  ;;  %v3985_v21 = vrot.slane %v2221_v23, %v3265_v9  ;;  %v3996_v18 = vrot.slane %v2219_v60, %v3265_v9  ;;  %v2250_v27 = vcombine.high %v2228_v48, %v2228_v48  ;;  %v2820_v23 = vld [vmem:[%s3992_s19 + $0x4] sm:$0xf] }
 0x1d3   : > { %v2713_v17 = vrot.slane %v2704_v22, %v3265_v9  ;;  %v2720_v35 = vrot.slane %v2705_v25, %v3265_v9  ;;  %v2496_v47 = vcombine.low %v2487_v62, %v2494_v19  ;;  %v2512_v42 = vcombine.low %v2204_v63, %v2228_v48 }
 0x1d4   : > { %v2503_v59 = vrot.slane %v2495_v1, %v3265_v9  ;;  %v2252_v40 = vcombine.high %v2242_v7, %v2242_v7  ;;  %v2542_v5 = vrot.slane %v3985_v21, %v3265_v9  ;;  %v2400_v13 = vcombine.high %v2396_v36, %v2396_v36 }
 0x1d5   : > { %v3981_v61 = vcombine.low %v2713_v17, %v2720_v35  ;;  %v2510_v11 = vrot.slane %v2496_v47, %v3265_v9  ;;  %v2513_v39 = vcombine.low %v2242_v7, %v2250_v27  ;;  %v2521_v8 = vrot.slane %v2512_v42, %v3265_v9 }
 0x1d6   : > { %v2401_v0 = vcombine.high %v2147_v24, %v2147_v24  ;;  %v2514_v3 = vcombine.low %v2252_v40, %v3996_v18  ;;  %v3076_v45 = vcombine.high %v3996_v18, %v3985_v21  ;;  %v2408_v16 = vrot.slane %v2147_v24, %v3265_v9 }
 0x1d7   : > { %v2743_v43 = vrot.slane %v3981_v61, %v3265_v9  ;;  %v2511_v6 = vcombine.low %v2503_v59, %v2510_v11  ;;  %v2123_v14 = vadd.f32 %v3949_v29, %v3931_v2  ;;  %v2528_v33 = vrot.slane %v2513_v39, %v3265_v9 }
 0x1d8   : > { %v2415_v51 = vrot.slane %v2401_v0, %v3265_v9  ;;  %v2127_v26 = vadd.f32 %v3952_v31, %v3935_v54  ;;  %v2535_v58 = vrot.slane %v2514_v3, %v3265_v9  ;;  %v2416_v44 = vcombine.high %v2408_v16, %v2408_v16 }
 0x1d9   : > { %v2807_v37 = vpack.c.bf16 %v2511_v6, %v2511_v6  ;;  %v2424_v46 = vrot.slane %v2408_v16, %v3265_v9  ;;  %v2137_v49 = vadd.f32 %v3940_v12, %v2123_v14  ;;  %v2543_v30 = vcombine.low %v2521_v8, %v2528_v33  ;;  %v2832_v8 = vld [vmem:[%s3992_s19 + $0x14] sm:$0xf] }
 0x1da   : > { %v2417_v2 = vcombine.high %v2415_v51, %v2415_v51  ;;  %v2431_v29 = vrot.slane %v2415_v51, %v3265_v9  ;;  %v2544_v52 = vcombine.low %v2535_v58, %v2542_v5  ;;  %v2438_v36 = vrot.slane %v2416_v44, %v3265_v9 }
 0x1db   : > { %v2818_v10 = vsel %vm4005_vm7, %v2807_v37, %v2817_v32  ;;  %v2706_v53 = vcombine.low %v2400_v13, %v2424_v46  ;;  %v2144_v54 = vmax.f32 %v2137_v49, 0.0  ;;  %v2551_v31 = vrot.slane %v2543_v30, %v3265_v9 }
 0x1dc   : > { %2819 = vst [vmem:[%s3992_s19] sm:$0xf] %v2818_v10  ;;  %v2445_v57 = vrot.slane %v2417_v2, %v3265_v9  ;;  %v2141_v60 = vadd.f32 %v3940_v12, %v2127_v26  ;;  %v2124_v50 = vadd.f32 %v3957_v15, %v3933_v34  ;;  %v2558_v28 = vrot.slane %v2544_v52, %v3265_v9 }
 0x1dd   : > { %v2727_v55 = vrot.slane %v2706_v53, %v3265_v9  ;;  %v2734_v56 = vrot.slane %v2438_v36, %v3265_v9  ;;  %v3079_v19 = vcombine.high %v2424_v46, %v2438_v36  ;;  %v2254_v62 = vcombine.high %v2144_v54, %v2144_v54 }
 0x1de   : > { %v2753_v22 = vcombine.low %v2431_v29, %v2445_v57  ;;  %v3080_v25 = vcombine.high %v2431_v29, %v2445_v57  ;;  %v2261_v1 = vrot.slane %v2144_v54, %v3265_v9  ;;  %v2559_v63 = vcombine.low %v2551_v31, %v2558_v28 }
 0x1df   : > { %v2736_v38 = vcombine.low %v2727_v55, %v2734_v56  ;;  %v2761_v17 = vrot.slane %v3079_v19, %v3265_v9  ;;  %v2148_v35 = vmax.f32 %v2141_v60, 0.0  ;;  %v2268_v15 = vrot.slane %v2254_v62, %v3265_v9 }
 0x1e0   : > { %v2768_v34 = vrot.slane %v2753_v22, %v3265_v9  ;;  %v2269_v47 = vcombine.high %v2261_v1, %v2261_v1  ;;  %v2277_v48 = vrot.slane %v2261_v1, %v3265_v9  ;;  %v2808_v24 = vpack.c.bf16 %v2559_v63, %v2559_v63  ;;  %v2823_v1 = vld [vmem:[%s3992_s19 + $0x8] sm:$0xf] }
 0x1e1   : > { %v2750_v59 = vrot.slane %v2736_v38, %v3265_v9  ;;  %v2456_v61 = vrot.slane %v2148_v35, %v3265_v9  ;;  %v2775_v7 = vrot.slane %v3080_v25, %v3265_v9  ;;  %v2270_v11 = vcombine.high %v2268_v15, %v2268_v15 }
 0x1e2   : > { %v2783_v21 = vcombine.low %v2761_v17, %v2768_v34  ;;  %v2284_v18 = vrot.slane %v2268_v15, %v3265_v9  ;;  %v2291_v27 = vrot.slane %v2269_v47, %v3265_v9  ;;  %v2821_v42 = vsel %vm4005_vm7, %v2808_v24, %v2820_v23 }
 0x1e3   : > { %v2751_v40 = vcombine.low %v2743_v43, %v2750_v59  ;;  %v2463_v5 = vrot.slane %v2456_v61, %v3265_v9  ;;  %v2138_v13 = vadd.f32 %v3940_v12, %v2124_v50  ;;  %v2375_v6 = vrot.slane %v3947_v20, %v3265_v9  ;;  %2822 = vst [vmem:[%s3992_s19 + $0x4] sm:$0xf] %v2821_v42  ;;  %v2835_v50 = vld [vmem:[%s3992_s19 + $0x18] sm:$0xf] }
 0x1e4   : > { %v2569_v39 = vrot.slane %v3076_v45, %v3265_v9  ;;  %v2561_v0 = vcombine.low %v2277_v48, %v2291_v27  ;;  %v2298_v3 = vrot.slane %v2270_v11, %v3265_v9  ;;  %v3077_v16 = vcombine.high %v2277_v48, %v2291_v27 }
 0x1e5   : > { %v2812_v32 = vpack.c.bf16 %v2751_v40, %v2751_v40  ;;  %v2782_v14 = vrot.slane %v2463_v5, %v3265_v9  ;;  %v2791_v43 = vrot.slane %v2783_v21, %v3265_v9  ;;  %v2300_v37 = vcombine.high %v2284_v18, %v2284_v18 }
 0x1e6   : > { %v2576_v12 = vrot.slane %v2561_v0, %v3265_v9  ;;  %v2145_v33 = vmax.f32 %v2138_v13, 0.0  ;;  %v2583_v45 = vrot.slane %v3077_v16, %v3265_v9  ;;  %v2590_v51 = vrot.slane %v2284_v18, %v3265_v9  ;;  %v2826_v0 = vld [vmem:[%s3992_s19 + $0xc] sm:$0xf]  ;;  %v2829_v16 = vld [vmem:[%s3992_s19 + $0x10] sm:$0xf] }
 0x1e7   : > { %v2833_v20 = vsel %vm4005_vm7, %v2812_v32, %v2832_v8  ;;  %v2784_v26 = vcombine.low %v2775_v7, %v2782_v14  ;;  %v2658_v58 = vcombine.low %v2375_v6, %v3964_v41  ;;  %v2397_v10 = vcombine.high %v2375_v6, %v2375_v6 }
 0x1e8   : > { %2834 = vst [vmem:[%s3992_s19 + $0x14] sm:$0xf] %v2833_v20  ;;  %v2591_v44 = vcombine.low %v2569_v39, %v2576_v12  ;;  %v2303_v46 = vcombine.high %v2145_v33, %v2145_v33  ;;  %v2310_v49 = vrot.slane %v2145_v33, %v3265_v9  ;;  %v2592_v30 = vcombine.low %v2583_v45, %v2590_v51 }
 0x1e9   : > { %v2798_v2 = vrot.slane %v2784_v26, %v3265_v9  ;;  %v2302_v29 = vcombine.high %v2298_v3, %v2298_v3  ;;  %v2608_v31 = vcombine.low %v2298_v3, %v2300_v37  ;;  %v2679_v60 = vrot.slane %v2658_v58, %v3265_v9 }
 0x1ea   : > { %v2599_v52 = vrot.slane %v2591_v44, %v3265_v9  ;;  %v2317_v36 = vrot.slane %v2303_v46, %v3265_v9  ;;  %v2318_v53 = vcombine.high %v2310_v49, %v2310_v49  ;;  %v2326_v54 = vrot.slane %v2310_v49, %v3265_v9 }
 0x1eb   : > { %v2606_v41 = vrot.slane %v2592_v30, %v3265_v9  ;;  %v2799_v57 = vcombine.low %v2791_v43, %v2798_v2  ;;  %v2686_v19 = vrot.slane %v2397_v10, %v3265_v9  ;;  %v2617_v15 = vrot.slane %v2608_v31, %v3265_v9 }
 0x1ec   : > { %v2319_v28 = vcombine.high %v2317_v36, %v2317_v36  ;;  %v2340_v55 = vrot.slane %v2318_v53, %v3265_v9  ;;  %v2348_v56 = vcombine.high %v2326_v54, %v2326_v54  ;;  %v2609_v62 = vcombine.low %v2302_v29, %v2326_v54 }
 0x1ed   : > { %v2607_v22 = vcombine.low %v2599_v52, %v2606_v41  ;;  %v2813_v25 = vpack.c.bf16 %v2799_v57, %v2799_v57  ;;  %v2333_v63 = vrot.slane %v2317_v36, %v3265_v9  ;;  %v2688_v11 = vcombine.low %v2679_v60, %v2686_v19 }
 0x1ee   : > { %v2347_v38 = vrot.slane %v2319_v28, %v3265_v9  ;;  %v2350_v17 = vcombine.high %v2340_v55, %v2340_v55  ;;  %v2610_v35 = vcombine.low %v2340_v55, %v2348_v56  ;;  %v2624_v47 = vrot.slane %v2609_v62, %v3265_v9 }
 0x1ef   : > { %v2809_v23 = vpack.c.bf16 %v2607_v22, %v2607_v22  ;;  %v2836_v34 = vsel %vm4005_vm7, %v2813_v25, %v2835_v50  ;;  %v2702_v6 = vrot.slane %v2688_v11, %v3265_v9 }
 0x1f0   : > { %2837 = vst [vmem:[%s3992_s19 + $0x18] sm:$0xf] %v2836_v34  ;;  %v2631_v48 = vrot.slane %v2610_v35, %v3265_v9  ;;  %v2638_v24 = vrot.slane %v2350_v17, %v3265_v9  ;;  %v2656_v59 = vcombine.low %v2333_v63, %v2347_v38  ;;  %v3078_v61 = vcombine.high %v2333_v63, %v2347_v38 }
 0x1f1   : > { %v2824_v7 = vsel %vm4005_vm7, %v2809_v23, %v2823_v1  ;;  %v2639_v21 = vcombine.low %v2617_v15, %v2624_v47 }
 0x1f2   : > { %2825 = vst [vmem:[%s3992_s19 + $0x8] sm:$0xf] %v2824_v7  ;;  %v2640_v18 = vcombine.low %v2631_v48, %v2638_v24  ;;  %v2665_v27 = vrot.slane %v2656_v59, %v3265_v9  ;;  %v2672_v42 = vrot.slane %v3078_v61, %v3265_v9 }
 0x1f3   : > { %v2647_v40 = vrot.slane %v2639_v21, %v3265_v9 }
 0x1f4   : > { %v2654_v5 = vrot.slane %v2640_v18, %v3265_v9  ;;  %v2687_v13 = vcombine.low %v2665_v27, %v2672_v42 }
 0x1f6   : > { %v2655_v39 = vcombine.low %v2647_v40, %v2654_v5  ;;  %v2695_v8 = vrot.slane %v2687_v13, %v3265_v9 }
 0x1f8   : > { %v2703_v32 = vcombine.low %v2695_v8, %v2702_v6  ;;  %v2810_v3 = vpack.c.bf16 %v2655_v39, %v2655_v39 }
 0x1fa   : > { %v2811_v14 = vpack.c.bf16 %v2703_v32, %v2703_v32  ;;  %v2827_v43 = vsel %vm4005_vm7, %v2810_v3, %v2826_v0 }
 0x1fb   : > { %2828 = vst [vmem:[%s3992_s19 + $0xc] sm:$0xf] %v2827_v43 }
 0x1fc   : > { %v2830_v37 = vsel %vm4005_vm7, %v2811_v14, %v2829_v16 }
 0x1fd   : > { %2831 = vst [vmem:[%s3992_s19 + $0x10] sm:$0xf] %v2830_v37 }
 0x1fe PF: > { %s14_s17 = sadd.s32 1, %s3201_s17   ;;  %s4121_s15 = smov %s3197_s16 }
 0x1ff   : > { %p11_p5 = scmp.ge.s32.totalorder %s14_s17, 4   ;;  %s4122_s16 = smov %s4124_s18 }
 0x201   :  { %13 = sbr.rel (!%p11_p5) target bundleno = 2 (0x2), region = 71 }

// kernel: vggnet_forward.11
= control target key start
LH: loop header
LB: loop body
LE: loop exit
PB: predicated region body
PF: predicated region fallthrough
CT: control target
= control target key end

     0   :  { %s1055_s9 = smov 0   ;;  %s1057_s10 = smov 0   ;;  %s1203_s0 = inlined_call_operand.vmem [shape: bf16[2,7,7,32], index: 0, kind: input, shape index: {}]   ;;  %s1204_s1 = inlined_call_operand.vmem [shape: bf16[2,1,7,32], index: 1, kind: input, shape index: {}]   ;;  %s1205_s2 = inlined_call_operand.vmem [shape: bf16[2,3,3,32], index: 2, kind: output, shape index: {}]  }
   0x1   :  { %s1059_s11 = smov 0  }
   0x2 LB: > { %s24_s12 = sadd.s32 1, %s1031_s10  ;;  %p964_p0 = scmp.ge.s32.totalorder %s1035_s11, 1  ;;  %s1035_s11 = sphi %s1059_s11, %s12_s11   ;;  %s1031_s10 = sphi %s1057_s10, %s1207_s10   ;;  %s1027_s9 = sphi %s1055_s9, %s1206_s9  }
   0x3   : > { %p26_p1 = scmp.ge.s32.totalorder %s24_s12, 2  ;;  %p145_p2 = scmp.lt.s32.totalorder %s1035_s11, 3 }
   0x5   : > { %s1209_s12 = smov (%p26_p1, %s24_s12), 0  ;;  %p146_p3 = pnand %p964_p0, %p145_p2 }
   0x6   : > { %p180_p4 = scmp.lt.s32.totalorder (!%p146_p3), %s1027_s9, 1  ;;  %v223_v0 = vlaneseq (!%p146_p3)  ;;  %v1037_v1 = vmov (!%p146_p3), 1966171168   ;;  %vm278_vm0 = vcmask (!%p146_p3), 1042432   ;;  %v1038_v51 = vmov (!%p146_p3), 1935823168  }
   0x7   : > { %149 = sbr.rel (%p146_p3) target bundleno = 76 (0x4c), region = 28  ;;  %v221_v2 = vunpack.c.l.s4 (!%p146_p3), %v1037_v1  ;;  %v676_v52 = vunpack.c.l.s4 (!%p146_p3), %v1038_v51  ;;  %v1039_v57 = vmov (!%p146_p3), 1983009808   ;;  %vm485_vm1 = vcmask (!%p146_p3), 1041409  }
   0x8   : > { %v1075_v3 = vshrl.u32 (!%p146_p3), %v223_v0, 7  ;;  %v739_v58 = vunpack.c.l.s4 (!%p146_p3), %v1039_v57  ;;  %vm497_vm2 = vcmask (!%p146_p3), 1040384   ;;  %vm813_vm3 = vcmask (!%p146_p3), 1042434  }
   0x9   : > { %v222_v4 = vunpack.c.0.s8 (!%p146_p3), %v221_v2  ;;  %v677_v1 = vunpack.c.0.s8 (!%p146_p3), %v676_v52  ;;  %vm850_vm4 = vcmask (!%p146_p3), 254976   ;;  %vm851_vm5 = vsmask.f32 (!%p146_p3), 1280 }
   0xa   : > { %v252_v9 = vsub.s32 (!%p146_p3), 0, %v1075_v3  ;;  %vm852_vm6 = vmand (!%p146_p3), %vm850_vm4, %vm851_vm5 }
   0xb   : > { %v1083_v5 = vsub.s32 (!%p146_p3), %v222_v4, %v1075_v3 }
   0xe   : > { %s1211_s9 = smov (!%p180_p4, %s1027_s9), 1 }
   0xf   : > { %s984_s13 = smul.u32 28, %s1211_s9  ;;  %s966_s14 = sshll.u32 %s1211_s9, 2 }
  0x10   : > { %s194_s17 = scalar_lea.vmem %s1204_s1, %s966_s14  ;;  %s985_s21 = smul.u32 6, %s1211_s9 }
  0x11   : > { %v968_v6 = vld.sshfl [vmem:[%s194_s17] sm:$0x33 pattern:$0x75316420]  ;;  %s187_s20 = scalar_lea.vmem %s1203_s0, %s984_s13 }
  0x12   : > { %v219_v7 = vcombine.high %v968_v6, %v968_v6  ;;  %v226_v8 = vrot.slane %v968_v6, %v1083_v5  ;;  %v203_v14 = vld [vmem:[%s187_s20] sm:$0xf]  ;;  %v204_v19 = vld [vmem:[%s187_s20 + $0x4] sm:$0xf]  ;;  %v205_v23 = vld [vmem:[%s187_s20 + $0x8] sm:$0xf]  ;;  %s202_s24 = scalar_lea.vmem %s1205_s2, %s985_s21 }
  0x13   : > { %v207_v24 = vld [vmem:[%s187_s20 + $0x10] sm:$0xf]  ;;  %v206_v29 = vld [vmem:[%s187_s20 + $0xc] sm:$0xf]  ;;  %v208_v30 = vld [vmem:[%s187_s20 + $0x14] sm:$0xf] }
  0x14   : > { %v233_v10 = vrot.slane %v219_v7, %v1083_v5  ;;  %v234_v11 = vcombine.high %v226_v8, %v226_v8  ;;  %v237_v12 = vunpack.i.h.s16 %v226_v8  ;;  %v969_v13 = vpack.i.b16 %v226_v8, %v226_v8  ;;  %v209_v31 = vld [vmem:[%s187_s20 + $0x18] sm:$0xf] }
  0x16   : > { %v235_v15 = vcombine.high %v233_v10, %v233_v10  ;;  %v239_v16 = vunpack.i.h.s16 %v233_v10  ;;  %v241_v17 = vunpack.i.h.s16 %v234_v11  ;;  %v244_v18 = vpack.i.b16 %v237_v12, %v237_v12 }
  0x17   : > { %v970_v20 = vpack.i.b16 %v233_v10, %v233_v10  ;;  %v971_v21 = vpack.i.b16 %v234_v11, %v234_v11  ;;  %v253_v22 = vrot.slane %v969_v13, %v252_v9  ;;  %v740_v10 = vunpack.c.0.s8 %v739_v58 }
  0x18   : > { %v246_v25 = vpack.i.b16 %v239_v16, %v239_v16  ;;  %v248_v26 = vpack.i.b16 %v241_v17, %v241_v17  ;;  %v972_v27 = vpack.i.b16 %v235_v15, %v235_v15  ;;  %v257_v28 = vrot.slane %v244_v18, %v252_v9 }
  0x19   : > { %v261_v32 = vrot.slane %v970_v20, %v252_v9  ;;  %v269_v33 = vrot.slane %v971_v21, %v252_v9  ;;  %v281_v34 = vsel %vm278_vm0, %v203_v14, %v253_v22  ;;  %v1132_v17 = vsub.s32 %v677_v1, %v1075_v3 }
  0x1a   : > { %v265_v35 = vrot.slane %v246_v25, %v252_v9  ;;  %v273_v36 = vrot.slane %v248_v26, %v252_v9  ;;  %v277_v37 = vrot.slane %v972_v27, %v252_v9  ;;  %v285_v38 = vsel %vm278_vm0, %v204_v19, %v257_v28 }
  0x1b   : > { %v289_v39 = vsel %vm278_vm0, %v205_v23, %v261_v32  ;;  %v297_v40 = vsel %vm278_vm0, %v207_v24, %v269_v33  ;;  %v307_v41 = vmax.bf16 %v285_v38, %v281_v34  ;;  %v1140_v25 = vsub.s32 %v740_v10, %v1075_v3 }
  0x1c   : > { %v293_v42 = vsel %vm278_vm0, %v206_v29, %v265_v35  ;;  %v301_v43 = vsel %vm278_vm0, %v208_v30, %v273_v36  ;;  %v305_v44 = vsel %vm278_vm0, %v209_v31, %v277_v37 }
  0x1d   : > { %v308_v45 = vmax.bf16 %v293_v42, %v289_v39  ;;  %v309_v46 = vmax.bf16 %v301_v43, %v297_v40  ;;  %v1098_v47 = vmax.bf16 %v307_v41, %v289_v39 }
  0x1f   : > { %v1100_v48 = vmax.bf16 %v308_v45, %v297_v40  ;;  %v1102_v49 = vmax.bf16 %v309_v46, %v305_v44  ;;  %v322_v50 = vrot.slane %v1098_v47, %v1083_v5  ;;  %v494_v24 = vrot.slane %v1098_v47, 2 }
  0x21   : > { %v323_v53 = vcombine.high %v322_v50, %v322_v50  ;;  %v330_v54 = vrot.slane %v322_v50, %v1083_v5  ;;  %v345_v55 = vrot.slane %v1100_v48, %v1083_v5  ;;  %v368_v56 = vrot.slane %v1102_v49, %v1083_v5 }
  0x22   : > { %v495_v29 = vrot.slane %v1100_v48, 2  ;;  %v496_v32 = vrot.slane %v1102_v49, 2 }
  0x23   : > { %v337_v59 = vrot.slane %v323_v53, %v1083_v5  ;;  %v338_v60 = vcombine.high %v330_v54, %v330_v54  ;;  %v346_v61 = vcombine.high %v345_v55, %v345_v55  ;;  %v353_v62 = vrot.slane %v345_v55, %v1083_v5 }
  0x24   : > { %v369_v63 = vcombine.high %v368_v56, %v368_v56  ;;  %v1114_v0 = vrot.slane %v368_v56, %v1083_v5  ;;  %v508_v33 = vshrl.u32 %v330_v54, 16 }
  0x25   : > { %v360_v2 = vrot.slane %v346_v61, %v1083_v5  ;;  %v361_v4 = vcombine.high %v353_v62, %v353_v62  ;;  %v400_v6 = vrot.slane %v337_v59, %v1083_v5  ;;  %v414_v7 = vrot.slane %v338_v60, %v1083_v5 }
  0x26   : > { %v383_v8 = vrot.slane %v369_v63, %v1083_v5  ;;  %v1122_v9 = vcombine.high %v1114_v0, %v1114_v0  ;;  %v513_v36 = vshrl.u32 %v337_v59, 16  ;;  %v518_v37 = vshrl.u32 %v338_v60, 16 }
  0x27   : > { %v407_v11 = vrot.slane %v400_v6, %v1083_v5  ;;  %v421_v12 = vrot.slane %v414_v7, %v1083_v5  ;;  %v428_v13 = vrot.slane %v360_v2, %v1083_v5  ;;  %v442_v14 = vrot.slane %v361_v4, %v1083_v5 }
  0x28   : > { %v456_v15 = vrot.slane %v383_v8, %v1083_v5  ;;  %v470_v16 = vrot.slane %v1122_v9, %v1083_v5  ;;  %v523_v40 = vshrl.u32 %v353_v62, 16  ;;  %v528_v3 = vshrl.u32 %v360_v2, 16 }
  0x29   : > { %v435_v18 = vrot.slane %v428_v13, %v1083_v5  ;;  %v449_v19 = vrot.slane %v442_v14, %v1083_v5  ;;  %v478_v20 = vunpack.c.l.b16 %v407_v11  ;;  %v479_v21 = vunpack.c.l.b16 %v421_v12 }
  0x2a   : > { %v463_v22 = vrot.slane %v456_v15, %v1083_v5  ;;  %v477_v23 = vrot.slane %v470_v16, %v1083_v5  ;;  %v533_v42 = vshrl.u32 %v361_v4, 16  ;;  %v538_v43 = vshrl.u32 %v1114_v0, 16 }
  0x2b   : > { %v480_v26 = vunpack.c.l.b16 %v435_v18  ;;  %v481_v27 = vunpack.c.l.b16 %v449_v19  ;;  %v484_v28 = vrot.slane %v479_v21, 7  ;;  %v543_v44 = vshrl.u32 %v383_v8, 16 }
  0x2c   : > { %v482_v30 = vunpack.c.l.b16 %v463_v22  ;;  %v483_v31 = vunpack.c.l.b16 %v477_v23  ;;  %v548_v48 = vshrl.u32 %v1122_v9, 16  ;;  %v561_v50 = vmax.bf16 %v508_v33, %v330_v54 }
  0x2d   : > { %v486_v34 = vsel %vm485_vm1, %v484_v28, %v478_v20  ;;  %v487_v35 = vrot.slane %v481_v27, 7  ;;  %v562_v51 = vmax.bf16 %v513_v36, %v337_v59  ;;  %v563_v55 = vmax.bf16 %v518_v37, %v338_v60 }
  0x2e   : > { %v489_v38 = vrot.slane %v483_v31, 7  ;;  %v491_v39 = vpack.c.b16 %v486_v34, %v486_v34  ;;  %v564_v56 = vmax.bf16 %v523_v40, %v353_v62  ;;  %v565_v57 = vmax.bf16 %v528_v3, %v360_v2 }
  0x2f   : > { %v488_v41 = vsel %vm485_vm1, %v487_v35, %v480_v26  ;;  %v566_v6 = vmax.bf16 %v533_v42, %v361_v4  ;;  %v567_v7 = vmax.bf16 %v538_v43, %v1114_v0  ;;  %v568_v10 = vmax.bf16 %v543_v44, %v383_v8 }
  0x30   : > { %v490_v45 = vsel %vm485_vm1, %v489_v38, %v482_v30  ;;  %v492_v46 = vpack.c.b16 %v488_v41, %v488_v41  ;;  %v500_v47 = vsel %vm497_vm2, %v491_v39, %v494_v24  ;;  %v569_v2 = vmax.bf16 %v548_v48, %v1122_v9 }
  0x31   : > { %v493_v49 = vpack.c.b16 %v490_v45, %v490_v45  ;;  %v579_v52 = vrot.slane %v500_v47, %v1083_v5 }
  0x32   : > { %v503_v53 = vsel %vm497_vm2, %v492_v46, %v495_v29 }
  0x33   : > { %v506_v58 = vsel %vm497_vm2, %v493_v49, %v496_v32  ;;  %v580_v61 = vcombine.high %v579_v52, %v579_v52  ;;  %v587_v63 = vrot.slane %v579_v52, %v1083_v5  ;;  %v601_v1 = vrot.slane %v503_v53, %v1083_v5 }
  0x34   : > { %v623_v54 = vrot.slane %v506_v58, %v1083_v5 }
  0x35   : > { %v594_v59 = vrot.slane %v580_v61, %v1083_v5  ;;  %v602_v11 = vcombine.high %v601_v1, %v601_v1  ;;  %v609_v60 = vrot.slane %v601_v1, %v1083_v5  ;;  %v640_v62 = vshrl.u32 %v587_v63, 16 }
  0x36   : > { %v624_v12 = vcombine.high %v623_v54, %v623_v54  ;;  %v631_v13 = vrot.slane %v623_v54, %v1083_v5  ;;  %v657_v14 = vmax.bf16 %v587_v63, %v561_v50 }
  0x37   : > { %v616_v15 = vrot.slane %v602_v11, %v1083_v5  ;;  %v643_v4 = vshrl.u32 %v609_v60, 16  ;;  %v658_v16 = vmax.bf16 %v640_v62, %v562_v51  ;;  %v659_v0 = vmax.bf16 %v594_v59, %v563_v55  ;;  %v856_v11 = vld [vmem:[%s202_s24 + $0x2] sm:$0x3]  ;;  %v859_v62 = vld [vmem:[%s202_s24 + $0x4] sm:$0x3] }
  0x38   : > { %v638_v8 = vrot.slane %v624_v12, %v1083_v5  ;;  %v646_v18 = vshrl.u32 %v631_v13, 16  ;;  %v660_v19 = vmax.bf16 %v609_v60, %v564_v56  ;;  %v663_v20 = vmax.bf16 %v631_v13, %v567_v7 }
  0x39   : > { %v661_v21 = vmax.bf16 %v643_v4, %v565_v57  ;;  %v662_v22 = vmax.bf16 %v616_v15, %v566_v6  ;;  %v681_v23 = vrot.slane %v657_v14, %v1132_v17  ;;  %v688_v9 = vrot.slane %v658_v16, %v1132_v17 }
  0x3a   : > { %v664_v24 = vmax.bf16 %v646_v18, %v568_v10  ;;  %v665_v26 = vmax.bf16 %v638_v8, %v569_v2  ;;  %v695_v27 = vrot.slane %v659_v0, %v1132_v17  ;;  %v702_v28 = vrot.slane %v660_v19, %v1132_v17  ;;  %v853_v10 = vld [vmem:[%s202_s24] sm:$0x3] }
  0x3b   : > { %v709_v29 = vrot.slane %v661_v21, %v1132_v17  ;;  %v716_v5 = vrot.slane %v662_v22, %v1132_v17  ;;  %v723_v30 = vrot.slane %v663_v20, %v1132_v17  ;;  %v744_v31 = vrot.slane %v681_v23, %v1140_v25 }
  0x3c   : > { %v730_v32 = vrot.slane %v664_v24, %v1132_v17  ;;  %v737_v33 = vrot.slane %v665_v26, %v1132_v17  ;;  %v751_v34 = vrot.slane %v688_v9, %v1140_v25  ;;  %v758_v35 = vrot.slane %v695_v27, %v1140_v25 }
  0x3d   : > { %v765_v36 = vrot.slane %v702_v28, %v1140_v25  ;;  %v772_v37 = vrot.slane %v709_v29, %v1140_v25  ;;  %v779_v38 = vrot.slane %v716_v5, %v1140_v25  ;;  %v786_v39 = vrot.slane %v723_v30, %v1140_v25 }
  0x3e   : > { %v793_v40 = vrot.slane %v730_v32, %v1140_v25  ;;  %v800_v3 = vrot.slane %v737_v33, %v1140_v25  ;;  %v801_v41 = vunpack.c.l.b16 %v744_v31  ;;  %v802_v42 = vunpack.c.l.b16 %v751_v34 }
  0x3f   : > { %v803_v17 = vunpack.c.l.b16 %v758_v35  ;;  %v804_v43 = vunpack.c.l.b16 %v765_v36  ;;  %v805_v44 = vunpack.c.l.b16 %v772_v37  ;;  %v806_v45 = vunpack.c.l.b16 %v779_v38 }
  0x40   : > { %v807_v46 = vunpack.c.l.b16 %v786_v39  ;;  %v808_v47 = vunpack.c.l.b16 %v793_v40  ;;  %v809_v48 = vunpack.c.l.b16 %v800_v3  ;;  %v810_v49 = vrot.slane %v802_v42, 7 }
  0x41   : > { %v812_v50 = vrot.slane %v803_v17, 6  ;;  %v815_v51 = vrot.slane %v805_v44, 7  ;;  %v817_v52 = vrot.slane %v806_v45, 6 }
  0x42   : > { %v811_v53 = vsel %vm485_vm1, %v810_v49, %v801_v41  ;;  %v819_v55 = vrot.slane %v808_v47, 7  ;;  %v821_v56 = vrot.slane %v809_v48, 6 }
  0x43   : > { %v814_v57 = vsel %vm813_vm3, %v812_v50, %v811_v53  ;;  %v816_v58 = vsel %vm485_vm1, %v815_v51, %v804_v43 }
  0x44   : > { %v818_v61 = vsel %vm813_vm3, %v817_v52, %v816_v58  ;;  %v820_v63 = vsel %vm485_vm1, %v819_v55, %v807_v46  ;;  %v823_v1 = vpack.c.b16 %v814_v57, %v814_v57 }
  0x45   : > { %v822_v6 = vsel %vm813_vm3, %v821_v56, %v820_v63  ;;  %v824_v7 = vpack.c.b16 %v818_v61, %v818_v61 }
  0x46   : > { %v825_v54 = vpack.c.b16 %v822_v6, %v822_v6  ;;  %v832_v59 = vrot.slane %v823_v1, %v1140_v25 }
  0x47   : > { %v839_v60 = vrot.slane %v824_v7, %v1140_v25 }
  0x48   : > { %v846_v2 = vrot.slane %v825_v54, %v1140_v25  ;;  %v854_v12 = vsel %vm852_vm6, %v832_v59, %v853_v10 }
  0x49   : > { %855 = vst [vmem:[%s202_s24] sm:$0x3] %v854_v12  ;;  %v857_v13 = vsel %vm852_vm6, %v839_v60, %v856_v11 }
  0x4a   : > { %858 = vst [vmem:[%s202_s24 + $0x2] sm:$0x3] %v857_v13  ;;  %v860_v14 = vsel %vm852_vm6, %v846_v2, %v859_v62 }
  0x4b   : > { %861 = vst [vmem:[%s202_s24 + $0x4] sm:$0x3] %v860_v14 }
  0x4c PF: > { %s12_s11 = sadd.s32 1, %s1035_s11   ;;  %s1206_s9 = smov %s1031_s10 }
  0x4d   : > { %p9_p5 = scmp.ge.s32.totalorder %s12_s11, 4   ;;  %s1207_s10 = smov %s1209_s12 }
  0x4f   :  { %11 = sbr.rel (!%p9_p5) target bundleno = 2 (0x2), region = 61 }

// kernel: vggnet_forward.10
= control target key start
LH: loop header
LB: loop body
LE: loop exit
PB: predicated region body
PF: predicated region fallthrough
CT: control target
= control target key end

     0   :  { %s2639_s15 = smov 0   ;;  %s2641_s16 = smov 0   ;;  %s3249_s0 = inlined_call_operand.vmem [shape: bf16[2,7,7,32], index: 0, kind: input, shape index: {}]   ;;  %s3250_s1 = inlined_call_operand.vmem [shape: bf16[2,7,1,2,32], index: 1, kind: input, shape index: {}]   ;;  %s3251_s2 = inlined_call_operand.vmem [shape: bf16[288,32], index: 2, kind: input, shape index: {}]   ;;  %s3252_s3 = inlined_call_operand.vmem [shape: f32[1,32], index: 3, kind: input, shape index: {}]   ;;  %s3253_s4 = inlined_call_operand.vmem [shape: bf16[2,7,7,32], index: 4, kind: output, shape index: {}]  }
   0x1   :  { %s2643_s17 = smov 0  }
   0x2 LB: > { %s26_s18 = sadd.s32 1, %s2603_s16  ;;  %p2397_p0 = scmp.ge.s32.totalorder %s2607_s17, 1  ;;  %s2607_s17 = sphi %s2643_s17, %s14_s17   ;;  %s2603_s16 = sphi %s2641_s16, %s3259_s16   ;;  %s2599_s15 = sphi %s2639_s15, %s3258_s15  }
   0x3   : > { %p28_p1 = scmp.ge.s32.totalorder %s26_s18, 2  ;;  %p195_p2 = scmp.lt.s32.totalorder %s2607_s17, 3 }
   0x5   : > { %s3261_s18 = smov (%p28_p1, %s26_s18), 0  ;;  %p196_p3 = pnand %p2397_p0, %p195_p2 }
   0x6   : > { %v359_v0 = vlaneseq (!%p196_p3)  ;;  %v2609_v1 = vmov (!%p196_p3), 0   ;;  %p234_p4 = scmp.lt.s32.totalorder (!%p196_p3), %s2599_s15, 1  ;;  %v2610_v3 = vmov (!%p196_p3), 1966171168   ;;  %vm483_vm0 = vsmask.f32 (!%p196_p3), 256 }
   0x7   : > { %199 = sbr.rel (%p196_p3) target bundleno = 499 (0x1f3), region = 36  ;;  %v2657_v2 = vrot.slane (!%p196_p3), %v2609_v1, 1  ;;  %v357_v4 = vunpack.c.l.s4 (!%p196_p3), %v2610_v3  ;;  %s2611_s19 = smov (!%p196_p3), 32   ;;  %vm482_vm1 = vcmask (!%p196_p3), 1040384   ;;  %vm492_vm3 = vcmask (!%p196_p3), 1043456  }
   0x8   : > { %v360_v5 = vshrl.u32 (!%p196_p3), %v359_v0, 7  ;;  %s2612_s22 = smov (!%p196_p3), 64   ;;  %vm2694_vm2 = vmand (!%p196_p3), %vm482_vm1, %vm483_vm0  ;;  %s2613_s29 = smov (!%p196_p3), 96   ;;  %vm663_vm4 = vcmask (!%p196_p3), 261120   ;;  %vm678_vm5 = vcmask (!%p196_p3), 523264   ;;  %vm693_vm6 = vcmask (!%p196_p3), 785408  }
   0x9   : > { %557 = vrot.lane.b32.xlu0 (!%p196_p3), %v2657_v2, %s2611_s19  ;;  %v2555_v6 = vpack.i.bf16 (!%p196_p3), %v2609_v1, %v2657_v2  ;;  %v358_v7 = vunpack.c.0.s8 (!%p196_p3), %v357_v4  ;;  %v2567_v4 = vld [vmem:[%s3251_s2 + $0x40] sm:$0xff] (!%p196_p3)   ;;  %vm2271_vm7 = vcmask (!%p196_p3), 257024   ;;  %vm2272_vm8 = vsmask.f32 (!%p196_p3), 3328 }
   0xa   : > { %2450 = vmatprep.subr.bf16.mxu0 (!%p196_p3), %v2567_v4  ;;  %2508 = vmatprep.subr.bf16.mxu1 (!%p196_p3), %v2567_v4  ;;  %v2578_v4 = vld [vmem:[%s3251_s2 + $0x28] sm:$0xff] (!%p196_p3)   ;;  %vm3150_vm9 = vmand (!%p196_p3), %vm2271_vm7, %vm2272_vm8 }
   0xb   : > { %v2666_v8 = vsub.s32 (!%p196_p3), %v358_v7, %v360_v5 }
   0xd   : > { %2556 = vrot.lane.b32.xlu0 (!%p196_p3), %v2555_v6, %s2612_s22 }
   0xe   : > { %s3263_s15 = smov (!%p234_p4, %s2599_s15), 1 }
   0xf   : > { %s2524_s20 = smul.u32 28, %s3263_s15 }
  0x10   : > { %s2525_s21 = smul.u32 7, %s3263_s15 }
  0x11   : > { %s2674_s25 = scalar_lea.vmem %s3249_s0, %s2524_s20  ;;  %s3141_s5 = scalar_lea.vmem %s3253_s4, %s2524_s20 }
  0x12   : > { %s2679_s28 = scalar_lea.vmem %s3250_s1, %s2525_s21  ;;  %v2560_v9 = vld [vmem:[%s2674_s25 + $0x8] ss:$0 sps:$4 sm:$0xff]   ;;  %v2561_v12 = vld [vmem:[%s2674_s25] ss:$0 sps:$4 sm:$0xff]   ;;  %v2562_v20 = vld [vmem:[%s2674_s25 + $0x4] ss:$0 sps:$4 sm:$0xff]  }
  0x13   : > { %v267_v10 = vld [vmem:[%s2679_s28 + $0x2] sm:$0x1]  ;;  %v265_v11 = vld [vmem:[%s2679_s28] sm:$0x1]  ;;  %v308_v13 = vshrl.u32 %v2560_v9, 16  ;;  %v311_v14 = vshll.u32 %v2560_v9, 16 }
  0x14   : > { %v390_v15 = vrot.slane %v267_v10, %v2666_v8  ;;  %v362_v16 = vrot.slane %v265_v11, %v2666_v8  ;;  %v266_v17 = vld [vmem:[%s2679_s28 + $0x1] sm:$0x1]  ;;  %v294_v18 = vshrl.u32 %v2561_v12, 16  ;;  %v297_v19 = vshll.u32 %v2561_v12, 16  ;;  %v2717_v46 = vld [vmem:[%s2679_s28 + $0x3] sm:$0x1] }
  0x15   : > { %v376_v21 = vrot.slane %v266_v17, %v2666_v8  ;;  %v310_v22 = vrot.slane %v308_v13, 7  ;;  %v301_v27 = vshrl.u32 %v2562_v20, 16  ;;  %v304_v28 = vshll.u32 %v2562_v20, 16  ;;  %v2563_v48 = vld [vmem:[%s2674_s25 + $0xc] ss:$0 sps:$4 sm:$0xff]   ;;  %v2568_v9 = vld [vmem:[%s3251_s2] sm:$0xff]  }
  0x16   : > { %v397_v23 = vrot.slane %v390_v15, %v2666_v8  ;;  %v369_v24 = vrot.slane %v362_v16, %v2666_v8  ;;  %v296_v26 = vrot.slane %v294_v18, 7  ;;  %v2724_v49 = vld [vmem:[%s2679_s28 + $0x5] sm:$0x1]  ;;  %v2564_v51 = vld [vmem:[%s2674_s25 + $0x14] ss:$0 sps:$4 sm:$0xff]   ;;  %v404_v56 = vrot.slane %v2717_v46, %v2666_v8  ;;  %2451 = vmatpush3.bf16.msra.mxu0 %v2568_v9  ;;  %2516 = vmatpush3.bf16.msra.mxu1 %v2568_v9 }
  0x17   : > { %v383_v29 = vrot.slane %v376_v21, %v2666_v8  ;;  %v313_v30 = vor.u32 %v311_v14, %v310_v22  ;;  %v303_v34 = vrot.slane %v301_v27, 7  ;;  %v432_v57 = vrot.slane %v2724_v49, %v2666_v8  ;;  %v2766_v14 = vld [vmem:[%s2679_s28 + $0x6] sm:$0x1]  ;;  %v2566_v20 = vld [vmem:[%s2674_s25 + $0x18] ss:$0 sps:$4 sm:$0xff]   ;;  %v2570_v21 = vld [vmem:[%s3251_s2 + $0x8] sm:$0xff]  }
  0x18   : > { %v463_v31 = vshrl.u32 %v397_v23, 16  ;;  %v455_v32 = vshrl.u32 %v369_v24, 16  ;;  %v299_v33 = vor.u32 %v297_v19, %v296_v26  ;;  %v315_v58 = vshrl.u32 %v2563_v48, 16  ;;  %v2782_v23 = vld [vmem:[%s2679_s28 + $0x4] sm:$0x1] }
  0x19   : > { %v459_v35 = vshrl.u32 %v383_v29, 16  ;;  %v487_v37 = vsel %vm2694_vm2, %v267_v10, %v313_v30  ;;  %v306_v40 = vor.u32 %v304_v28, %v303_v34  ;;  %v329_v59 = vshrl.u32 %v2564_v51, 16  ;;  %v2565_v24 = vld [vmem:[%s2674_s25 + $0x10] ss:$0 sps:$4 sm:$0xff]  }
  0x1a   : > { %v465_v36 = vrot.slane %v463_v31, 4  ;;  %v457_v38 = vrot.slane %v455_v32, 4  ;;  %v485_v39 = vsel %vm2694_vm2, %v265_v11, %v299_v33  ;;  %v318_v0 = vshll.u32 %v2563_v48, 16  ;;  %v2571_v29 = vld [vmem:[%s3251_s2 + $0x50] sm:$0xff]  }
  0x1b   : > { %v461_v41 = vrot.slane %v459_v35, 4  ;;  %v486_v44 = vsel %vm2694_vm2, %v266_v17, %v306_v40  ;;  %v411_v1 = vrot.slane %v404_v56, %v2666_v8  ;;  %v439_v3 = vrot.slane %v432_v57, %v2666_v8  ;;  %v2569_v17 = vld [vmem:[%s3251_s2 + $0x48] sm:$0xff]   ;;  %v2572_v33 = vld [vmem:[%s3251_s2 + $0x10] sm:$0xff]   ;;  %v2576_v56 = vld [vmem:[%s3251_s2 + $0x20] sm:$0xff]  }
  0x1c   : > { %v2704_v42 = vsel %vm492_vm3, %v487_v37, %v465_v36  ;;  %v2707_v43 = vsel %vm492_vm3, %v485_v39, %v457_v38  ;;  %v317_v5 = vrot.slane %v315_v58, 7  ;;  %v331_v6 = vrot.slane %v329_v59, 7  ;;  %2452 = vmatprep.subr.bf16.mxu0 %v2569_v17  ;;  %2509 = vmatprep.subr.bf16.mxu1 %v2569_v17  ;;  %v2573_v39 = vld [vmem:[%s3251_s2 + $0x58] sm:$0xff]  }
  0x1d   : > { %637 = vrot.lane.b32.xlu1 %v2704_v42, %s2612_s22  ;;  %600 = vrot.lane.b32.xlu0 %v2707_v43, %s2613_s29  ;;  %v523_v45 = vshll.u32 %v2707_v43, 16  ;;  %v2720_v47 = vsel %vm492_vm3, %v486_v44, %v461_v41  ;;  %v579_v52 = vrot.slane %v2707_v43, 1  ;;  %v521_v53 = vshrl.u32 %v2707_v43, 16  ;;  %v2574_v44 = vld [vmem:[%s3251_s2 + $0x18] sm:$0xff]  }
  0x1e   : > { %v2727_v50 = vrot.slane %v2720_v47, 1  ;;  %v529_v55 = vshll.u32 %v2720_v47, 16  ;;  %v535_v60 = vshll.u32 %v2704_v42, 16  ;;  %v527_v62 = vshrl.u32 %v2720_v47, 16  ;;  %2453 = vmatpush3.bf16.msra.mxu0 %v2570_v21  ;;  %2517 = vmatpush3.bf16.msra.mxu1 %v2570_v21  ;;  %v2581_v17 = vld [vmem:[%s3251_s2 + $0x78] sm:$0xff]  }
  0x1f   : > { %v525_v54 = vrot.slane %v523_v45, 1  ;;  %v332_v7 = vshll.u32 %v2564_v51, 16  ;;  %v2757_v10 = vrot.slane %v2704_v42, 1  ;;  %v533_v12 = vshrl.u32 %v2704_v42, 16  ;;  %2454 = vmatprep.subr.bf16.mxu0 %v2571_v29  ;;  %2510 = vmatprep.subr.bf16.mxu1 %v2571_v29 }
  0x20   : > { %v531_v63 = vrot.slane %v529_v55, 1  ;;  %v537_v13 = vrot.slane %v535_v60, 1  ;;  %v467_v15 = vshrl.u32 %v411_v1, 16  ;;  %v475_v16 = vshrl.u32 %v439_v3, 16  ;;  %v2577_v1 = vld [vmem:[%s3251_s2 + $0x68] sm:$0xff]  }
  0x21   : > { %602 = vrot.lane.b32.xlu1 %v2720_v47, %s2613_s29  ;;  %623 = vrot.lane.b32.xlu0 %v2727_v50, %s2611_s19  ;;  %v2745_v61 = vor.u32 %v525_v54, %v521_v53  ;;  %v320_v18 = vor.u32 %v318_v0, %v317_v5  ;;  %v334_v19 = vor.u32 %v332_v7, %v331_v6  ;;  %v336_v32 = vshrl.u32 %v2566_v20, 16  ;;  %v2575_v54 = vld [vmem:[%s3251_s2 + $0x60] sm:$0xff]  }
  0x22   : > { %v2762_v11 = vor.u32 %v531_v63, %v527_v62  ;;  %v2779_v22 = vor.u32 %v537_v13, %v533_v12  ;;  %v469_v26 = vrot.slane %v467_v15, 4  ;;  %v477_v27 = vrot.slane %v475_v16, 4  ;;  %2455 = vmatpush3.bf16.msra.mxu0 %v2572_v33  ;;  %2518 = vmatpush3.bf16.msra.mxu1 %v2572_v33  ;;  %v2579_v13 = vld [vmem:[%s3251_s2 + $0x70] sm:$0xff]  }
  0x23   : > { %v446_v28 = vrot.slane %v2766_v14, %v2666_v8  ;;  %v488_v30 = vsel %vm2694_vm2, %v2717_v46, %v320_v18  ;;  %v490_v31 = vsel %vm2694_vm2, %v2724_v49, %v334_v19  ;;  %v418_v34 = vrot.slane %v2782_v23, %v2666_v8  ;;  %2456 = vmatprep.subr.bf16.mxu0 %v2573_v39  ;;  %v2580_v15 = vld [vmem:[%s3251_s2 + $0x30] sm:$0xff]   ;;  %v2582_v18 = vld [vmem:[%s3251_s2 + $0x38] sm:$0xff]  }
  0x24   : > { %v322_v35 = vshrl.u32 %v2565_v24, 16  ;;  %v2806_v36 = vsel %vm492_vm3, %v488_v30, %v469_v26  ;;  %v2809_v37 = vsel %vm492_vm3, %v490_v31, %v477_v27  ;;  %v338_v40 = vrot.slane %v336_v32, 7  ;;  %2511 = vmatprep.subr.bf16.mxu1 %v2573_v39  ;;  %v2922_v27 = vld [vmem:[%s3251_s2 + $0x80] sm:$0xff]  }
  0x25   : > { %635 = vrot.lane.b32.xlu1 %v2720_v47, %s2612_s22  ;;  %621 = vrot.lane.b32.xlu0 %v579_v52, %s2611_s19  ;;  %v453_v38 = vrot.slane %v446_v28, %v2666_v8  ;;  %v339_v41 = vshll.u32 %v2566_v20, 16  ;;  %v325_v45 = vshll.u32 %v2565_v24, 16  ;;  %v425_v46 = vrot.slane %v418_v34, %v2666_v8 }
  0x26   : > { %v2824_v48 = vrot.slane %v2806_v36, 1  ;;  %v541_v49 = vshll.u32 %v2806_v36, 16  ;;  %v553_v51 = vshll.u32 %v2809_v37, 16  ;;  %2457 = vmatpush3.bf16.msra.mxu0 %v2574_v44  ;;  %2519 = vmatpush3.bf16.msra.mxu1 %v2574_v44  ;;  %v539_v57 = vshrl.u32 %v2806_v36, 16 }
  0x27   : > { %v479_v53 = vshrl.u32 %v453_v38, 16  ;;  %v341_v55 = vor.u32 %v339_v41, %v338_v40  ;;  %v471_v58 = vshrl.u32 %v425_v46, 16  ;;  %2458 = vmatprep.subr.bf16.mxu0 %v2575_v54  ;;  %2512 = vmatprep.subr.bf16.mxu1 %v2575_v54  ;;  %v551_v60 = vshrl.u32 %v2809_v37, 16 }
  0x28   : > { %v543_v59 = vrot.slane %v541_v49, 1  ;;  %v555_v62 = vrot.slane %v553_v51, 1  ;;  %v2890_v19 = vrot.slane %v2809_v37, 1 }
  0x29   : > { %587 = vrot.lane.b32.xlu1 %v579_v52, %s2612_s22  ;;  %559 = vrot.lane.b32.xlu0 %v2745_v61, %s2611_s19  ;;  %v324_v52 = vrot.slane %v322_v35, 7  ;;  %v481_v0 = vrot.slane %v479_v53, 4  ;;  %v491_v3 = vsel %vm2694_vm2, %v2766_v14, %v341_v55  ;;  %v473_v5 = vrot.slane %v471_v58, 4 }
  0x2a   : > { %2459 = vmatpush3.bf16.msra.mxu0 %v2576_v56  ;;  %2520 = vmatpush3.bf16.msra.mxu1 %v2576_v56  ;;  %v2853_v6 = vor.u32 %v543_v59, %v539_v57  ;;  %v2855_v7 = vor.u32 %v555_v62, %v551_v60 }
  0x2b   : > { %v327_v63 = vor.u32 %v325_v45, %v324_v52  ;;  %2460 = vmatprep.subr.bf16.mxu0 %v2577_v1  ;;  %2513 = vmatprep.subr.bf16.mxu1 %v2577_v1  ;;  %v2861_v12 = vsel %vm492_vm3, %v491_v3, %v481_v0 }
  0x2c   : > { %v620_v25 = vrot.slane %v2861_v12, 1  ;;  %v616_v26 = vshll.u32 %v2861_v12, 16  ;;  %v614_v28 = vshrl.u32 %v2861_v12, 16 }
  0x2d   : > { %625 = vrot.lane.b32.xlu1 %v2757_v10, %s2611_s19  ;;  %561 = vrot.lane.b32.xlu0 %v2762_v11, %s2611_s19  ;;  %v489_v9 = vsel %vm2694_vm2, %v2782_v23, %v327_v63 }
  0x2e   : > { %2461 = vmatpush3.bf16.msra.mxu0 %v2578_v4  ;;  %2521 = vmatpush3.bf16.msra.mxu1 %v2578_v4  ;;  %v2867_v14 = vsel %vm492_vm3, %v489_v9, %v473_v5  ;;  %v618_v29 = vrot.slane %v616_v26, 1  ;;  %v785_v5 = vrot.slane %v2727_v50, %v2666_v8 }
  0x2f   : > { %v547_v16 = vshll.u32 %v2867_v14, 16  ;;  %2462 = vmatprep.subr.bf16.mxu0 %v2579_v13  ;;  %2514 = vmatprep.subr.bf16.mxu1 %v2579_v13  ;;  %v545_v20 = vshrl.u32 %v2867_v14, 16  ;;  %v2904_v24 = vrot.slane %v2867_v14, 1 }
  0x30   : > { %v2934_v30 = vor.u32 %v618_v29, %v614_v28 }
  0x31   : > { %651 = vrot.lane.b32.xlu1 %v2779_v22, %s2613_s29  ;;  %589 = vrot.lane.b32.xlu0 %v2727_v50, %s2612_s22  ;;  %v549_v21 = vrot.slane %v547_v16, 1 }
  0x32   : > { %2463 = vmatpush3.bf16.msra.mxu0 %v2580_v15  ;;  %2522 = vmatpush3.bf16.msra.mxu1 %v2580_v15 }
  0x33   : > { %2464 = vmatprep.subr.bf16.mxu0 %v2581_v17  ;;  %2515 = vmatprep.subr.bf16.mxu1 %v2581_v17  ;;  %v2897_v23 = vor.u32 %v549_v21, %v545_v20 }
  0x35   : > { %649 = vrot.lane.b32.xlu1 %v2762_v11, %s2613_s29  ;;  %563 = vrot.lane.b32.xlu0 %v2779_v22, %s2611_s19 }
  0x36   : > { %2465 = vmatpush3.bf16.msra.mxu0 %v2582_v18  ;;  %2523 = vmatpush3.bf16.msra.mxu1 %v2582_v18 }
  0x37   : > { %2496 = vmatprep.subr.bf16.mxu1 %v2922_v27 }
  0x39   : > { %639 = vrot.lane.b32.xlu1 %v2806_v36, %s2612_s22  ;;  %627 = vrot.lane.b32.xlu0 %v2824_v48, %s2611_s19 }
  0x3d   : > { %604 = vrot.lane.b32.xlu1 %v2704_v42, %s2613_s29  ;;  %591 = vrot.lane.b32.xlu0 %v2757_v10, %s2612_s22 }
  0x41   : > { %653 = vrot.lane.b32.xlu1 %v2853_v6, %s2613_s29  ;;  %569 = vrot.lane.b32.xlu0 %v2855_v7, %s2611_s19 }
  0x45   : > { %641 = vrot.lane.b32.xlu1 %v2867_v14, %s2612_s22  ;;  %633 = vrot.lane.b32.xlu0 %v620_v25, %s2611_s19 }
  0x49   : > { %606 = vrot.lane.b32.xlu1 %v2806_v36, %s2613_s29  ;;  %597 = vrot.lane.b32.xlu0 %v2890_v19, %s2612_s22 }
  0x4d   : > { %655 = vrot.lane.b32.xlu1 %v2897_v23, %s2613_s29  ;;  %661 = vrot.lane.b32.xlu0 %v2657_v2, %s2613_s29 }
  0x51   : > { %612 = vrot.lane.b32.xlu1 %v2861_v12, %s2613_s29  ;;  %629 = vrot.lane.b32.xlu0 %v2904_v24, %s2611_s19 }
  0x55   : > { %565 = vrot.lane.b32.xlu1 %v2853_v6, %s2611_s19  ;;  %643 = vrot.lane.b32.xlu0 %v2809_v37, %s2612_s22 }
  0x59   : > { %593 = vrot.lane.b32.xlu1 %v2824_v48, %s2612_s22  ;;  %608 = vrot.lane.b32.xlu0 %v2867_v14, %s2613_s29 }
  0x5d   : > { %567 = vrot.lane.b32.xlu1 %v2897_v23, %s2611_s19  ;;  %657 = vrot.lane.b32.xlu0 %v2855_v7, %s2613_s29 }
  0x61   : > { %631 = vrot.lane.b32.xlu1 %v2890_v19, %s2611_s19  ;;  %645 = vrot.lane.b32.xlu0 %v2861_v12, %s2612_s22 }
  0x65   : > { %595 = vrot.lane.b32.xlu1 %v2904_v24, %s2612_s22  ;;  %659 = vrot.lane.b32.xlu0 %v2934_v30, %s2613_s29 }
  0x69   : > { %610 = vrot.lane.b32.xlu1 %v2809_v37, %s2613_s29 }
  0x7b   : > { %v558_v31 = vpop.permute.xlu0 %557 }
  0x7c   : > { %v665_v57 = vsel %vm663_vm4, 0, %v558_v31 }
  0x7f   : > { %v2942_v32 = vpop.permute.xlu0 %2556 }
  0x80   : > { %v2558_v53 = vunpack.i.l.bf16 %v2942_v32 }
  0x82   : > { %v680_v62 = vsel %vm678_vm5, %v665_v57, %v2558_v53 }
  0x8f   : > { %v638_v33 = vpop.permute.xlu1 %637  ;;  %v601_v34 = vpop.permute.xlu0 %600 }
  0x90   : > { %v695_v4 = vsel %vm693_vm6, %v680_v62, %v601_v34 }
  0x93   : > { %v603_v35 = vpop.permute.xlu1 %602  ;;  %v624_v38 = vpop.permute.xlu0 %623 }
  0x94   : > { %v713_v51 = vsel %vm663_vm4, %v2762_v11, %v624_v38  ;;  %v818_v11 = vrot.slane %v2757_v10, %v2666_v8 }
  0x95   : > { %v732_v54 = vsel %vm678_vm5, %v713_v51, %v638_v33 }
  0x97   : > { %v636_v39 = vpop.permute.xlu1 %635  ;;  %v622_v40 = vpop.permute.xlu0 %621 }
  0x9b   : > { %v588_v41 = vpop.permute.xlu1 %587  ;;  %v560_v44 = vpop.permute.xlu0 %559 }
  0x9c   : > { %v667_v45 = vsel %vm663_vm4, %v2707_v43, %v560_v44  ;;  %v710_v43 = vsel %vm663_vm4, %v2745_v61, %v622_v40 }
  0x9d   : > { %v682_v52 = vsel %vm678_vm5, %v667_v45, %v588_v41  ;;  %v730_v1 = vsel %vm678_vm5, %v710_v43, %v636_v39 }
  0x9e   : > { %v697_v58 = vsel %vm693_vm6, %v682_v52, %v603_v35 }
  0x9f   : > { %v626_v46 = vpop.permute.xlu1 %625  ;;  %v562_v49 = vpop.permute.xlu0 %561 }
  0xa0   : > { %v669_v26 = vsel %vm663_vm4, %v2720_v47, %v562_v49  ;;  %v716_v34 = vsel %vm663_vm4, %v2779_v22, %v626_v46  ;;  %v851_v22 = vrot.slane %v2824_v48, %v2666_v8 }
  0xa3   : > { %v652_v55 = vpop.permute.xlu1 %651  ;;  %v590_v56 = vpop.permute.xlu0 %589 }
  0xa4   : > { %v746_v59 = vsel %vm693_vm6, %v732_v54, %v652_v55  ;;  %v684_v38 = vsel %vm678_vm5, %v669_v26, %v590_v56 }
  0xa5   : > { %v804_v60 = vcombine.low %v697_v58, %v746_v59 }
  0xa7   : > { %v811_v63 = vrot.slane %v804_v60, %v2666_v8  ;;  %v650_v0 = vpop.permute.xlu1 %649  ;;  %v564_v3 = vpop.permute.xlu0 %563 }
  0xa8   : > { %v744_v61 = vsel %vm693_vm6, %v730_v1, %v650_v0 }
  0xa9   : > { %v771_v9 = vcombine.low %v695_v4, %v744_v61  ;;  %v819_v13 = vcombine.low %v811_v63, %v818_v11  ;;  %v820_v15 = vcombine.high %v811_v63, %v818_v11 }
  0xab   : > { %v778_v10 = vrot.slane %v771_v9, %v2666_v8  ;;  %v640_v16 = vpop.permute.xlu1 %639  ;;  %v628_v17 = vpop.permute.xlu0 %627  ;;  %v827_v21 = vrot.slane %v819_v13, %v2666_v8  ;;  %v834_v28 = vrot.slane %v820_v15, %v2666_v8  ;;  %v671_v15 = vsel %vm663_vm4, %v2704_v42, %v564_v3 }
  0xac   : > { %v734_v39 = vsel %vm678_vm5, %v716_v34, %v640_v16  ;;  %v719_v16 = vsel %vm663_vm4, %v2853_v6, %v628_v17  ;;  %v884_v17 = vrot.slane %v2904_v24, %v2666_v8 }
  0xad   : > { %v786_v18 = vcombine.low %v778_v10, %v785_v5  ;;  %v787_v20 = vcombine.high %v778_v10, %v785_v5  ;;  %v835_v40 = vcombine.high %v827_v21, %v827_v21  ;;  %v1010_v41 = vunpack.i.h.s16 %v827_v21 }
  0xae   : > { %v1012_v49 = vunpack.i.h.s16 %v834_v28  ;;  %v836_v0 = vcombine.high %v834_v28, %v834_v28 }
  0xaf   : > { %v794_v29 = vrot.slane %v786_v18, %v2666_v8  ;;  %v801_v50 = vrot.slane %v787_v20, %v2666_v8  ;;  %v605_v31 = vpop.permute.xlu1 %604  ;;  %v592_v33 = vpop.permute.xlu0 %591  ;;  %v1014_v56 = vunpack.i.h.s16 %v835_v40  ;;  %v2409_v57 = vpack.i.b16 %v834_v28, %v1010_v41 }
  0xb0   : > { %v699_v53 = vsel %vm693_vm6, %v684_v38, %v605_v31  ;;  %v2410_v60 = vpack.i.b16 %v835_v40, %v1012_v49  ;;  %v686_v18 = vsel %vm678_vm5, %v671_v15, %v592_v33  ;;  %v2559_v31 = vunpack.i.h.bf16 %v2942_v32 }
  0xb1   : > { %v803_v35 = vcombine.high %v801_v50, %v801_v50  ;;  %v802_v45 = vcombine.high %v794_v29, %v794_v29  ;;  %v1119_v52 = vcombine.low %v794_v29, %v801_v50  ;;  %v2411_v9 = vpack.i.b16 %v836_v0, %v1014_v56 }
  0xb2   : > { %v1121_v13 = vcombine.low %v2409_v57, %v2410_v60 }
  0xb3   : > { %v654_v44 = vpop.permute.xlu1 %653  ;;  %v570_v47 = vpop.permute.xlu0 %569  ;;  %v2408_v51 = vpack.i.b16 %v827_v21, %v803_v35  ;;  %v1129_v11 = vrot.slane %v1119_v52, %v2666_v8 }
  0xb4   : > { %v748_v54 = vsel %vm693_vm6, %v734_v39, %v654_v44  ;;  %v1143_v29 = vrot.slane %v1121_v13, %v2666_v8 }
  0xb5   : > { %v837_v46 = vcombine.low %v699_v53, %v748_v54  ;;  %v1120_v55 = vcombine.low %v802_v45, %v2408_v51 }
  0xb7   : > { %v844_v43 = vrot.slane %v837_v46, %v2666_v8  ;;  %v642_v58 = vpop.permute.xlu1 %641  ;;  %v634_v59 = vpop.permute.xlu0 %633  ;;  %v1136_v62 = vrot.slane %v1120_v55, %v2666_v8  ;;  %v3017_v46 = vrot.slane %v2657_v2, %v2666_v8 }
  0xb8   : > { %v736_v20 = vsel %vm678_vm5, %v719_v16, %v642_v58  ;;  %v728_v21 = vsel %vm663_vm4, %v2934_v30, %v634_v59  ;;  %v677_v30 = vsel %vm663_vm4, %v2809_v37, %v570_v47 }
  0xb9   : > { %v852_v63 = vcombine.low %v844_v43, %v851_v22  ;;  %v1152_v1 = vcombine.high %v1129_v11, %v1136_v62  ;;  %v1151_v4 = vcombine.low %v1129_v11, %v1136_v62  ;;  %v853_v42 = vcombine.high %v844_v43, %v851_v22 }
  0xba   : > { %v742_v38 = vsel %vm678_vm5, %v728_v21, %v2559_v31 }
  0xbb   : > { %v860_v61 = vrot.slane %v852_v63, %v2666_v8  ;;  %v607_v48 = vpop.permute.xlu1 %606  ;;  %v598_v5 = vpop.permute.xlu0 %597  ;;  %v1168_v39 = vrot.slane %v1152_v1, %v2666_v8  ;;  %v867_v49 = vrot.slane %v853_v42, %v2666_v8  ;;  %v3013_v47 = vrot.slane %v1151_v4, %v2666_v8 }
  0xbc   : > { %v701_v3 = vsel %vm693_vm6, %v686_v18, %v607_v48  ;;  %v692_v32 = vsel %vm678_vm5, %v677_v30, %v598_v5  ;;  %v917_v18 = vrot.slane %v2890_v19, %v2666_v8 }
  0xbd   : > { %v1122_v10 = vcombine.low %v2411_v9, %v860_v61  ;;  %v868_v57 = vcombine.high %v860_v61, %v860_v61  ;;  %v869_v11 = vcombine.high %v867_v49, %v867_v49 }
  0xbf   : > { %v656_v26 = vpop.permute.xlu1 %655  ;;  %v662_v28 = vpop.permute.xlu0 %661  ;;  %v1150_v50 = vrot.slane %v1122_v10, %v2666_v8  ;;  %v1186_v1 = vcombine.low %v867_v49, %v868_v57 }
  0xc0   : > { %v750_v6 = vsel %vm693_vm6, %v736_v20, %v656_v26  ;;  %v756_v51 = vsel %vm693_vm6, %v742_v38, %v662_v28 }
  0xc1   : > { %v870_v33 = vcombine.low %v701_v3, %v750_v6  ;;  %v1154_v34 = vcombine.high %v1143_v29, %v1150_v50  ;;  %v1153_v35 = vcombine.low %v1143_v29, %v1150_v50  ;;  %v1196_v29 = vrot.slane %v1186_v1, %v2666_v8 }
  0xc3   : > { %v877_v40 = vrot.slane %v870_v33, %v2666_v8  ;;  %v613_v41 = vpop.permute.xlu1 %612  ;;  %v630_v44 = vpop.permute.xlu0 %629  ;;  %v1182_v45 = vrot.slane %v1154_v34, %v2666_v8  ;;  %v3007_v24 = vrot.slane %v1153_v35, %v2666_v8 }
  0xc4   : > { %v707_v37 = vsel %vm693_vm6, %v692_v32, %v613_v41  ;;  %v722_v9 = vsel %vm663_vm4, %v2897_v23, %v630_v44 }
  0xc5   : > { %v885_v52 = vcombine.low %v877_v40, %v884_v17  ;;  %v886_v53 = vcombine.high %v877_v40, %v884_v17  ;;  %v969_v54 = vcombine.low %v707_v37, %v756_v51  ;;  %v1185_v22 = vcombine.low %v1168_v39, %v1182_v45 }
  0xc6   : > { %v1183_v55 = vcombine.low %v3013_v47, %v3007_v24  ;;  %v1184_v56 = vcombine.high %v3013_v47, %v3007_v24  ;;  %v2584_v47 = vld [vmem:[%s3251_s2 + $0x88] sm:$0xff]  }
  0xc7   : > { %v893_v43 = vrot.slane %v885_v52, %v2666_v8  ;;  %v3025_v58 = vrot.slane %v969_v54, %v2666_v8  ;;  %v566_v59 = vpop.permute.xlu1 %565  ;;  %v644_v60 = vpop.permute.xlu0 %643  ;;  %1503 = vmatprep.mubr.bf16.mxu0 %v1185_v22  ;;  %v900_v2 = vrot.slane %v886_v53, %v2666_v8 }
  0xc8   : > { %1504 = vmatmul.mubr.bf16.vlgmr.msra.gmra.mrb[0].mxu0 %v1183_v55  ;;  %v673_v13 = vsel %vm663_vm4, %v2806_v36, %v566_v59  ;;  %v738_v26 = vsel %vm678_vm5, %v722_v9, %v644_v60 }
  0xc9   : > { %v1024_v62 = vunpack.i.h.s16 %v893_v43  ;;  %v2412_v63 = vpack.i.b16 %v893_v43, %v869_v11  ;;  %v985_v0 = vcombine.high %v3025_v58, %v3017_v46  ;;  %v901_v4 = vcombine.high %v893_v43, %v893_v43 }
  0xca   : > { %v902_v50 = vcombine.high %v900_v2, %v900_v2  ;;  %v1026_v6 = vunpack.i.h.s16 %v900_v2  ;;  %v984_v11 = vcombine.low %v3025_v58, %v3017_v46 }
  0xcb   : > { %v2413_v61 = vpack.i.b16 %v900_v2, %v1024_v62  ;;  %v594_v48 = vpop.permute.xlu1 %593  ;;  %v609_v5 = vpop.permute.xlu0 %608  ;;  %v3035_v15 = vrot.slane %v985_v0, %v2666_v8  ;;  %v1028_v21 = vunpack.i.h.s16 %v901_v4 }
  0xcc   : > { %v688_v10 = vsel %vm678_vm5, %v673_v13, %v594_v48  ;;  %v2414_v44 = vpack.i.b16 %v901_v4, %v1026_v6 }
  0xcd   : > { %v1187_v16 = vcombine.low %v2412_v63, %v2413_v61  ;;  %v1001_v20 = vcombine.high %v3035_v15, %v3035_v15  ;;  %v703_v31 = vsel %vm693_vm6, %v688_v10, %v609_v5  ;;  %v2415_v39 = vpack.i.b16 %v902_v50, %v1028_v21 }
  0xce   : > { %v992_v61 = vrot.slane %v984_v11, %v2666_v8 }
  0xcf   : > { %v568_v28 = vpop.permute.xlu1 %567  ;;  %v658_v23 = vpop.permute.xlu0 %657  ;;  %v1203_v36 = vrot.slane %v1187_v16, %v2666_v8  ;;  %v1050_v3 = vunpack.i.l.s16 %v1001_v20  ;;  %v1188_v52 = vcombine.low %v2414_v44, %v2415_v39 }
  0xd0   : > { %v752_v42 = vsel %vm693_vm6, %v738_v26, %v658_v23  ;;  %v675_v55 = vsel %vm663_vm4, %v2867_v14, %v568_v28 }
  0xd1   : > { %v903_v19 = vcombine.low %v703_v31, %v752_v42  ;;  %v1218_v17 = vcombine.low %v1196_v29, %v1203_v36  ;;  %v1219_v33 = vcombine.high %v1196_v29, %v1203_v36  ;;  %v1326_v34 = vrot.slane %v1050_v3, %v2666_v8 }
  0xd3   : > { %v910_v35 = vrot.slane %v903_v19, %v2666_v8  ;;  %v632_v30 = vpop.permute.xlu1 %631  ;;  %v646_v38 = vpop.permute.xlu0 %645  ;;  %v1327_v32 = vcombine.high %v1326_v34, %v1326_v34  ;;  %v3053_v37 = vrot.slane %v1326_v34, %v2666_v8  ;;  %v1235_v0 = vrot.slane %v1219_v33, %v2666_v8 }
  0xd4   : > { %v725_v53 = vsel %vm663_vm4, %v2855_v7, %v632_v30  ;;  %v1210_v7 = vrot.slane %v1188_v52, %v2666_v8  ;;  %v1228_v46 = vrot.slane %v1218_v17, %v2666_v8 }
  0xd5   : > { %v918_v40 = vcombine.low %v910_v35, %v917_v18  ;;  %v919_v41 = vcombine.high %v910_v35, %v917_v18  ;;  %v1341_v45 = vrot.slane %v1327_v32, %v2666_v8  ;;  %v740_v57 = vsel %vm678_vm5, %v725_v53, %v646_v38 }
  0xd6   : > { %v1000_v18 = vcombine.high %v992_v61, %v992_v61 }
  0xd7   : > { %v926_v24 = vrot.slane %v918_v40, %v2666_v8  ;;  %v933_v49 = vrot.slane %v919_v41, %v2666_v8  ;;  %v596_v51 = vpop.permute.xlu1 %595  ;;  %1527 = vmatprep.mubr.bf16.mxu1 %v1341_v45  ;;  %v660_v22 = vpop.permute.xlu0 %659 }
  0xd8   : > { %1528 = vmatmul.mubr.bf16.vlgmr.msra.gmra.mrb[0].mxu1 %v3053_v37  ;;  %v690_v43 = vsel %vm678_vm5, %v675_v55, %v596_v51  ;;  %v754_v2 = vsel %vm693_vm6, %v740_v57, %v660_v22  ;;  %v1256_v3 = vcombine.low %v3035_v15, %v1000_v18 }
  0xd9   : > { %v1189_v54 = vcombine.low %v926_v24, %v933_v49  ;;  %2500 = vmatprep.mubr.msk.bf16.mxu1 %vm663_vm4, %v1184_v56  ;;  %2497 = vmatpush3.bf16.msra.mxu1 %v2922_v27  ;;  %v950_v27 = vrot.slane %v620_v25, %v2666_v8  ;;  %v935_v16 = vcombine.high %v933_v49, %v933_v49 }
  0xda   : > { %2498 = vmatprep.subr.bf16.mxu1 %v2584_v47  ;;  %v934_v28 = vcombine.high %v926_v24, %v926_v24  ;;  %v1284_v30 = vrot.slane %v1256_v3, %v2666_v8 }
  0xdb   : > { %v611_v59 = vpop.permute.xlu1 %610  ;;  %v1217_v60 = vrot.slane %v1189_v54, %v2666_v8 }
  0xdc   : > { %v705_v14 = vsel %vm693_vm6, %v690_v43, %v611_v59 }
  0xdd   : > { %v936_v56 = vcombine.low %v705_v14, %v754_v2  ;;  %v1220_v62 = vcombine.low %v1210_v7, %v1217_v60  ;;  %v1221_v63 = vcombine.high %v1210_v7, %v1217_v60  ;;  %2499 = vmatpush3.bf16.msra.mxu1 %v2584_v47  ;;  %v1342_v47 = vcombine.high %v3053_v37, %v3053_v37  ;;  %v3101_v37 = vld [vmem:[%s3252_s3] ss:$0 sm:$0xff] }
  0xdf   : > { %v943_v1 = vrot.slane %v936_v56, %v2666_v8  ;;  %v1249_v4 = vrot.slane %v1221_v63, %v2666_v8  ;;  %v1242_v58 = vrot.slane %v1220_v62, %v2666_v8 }
  0xe1   : > { %v951_v48 = vcombine.low %v943_v1, %v950_v27  ;;  %v952_v5 = vcombine.high %v943_v1, %v950_v27  ;;  %v1252_v12 = vcombine.low %v1235_v0, %v1249_v4  ;;  %v1251_v25 = vcombine.high %v1228_v46, %v1242_v58 }
  0xe2   : > { %v1250_v9 = vcombine.low %v1228_v46, %v1242_v58 }
  0xe3   : > { %v959_v13 = vrot.slane %v951_v48, %v2666_v8  ;;  %v966_v10 = vrot.slane %v952_v5, %v2666_v8  ;;  %1511 = vmatprep.mubr.bf16.mxu0 %v1252_v12  ;;  %2501 = vmatmul.mubr.msk.bf16.vlgmr.msra.gmra.mrb[4].mxu1 %vm663_vm4, %v1251_v25 }
  0xe4   : > { %1512 = vmatmul.mubr.bf16.gmra.mrb[4].mxu0 %v1250_v9 }
  0xe5   : > { %v967_v20 = vcombine.high %v959_v13, %v959_v13  ;;  %v1038_v21 = vunpack.i.h.s16 %v959_v13  ;;  %v1040_v26 = vunpack.i.h.s16 %v966_v10  ;;  %v2416_v23 = vpack.i.b16 %v959_v13, %v935_v16 }
  0xe6   : > { %v968_v29 = vcombine.high %v966_v10, %v966_v10 }
  0xe7   : > { %v1042_v36 = vunpack.i.h.s16 %v967_v20  ;;  %v2417_v50 = vpack.i.b16 %v966_v10, %v1038_v21  ;;  %v2418_v31 = vpack.i.b16 %v967_v20, %v1040_v26  ;;  %v1253_v42 = vcombine.low %v934_v28, %v2416_v23 }
  0xe9   : > { %v2419_v6 = vpack.i.b16 %v968_v29, %v1042_v36  ;;  %v1254_v19 = vcombine.low %v2417_v50, %v2418_v31  ;;  %v1263_v33 = vrot.slane %v1253_v42, %v2666_v8 }
  0xeb   : > { %v1255_v17 = vcombine.low %v2419_v6, %v992_v61  ;;  %v1270_v34 = vrot.slane %v1254_v19, %v2666_v8 }
  0xed   : > { %v1277_v35 = vrot.slane %v1255_v17, %v2666_v8  ;;  %v1286_v38 = vcombine.high %v1263_v33, %v1270_v34  ;;  %v1285_v39 = vcombine.low %v1263_v33, %v1270_v34 }
  0xef   : > { %v1288_v32 = vcombine.high %v1277_v35, %v1284_v30  ;;  %v1287_v40 = vcombine.low %v1277_v35, %v1284_v30  ;;  %v1302_v41 = vrot.slane %v1286_v38, %v2666_v8  ;;  %v1295_v15 = vrot.slane %v1285_v39, %v2666_v8 }
  0xf1   : > { %v1316_v44 = vrot.slane %v1288_v32, %v2666_v8  ;;  %v1309_v45 = vrot.slane %v1287_v40, %v2666_v8 }
  0xf3   : > { %v1319_v24 = vcombine.low %v1302_v41, %v1316_v44  ;;  %v1318_v49 = vcombine.high %v1295_v15, %v1309_v45  ;;  %v1317_v51 = vcombine.low %v1295_v15, %v1309_v45 }
  0xf5   : > { %1519 = vmatprep.mubr.bf16.mxu0 %v1319_v24  ;;  %2504 = vmatprep.mubr.msk.bf16.mxu1 %vm663_vm4, %v1318_v49 }
  0xf6   : > { %1520 = vmatmul.mubr.bf16.gmra.mrb[8].mxu0 %v1317_v51  ;;  %2505 = vmatmul.mubr.msk.bf16.gmra.mrb[8].mxu1 %vm663_vm4, %v1342_v47 }
 0x19b   : > { %v2466_v52 = vpop.f32.mrb[0].mxu0 }
 0x19c   : > { %v2467_v53 = vpop.f32.mrb[1].mxu0 }
 0x19d   : > { %v2468_v54 = vadd.f32 %v2467_v53, %v2466_v52  ;;  %v2469_v22 = vpop.f32.mrb[2].mxu0 }
 0x19e   : > { %v2470_v55 = vpop.f32.mrb[3].mxu0 }
 0x19f   : > { %v2471_v57 = vadd.f32 %v2470_v55, %v2469_v22  ;;  %v1506_v14 = vadd.f32 %v2468_v54, %v3101_v37 }
 0x1a1   : > { %v1509_v1 = vadd.f32 %v2471_v57, %v3101_v37 }
 0x1ab   : > { %v2484_v43 = vpop.f32.mrb[0].mxu1 }
 0x1ac   : > { %v2485_v59 = vpop.f32.mrb[1].mxu1 }
 0x1ad   : > { %v2486_v7 = vadd.f32 %v2485_v59, %v2484_v43  ;;  %v2487_v60 = vpop.f32.mrb[2].mxu1 }
 0x1ae   : > { %v2488_v11 = vpop.f32.mrb[3].mxu1 }
 0x1af   : > { %v3116_v33 = vadd.f32 %v2486_v7, %v3101_v37 }
 0x1b6   : > { %v2502_v2 = vpop.f32.mrb[4].mxu1 }
 0x1b7   : > { %v2472_v27 = vpop.f32.mrb[4].mxu0  ;;  %v1569_v56 = vpop.f32.mrb[5].mxu1 }
 0x1b8   : > { %v1570_v62 = vadd.f32 %v1569_v56, %v1506_v14  ;;  %v2473_v63 = vpop.f32.mrb[5].mxu0  ;;  %v2503_v0 = vpop.f32.mrb[6].mxu1 }
 0x1b9   : > { %v2474_v4 = vadd.f32 %v2473_v63, %v2472_v27  ;;  %v2475_v46 = vpop.f32.mrb[6].mxu0  ;;  %v1572_v58 = vpop.f32.mrb[7].mxu1 }
 0x1ba   : > { %v1599_v61 = vmax.f32 %v1570_v62, 0.0  ;;  %v1573_v48 = vadd.f32 %v1572_v58, %v1509_v1  ;;  %v2476_v5 = vpop.f32.mrb[7].mxu0 }
 0x1bb   : > { %v1514_v12 = vadd.f32 %v2474_v4, %v3101_v37  ;;  %v2477_v25 = vadd.f32 %v2476_v5, %v2475_v46 }
 0x1bc   : > { %v1613_v9 = vcombine.high %v1599_v61, %v1599_v61  ;;  %v1620_v13 = vrot.slane %v1599_v61, %v2666_v8  ;;  %v1600_v10 = vmax.f32 %v1573_v48, 0.0 }
 0x1bd   : > { %v1578_v16 = vadd.f32 %v2502_v2, %v1514_v12  ;;  %v1517_v18 = vadd.f32 %v2477_v25, %v3101_v37 }
 0x1be   : > { %v1627_v20 = vrot.slane %v1613_v9, %v2666_v8  ;;  %v1628_v21 = vcombine.high %v1620_v13, %v1620_v13  ;;  %v1662_v26 = vcombine.high %v1600_v10, %v1600_v10  ;;  %v1636_v28 = vrot.slane %v1620_v13, %v2666_v8 }
 0x1bf   : > { %v1601_v23 = vmax.f32 %v1578_v16, 0.0  ;;  %v1669_v29 = vrot.slane %v1600_v10, %v2666_v8  ;;  %v1581_v36 = vadd.f32 %v2503_v0, %v1517_v18 }
 0x1c0   : > { %v1629_v50 = vcombine.high %v1627_v20, %v1627_v20  ;;  %v1643_v31 = vrot.slane %v1627_v20, %v2666_v8  ;;  %v1650_v42 = vrot.slane %v1628_v21, %v2666_v8  ;;  %v1676_v3 = vrot.slane %v1662_v26, %v2666_v8 }
 0x1c1   : > { %v1711_v6 = vcombine.high %v1601_v23, %v1601_v23  ;;  %v1718_v19 = vrot.slane %v1601_v23, %v2666_v8  ;;  %v1677_v17 = vcombine.high %v1669_v29, %v1669_v29  ;;  %v1685_v41 = vrot.slane %v1669_v29, %v2666_v8 }
 0x1c2   : > { %v1657_v34 = vrot.slane %v1629_v50, %v2666_v8  ;;  %v1659_v35 = vcombine.high %v1643_v31, %v1643_v31  ;;  %v1921_v30 = vcombine.low %v1636_v28, %v1650_v42  ;;  %v2442_v38 = vcombine.high %v1636_v28, %v1650_v42  ;;  %v2274_v50 = vld [vmem:[%s3141_s5] sm:$0xf] }
 0x1c3   : > { %v1725_v39 = vrot.slane %v1711_v6, %v2666_v8  ;;  %v1726_v32 = vcombine.high %v1718_v19, %v1718_v19  ;;  %v1734_v40 = vrot.slane %v1718_v19, %v2666_v8  ;;  %v1678_v24 = vcombine.high %v1676_v3, %v1676_v3 }
 0x1c4   : > { %v1923_v44 = vcombine.low %v1643_v31, %v1657_v34  ;;  %v1930_v15 = vrot.slane %v1921_v30, %v2666_v8  ;;  %v1937_v45 = vrot.slane %v2442_v38, %v2666_v8  ;;  %v1951_v49 = vrot.slane %v1659_v35, %v2666_v8 }
 0x1c5   : > { %v1727_v51 = vcombine.high %v1725_v39, %v1725_v39  ;;  %v1741_v47 = vrot.slane %v1725_v39, %v2666_v8  ;;  %v1748_v52 = vrot.slane %v1726_v32, %v2666_v8  ;;  %v1661_v22 = vcombine.high %v1657_v34, %v1657_v34 }
 0x1c6   : > { %v1944_v53 = vrot.slane %v1923_v44, %v2666_v8  ;;  %v1952_v54 = vcombine.low %v1930_v15, %v1937_v45  ;;  %v1699_v55 = vrot.slane %v1677_v17, %v2666_v8  ;;  %v1692_v2 = vrot.slane %v1676_v3, %v2666_v8 }
 0x1c7   : > { %v1755_v57 = vrot.slane %v1727_v51, %v2666_v8  ;;  %v1757_v43 = vcombine.high %v1741_v47, %v1741_v47  ;;  %v2018_v59 = vcombine.low %v1734_v40, %v1748_v52  ;;  %v2444_v7 = vcombine.high %v1734_v40, %v1748_v52 }
 0x1c8   : > { %v1953_v60 = vcombine.low %v1944_v53, %v1951_v49  ;;  %v1960_v11 = vrot.slane %v1952_v54, %v2666_v8  ;;  %v1706_v14 = vrot.slane %v1678_v24, %v2666_v8  ;;  %v2047_v62 = vrot.slane %v1741_v47, %v2666_v8 }
 0x1c9   : > { %v2033_v27 = vrot.slane %v2018_v59, %v2666_v8  ;;  %v2040_v56 = vrot.slane %v2444_v7, %v2666_v8  ;;  %v1707_v63 = vcombine.high %v1685_v41, %v1685_v41  ;;  %v2478_v0 = vpop.f32.mrb[8].mxu0  ;;  %v2506_v1 = vpop.f32.mrb[8].mxu1  ;;  %v2065_v46 = vcombine.low %v1755_v57, %v1757_v43 }
 0x1ca   : > { %v1967_v4 = vrot.slane %v1953_v60, %v2666_v8  ;;  %v1709_v58 = vcombine.high %v1699_v55, %v1699_v55  ;;  %v1969_v61 = vcombine.low %v1661_v22, %v1685_v41  ;;  %v2479_v48 = vpop.f32.mrb[9].mxu0  ;;  %v3144_v5 = vpop.f32.mrb[9].mxu1  ;;  %v2443_v9 = vcombine.high %v1692_v2, %v1706_v14  ;;  %v2277_v60 = vld [vmem:[%s3141_s5 + $0x4] sm:$0xf] }
 0x1cb   : > { %v2049_v12 = vcombine.low %v2040_v56, %v2047_v62  ;;  %v1970_v25 = vcombine.low %v1699_v55, %v1707_v63  ;;  %v1602_v13 = vmax.f32 %v1581_v36, 0.0  ;;  %v2481_v10 = vpop.f32.mrb[10].mxu0  ;;  %v2507_v16 = vpop.f32.mrb[10].mxu1  ;;  %v1999_v26 = vrot.slane %v1706_v14, %v2666_v8  ;;  %v2280_v55 = vld [vmem:[%s3141_s5 + $0x8] sm:$0xf] }
 0x1cc   : > { %v1968_v18 = vcombine.low %v1960_v11, %v1967_v4  ;;  %v1971_v20 = vcombine.low %v1709_v58, %v1692_v2  ;;  %v1978_v21 = vrot.slane %v1969_v61, %v2666_v8  ;;  %v2482_v28 = vpop.f32.mrb[11].mxu0  ;;  %v1588_v23 = vpop.f32.mrb[11].mxu1  ;;  %v2026_v36 = vrot.slane %v2443_v9, %v2666_v8 }
 0x1cd   : > { %v1985_v31 = vrot.slane %v1970_v25, %v2666_v8  ;;  %v1759_v42 = vcombine.high %v1755_v57, %v1755_v57  ;;  %v1760_v3 = vcombine.high %v1602_v13, %v1602_v13  ;;  %v2063_v19 = vrot.slane %v2049_v12, %v2666_v8 }
 0x1ce   : > { %v2264_v6 = vpack.c.bf16 %v1968_v18, %v1968_v18  ;;  %v1992_v17 = vrot.slane %v1971_v20, %v2666_v8  ;;  %v1767_v34 = vrot.slane %v1602_v13, %v2666_v8  ;;  %v2048_v30 = vcombine.low %v2026_v36, %v2033_v27  ;;  %v2283_v18 = vld [vmem:[%s3141_s5 + $0xc] sm:$0xf] }
 0x1cf   : > { %v2000_v35 = vcombine.low %v1978_v21, %v1985_v31  ;;  %v1774_v38 = vrot.slane %v1760_v3, %v2666_v8  ;;  %v3162_v39 = vadd.f32 %v2506_v1, %v3116_v33  ;;  %v2074_v53 = vrot.slane %v2065_v46, %v2666_v8 }
 0x1d0   : > { %v2275_v32 = vsel %vm3150_vm9, %v2264_v6, %v2274_v50  ;;  %v2001_v40 = vcombine.low %v1992_v17, %v1999_v26  ;;  %v1775_v41 = vcombine.high %v1767_v34, %v1767_v34  ;;  %v1783_v44 = vrot.slane %v1767_v34, %v2666_v8 }
 0x1d1   : > { %2276 = vst [vmem:[%s3141_s5] sm:$0xf] %v2275_v32  ;;  %v2008_v15 = vrot.slane %v2000_v35, %v2666_v8  ;;  %v2056_v45 = vrot.slane %v2048_v30, %v2666_v8  ;;  %v1776_v52 = vcombine.high %v1774_v38, %v1774_v38  ;;  %v2480_v54 = vadd.f32 %v2479_v48, %v2478_v0 }
 0x1d2   : > { %v2015_v24 = vrot.slane %v2001_v40, %v2666_v8  ;;  %v1797_v49 = vrot.slane %v1775_v41, %v2666_v8  ;;  %v1805_v33 = vcombine.high %v1783_v44, %v1783_v44  ;;  %v2066_v51 = vcombine.low %v1759_v42, %v1783_v44 }
 0x1d3   : > { %v2064_v47 = vcombine.low %v2056_v45, %v2063_v19  ;;  %v1804_v62 = vrot.slane %v1776_v52, %v2666_v8  ;;  %v1522_v4 = vadd.f32 %v2480_v54, %v3101_v37  ;;  %v1790_v46 = vrot.slane %v1774_v38, %v2666_v8 }
 0x1d4   : > { %v2016_v22 = vcombine.low %v2008_v15, %v2015_v24  ;;  %v1807_v57 = vcombine.high %v1797_v49, %v1797_v49  ;;  %v2067_v43 = vcombine.low %v1797_v49, %v1805_v33  ;;  %v2081_v59 = vrot.slane %v2066_v51, %v2666_v8 }
 0x1d5   : > { %v2266_v7 = vpack.c.bf16 %v2064_v47, %v2064_v47  ;;  %v2483_v58 = vadd.f32 %v2482_v28, %v2481_v10  ;;  %v1586_v48 = vadd.f32 %v3144_v5, %v1522_v4  ;;  %v2113_v12 = vcombine.low %v1790_v46, %v1804_v62 }
 0x1d6   : > { %v2265_v11 = vpack.c.bf16 %v2016_v22, %v2016_v22  ;;  %v2088_v2 = vrot.slane %v2067_v43, %v2666_v8  ;;  %v2095_v14 = vrot.slane %v1807_v57, %v2666_v8  ;;  %v2096_v27 = vcombine.low %v2074_v53, %v2081_v59 }
 0x1d7   : > { %v2281_v56 = vsel %vm3150_vm9, %v2266_v7, %v2280_v55  ;;  %v2445_v25 = vcombine.high %v1790_v46, %v1804_v62  ;;  %v1525_v9 = vadd.f32 %v2483_v58, %v3101_v37  ;;  %v1603_v16 = vmax.f32 %v1586_v48, 0.0  ;;  %v2286_v48 = vld [vmem:[%s3141_s5 + $0x10] sm:$0xf] }
 0x1d8   : > { %v2278_v63 = vsel %vm3150_vm9, %v2265_v11, %v2277_v60  ;;  %2282 = vst [vmem:[%s3141_s5 + $0x8] sm:$0xf] %v2281_v56  ;;  %v2097_v0 = vcombine.low %v2088_v2, %v2095_v14  ;;  %v2104_v1 = vrot.slane %v2096_v27, %v2666_v8  ;;  %v2122_v31 = vrot.slane %v2113_v12, %v2666_v8 }
 0x1d9   : > { %2279 = vst [vmem:[%s3141_s5 + $0x4] sm:$0xf] %v2278_v63  ;;  %v1589_v20 = vadd.f32 %v1588_v23, %v1525_v9  ;;  %v1809_v26 = vcombine.high %v1603_v16, %v1603_v16  ;;  %v1816_v50 = vrot.slane %v1603_v16, %v2666_v8  ;;  %v2129_v10 = vrot.slane %v2445_v25, %v2666_v8 }
 0x1da   : > { %v2111_v61 = vrot.slane %v2097_v0, %v2666_v8  ;;  %v1605_v28 = vmax.f32 %v3162_v39, 0.0 }
 0x1db   : > { %v1604_v5 = vmax.f32 %v1589_v20, 0.0  ;;  %v1823_v37 = vrot.slane %v1809_v26, %v2666_v8  ;;  %v1824_v42 = vcombine.high %v1816_v50, %v1816_v50  ;;  %v1832_v3 = vrot.slane %v1816_v50, %v2666_v8 }
 0x1dc   : > { %v2112_v13 = vcombine.low %v2104_v1, %v2111_v61  ;;  %v2144_v30 = vcombine.low %v2122_v31, %v2129_v10  ;;  %v1913_v38 = vrot.slane %v1605_v28, %v2666_v8  ;;  %v2289_v31 = vld [vmem:[%s3141_s5 + $0x14] sm:$0xf]  ;;  %v2292_v28 = vld [vmem:[%s3141_s5 + $0x18] sm:$0xf] }
 0x1dd   : > { %v1858_v23 = vcombine.high %v1604_v5, %v1604_v5  ;;  %v1865_v6 = vrot.slane %v1604_v5, %v2666_v8  ;;  %v1825_v19 = vcombine.high %v1823_v37, %v1823_v37  ;;  %v1839_v17 = vrot.slane %v1823_v37, %v2666_v8 }
 0x1de   : > { %v2267_v21 = vpack.c.bf16 %v2112_v13, %v2112_v13  ;;  %v1846_v34 = vrot.slane %v1824_v42, %v2666_v8  ;;  %v1854_v35 = vcombine.high %v1832_v3, %v1832_v3  ;;  %v1920_v54 = vrot.slane %v1913_v38, %v2666_v8 }
 0x1df   : > { %v1872_v39 = vrot.slane %v1858_v23, %v2666_v8  ;;  %v1873_v32 = vcombine.high %v1865_v6, %v1865_v6  ;;  %v1853_v40 = vrot.slane %v1825_v19, %v2666_v8  ;;  %v1855_v41 = vcombine.high %v1839_v17, %v1839_v17 }
 0x1e0   : > { %v2284_v36 = vsel %vm3150_vm9, %v2267_v21, %v2283_v18  ;;  %v1856_v44 = vcombine.high %v1846_v34, %v1846_v34  ;;  %v2115_v15 = vcombine.low %v1832_v3, %v1846_v34  ;;  %v2143_v45 = vrot.slane %v1854_v35, %v2666_v8 }
 0x1e1   : > { %2285 = vst [vmem:[%s3141_s5 + $0xc] sm:$0xf] %v2284_v36  ;;  %v1874_v24 = vcombine.high %v1872_v39, %v1872_v39  ;;  %v1881_v49 = vrot.slane %v1865_v6, %v2666_v8  ;;  %v1895_v33 = vrot.slane %v1873_v32, %v2666_v8  ;;  %v2162_v52 = vcombine.low %v1853_v40, %v1855_v41 }
 0x1e2   : > { %v2136_v51 = vrot.slane %v2115_v15, %v2666_v8  ;;  %v2161_v47 = vcombine.low %v1856_v44, %v1839_v17  ;;  %v1857_v53 = vcombine.high %v1853_v40, %v1853_v40  ;;  %v1888_v22 = vrot.slane %v1872_v39, %v2666_v8 }
 0x1e3   : > { %v1902_v55 = vrot.slane %v1874_v24, %v2666_v8  ;;  %v2446_v57 = vcombine.high %v1881_v49, %v1895_v33  ;;  %v2177_v7 = vrot.slane %v2162_v52, %v2666_v8  ;;  %v2152_v11 = vrot.slane %v2144_v30, %v2666_v8 }
 0x1e4   : > { %v2145_v43 = vcombine.low %v2136_v51, %v2143_v45  ;;  %v2170_v59 = vrot.slane %v2161_v47, %v2666_v8  ;;  %v2163_v60 = vcombine.low %v1857_v53, %v1881_v49  ;;  %v2191_v63 = vrot.slane %v1895_v33, %v2666_v8 }
 0x1e5   : > { %v2210_v2 = vcombine.low %v1888_v22, %v1902_v55  ;;  %v2447_v14 = vcombine.high %v1888_v22, %v1902_v55  ;;  %v2239_v0 = vrot.slane %v1920_v54, %v2666_v8  ;;  %v2218_v1 = vrot.slane %v2446_v57, %v2666_v8 }
 0x1e6   : > { %v2159_v27 = vrot.slane %v2145_v43, %v2666_v8  ;;  %v2192_v56 = vcombine.low %v2170_v59, %v2177_v7  ;;  %v2184_v62 = vrot.slane %v2163_v60, %v2666_v8 }
 0x1e7   : > { %v2225_v4 = vrot.slane %v2210_v2, %v2666_v8  ;;  %v2232_v46 = vrot.slane %v2447_v14, %v2666_v8 }
 0x1e8   : > { %v2160_v58 = vcombine.low %v2152_v11, %v2159_v27  ;;  %v2193_v61 = vcombine.low %v2184_v62, %v2191_v63  ;;  %v2200_v9 = vrot.slane %v2192_v56, %v2666_v8 }
 0x1e9   : > { %v2240_v12 = vcombine.low %v2218_v1, %v2225_v4  ;;  %v2241_v25 = vcombine.low %v2232_v46, %v2239_v0 }
 0x1ea   : > { %v2268_v13 = vpack.c.bf16 %v2160_v58, %v2160_v58  ;;  %v2207_v16 = vrot.slane %v2193_v61, %v2666_v8 }
 0x1eb   : > { %v2248_v18 = vrot.slane %v2240_v12, %v2666_v8  ;;  %v2255_v20 = vrot.slane %v2241_v25, %v2666_v8 }
 0x1ec   : > { %v2287_v21 = vsel %vm3150_vm9, %v2268_v13, %v2286_v48  ;;  %v2208_v26 = vcombine.low %v2200_v9, %v2207_v16 }
 0x1ed   : > { %2288 = vst [vmem:[%s3141_s5 + $0x10] sm:$0xf] %v2287_v21  ;;  %v2256_v50 = vcombine.low %v2248_v18, %v2255_v20 }
 0x1ee   : > { %v2269_v10 = vpack.c.bf16 %v2208_v26, %v2208_v26 }
 0x1ef   : > { %v2270_v5 = vpack.c.bf16 %v2256_v50, %v2256_v50 }
 0x1f0   : > { %v2290_v36 = vsel %vm3150_vm9, %v2269_v10, %v2289_v31 }
 0x1f1   : > { %2291 = vst [vmem:[%s3141_s5 + $0x14] sm:$0xf] %v2290_v36  ;;  %v2293_v37 = vsel %vm3150_vm9, %v2270_v5, %v2292_v28 }
 0x1f2   : > { %2294 = vst [vmem:[%s3141_s5 + $0x18] sm:$0xf] %v2293_v37 }
 0x1f3 PF: > { %s14_s17 = sadd.s32 1, %s2607_s17   ;;  %s3258_s15 = smov %s2603_s16 }
 0x1f4   : > { %p11_p5 = scmp.ge.s32.totalorder %s14_s17, 4   ;;  %s3259_s16 = smov %s3261_s18 }
 0x1f6   :  { %13 = sbr.rel (!%p11_p5) target bundleno = 2 (0x2), region = 69 }

</bundles_post_ra>
